<compile_context>
chip_gen: v6e
topology: v6e:2x2x1
jax: 0.10.0
libtpu: 0.0.40
codegen_flags: <defaults>
</compile_context>

<pallas_src>
import functools
import numpy as np
import jax
import jax.numpy as jnp
from jax import lax
from jax.experimental import pallas as pl
from jax.experimental.pallas import tpu as pltpu


# ----------------------------------------------------------------------------
# Bilinear (align_corners=True) interpolation matrices, built on host (glue).
# ----------------------------------------------------------------------------
def interp_matrix(n_in: int, n_out: int) -> jnp.ndarray:
    """Row-stochastic (n_out, n_in) matrix s.t. y = M @ x does 1-D linear interp
    with align_corners=True (PyTorch semantics)."""
    m = np.zeros((n_out, n_in), dtype=np.float32)
    if n_out == 1:
        m[0, 0] = 1.0
        return jnp.asarray(m)
    src = np.arange(n_out, dtype=np.float64) * (n_in - 1) / (n_out - 1)
    i0 = np.clip(np.floor(src).astype(np.int64), 0, n_in - 1)
    i1 = np.minimum(i0 + 1, n_in - 1)
    frac = (src - i0).astype(np.float32)
    rows = np.arange(n_out)
    np.add.at(m, (rows, i0), 1.0 - frac)
    np.add.at(m, (rows, i1), frac)
    return jnp.asarray(m)


# ----------------------------------------------------------------------------
# Fused kernel: interp1 -> pad -> 3x3 conv (no bias) -> SiLU -> SiLU -> interp2
# One grid step handles all channels of one batch element.
# ----------------------------------------------------------------------------
def _fused_kernel(x_ref, wh1_ref, ww1t_ref, wh2_ref, ww2t_ref, w_ref,
                  o_ref, pad_ref):
    _, Cin, H, W = x_ref.shape
    H1 = wh1_ref.shape[0]
    W1 = ww1t_ref.shape[1]
    H2 = wh2_ref.shape[0]
    W2 = ww2t_ref.shape[1]
    Cout = o_ref.shape[1]
    f32 = jnp.float32

    x = x_ref[0].astype(f32)                                   # (Cin, H, W)

    # ---- bilinear interp #1:  Wh1 @ X_c @ Ww1^T  (Ww1 pre-transposed host-side) ----
    ww1t = ww1t_ref[...]                                       # (W, W1)
    wh1 = wh1_ref[...]                                         # (H1, H)
    xw = jnp.dot(x.reshape(Cin * H, W), ww1t,
                 preferred_element_type=f32).reshape(Cin, H, W1)
    x1 = [jnp.dot(wh1, xw[c], preferred_element_type=f32) for c in range(Cin)]

    # ---- zero pad (padding=1) into VMEM scratch: no HBM round trip ----
    pad_ref[...] = jnp.zeros_like(pad_ref)
    for c in range(Cin):
        pad_ref[c, 1:H1 + 1, 1:W1 + 1] = x1[c]

    # ---- 3x3 conv, stride 1, no bias: shifted-plane scalar FMAs on the VPU.
    #      W1 stays in the lane dim; weights are scalars read from SMEM. ----
    accs = [jnp.zeros((H1, W1), f32) for _ in range(Cout)]
    for ci in range(Cin):
        for k in range(9):                                     # k = dy*3 + dx
            dy, dx = k // 3, k % 3
            plane = pad_ref[ci, dy:dy + H1, dx:dx + W1]        # (H1, W1)
            for co in range(Cout):
                w_scalar = w_ref[(co * Cin + ci) * 9 + k]
                accs[co] = accs[co] + w_scalar * plane

    # ---- SiLU (Conv2dResBlock activation), dropout = identity, then SiLU (outer) ----
    y = [a * jax.nn.sigmoid(a) for a in accs]
    y = [v * jax.nn.sigmoid(v) for v in y]

    # ---- bilinear interp #2 ----
    ww2t = ww2t_ref[...]                                       # (W1, W2)
    wh2 = wh2_ref[...]                                         # (H2, H1)
    ystk = jnp.stack(y, axis=0)                                # (Cout, H1, W1)
    yw = jnp.dot(ystk.reshape(Cout * H1, W1), ww2t,
                 preferred_element_type=f32).reshape(Cout, H1, W2)
    out = jnp.stack([jnp.dot(wh2, yw[c], preferred_element_type=f32)
                     for c in range(Cout)], axis=0)            # (Cout, H2, W2)

    # lane-dense store: last dim H2*W2 is a large multiple of 128
    o_ref[0] = out.reshape(Cout, H2 * W2).astype(o_ref.dtype)


# ----------------------------------------------------------------------------
# Full forward (public layout NCHW, like PyTorch).
# ----------------------------------------------------------------------------
def interp2d_upsample_forward(x_nchw, conv_w_oihw, interp_size=(2, 2)):
    """x_nchw: (B, Cin, H, W) f32.  conv_w_oihw: (Cout, Cin, 3, 3) f32 (PyTorch layout)."""
    B, Cin, H, W = x_nchw.shape
    Cout = conv_w_oihw.shape[0]
    s0, s1 = interp_size
    H1, W1 = int(H * s0), int(W * s0)
    H2, W2 = int(H1 * s1), int(W1 * s1)

    wh1 = interp_matrix(H, H1)                    # (H1, H)
    ww1t = interp_matrix(W, W1).T                 # (W, W1)   pre-transposed on host
    wh2 = interp_matrix(H1, H2)                   # (H2, H1)
    ww2t = interp_matrix(W1, W2).T                # (W1, W2)
    w_flat = conv_w_oihw.reshape(Cout * Cin * 9).astype(jnp.float32)   # SMEM scalars

    out_flat = pl.pallas_call(
        _fused_kernel,
        out_shape=jax.ShapeDtypeStruct((B, Cout, H2 * W2), x_nchw.dtype),
        grid=(B,),
        in_specs=[
            pl.BlockSpec((1, Cin, H, W), lambda b: (b, 0, 0, 0)),
            pl.BlockSpec((H1, H), lambda b: (0, 0)),
            pl.BlockSpec((W, W1), lambda b: (0, 0)),
            pl.BlockSpec((H2, H1), lambda b: (0, 0)),
            pl.BlockSpec((W1, W2), lambda b: (0, 0)),
            pl.BlockSpec(memory_space=pltpu.MemorySpace.SMEM),      # conv weights
        ],
        out_specs=pl.BlockSpec((1, Cout, H2 * W2), lambda b: (b, 0, 0)),
        scratch_shapes=[pltpu.VMEM((Cin, H1 + 2, W1 + 2), jnp.float32)],
        compiler_params=pltpu.CompilerParams(
            dimension_semantics=("parallel",),
            vmem_limit_bytes=32 * 1024 * 1024,
        ),
    )(x_nchw, wh1, ww1t, wh2, ww2t, w_flat)

    return out_flat.reshape(B, Cout, H2, W2)


# ----------------------------------------------------------------------------
# Pure-JAX reference (for sanity check).
# ----------------------------------------------------------------------------
def reference_forward(x_nchw, conv_w_oihw, interp_size=(2, 2)):
    B, Cin, H, W = x_nchw.shape
    s0, s1 = interp_size

    def interp(x, Ho, Wo):
        wh = interp_matrix(x.shape[2], Ho)
        ww = interp_matrix(x.shape[3], Wo)
        return jnp.einsum("oh,bchw,pw->bcop", wh, x, ww)

    x1 = interp(x_nchw, int(H * s0), int(W * s0))
    y = lax.conv_general_dilated(
        x1, conv_w_oihw, window_strides=(1, 1), padding="SAME",
        dimension_numbers=("NCHW", "OIHW", "NCHW"))
    y = y * jax.nn.sigmoid(y)
    y = y * jax.nn.sigmoid(y)
    return interp(y, int(y.shape[2] * s1), int(y.shape[3] * s1))


if __name__ == "__main__":
    key = jax.random.PRNGKey(0)
    kx, kw = jax.random.split(key)

    B, Cin, Cout, H, W = 2, 4, 4, 16, 16
    interp_size = (2, 2)

    x = jax.random.normal(kx, (B, Cin, H, W), dtype=jnp.float32)
    # Conv2d 3x3, bias=False weight: (Cout, Cin, 3, 3), PyTorch layout.
    conv_w = 0.1 * jax.random.normal(kw, (Cout, Cin, 3, 3), dtype=jnp.float32)

    fwd = jax.jit(functools.partial(interp2d_upsample_forward, interp_size=interp_size))
    out = jax.block_until_ready(fwd(x, conv_w))

    ref = jax.block_until_ready(reference_forward(x, conv_w, interp_size))
    assert out.shape == (B, Cout, H * interp_size[0] * interp_size[1],
                         W * interp_size[0] * interp_size[1]), out.shape
    err = float(jnp.max(jnp.abs(out - ref)))
    assert jnp.allclose(out, ref, atol=1e-4, rtol=1e-4), err

    print("KERNEL_OK")
</pallas_src>

<mosaic_0001>
module attributes {stable_mosaic.version = 11 : i64} {
  func.func @_fused_kernel(%arg0: i32, %arg1: memref<1x4x16x16xf32, #tpu.memory_space<vmem>>, %arg2: memref<32x16xf32, #tpu.memory_space<vmem>>, %arg3: memref<16x32xf32, #tpu.memory_space<vmem>>, %arg4: memref<64x32xf32, #tpu.memory_space<vmem>>, %arg5: memref<32x64xf32, #tpu.memory_space<vmem>>, %arg6: memref<144xf32, #tpu.memory_space<smem>>, %arg7: memref<1x4x4096xf32, #tpu.memory_space<vmem>>, %arg8: memref<4x34x34xf32, #tpu.memory_space<vmem>>) attributes {dimension_semantics = [#tpu.dimension_semantics<parallel>], iteration_bounds = array<i64: 2>, scalar_prefetch = 0 : i64, scratch_operands = 1 : i64, tpu.core_type = #tpu.core_type<tc>, window_params = [{transform_indices = @transform_0, window_bounds = array<i64: 1, 4, 16, 16>}, {pipeline_mode = #tpu.pipeline_mode<synchronous>, transform_indices = @transform_1, window_bounds = array<i64: 32, 16>}, {pipeline_mode = #tpu.pipeline_mode<synchronous>, transform_indices = @transform_2, window_bounds = array<i64: 16, 32>}, {pipeline_mode = #tpu.pipeline_mode<synchronous>, transform_indices = @transform_3, window_bounds = array<i64: 64, 32>}, {pipeline_mode = #tpu.pipeline_mode<synchronous>, transform_indices = @transform_4, window_bounds = array<i64: 32, 64>}, {transform_indices = @transform_5, window_bounds = array<i64: 144>}, {transform_indices = @transform_6, window_bounds = array<i64: 1, 4, 4096>}]} {
    %c0 = arith.constant 0 : index
    %c0_0 = arith.constant 0 : index
    %c0_1 = arith.constant 0 : index
    %c0_2 = arith.constant 0 : index
    %0 = vector.load %arg1[%c0, %c0_0, %c0_1, %c0_2] : memref<1x4x16x16xf32, #tpu.memory_space<vmem>>, vector<1x4x16x16xf32>
    %1 = vector.shape_cast %0 : vector<1x4x16x16xf32> to vector<4x16x16xf32>
    %c0_3 = arith.constant 0 : index
    %c0_4 = arith.constant 0 : index
    %2 = vector.load %arg3[%c0_3, %c0_4] : memref<16x32xf32, #tpu.memory_space<vmem>>, vector<16x32xf32>
    %c0_5 = arith.constant 0 : index
    %c0_6 = arith.constant 0 : index
    %3 = vector.load %arg2[%c0_5, %c0_6] : memref<32x16xf32, #tpu.memory_space<vmem>>, vector<32x16xf32>
    %4 = vector.shape_cast %1 : vector<4x16x16xf32> to vector<64x16xf32>
    %cst = arith.constant dense<0.000000e+00> : vector<64x32xf32>
    %5 = tpu.matmul %4, %2, %cst {dimension_numbers = #tpu.dot_dimension_numbers<[1], [0], [0], [1], [0, 0, 1, 1], [], []>} : vector<64x16xf32>, vector<16x32xf32>, vector<64x32xf32> -> vector<64x32xf32>
    %6 = vector.shape_cast %5 : vector<64x32xf32> to vector<4x16x32xf32>
    %7 = vector.extract_strided_slice %6 {offsets = [0, 0, 0], sizes = [1, 16, 32], strides = [1, 1, 1]} : vector<4x16x32xf32> to vector<1x16x32xf32>
    %8 = vector.shape_cast %7 : vector<1x16x32xf32> to vector<16x32xf32>
    %cst_7 = arith.constant dense<0.000000e+00> : vector<32x32xf32>
    %9 = tpu.matmul %3, %8, %cst_7 {dimension_numbers = #tpu.dot_dimension_numbers<[1], [0], [0], [1], [0, 0, 1, 1], [], []>} : vector<32x16xf32>, vector<16x32xf32>, vector<32x32xf32> -> vector<32x32xf32>
    %10 = vector.extract_strided_slice %6 {offsets = [1, 0, 0], sizes = [1, 16, 32], strides = [1, 1, 1]} : vector<4x16x32xf32> to vector<1x16x32xf32>
    %11 = vector.shape_cast %10 : vector<1x16x32xf32> to vector<16x32xf32>
    %cst_8 = arith.constant dense<0.000000e+00> : vector<32x32xf32>
    %12 = tpu.matmul %3, %11, %cst_8 {dimension_numbers = #tpu.dot_dimension_numbers<[1], [0], [0], [1], [0, 0, 1, 1], [], []>} : vector<32x16xf32>, vector<16x32xf32>, vector<32x32xf32> -> vector<32x32xf32>
    %13 = vector.extract_strided_slice %6 {offsets = [2, 0, 0], sizes = [1, 16, 32], strides = [1, 1, 1]} : vector<4x16x32xf32> to vector<1x16x32xf32>
    %14 = vector.shape_cast %13 : vector<1x16x32xf32> to vector<16x32xf32>
    %cst_9 = arith.constant dense<0.000000e+00> : vector<32x32xf32>
    %15 = tpu.matmul %3, %14, %cst_9 {dimension_numbers = #tpu.dot_dimension_numbers<[1], [0], [0], [1], [0, 0, 1, 1], [], []>} : vector<32x16xf32>, vector<16x32xf32>, vector<32x32xf32> -> vector<32x32xf32>
    %16 = vector.extract_strided_slice %6 {offsets = [3, 0, 0], sizes = [1, 16, 32], strides = [1, 1, 1]} : vector<4x16x32xf32> to vector<1x16x32xf32>
    %17 = vector.shape_cast %16 : vector<1x16x32xf32> to vector<16x32xf32>
    %cst_10 = arith.constant dense<0.000000e+00> : vector<32x32xf32>
    %18 = tpu.matmul %3, %17, %cst_10 {dimension_numbers = #tpu.dot_dimension_numbers<[1], [0], [0], [1], [0, 0, 1, 1], [], []>} : vector<32x16xf32>, vector<16x32xf32>, vector<32x32xf32> -> vector<32x32xf32>
    %cst_11 = arith.constant 0.000000e+00 : f32
    %19 = vector.broadcast %cst_11 : f32 to vector<4x34x34xf32>
    %c0_12 = arith.constant 0 : index
    %c0_13 = arith.constant 0 : index
    %c0_14 = arith.constant 0 : index
    %20 = vector.load %arg8[%c0_12, %c0_13, %c0_14] : memref<4x34x34xf32, #tpu.memory_space<vmem>>, vector<4x34x34xf32>
    tpu.vector_store %arg8[%c0_12, %c0_13, %c0_14], %19 {strides = array<i32>} : memref<4x34x34xf32, #tpu.memory_space<vmem>>, vector<4x34x34xf32>,
    %c0_15 = arith.constant 0 : index
    %c1 = arith.constant 1 : index
    %c1_16 = arith.constant 1 : index
    %21 = vector.load %arg8[%c0_15, %c1, %c1_16] : memref<4x34x34xf32, #tpu.memory_space<vmem>>, vector<1x32x32xf32>
    %22 = vector.shape_cast %21 : vector<1x32x32xf32> to vector<32x32xf32>
    %23 = vector.shape_cast %9 : vector<32x32xf32> to vector<1x32x32xf32>
    tpu.vector_store %arg8[%c0_15, %c1, %c1_16], %23 {strides = array<i32>} : memref<4x34x34xf32, #tpu.memory_space<vmem>>, vector<1x32x32xf32>,
    %c1_17 = arith.constant 1 : index
    %c1_18 = arith.constant 1 : index
    %c1_19 = arith.constant 1 : index
    %24 = vector.load %arg8[%c1_17, %c1_18, %c1_19] : memref<4x34x34xf32, #tpu.memory_space<vmem>>, vector<1x32x32xf32>
    %25 = vector.shape_cast %24 : vector<1x32x32xf32> to vector<32x32xf32>
    %26 = vector.shape_cast %12 : vector<32x32xf32> to vector<1x32x32xf32>
    tpu.vector_store %arg8[%c1_17, %c1_18, %c1_19], %26 {strides = array<i32>} : memref<4x34x34xf32, #tpu.memory_space<vmem>>, vector<1x32x32xf32>,
    %c2 = arith.constant 2 : index
    %c1_20 = arith.constant 1 : index
    %c1_21 = arith.constant 1 : index
    %27 = vector.load %arg8[%c2, %c1_20, %c1_21] : memref<4x34x34xf32, #tpu.memory_space<vmem>>, vector<1x32x32xf32>
    %28 = vector.shape_cast %27 : vector<1x32x32xf32> to vector<32x32xf32>
    %29 = vector.shape_cast %15 : vector<32x32xf32> to vector<1x32x32xf32>
    tpu.vector_store %arg8[%c2, %c1_20, %c1_21], %29 {strides = array<i32>} : memref<4x34x34xf32, #tpu.memory_space<vmem>>, vector<1x32x32xf32>,
    %c3 = arith.constant 3 : index
    %c1_22 = arith.constant 1 : index
    %c1_23 = arith.constant 1 : index
    %30 = vector.load %arg8[%c3, %c1_22, %c1_23] : memref<4x34x34xf32, #tpu.memory_space<vmem>>, vector<1x32x32xf32>
    %31 = vector.shape_cast %30 : vector<1x32x32xf32> to vector<32x32xf32>
    %32 = vector.shape_cast %18 : vector<32x32xf32> to vector<1x32x32xf32>
    tpu.vector_store %arg8[%c3, %c1_22, %c1_23], %32 {strides = array<i32>} : memref<4x34x34xf32, #tpu.memory_space<vmem>>, vector<1x32x32xf32>,
    %cst_24 = arith.constant 0.000000e+00 : f32
    %33 = vector.broadcast %cst_24 : f32 to vector<32x32xf32>
    %cst_25 = arith.constant 0.000000e+00 : f32
    %34 = vector.broadcast %cst_25 : f32 to vector<32x32xf32>
    %cst_26 = arith.constant 0.000000e+00 : f32
    %35 = vector.broadcast %cst_26 : f32 to vector<32x32xf32>
    %cst_27 = arith.constant 0.000000e+00 : f32
    %36 = vector.broadcast %cst_27 : f32 to vector<32x32xf32>
    %c0_28 = arith.constant 0 : index
    %c0_29 = arith.constant 0 : index
    %c0_30 = arith.constant 0 : index
    %37 = vector.load %arg8[%c0_28, %c0_29, %c0_30] : memref<4x34x34xf32, #tpu.memory_space<vmem>>, vector<1x32x32xf32>
    %38 = vector.shape_cast %37 : vector<1x32x32xf32> to vector<32x32xf32>
    %c0_31 = arith.constant 0 : index
    %39 = memref.load %arg6[%c0_31] : memref<144xf32, #tpu.memory_space<smem>>
    %40 = vector.broadcast %39 : f32 to vector<32x32xf32>
    %41 = arith.mulf %40, %38 : vector<32x32xf32>
    %42 = arith.addf %33, %41 : vector<32x32xf32>
    %c36 = arith.constant 36 : index
    %43 = memref.load %arg6[%c36] : memref<144xf32, #tpu.memory_space<smem>>
    %44 = vector.broadcast %43 : f32 to vector<32x32xf32>
    %45 = arith.mulf %44, %38 : vector<32x32xf32>
    %46 = arith.addf %34, %45 : vector<32x32xf32>
    %c72 = arith.constant 72 : index
    %47 = memref.load %arg6[%c72] : memref<144xf32, #tpu.memory_space<smem>>
    %48 = vector.broadcast %47 : f32 to vector<32x32xf32>
    %49 = arith.mulf %48, %38 : vector<32x32xf32>
    %50 = arith.addf %35, %49 : vector<32x32xf32>
    %c108 = arith.constant 108 : index
    %51 = memref.load %arg6[%c108] : memref<144xf32, #tpu.memory_space<smem>>
    %52 = vector.broadcast %51 : f32 to vector<32x32xf32>
    %53 = arith.mulf %52, %38 : vector<32x32xf32>
    %54 = arith.addf %36, %53 : vector<32x32xf32>
    %c0_32 = arith.constant 0 : index
    %c0_33 = arith.constant 0 : index
    %c1_34 = arith.constant 1 : index
    %55 = vector.load %arg8[%c0_32, %c0_33, %c1_34] : memref<4x34x34xf32, #tpu.memory_space<vmem>>, vector<1x32x32xf32>
    %56 = vector.shape_cast %55 : vector<1x32x32xf32> to vector<32x32xf32>
    %c1_35 = arith.constant 1 : index
    %57 = memref.load %arg6[%c1_35] : memref<144xf32, #tpu.memory_space<smem>>
    %58 = vector.broadcast %57 : f32 to vector<32x32xf32>
    %59 = arith.mulf %58, %56 : vector<32x32xf32>
    %60 = arith.addf %42, %59 : vector<32x32xf32>
    %c37 = arith.constant 37 : index
    %61 = memref.load %arg6[%c37] : memref<144xf32, #tpu.memory_space<smem>>
    %62 = vector.broadcast %61 : f32 to vector<32x32xf32>
    %63 = arith.mulf %62, %56 : vector<32x32xf32>
    %64 = arith.addf %46, %63 : vector<32x32xf32>
    %c73 = arith.constant 73 : index
    %65 = memref.load %arg6[%c73] : memref<144xf32, #tpu.memory_space<smem>>
    %66 = vector.broadcast %65 : f32 to vector<32x32xf32>
    %67 = arith.mulf %66, %56 : vector<32x32xf32>
    %68 = arith.addf %50, %67 : vector<32x32xf32>
    %c109 = arith.constant 109 : index
    %69 = memref.load %arg6[%c109] : memref<144xf32, #tpu.memory_space<smem>>
    %70 = vector.broadcast %69 : f32 to vector<32x32xf32>
    %71 = arith.mulf %70, %56 : vector<32x32xf32>
    %72 = arith.addf %54, %71 : vector<32x32xf32>
    %c0_36 = arith.constant 0 : index
    %c0_37 = arith.constant 0 : index
    %c2_38 = arith.constant 2 : index
    %73 = vector.load %arg8[%c0_36, %c0_37, %c2_38] : memref<4x34x34xf32, #tpu.memory_space<vmem>>, vector<1x32x32xf32>
    %74 = vector.shape_cast %73 : vector<1x32x32xf32> to vector<32x32xf32>
    %c2_39 = arith.constant 2 : index
    %75 = memref.load %arg6[%c2_39] : memref<144xf32, #tpu.memory_space<smem>>
    %76 = vector.broadcast %75 : f32 to vector<32x32xf32>
    %77 = arith.mulf %76, %74 : vector<32x32xf32>
    %78 = arith.addf %60, %77 : vector<32x32xf32>
    %c38 = arith.constant 38 : index
    %79 = memref.load %arg6[%c38] : memref<144xf32, #tpu.memory_space<smem>>
    %80 = vector.broadcast %79 : f32 to vector<32x32xf32>
    %81 = arith.mulf %80, %74 : vector<32x32xf32>
    %82 = arith.addf %64, %81 : vector<32x32xf32>
    %c74 = arith.constant 74 : index
    %83 = memref.load %arg6[%c74] : memref<144xf32, #tpu.memory_space<smem>>
    %84 = vector.broadcast %83 : f32 to vector<32x32xf32>
    %85 = arith.mulf %84, %74 : vector<32x32xf32>
    %86 = arith.addf %68, %85 : vector<32x32xf32>
    %c110 = arith.constant 110 : index
    %87 = memref.load %arg6[%c110] : memref<144xf32, #tpu.memory_space<smem>>
    %88 = vector.broadcast %87 : f32 to vector<32x32xf32>
    %89 = arith.mulf %88, %74 : vector<32x32xf32>
    %90 = arith.addf %72, %89 : vector<32x32xf32>
    %c0_40 = arith.constant 0 : index
    %c1_41 = arith.constant 1 : index
    %c0_42 = arith.constant 0 : index
    %91 = vector.load %arg8[%c0_40, %c1_41, %c0_42] : memref<4x34x34xf32, #tpu.memory_space<vmem>>, vector<1x32x32xf32>
    %92 = vector.shape_cast %91 : vector<1x32x32xf32> to vector<32x32xf32>
    %c3_43 = arith.constant 3 : index
    %93 = memref.load %arg6[%c3_43] : memref<144xf32, #tpu.memory_space<smem>>
    %94 = vector.broadcast %93 : f32 to vector<32x32xf32>
    %95 = arith.mulf %94, %92 : vector<32x32xf32>
    %96 = arith.addf %78, %95 : vector<32x32xf32>
    %c39 = arith.constant 39 : index
    %97 = memref.load %arg6[%c39] : memref<144xf32, #tpu.memory_space<smem>>
    %98 = vector.broadcast %97 : f32 to vector<32x32xf32>
    %99 = arith.mulf %98, %92 : vector<32x32xf32>
    %100 = arith.addf %82, %99 : vector<32x32xf32>
    %c75 = arith.constant 75 : index
    %101 = memref.load %arg6[%c75] : memref<144xf32, #tpu.memory_space<smem>>
    %102 = vector.broadcast %101 : f32 to vector<32x32xf32>
    %103 = arith.mulf %102, %92 : vector<32x32xf32>
    %104 = arith.addf %86, %103 : vector<32x32xf32>
    %c111 = arith.constant 111 : index
    %105 = memref.load %arg6[%c111] : memref<144xf32, #tpu.memory_space<smem>>
    %106 = vector.broadcast %105 : f32 to vector<32x32xf32>
    %107 = arith.mulf %106, %92 : vector<32x32xf32>
    %108 = arith.addf %90, %107 : vector<32x32xf32>
    %c0_44 = arith.constant 0 : index
    %c1_45 = arith.constant 1 : index
    %c1_46 = arith.constant 1 : index
    %109 = vector.load %arg8[%c0_44, %c1_45, %c1_46] : memref<4x34x34xf32, #tpu.memory_space<vmem>>, vector<1x32x32xf32>
    %110 = vector.shape_cast %109 : vector<1x32x32xf32> to vector<32x32xf32>
    %c4 = arith.constant 4 : index
    %111 = memref.load %arg6[%c4] : memref<144xf32, #tpu.memory_space<smem>>
    %112 = vector.broadcast %111 : f32 to vector<32x32xf32>
    %113 = arith.mulf %112, %110 : vector<32x32xf32>
    %114 = arith.addf %96, %113 : vector<32x32xf32>
    %c40 = arith.constant 40 : index
    %115 = memref.load %arg6[%c40] : memref<144xf32, #tpu.memory_space<smem>>
    %116 = vector.broadcast %115 : f32 to vector<32x32xf32>
    %117 = arith.mulf %116, %110 : vector<32x32xf32>
    %118 = arith.addf %100, %117 : vector<32x32xf32>
    %c76 = arith.constant 76 : index
    %119 = memref.load %arg6[%c76] : memref<144xf32, #tpu.memory_space<smem>>
    %120 = vector.broadcast %119 : f32 to vector<32x32xf32>
    %121 = arith.mulf %120, %110 : vector<32x32xf32>
    %122 = arith.addf %104, %121 : vector<32x32xf32>
    %c112 = arith.constant 112 : index
    %123 = memref.load %arg6[%c112] : memref<144xf32, #tpu.memory_space<smem>>
    %124 = vector.broadcast %123 : f32 to vector<32x32xf32>
    %125 = arith.mulf %124, %110 : vector<32x32xf32>
    %126 = arith.addf %108, %125 : vector<32x32xf32>
    %c0_47 = arith.constant 0 : index
    %c1_48 = arith.constant 1 : index
    %c2_49 = arith.constant 2 : index
    %127 = vector.load %arg8[%c0_47, %c1_48, %c2_49] : memref<4x34x34xf32, #tpu.memory_space<vmem>>, vector<1x32x32xf32>
    %128 = vector.shape_cast %127 : vector<1x32x32xf32> to vector<32x32xf32>
    %c5 = arith.constant 5 : index
    %129 = memref.load %arg6[%c5] : memref<144xf32, #tpu.memory_space<smem>>
    %130 = vector.broadcast %129 : f32 to vector<32x32xf32>
    %131 = arith.mulf %130, %128 : vector<32x32xf32>
    %132 = arith.addf %114, %131 : vector<32x32xf32>
    %c41 = arith.constant 41 : index
    %133 = memref.load %arg6[%c41] : memref<144xf32, #tpu.memory_space<smem>>
    %134 = vector.broadcast %133 : f32 to vector<32x32xf32>
    %135 = arith.mulf %134, %128 : vector<32x32xf32>
    %136 = arith.addf %118, %135 : vector<32x32xf32>
    %c77 = arith.constant 77 : index
    %137 = memref.load %arg6[%c77] : memref<144xf32, #tpu.memory_space<smem>>
    %138 = vector.broadcast %137 : f32 to vector<32x32xf32>
    %139 = arith.mulf %138, %128 : vector<32x32xf32>
    %140 = arith.addf %122, %139 : vector<32x32xf32>
    %c113 = arith.constant 113 : index
    %141 = memref.load %arg6[%c113] : memref<144xf32, #tpu.memory_space<smem>>
    %142 = vector.broadcast %141 : f32 to vector<32x32xf32>
    %143 = arith.mulf %142, %128 : vector<32x32xf32>
    %144 = arith.addf %126, %143 : vector<32x32xf32>
    %c0_50 = arith.constant 0 : index
    %c2_51 = arith.constant 2 : index
    %c0_52 = arith.constant 0 : index
    %145 = vector.load %arg8[%c0_50, %c2_51, %c0_52] : memref<4x34x34xf32, #tpu.memory_space<vmem>>, vector<1x32x32xf32>
    %146 = vector.shape_cast %145 : vector<1x32x32xf32> to vector<32x32xf32>
    %c6 = arith.constant 6 : index
    %147 = memref.load %arg6[%c6] : memref<144xf32, #tpu.memory_space<smem>>
    %148 = vector.broadcast %147 : f32 to vector<32x32xf32>
    %149 = arith.mulf %148, %146 : vector<32x32xf32>
    %150 = arith.addf %132, %149 : vector<32x32xf32>
    %c42 = arith.constant 42 : index
    %151 = memref.load %arg6[%c42] : memref<144xf32, #tpu.memory_space<smem>>
    %152 = vector.broadcast %151 : f32 to vector<32x32xf32>
    %153 = arith.mulf %152, %146 : vector<32x32xf32>
    %154 = arith.addf %136, %153 : vector<32x32xf32>
    %c78 = arith.constant 78 : index
    %155 = memref.load %arg6[%c78] : memref<144xf32, #tpu.memory_space<smem>>
    %156 = vector.broadcast %155 : f32 to vector<32x32xf32>
    %157 = arith.mulf %156, %146 : vector<32x32xf32>
    %158 = arith.addf %140, %157 : vector<32x32xf32>
    %c114 = arith.constant 114 : index
    %159 = memref.load %arg6[%c114] : memref<144xf32, #tpu.memory_space<smem>>
    %160 = vector.broadcast %159 : f32 to vector<32x32xf32>
    %161 = arith.mulf %160, %146 : vector<32x32xf32>
    %162 = arith.addf %144, %161 : vector<32x32xf32>
    %c0_53 = arith.constant 0 : index
    %c2_54 = arith.constant 2 : index
    %c1_55 = arith.constant 1 : index
    %163 = vector.load %arg8[%c0_53, %c2_54, %c1_55] : memref<4x34x34xf32, #tpu.memory_space<vmem>>, vector<1x32x32xf32>
    %164 = vector.shape_cast %163 : vector<1x32x32xf32> to vector<32x32xf32>
    %c7 = arith.constant 7 : index
    %165 = memref.load %arg6[%c7] : memref<144xf32, #tpu.memory_space<smem>>
    %166 = vector.broadcast %165 : f32 to vector<32x32xf32>
    %167 = arith.mulf %166, %164 : vector<32x32xf32>
    %168 = arith.addf %150, %167 : vector<32x32xf32>
    %c43 = arith.constant 43 : index
    %169 = memref.load %arg6[%c43] : memref<144xf32, #tpu.memory_space<smem>>
    %170 = vector.broadcast %169 : f32 to vector<32x32xf32>
    %171 = arith.mulf %170, %164 : vector<32x32xf32>
    %172 = arith.addf %154, %171 : vector<32x32xf32>
    %c79 = arith.constant 79 : index
    %173 = memref.load %arg6[%c79] : memref<144xf32, #tpu.memory_space<smem>>
    %174 = vector.broadcast %173 : f32 to vector<32x32xf32>
    %175 = arith.mulf %174, %164 : vector<32x32xf32>
    %176 = arith.addf %158, %175 : vector<32x32xf32>
    %c115 = arith.constant 115 : index
    %177 = memref.load %arg6[%c115] : memref<144xf32, #tpu.memory_space<smem>>
    %178 = vector.broadcast %177 : f32 to vector<32x32xf32>
    %179 = arith.mulf %178, %164 : vector<32x32xf32>
    %180 = arith.addf %162, %179 : vector<32x32xf32>
    %c0_56 = arith.constant 0 : index
    %c2_57 = arith.constant 2 : index
    %c2_58 = arith.constant 2 : index
    %181 = vector.load %arg8[%c0_56, %c2_57, %c2_58] : memref<4x34x34xf32, #tpu.memory_space<vmem>>, vector<1x32x32xf32>
    %182 = vector.shape_cast %181 : vector<1x32x32xf32> to vector<32x32xf32>
    %c8 = arith.constant 8 : index
    %183 = memref.load %arg6[%c8] : memref<144xf32, #tpu.memory_space<smem>>
    %184 = vector.broadcast %183 : f32 to vector<32x32xf32>
    %185 = arith.mulf %184, %182 : vector<32x32xf32>
    %186 = arith.addf %168, %185 : vector<32x32xf32>
    %c44 = arith.constant 44 : index
    %187 = memref.load %arg6[%c44] : memref<144xf32, #tpu.memory_space<smem>>
    %188 = vector.broadcast %187 : f32 to vector<32x32xf32>
    %189 = arith.mulf %188, %182 : vector<32x32xf32>
    %190 = arith.addf %172, %189 : vector<32x32xf32>
    %c80 = arith.constant 80 : index
    %191 = memref.load %arg6[%c80] : memref<144xf32, #tpu.memory_space<smem>>
    %192 = vector.broadcast %191 : f32 to vector<32x32xf32>
    %193 = arith.mulf %192, %182 : vector<32x32xf32>
    %194 = arith.addf %176, %193 : vector<32x32xf32>
    %c116 = arith.constant 116 : index
    %195 = memref.load %arg6[%c116] : memref<144xf32, #tpu.memory_space<smem>>
    %196 = vector.broadcast %195 : f32 to vector<32x32xf32>
    %197 = arith.mulf %196, %182 : vector<32x32xf32>
    %198 = arith.addf %180, %197 : vector<32x32xf32>
    %c1_59 = arith.constant 1 : index
    %c0_60 = arith.constant 0 : index
    %c0_61 = arith.constant 0 : index
    %199 = vector.load %arg8[%c1_59, %c0_60, %c0_61] : memref<4x34x34xf32, #tpu.memory_space<vmem>>, vector<1x32x32xf32>
    %200 = vector.shape_cast %199 : vector<1x32x32xf32> to vector<32x32xf32>
    %c9 = arith.constant 9 : index
    %201 = memref.load %arg6[%c9] : memref<144xf32, #tpu.memory_space<smem>>
    %202 = vector.broadcast %201 : f32 to vector<32x32xf32>
    %203 = arith.mulf %202, %200 : vector<32x32xf32>
    %204 = arith.addf %186, %203 : vector<32x32xf32>
    %c45 = arith.constant 45 : index
    %205 = memref.load %arg6[%c45] : memref<144xf32, #tpu.memory_space<smem>>
    %206 = vector.broadcast %205 : f32 to vector<32x32xf32>
    %207 = arith.mulf %206, %200 : vector<32x32xf32>
    %208 = arith.addf %190, %207 : vector<32x32xf32>
    %c81 = arith.constant 81 : index
    %209 = memref.load %arg6[%c81] : memref<144xf32, #tpu.memory_space<smem>>
    %210 = vector.broadcast %209 : f32 to vector<32x32xf32>
    %211 = arith.mulf %210, %200 : vector<32x32xf32>
    %212 = arith.addf %194, %211 : vector<32x32xf32>
    %c117 = arith.constant 117 : index
    %213 = memref.load %arg6[%c117] : memref<144xf32, #tpu.memory_space<smem>>
    %214 = vector.broadcast %213 : f32 to vector<32x32xf32>
    %215 = arith.mulf %214, %200 : vector<32x32xf32>
    %216 = arith.addf %198, %215 : vector<32x32xf32>
    %c1_62 = arith.constant 1 : index
    %c0_63 = arith.constant 0 : index
    %c1_64 = arith.constant 1 : index
    %217 = vector.load %arg8[%c1_62, %c0_63, %c1_64] : memref<4x34x34xf32, #tpu.memory_space<vmem>>, vector<1x32x32xf32>
    %218 = vector.shape_cast %217 : vector<1x32x32xf32> to vector<32x32xf32>
    %c10 = arith.constant 10 : index
    %219 = memref.load %arg6[%c10] : memref<144xf32, #tpu.memory_space<smem>>
    %220 = vector.broadcast %219 : f32 to vector<32x32xf32>
    %221 = arith.mulf %220, %218 : vector<32x32xf32>
    %222 = arith.addf %204, %221 : vector<32x32xf32>
    %c46 = arith.constant 46 : index
    %223 = memref.load %arg6[%c46] : memref<144xf32, #tpu.memory_space<smem>>
    %224 = vector.broadcast %223 : f32 to vector<32x32xf32>
    %225 = arith.mulf %224, %218 : vector<32x32xf32>
    %226 = arith.addf %208, %225 : vector<32x32xf32>
    %c82 = arith.constant 82 : index
    %227 = memref.load %arg6[%c82] : memref<144xf32, #tpu.memory_space<smem>>
    %228 = vector.broadcast %227 : f32 to vector<32x32xf32>
    %229 = arith.mulf %228, %218 : vector<32x32xf32>
    %230 = arith.addf %212, %229 : vector<32x32xf32>
    %c118 = arith.constant 118 : index
    %231 = memref.load %arg6[%c118] : memref<144xf32, #tpu.memory_space<smem>>
    %232 = vector.broadcast %231 : f32 to vector<32x32xf32>
    %233 = arith.mulf %232, %218 : vector<32x32xf32>
    %234 = arith.addf %216, %233 : vector<32x32xf32>
    %c1_65 = arith.constant 1 : index
    %c0_66 = arith.constant 0 : index
    %c2_67 = arith.constant 2 : index
    %235 = vector.load %arg8[%c1_65, %c0_66, %c2_67] : memref<4x34x34xf32, #tpu.memory_space<vmem>>, vector<1x32x32xf32>
    %236 = vector.shape_cast %235 : vector<1x32x32xf32> to vector<32x32xf32>
    %c11 = arith.constant 11 : index
    %237 = memref.load %arg6[%c11] : memref<144xf32, #tpu.memory_space<smem>>
    %238 = vector.broadcast %237 : f32 to vector<32x32xf32>
    %239 = arith.mulf %238, %236 : vector<32x32xf32>
    %240 = arith.addf %222, %239 : vector<32x32xf32>
    %c47 = arith.constant 47 : index
    %241 = memref.load %arg6[%c47] : memref<144xf32, #tpu.memory_space<smem>>
    %242 = vector.broadcast %241 : f32 to vector<32x32xf32>
    %243 = arith.mulf %242, %236 : vector<32x32xf32>
    %244 = arith.addf %226, %243 : vector<32x32xf32>
    %c83 = arith.constant 83 : index
    %245 = memref.load %arg6[%c83] : memref<144xf32, #tpu.memory_space<smem>>
    %246 = vector.broadcast %245 : f32 to vector<32x32xf32>
    %247 = arith.mulf %246, %236 : vector<32x32xf32>
    %248 = arith.addf %230, %247 : vector<32x32xf32>
    %c119 = arith.constant 119 : index
    %249 = memref.load %arg6[%c119] : memref<144xf32, #tpu.memory_space<smem>>
    %250 = vector.broadcast %249 : f32 to vector<32x32xf32>
    %251 = arith.mulf %250, %236 : vector<32x32xf32>
    %252 = arith.addf %234, %251 : vector<32x32xf32>
    %c1_68 = arith.constant 1 : index
    %c1_69 = arith.constant 1 : index
    %c0_70 = arith.constant 0 : index
    %253 = vector.load %arg8[%c1_68, %c1_69, %c0_70] : memref<4x34x34xf32, #tpu.memory_space<vmem>>, vector<1x32x32xf32>
    %254 = vector.shape_cast %253 : vector<1x32x32xf32> to vector<32x32xf32>
    %c12 = arith.constant 12 : index
    %255 = memref.load %arg6[%c12] : memref<144xf32, #tpu.memory_space<smem>>
    %256 = vector.broadcast %255 : f32 to vector<32x32xf32>
    %257 = arith.mulf %256, %254 : vector<32x32xf32>
    %258 = arith.addf %240, %257 : vector<32x32xf32>
    %c48 = arith.constant 48 : index
    %259 = memref.load %arg6[%c48] : memref<144xf32, #tpu.memory_space<smem>>
    %260 = vector.broadcast %259 : f32 to vector<32x32xf32>
    %261 = arith.mulf %260, %254 : vector<32x32xf32>
    %262 = arith.addf %244, %261 : vector<32x32xf32>
    %c84 = arith.constant 84 : index
    %263 = memref.load %arg6[%c84] : memref<144xf32, #tpu.memory_space<smem>>
    %264 = vector.broadcast %263 : f32 to vector<32x32xf32>
    %265 = arith.mulf %264, %254 : vector<32x32xf32>
    %266 = arith.addf %248, %265 : vector<32x32xf32>
    %c120 = arith.constant 120 : index
    %267 = memref.load %arg6[%c120] : memref<144xf32, #tpu.memory_space<smem>>
    %268 = vector.broadcast %267 : f32 to vector<32x32xf32>
    %269 = arith.mulf %268, %254 : vector<32x32xf32>
    %270 = arith.addf %252, %269 : vector<32x32xf32>
    %c1_71 = arith.constant 1 : index
    %c1_72 = arith.constant 1 : index
    %c1_73 = arith.constant 1 : index
    %271 = vector.load %arg8[%c1_71, %c1_72, %c1_73] : memref<4x34x34xf32, #tpu.memory_space<vmem>>, vector<1x32x32xf32>
    %272 = vector.shape_cast %271 : vector<1x32x32xf32> to vector<32x32xf32>
    %c13 = arith.constant 13 : index
    %273 = memref.load %arg6[%c13] : memref<144xf32, #tpu.memory_space<smem>>
    %274 = vector.broadcast %273 : f32 to vector<32x32xf32>
    %275 = arith.mulf %274, %272 : vector<32x32xf32>
    %276 = arith.addf %258, %275 : vector<32x32xf32>
    %c49 = arith.constant 49 : index
    %277 = memref.load %arg6[%c49] : memref<144xf32, #tpu.memory_space<smem>>
    %278 = vector.broadcast %277 : f32 to vector<32x32xf32>
    %279 = arith.mulf %278, %272 : vector<32x32xf32>
    %280 = arith.addf %262, %279 : vector<32x32xf32>
    %c85 = arith.constant 85 : index
    %281 = memref.load %arg6[%c85] : memref<144xf32, #tpu.memory_space<smem>>
    %282 = vector.broadcast %281 : f32 to vector<32x32xf32>
    %283 = arith.mulf %282, %272 : vector<32x32xf32>
    %284 = arith.addf %266, %283 : vector<32x32xf32>
    %c121 = arith.constant 121 : index
    %285 = memref.load %arg6[%c121] : memref<144xf32, #tpu.memory_space<smem>>
    %286 = vector.broadcast %285 : f32 to vector<32x32xf32>
    %287 = arith.mulf %286, %272 : vector<32x32xf32>
    %288 = arith.addf %270, %287 : vector<32x32xf32>
    %c1_74 = arith.constant 1 : index
    %c1_75 = arith.constant 1 : index
    %c2_76 = arith.constant 2 : index
    %289 = vector.load %arg8[%c1_74, %c1_75, %c2_76] : memref<4x34x34xf32, #tpu.memory_space<vmem>>, vector<1x32x32xf32>
    %290 = vector.shape_cast %289 : vector<1x32x32xf32> to vector<32x32xf32>
    %c14 = arith.constant 14 : index
    %291 = memref.load %arg6[%c14] : memref<144xf32, #tpu.memory_space<smem>>
    %292 = vector.broadcast %291 : f32 to vector<32x32xf32>
    %293 = arith.mulf %292, %290 : vector<32x32xf32>
    %294 = arith.addf %276, %293 : vector<32x32xf32>
    %c50 = arith.constant 50 : index
    %295 = memref.load %arg6[%c50] : memref<144xf32, #tpu.memory_space<smem>>
    %296 = vector.broadcast %295 : f32 to vector<32x32xf32>
    %297 = arith.mulf %296, %290 : vector<32x32xf32>
    %298 = arith.addf %280, %297 : vector<32x32xf32>
    %c86 = arith.constant 86 : index
    %299 = memref.load %arg6[%c86] : memref<144xf32, #tpu.memory_space<smem>>
    %300 = vector.broadcast %299 : f32 to vector<32x32xf32>
    %301 = arith.mulf %300, %290 : vector<32x32xf32>
    %302 = arith.addf %284, %301 : vector<32x32xf32>
    %c122 = arith.constant 122 : index
    %303 = memref.load %arg6[%c122] : memref<144xf32, #tpu.memory_space<smem>>
    %304 = vector.broadcast %303 : f32 to vector<32x32xf32>
    %305 = arith.mulf %304, %290 : vector<32x32xf32>
    %306 = arith.addf %288, %305 : vector<32x32xf32>
    %c1_77 = arith.constant 1 : index
    %c2_78 = arith.constant 2 : index
    %c0_79 = arith.constant 0 : index
    %307 = vector.load %arg8[%c1_77, %c2_78, %c0_79] : memref<4x34x34xf32, #tpu.memory_space<vmem>>, vector<1x32x32xf32>
    %308 = vector.shape_cast %307 : vector<1x32x32xf32> to vector<32x32xf32>
    %c15 = arith.constant 15 : index
    %309 = memref.load %arg6[%c15] : memref<144xf32, #tpu.memory_space<smem>>
    %310 = vector.broadcast %309 : f32 to vector<32x32xf32>
    %311 = arith.mulf %310, %308 : vector<32x32xf32>
    %312 = arith.addf %294, %311 : vector<32x32xf32>
    %c51 = arith.constant 51 : index
    %313 = memref.load %arg6[%c51] : memref<144xf32, #tpu.memory_space<smem>>
    %314 = vector.broadcast %313 : f32 to vector<32x32xf32>
    %315 = arith.mulf %314, %308 : vector<32x32xf32>
    %316 = arith.addf %298, %315 : vector<32x32xf32>
    %c87 = arith.constant 87 : index
    %317 = memref.load %arg6[%c87] : memref<144xf32, #tpu.memory_space<smem>>
    %318 = vector.broadcast %317 : f32 to vector<32x32xf32>
    %319 = arith.mulf %318, %308 : vector<32x32xf32>
    %320 = arith.addf %302, %319 : vector<32x32xf32>
    %c123 = arith.constant 123 : index
    %321 = memref.load %arg6[%c123] : memref<144xf32, #tpu.memory_space<smem>>
    %322 = vector.broadcast %321 : f32 to vector<32x32xf32>
    %323 = arith.mulf %322, %308 : vector<32x32xf32>
    %324 = arith.addf %306, %323 : vector<32x32xf32>
    %c1_80 = arith.constant 1 : index
    %c2_81 = arith.constant 2 : index
    %c1_82 = arith.constant 1 : index
    %325 = vector.load %arg8[%c1_80, %c2_81, %c1_82] : memref<4x34x34xf32, #tpu.memory_space<vmem>>, vector<1x32x32xf32>
    %326 = vector.shape_cast %325 : vector<1x32x32xf32> to vector<32x32xf32>
    %c16 = arith.constant 16 : index
    %327 = memref.load %arg6[%c16] : memref<144xf32, #tpu.memory_space<smem>>
    %328 = vector.broadcast %327 : f32 to vector<32x32xf32>
    %329 = arith.mulf %328, %326 : vector<32x32xf32>
    %330 = arith.addf %312, %329 : vector<32x32xf32>
    %c52 = arith.constant 52 : index
    %331 = memref.load %arg6[%c52] : memref<144xf32, #tpu.memory_space<smem>>
    %332 = vector.broadcast %331 : f32 to vector<32x32xf32>
    %333 = arith.mulf %332, %326 : vector<32x32xf32>
    %334 = arith.addf %316, %333 : vector<32x32xf32>
    %c88 = arith.constant 88 : index
    %335 = memref.load %arg6[%c88] : memref<144xf32, #tpu.memory_space<smem>>
    %336 = vector.broadcast %335 : f32 to vector<32x32xf32>
    %337 = arith.mulf %336, %326 : vector<32x32xf32>
    %338 = arith.addf %320, %337 : vector<32x32xf32>
    %c124 = arith.constant 124 : index
    %339 = memref.load %arg6[%c124] : memref<144xf32, #tpu.memory_space<smem>>
    %340 = vector.broadcast %339 : f32 to vector<32x32xf32>
    %341 = arith.mulf %340, %326 : vector<32x32xf32>
    %342 = arith.addf %324, %341 : vector<32x32xf32>
    %c1_83 = arith.constant 1 : index
    %c2_84 = arith.constant 2 : index
    %c2_85 = arith.constant 2 : index
    %343 = vector.load %arg8[%c1_83, %c2_84, %c2_85] : memref<4x34x34xf32, #tpu.memory_space<vmem>>, vector<1x32x32xf32>
    %344 = vector.shape_cast %343 : vector<1x32x32xf32> to vector<32x32xf32>
    %c17 = arith.constant 17 : index
    %345 = memref.load %arg6[%c17] : memref<144xf32, #tpu.memory_space<smem>>
    %346 = vector.broadcast %345 : f32 to vector<32x32xf32>
    %347 = arith.mulf %346, %344 : vector<32x32xf32>
    %348 = arith.addf %330, %347 : vector<32x32xf32>
    %c53 = arith.constant 53 : index
    %349 = memref.load %arg6[%c53] : memref<144xf32, #tpu.memory_space<smem>>
    %350 = vector.broadcast %349 : f32 to vector<32x32xf32>
    %351 = arith.mulf %350, %344 : vector<32x32xf32>
    %352 = arith.addf %334, %351 : vector<32x32xf32>
    %c89 = arith.constant 89 : index
    %353 = memref.load %arg6[%c89] : memref<144xf32, #tpu.memory_space<smem>>
    %354 = vector.broadcast %353 : f32 to vector<32x32xf32>
    %355 = arith.mulf %354, %344 : vector<32x32xf32>
    %356 = arith.addf %338, %355 : vector<32x32xf32>
    %c125 = arith.constant 125 : index
    %357 = memref.load %arg6[%c125] : memref<144xf32, #tpu.memory_space<smem>>
    %358 = vector.broadcast %357 : f32 to vector<32x32xf32>
    %359 = arith.mulf %358, %344 : vector<32x32xf32>
    %360 = arith.addf %342, %359 : vector<32x32xf32>
    %c2_86 = arith.constant 2 : index
    %c0_87 = arith.constant 0 : index
    %c0_88 = arith.constant 0 : index
    %361 = vector.load %arg8[%c2_86, %c0_87, %c0_88] : memref<4x34x34xf32, #tpu.memory_space<vmem>>, vector<1x32x32xf32>
    %362 = vector.shape_cast %361 : vector<1x32x32xf32> to vector<32x32xf32>
    %c18 = arith.constant 18 : index
    %363 = memref.load %arg6[%c18] : memref<144xf32, #tpu.memory_space<smem>>
    %364 = vector.broadcast %363 : f32 to vector<32x32xf32>
    %365 = arith.mulf %364, %362 : vector<32x32xf32>
    %366 = arith.addf %348, %365 : vector<32x32xf32>
    %c54 = arith.constant 54 : index
    %367 = memref.load %arg6[%c54] : memref<144xf32, #tpu.memory_space<smem>>
    %368 = vector.broadcast %367 : f32 to vector<32x32xf32>
    %369 = arith.mulf %368, %362 : vector<32x32xf32>
    %370 = arith.addf %352, %369 : vector<32x32xf32>
    %c90 = arith.constant 90 : index
    %371 = memref.load %arg6[%c90] : memref<144xf32, #tpu.memory_space<smem>>
    %372 = vector.broadcast %371 : f32 to vector<32x32xf32>
    %373 = arith.mulf %372, %362 : vector<32x32xf32>
    %374 = arith.addf %356, %373 : vector<32x32xf32>
    %c126 = arith.constant 126 : index
    %375 = memref.load %arg6[%c126] : memref<144xf32, #tpu.memory_space<smem>>
    %376 = vector.broadcast %375 : f32 to vector<32x32xf32>
    %377 = arith.mulf %376, %362 : vector<32x32xf32>
    %378 = arith.addf %360, %377 : vector<32x32xf32>
    %c2_89 = arith.constant 2 : index
    %c0_90 = arith.constant 0 : index
    %c1_91 = arith.constant 1 : index
    %379 = vector.load %arg8[%c2_89, %c0_90, %c1_91] : memref<4x34x34xf32, #tpu.memory_space<vmem>>, vector<1x32x32xf32>
    %380 = vector.shape_cast %379 : vector<1x32x32xf32> to vector<32x32xf32>
    %c19 = arith.constant 19 : index
    %381 = memref.load %arg6[%c19] : memref<144xf32, #tpu.memory_space<smem>>
    %382 = vector.broadcast %381 : f32 to vector<32x32xf32>
    %383 = arith.mulf %382, %380 : vector<32x32xf32>
    %384 = arith.addf %366, %383 : vector<32x32xf32>
    %c55 = arith.constant 55 : index
    %385 = memref.load %arg6[%c55] : memref<144xf32, #tpu.memory_space<smem>>
    %386 = vector.broadcast %385 : f32 to vector<32x32xf32>
    %387 = arith.mulf %386, %380 : vector<32x32xf32>
    %388 = arith.addf %370, %387 : vector<32x32xf32>
    %c91 = arith.constant 91 : index
    %389 = memref.load %arg6[%c91] : memref<144xf32, #tpu.memory_space<smem>>
    %390 = vector.broadcast %389 : f32 to vector<32x32xf32>
    %391 = arith.mulf %390, %380 : vector<32x32xf32>
    %392 = arith.addf %374, %391 : vector<32x32xf32>
    %c127 = arith.constant 127 : index
    %393 = memref.load %arg6[%c127] : memref<144xf32, #tpu.memory_space<smem>>
    %394 = vector.broadcast %393 : f32 to vector<32x32xf32>
    %395 = arith.mulf %394, %380 : vector<32x32xf32>
    %396 = arith.addf %378, %395 : vector<32x32xf32>
    %c2_92 = arith.constant 2 : index
    %c0_93 = arith.constant 0 : index
    %c2_94 = arith.constant 2 : index
    %397 = vector.load %arg8[%c2_92, %c0_93, %c2_94] : memref<4x34x34xf32, #tpu.memory_space<vmem>>, vector<1x32x32xf32>
    %398 = vector.shape_cast %397 : vector<1x32x32xf32> to vector<32x32xf32>
    %c20 = arith.constant 20 : index
    %399 = memref.load %arg6[%c20] : memref<144xf32, #tpu.memory_space<smem>>
    %400 = vector.broadcast %399 : f32 to vector<32x32xf32>
    %401 = arith.mulf %400, %398 : vector<32x32xf32>
    %402 = arith.addf %384, %401 : vector<32x32xf32>
    %c56 = arith.constant 56 : index
    %403 = memref.load %arg6[%c56] : memref<144xf32, #tpu.memory_space<smem>>
    %404 = vector.broadcast %403 : f32 to vector<32x32xf32>
    %405 = arith.mulf %404, %398 : vector<32x32xf32>
    %406 = arith.addf %388, %405 : vector<32x32xf32>
    %c92 = arith.constant 92 : index
    %407 = memref.load %arg6[%c92] : memref<144xf32, #tpu.memory_space<smem>>
    %408 = vector.broadcast %407 : f32 to vector<32x32xf32>
    %409 = arith.mulf %408, %398 : vector<32x32xf32>
    %410 = arith.addf %392, %409 : vector<32x32xf32>
    %c128 = arith.constant 128 : index
    %411 = memref.load %arg6[%c128] : memref<144xf32, #tpu.memory_space<smem>>
    %412 = vector.broadcast %411 : f32 to vector<32x32xf32>
    %413 = arith.mulf %412, %398 : vector<32x32xf32>
    %414 = arith.addf %396, %413 : vector<32x32xf32>
    %c2_95 = arith.constant 2 : index
    %c1_96 = arith.constant 1 : index
    %c0_97 = arith.constant 0 : index
    %415 = vector.load %arg8[%c2_95, %c1_96, %c0_97] : memref<4x34x34xf32, #tpu.memory_space<vmem>>, vector<1x32x32xf32>
    %416 = vector.shape_cast %415 : vector<1x32x32xf32> to vector<32x32xf32>
    %c21 = arith.constant 21 : index
    %417 = memref.load %arg6[%c21] : memref<144xf32, #tpu.memory_space<smem>>
    %418 = vector.broadcast %417 : f32 to vector<32x32xf32>
    %419 = arith.mulf %418, %416 : vector<32x32xf32>
    %420 = arith.addf %402, %419 : vector<32x32xf32>
    %c57 = arith.constant 57 : index
    %421 = memref.load %arg6[%c57] : memref<144xf32, #tpu.memory_space<smem>>
    %422 = vector.broadcast %421 : f32 to vector<32x32xf32>
    %423 = arith.mulf %422, %416 : vector<32x32xf32>
    %424 = arith.addf %406, %423 : vector<32x32xf32>
    %c93 = arith.constant 93 : index
    %425 = memref.load %arg6[%c93] : memref<144xf32, #tpu.memory_space<smem>>
    %426 = vector.broadcast %425 : f32 to vector<32x32xf32>
    %427 = arith.mulf %426, %416 : vector<32x32xf32>
    %428 = arith.addf %410, %427 : vector<32x32xf32>
    %c129 = arith.constant 129 : index
    %429 = memref.load %arg6[%c129] : memref<144xf32, #tpu.memory_space<smem>>
    %430 = vector.broadcast %429 : f32 to vector<32x32xf32>
    %431 = arith.mulf %430, %416 : vector<32x32xf32>
    %432 = arith.addf %414, %431 : vector<32x32xf32>
    %c2_98 = arith.constant 2 : index
    %c1_99 = arith.constant 1 : index
    %c1_100 = arith.constant 1 : index
    %433 = vector.load %arg8[%c2_98, %c1_99, %c1_100] : memref<4x34x34xf32, #tpu.memory_space<vmem>>, vector<1x32x32xf32>
    %434 = vector.shape_cast %433 : vector<1x32x32xf32> to vector<32x32xf32>
    %c22 = arith.constant 22 : index
    %435 = memref.load %arg6[%c22] : memref<144xf32, #tpu.memory_space<smem>>
    %436 = vector.broadcast %435 : f32 to vector<32x32xf32>
    %437 = arith.mulf %436, %434 : vector<32x32xf32>
    %438 = arith.addf %420, %437 : vector<32x32xf32>
    %c58 = arith.constant 58 : index
    %439 = memref.load %arg6[%c58] : memref<144xf32, #tpu.memory_space<smem>>
    %440 = vector.broadcast %439 : f32 to vector<32x32xf32>
    %441 = arith.mulf %440, %434 : vector<32x32xf32>
    %442 = arith.addf %424, %441 : vector<32x32xf32>
    %c94 = arith.constant 94 : index
    %443 = memref.load %arg6[%c94] : memref<144xf32, #tpu.memory_space<smem>>
    %444 = vector.broadcast %443 : f32 to vector<32x32xf32>
    %445 = arith.mulf %444, %434 : vector<32x32xf32>
    %446 = arith.addf %428, %445 : vector<32x32xf32>
    %c130 = arith.constant 130 : index
    %447 = memref.load %arg6[%c130] : memref<144xf32, #tpu.memory_space<smem>>
    %448 = vector.broadcast %447 : f32 to vector<32x32xf32>
    %449 = arith.mulf %448, %434 : vector<32x32xf32>
    %450 = arith.addf %432, %449 : vector<32x32xf32>
    %c2_101 = arith.constant 2 : index
    %c1_102 = arith.constant 1 : index
    %c2_103 = arith.constant 2 : index
    %451 = vector.load %arg8[%c2_101, %c1_102, %c2_103] : memref<4x34x34xf32, #tpu.memory_space<vmem>>, vector<1x32x32xf32>
    %452 = vector.shape_cast %451 : vector<1x32x32xf32> to vector<32x32xf32>
    %c23 = arith.constant 23 : index
    %453 = memref.load %arg6[%c23] : memref<144xf32, #tpu.memory_space<smem>>
    %454 = vector.broadcast %453 : f32 to vector<32x32xf32>
    %455 = arith.mulf %454, %452 : vector<32x32xf32>
    %456 = arith.addf %438, %455 : vector<32x32xf32>
    %c59 = arith.constant 59 : index
    %457 = memref.load %arg6[%c59] : memref<144xf32, #tpu.memory_space<smem>>
    %458 = vector.broadcast %457 : f32 to vector<32x32xf32>
    %459 = arith.mulf %458, %452 : vector<32x32xf32>
    %460 = arith.addf %442, %459 : vector<32x32xf32>
    %c95 = arith.constant 95 : index
    %461 = memref.load %arg6[%c95] : memref<144xf32, #tpu.memory_space<smem>>
    %462 = vector.broadcast %461 : f32 to vector<32x32xf32>
    %463 = arith.mulf %462, %452 : vector<32x32xf32>
    %464 = arith.addf %446, %463 : vector<32x32xf32>
    %c131 = arith.constant 131 : index
    %465 = memref.load %arg6[%c131] : memref<144xf32, #tpu.memory_space<smem>>
    %466 = vector.broadcast %465 : f32 to vector<32x32xf32>
    %467 = arith.mulf %466, %452 : vector<32x32xf32>
    %468 = arith.addf %450, %467 : vector<32x32xf32>
    %c2_104 = arith.constant 2 : index
    %c2_105 = arith.constant 2 : index
    %c0_106 = arith.constant 0 : index
    %469 = vector.load %arg8[%c2_104, %c2_105, %c0_106] : memref<4x34x34xf32, #tpu.memory_space<vmem>>, vector<1x32x32xf32>
    %470 = vector.shape_cast %469 : vector<1x32x32xf32> to vector<32x32xf32>
    %c24 = arith.constant 24 : index
    %471 = memref.load %arg6[%c24] : memref<144xf32, #tpu.memory_space<smem>>
    %472 = vector.broadcast %471 : f32 to vector<32x32xf32>
    %473 = arith.mulf %472, %470 : vector<32x32xf32>
    %474 = arith.addf %456, %473 : vector<32x32xf32>
    %c60 = arith.constant 60 : index
    %475 = memref.load %arg6[%c60] : memref<144xf32, #tpu.memory_space<smem>>
    %476 = vector.broadcast %475 : f32 to vector<32x32xf32>
    %477 = arith.mulf %476, %470 : vector<32x32xf32>
    %478 = arith.addf %460, %477 : vector<32x32xf32>
    %c96 = arith.constant 96 : index
    %479 = memref.load %arg6[%c96] : memref<144xf32, #tpu.memory_space<smem>>
    %480 = vector.broadcast %479 : f32 to vector<32x32xf32>
    %481 = arith.mulf %480, %470 : vector<32x32xf32>
    %482 = arith.addf %464, %481 : vector<32x32xf32>
    %c132 = arith.constant 132 : index
    %483 = memref.load %arg6[%c132] : memref<144xf32, #tpu.memory_space<smem>>
    %484 = vector.broadcast %483 : f32 to vector<32x32xf32>
    %485 = arith.mulf %484, %470 : vector<32x32xf32>
    %486 = arith.addf %468, %485 : vector<32x32xf32>
    %c2_107 = arith.constant 2 : index
    %c2_108 = arith.constant 2 : index
    %c1_109 = arith.constant 1 : index
    %487 = vector.load %arg8[%c2_107, %c2_108, %c1_109] : memref<4x34x34xf32, #tpu.memory_space<vmem>>, vector<1x32x32xf32>
    %488 = vector.shape_cast %487 : vector<1x32x32xf32> to vector<32x32xf32>
    %c25 = arith.constant 25 : index
    %489 = memref.load %arg6[%c25] : memref<144xf32, #tpu.memory_space<smem>>
    %490 = vector.broadcast %489 : f32 to vector<32x32xf32>
    %491 = arith.mulf %490, %488 : vector<32x32xf32>
    %492 = arith.addf %474, %491 : vector<32x32xf32>
    %c61 = arith.constant 61 : index
    %493 = memref.load %arg6[%c61] : memref<144xf32, #tpu.memory_space<smem>>
    %494 = vector.broadcast %493 : f32 to vector<32x32xf32>
    %495 = arith.mulf %494, %488 : vector<32x32xf32>
    %496 = arith.addf %478, %495 : vector<32x32xf32>
    %c97 = arith.constant 97 : index
    %497 = memref.load %arg6[%c97] : memref<144xf32, #tpu.memory_space<smem>>
    %498 = vector.broadcast %497 : f32 to vector<32x32xf32>
    %499 = arith.mulf %498, %488 : vector<32x32xf32>
    %500 = arith.addf %482, %499 : vector<32x32xf32>
    %c133 = arith.constant 133 : index
    %501 = memref.load %arg6[%c133] : memref<144xf32, #tpu.memory_space<smem>>
    %502 = vector.broadcast %501 : f32 to vector<32x32xf32>
    %503 = arith.mulf %502, %488 : vector<32x32xf32>
    %504 = arith.addf %486, %503 : vector<32x32xf32>
    %c2_110 = arith.constant 2 : index
    %c2_111 = arith.constant 2 : index
    %c2_112 = arith.constant 2 : index
    %505 = vector.load %arg8[%c2_110, %c2_111, %c2_112] : memref<4x34x34xf32, #tpu.memory_space<vmem>>, vector<1x32x32xf32>
    %506 = vector.shape_cast %505 : vector<1x32x32xf32> to vector<32x32xf32>
    %c26 = arith.constant 26 : index
    %507 = memref.load %arg6[%c26] : memref<144xf32, #tpu.memory_space<smem>>
    %508 = vector.broadcast %507 : f32 to vector<32x32xf32>
    %509 = arith.mulf %508, %506 : vector<32x32xf32>
    %510 = arith.addf %492, %509 : vector<32x32xf32>
    %c62 = arith.constant 62 : index
    %511 = memref.load %arg6[%c62] : memref<144xf32, #tpu.memory_space<smem>>
    %512 = vector.broadcast %511 : f32 to vector<32x32xf32>
    %513 = arith.mulf %512, %506 : vector<32x32xf32>
    %514 = arith.addf %496, %513 : vector<32x32xf32>
    %c98 = arith.constant 98 : index
    %515 = memref.load %arg6[%c98] : memref<144xf32, #tpu.memory_space<smem>>
    %516 = vector.broadcast %515 : f32 to vector<32x32xf32>
    %517 = arith.mulf %516, %506 : vector<32x32xf32>
    %518 = arith.addf %500, %517 : vector<32x32xf32>
    %c134 = arith.constant 134 : index
    %519 = memref.load %arg6[%c134] : memref<144xf32, #tpu.memory_space<smem>>
    %520 = vector.broadcast %519 : f32 to vector<32x32xf32>
    %521 = arith.mulf %520, %506 : vector<32x32xf32>
    %522 = arith.addf %504, %521 : vector<32x32xf32>
    %c3_113 = arith.constant 3 : index
    %c0_114 = arith.constant 0 : index
    %c0_115 = arith.constant 0 : index
    %523 = vector.load %arg8[%c3_113, %c0_114, %c0_115] : memref<4x34x34xf32, #tpu.memory_space<vmem>>, vector<1x32x32xf32>
    %524 = vector.shape_cast %523 : vector<1x32x32xf32> to vector<32x32xf32>
    %c27 = arith.constant 27 : index
    %525 = memref.load %arg6[%c27] : memref<144xf32, #tpu.memory_space<smem>>
    %526 = vector.broadcast %525 : f32 to vector<32x32xf32>
    %527 = arith.mulf %526, %524 : vector<32x32xf32>
    %528 = arith.addf %510, %527 : vector<32x32xf32>
    %c63 = arith.constant 63 : index
    %529 = memref.load %arg6[%c63] : memref<144xf32, #tpu.memory_space<smem>>
    %530 = vector.broadcast %529 : f32 to vector<32x32xf32>
    %531 = arith.mulf %530, %524 : vector<32x32xf32>
    %532 = arith.addf %514, %531 : vector<32x32xf32>
    %c99 = arith.constant 99 : index
    %533 = memref.load %arg6[%c99] : memref<144xf32, #tpu.memory_space<smem>>
    %534 = vector.broadcast %533 : f32 to vector<32x32xf32>
    %535 = arith.mulf %534, %524 : vector<32x32xf32>
    %536 = arith.addf %518, %535 : vector<32x32xf32>
    %c135 = arith.constant 135 : index
    %537 = memref.load %arg6[%c135] : memref<144xf32, #tpu.memory_space<smem>>
    %538 = vector.broadcast %537 : f32 to vector<32x32xf32>
    %539 = arith.mulf %538, %524 : vector<32x32xf32>
    %540 = arith.addf %522, %539 : vector<32x32xf32>
    %c3_116 = arith.constant 3 : index
    %c0_117 = arith.constant 0 : index
    %c1_118 = arith.constant 1 : index
    %541 = vector.load %arg8[%c3_116, %c0_117, %c1_118] : memref<4x34x34xf32, #tpu.memory_space<vmem>>, vector<1x32x32xf32>
    %542 = vector.shape_cast %541 : vector<1x32x32xf32> to vector<32x32xf32>
    %c28 = arith.constant 28 : index
    %543 = memref.load %arg6[%c28] : memref<144xf32, #tpu.memory_space<smem>>
    %544 = vector.broadcast %543 : f32 to vector<32x32xf32>
    %545 = arith.mulf %544, %542 : vector<32x32xf32>
    %546 = arith.addf %528, %545 : vector<32x32xf32>
    %c64 = arith.constant 64 : index
    %547 = memref.load %arg6[%c64] : memref<144xf32, #tpu.memory_space<smem>>
    %548 = vector.broadcast %547 : f32 to vector<32x32xf32>
    %549 = arith.mulf %548, %542 : vector<32x32xf32>
    %550 = arith.addf %532, %549 : vector<32x32xf32>
    %c100 = arith.constant 100 : index
    %551 = memref.load %arg6[%c100] : memref<144xf32, #tpu.memory_space<smem>>
    %552 = vector.broadcast %551 : f32 to vector<32x32xf32>
    %553 = arith.mulf %552, %542 : vector<32x32xf32>
    %554 = arith.addf %536, %553 : vector<32x32xf32>
    %c136 = arith.constant 136 : index
    %555 = memref.load %arg6[%c136] : memref<144xf32, #tpu.memory_space<smem>>
    %556 = vector.broadcast %555 : f32 to vector<32x32xf32>
    %557 = arith.mulf %556, %542 : vector<32x32xf32>
    %558 = arith.addf %540, %557 : vector<32x32xf32>
    %c3_119 = arith.constant 3 : index
    %c0_120 = arith.constant 0 : index
    %c2_121 = arith.constant 2 : index
    %559 = vector.load %arg8[%c3_119, %c0_120, %c2_121] : memref<4x34x34xf32, #tpu.memory_space<vmem>>, vector<1x32x32xf32>
    %560 = vector.shape_cast %559 : vector<1x32x32xf32> to vector<32x32xf32>
    %c29 = arith.constant 29 : index
    %561 = memref.load %arg6[%c29] : memref<144xf32, #tpu.memory_space<smem>>
    %562 = vector.broadcast %561 : f32 to vector<32x32xf32>
    %563 = arith.mulf %562, %560 : vector<32x32xf32>
    %564 = arith.addf %546, %563 : vector<32x32xf32>
    %c65 = arith.constant 65 : index
    %565 = memref.load %arg6[%c65] : memref<144xf32, #tpu.memory_space<smem>>
    %566 = vector.broadcast %565 : f32 to vector<32x32xf32>
    %567 = arith.mulf %566, %560 : vector<32x32xf32>
    %568 = arith.addf %550, %567 : vector<32x32xf32>
    %c101 = arith.constant 101 : index
    %569 = memref.load %arg6[%c101] : memref<144xf32, #tpu.memory_space<smem>>
    %570 = vector.broadcast %569 : f32 to vector<32x32xf32>
    %571 = arith.mulf %570, %560 : vector<32x32xf32>
    %572 = arith.addf %554, %571 : vector<32x32xf32>
    %c137 = arith.constant 137 : index
    %573 = memref.load %arg6[%c137] : memref<144xf32, #tpu.memory_space<smem>>
    %574 = vector.broadcast %573 : f32 to vector<32x32xf32>
    %575 = arith.mulf %574, %560 : vector<32x32xf32>
    %576 = arith.addf %558, %575 : vector<32x32xf32>
    %c3_122 = arith.constant 3 : index
    %c1_123 = arith.constant 1 : index
    %c0_124 = arith.constant 0 : index
    %577 = vector.load %arg8[%c3_122, %c1_123, %c0_124] : memref<4x34x34xf32, #tpu.memory_space<vmem>>, vector<1x32x32xf32>
    %578 = vector.shape_cast %577 : vector<1x32x32xf32> to vector<32x32xf32>
    %c30 = arith.constant 30 : index
    %579 = memref.load %arg6[%c30] : memref<144xf32, #tpu.memory_space<smem>>
    %580 = vector.broadcast %579 : f32 to vector<32x32xf32>
    %581 = arith.mulf %580, %578 : vector<32x32xf32>
    %582 = arith.addf %564, %581 : vector<32x32xf32>
    %c66 = arith.constant 66 : index
    %583 = memref.load %arg6[%c66] : memref<144xf32, #tpu.memory_space<smem>>
    %584 = vector.broadcast %583 : f32 to vector<32x32xf32>
    %585 = arith.mulf %584, %578 : vector<32x32xf32>
    %586 = arith.addf %568, %585 : vector<32x32xf32>
    %c102 = arith.constant 102 : index
    %587 = memref.load %arg6[%c102] : memref<144xf32, #tpu.memory_space<smem>>
    %588 = vector.broadcast %587 : f32 to vector<32x32xf32>
    %589 = arith.mulf %588, %578 : vector<32x32xf32>
    %590 = arith.addf %572, %589 : vector<32x32xf32>
    %c138 = arith.constant 138 : index
    %591 = memref.load %arg6[%c138] : memref<144xf32, #tpu.memory_space<smem>>
    %592 = vector.broadcast %591 : f32 to vector<32x32xf32>
    %593 = arith.mulf %592, %578 : vector<32x32xf32>
    %594 = arith.addf %576, %593 : vector<32x32xf32>
    %c3_125 = arith.constant 3 : index
    %c1_126 = arith.constant 1 : index
    %c1_127 = arith.constant 1 : index
    %595 = vector.load %arg8[%c3_125, %c1_126, %c1_127] : memref<4x34x34xf32, #tpu.memory_space<vmem>>, vector<1x32x32xf32>
    %596 = vector.shape_cast %595 : vector<1x32x32xf32> to vector<32x32xf32>
    %c31 = arith.constant 31 : index
    %597 = memref.load %arg6[%c31] : memref<144xf32, #tpu.memory_space<smem>>
    %598 = vector.broadcast %597 : f32 to vector<32x32xf32>
    %599 = arith.mulf %598, %596 : vector<32x32xf32>
    %600 = arith.addf %582, %599 : vector<32x32xf32>
    %c67 = arith.constant 67 : index
    %601 = memref.load %arg6[%c67] : memref<144xf32, #tpu.memory_space<smem>>
    %602 = vector.broadcast %601 : f32 to vector<32x32xf32>
    %603 = arith.mulf %602, %596 : vector<32x32xf32>
    %604 = arith.addf %586, %603 : vector<32x32xf32>
    %c103 = arith.constant 103 : index
    %605 = memref.load %arg6[%c103] : memref<144xf32, #tpu.memory_space<smem>>
    %606 = vector.broadcast %605 : f32 to vector<32x32xf32>
    %607 = arith.mulf %606, %596 : vector<32x32xf32>
    %608 = arith.addf %590, %607 : vector<32x32xf32>
    %c139 = arith.constant 139 : index
    %609 = memref.load %arg6[%c139] : memref<144xf32, #tpu.memory_space<smem>>
    %610 = vector.broadcast %609 : f32 to vector<32x32xf32>
    %611 = arith.mulf %610, %596 : vector<32x32xf32>
    %612 = arith.addf %594, %611 : vector<32x32xf32>
    %c3_128 = arith.constant 3 : index
    %c1_129 = arith.constant 1 : index
    %c2_130 = arith.constant 2 : index
    %613 = vector.load %arg8[%c3_128, %c1_129, %c2_130] : memref<4x34x34xf32, #tpu.memory_space<vmem>>, vector<1x32x32xf32>
    %614 = vector.shape_cast %613 : vector<1x32x32xf32> to vector<32x32xf32>
    %c32 = arith.constant 32 : index
    %615 = memref.load %arg6[%c32] : memref<144xf32, #tpu.memory_space<smem>>
    %616 = vector.broadcast %615 : f32 to vector<32x32xf32>
    %617 = arith.mulf %616, %614 : vector<32x32xf32>
    %618 = arith.addf %600, %617 : vector<32x32xf32>
    %c68 = arith.constant 68 : index
    %619 = memref.load %arg6[%c68] : memref<144xf32, #tpu.memory_space<smem>>
    %620 = vector.broadcast %619 : f32 to vector<32x32xf32>
    %621 = arith.mulf %620, %614 : vector<32x32xf32>
    %622 = arith.addf %604, %621 : vector<32x32xf32>
    %c104 = arith.constant 104 : index
    %623 = memref.load %arg6[%c104] : memref<144xf32, #tpu.memory_space<smem>>
    %624 = vector.broadcast %623 : f32 to vector<32x32xf32>
    %625 = arith.mulf %624, %614 : vector<32x32xf32>
    %626 = arith.addf %608, %625 : vector<32x32xf32>
    %c140 = arith.constant 140 : index
    %627 = memref.load %arg6[%c140] : memref<144xf32, #tpu.memory_space<smem>>
    %628 = vector.broadcast %627 : f32 to vector<32x32xf32>
    %629 = arith.mulf %628, %614 : vector<32x32xf32>
    %630 = arith.addf %612, %629 : vector<32x32xf32>
    %c3_131 = arith.constant 3 : index
    %c2_132 = arith.constant 2 : index
    %c0_133 = arith.constant 0 : index
    %631 = vector.load %arg8[%c3_131, %c2_132, %c0_133] : memref<4x34x34xf32, #tpu.memory_space<vmem>>, vector<1x32x32xf32>
    %632 = vector.shape_cast %631 : vector<1x32x32xf32> to vector<32x32xf32>
    %c33 = arith.constant 33 : index
    %633 = memref.load %arg6[%c33] : memref<144xf32, #tpu.memory_space<smem>>
    %634 = vector.broadcast %633 : f32 to vector<32x32xf32>
    %635 = arith.mulf %634, %632 : vector<32x32xf32>
    %636 = arith.addf %618, %635 : vector<32x32xf32>
    %c69 = arith.constant 69 : index
    %637 = memref.load %arg6[%c69] : memref<144xf32, #tpu.memory_space<smem>>
    %638 = vector.broadcast %637 : f32 to vector<32x32xf32>
    %639 = arith.mulf %638, %632 : vector<32x32xf32>
    %640 = arith.addf %622, %639 : vector<32x32xf32>
    %c105 = arith.constant 105 : index
    %641 = memref.load %arg6[%c105] : memref<144xf32, #tpu.memory_space<smem>>
    %642 = vector.broadcast %641 : f32 to vector<32x32xf32>
    %643 = arith.mulf %642, %632 : vector<32x32xf32>
    %644 = arith.addf %626, %643 : vector<32x32xf32>
    %c141 = arith.constant 141 : index
    %645 = memref.load %arg6[%c141] : memref<144xf32, #tpu.memory_space<smem>>
    %646 = vector.broadcast %645 : f32 to vector<32x32xf32>
    %647 = arith.mulf %646, %632 : vector<32x32xf32>
    %648 = arith.addf %630, %647 : vector<32x32xf32>
    %c3_134 = arith.constant 3 : index
    %c2_135 = arith.constant 2 : index
    %c1_136 = arith.constant 1 : index
    %649 = vector.load %arg8[%c3_134, %c2_135, %c1_136] : memref<4x34x34xf32, #tpu.memory_space<vmem>>, vector<1x32x32xf32>
    %650 = vector.shape_cast %649 : vector<1x32x32xf32> to vector<32x32xf32>
    %c34 = arith.constant 34 : index
    %651 = memref.load %arg6[%c34] : memref<144xf32, #tpu.memory_space<smem>>
    %652 = vector.broadcast %651 : f32 to vector<32x32xf32>
    %653 = arith.mulf %652, %650 : vector<32x32xf32>
    %654 = arith.addf %636, %653 : vector<32x32xf32>
    %c70 = arith.constant 70 : index
    %655 = memref.load %arg6[%c70] : memref<144xf32, #tpu.memory_space<smem>>
    %656 = vector.broadcast %655 : f32 to vector<32x32xf32>
    %657 = arith.mulf %656, %650 : vector<32x32xf32>
    %658 = arith.addf %640, %657 : vector<32x32xf32>
    %c106 = arith.constant 106 : index
    %659 = memref.load %arg6[%c106] : memref<144xf32, #tpu.memory_space<smem>>
    %660 = vector.broadcast %659 : f32 to vector<32x32xf32>
    %661 = arith.mulf %660, %650 : vector<32x32xf32>
    %662 = arith.addf %644, %661 : vector<32x32xf32>
    %c142 = arith.constant 142 : index
    %663 = memref.load %arg6[%c142] : memref<144xf32, #tpu.memory_space<smem>>
    %664 = vector.broadcast %663 : f32 to vector<32x32xf32>
    %665 = arith.mulf %664, %650 : vector<32x32xf32>
    %666 = arith.addf %648, %665 : vector<32x32xf32>
    %c3_137 = arith.constant 3 : index
    %c2_138 = arith.constant 2 : index
    %c2_139 = arith.constant 2 : index
    %667 = vector.load %arg8[%c3_137, %c2_138, %c2_139] : memref<4x34x34xf32, #tpu.memory_space<vmem>>, vector<1x32x32xf32>
    %668 = vector.shape_cast %667 : vector<1x32x32xf32> to vector<32x32xf32>
    %c35 = arith.constant 35 : index
    %669 = memref.load %arg6[%c35] : memref<144xf32, #tpu.memory_space<smem>>
    %670 = vector.broadcast %669 : f32 to vector<32x32xf32>
    %671 = arith.mulf %670, %668 : vector<32x32xf32>
    %672 = arith.addf %654, %671 : vector<32x32xf32>
    %c71 = arith.constant 71 : index
    %673 = memref.load %arg6[%c71] : memref<144xf32, #tpu.memory_space<smem>>
    %674 = vector.broadcast %673 : f32 to vector<32x32xf32>
    %675 = arith.mulf %674, %668 : vector<32x32xf32>
    %676 = arith.addf %658, %675 : vector<32x32xf32>
    %c107 = arith.constant 107 : index
    %677 = memref.load %arg6[%c107] : memref<144xf32, #tpu.memory_space<smem>>
    %678 = vector.broadcast %677 : f32 to vector<32x32xf32>
    %679 = arith.mulf %678, %668 : vector<32x32xf32>
    %680 = arith.addf %662, %679 : vector<32x32xf32>
    %c143 = arith.constant 143 : index
    %681 = memref.load %arg6[%c143] : memref<144xf32, #tpu.memory_space<smem>>
    %682 = vector.broadcast %681 : f32 to vector<32x32xf32>
    %683 = arith.mulf %682, %668 : vector<32x32xf32>
    %684 = arith.addf %666, %683 : vector<32x32xf32>
    %685 = arith.negf %672 : vector<32x32xf32>
    %686 = math.exp %685 : vector<32x32xf32>
    %cst_140 = arith.constant 1.000000e+00 : f32
    %687 = vector.broadcast %cst_140 : f32 to vector<32x32xf32>
    %688 = arith.addf %687, %686 : vector<32x32xf32>
    %689 = arith.divf %687, %688 : vector<32x32xf32>
    %690 = arith.mulf %672, %689 : vector<32x32xf32>
    %691 = arith.negf %676 : vector<32x32xf32>
    %692 = math.exp %691 : vector<32x32xf32>
    %cst_141 = arith.constant 1.000000e+00 : f32
    %693 = vector.broadcast %cst_141 : f32 to vector<32x32xf32>
    %694 = arith.addf %693, %692 : vector<32x32xf32>
    %695 = arith.divf %693, %694 : vector<32x32xf32>
    %696 = arith.mulf %676, %695 : vector<32x32xf32>
    %697 = arith.negf %680 : vector<32x32xf32>
    %698 = math.exp %697 : vector<32x32xf32>
    %cst_142 = arith.constant 1.000000e+00 : f32
    %699 = vector.broadcast %cst_142 : f32 to vector<32x32xf32>
    %700 = arith.addf %699, %698 : vector<32x32xf32>
    %701 = arith.divf %699, %700 : vector<32x32xf32>
    %702 = arith.mulf %680, %701 : vector<32x32xf32>
    %703 = arith.negf %684 : vector<32x32xf32>
    %704 = math.exp %703 : vector<32x32xf32>
    %cst_143 = arith.constant 1.000000e+00 : f32
    %705 = vector.broadcast %cst_143 : f32 to vector<32x32xf32>
    %706 = arith.addf %705, %704 : vector<32x32xf32>
    %707 = arith.divf %705, %706 : vector<32x32xf32>
    %708 = arith.mulf %684, %707 : vector<32x32xf32>
    %709 = arith.negf %690 : vector<32x32xf32>
    %710 = math.exp %709 : vector<32x32xf32>
    %cst_144 = arith.constant 1.000000e+00 : f32
    %711 = vector.broadcast %cst_144 : f32 to vector<32x32xf32>
    %712 = arith.addf %711, %710 : vector<32x32xf32>
    %713 = arith.divf %711, %712 : vector<32x32xf32>
    %714 = arith.mulf %690, %713 : vector<32x32xf32>
    %715 = arith.negf %696 : vector<32x32xf32>
    %716 = math.exp %715 : vector<32x32xf32>
    %cst_145 = arith.constant 1.000000e+00 : f32
    %717 = vector.broadcast %cst_145 : f32 to vector<32x32xf32>
    %718 = arith.addf %717, %716 : vector<32x32xf32>
    %719 = arith.divf %717, %718 : vector<32x32xf32>
    %720 = arith.mulf %696, %719 : vector<32x32xf32>
    %721 = arith.negf %702 : vector<32x32xf32>
    %722 = math.exp %721 : vector<32x32xf32>
    %cst_146 = arith.constant 1.000000e+00 : f32
    %723 = vector.broadcast %cst_146 : f32 to vector<32x32xf32>
    %724 = arith.addf %723, %722 : vector<32x32xf32>
    %725 = arith.divf %723, %724 : vector<32x32xf32>
    %726 = arith.mulf %702, %725 : vector<32x32xf32>
    %727 = arith.negf %708 : vector<32x32xf32>
    %728 = math.exp %727 : vector<32x32xf32>
    %cst_147 = arith.constant 1.000000e+00 : f32
    %729 = vector.broadcast %cst_147 : f32 to vector<32x32xf32>
    %730 = arith.addf %729, %728 : vector<32x32xf32>
    %731 = arith.divf %729, %730 : vector<32x32xf32>
    %732 = arith.mulf %708, %731 : vector<32x32xf32>
    %c0_148 = arith.constant 0 : index
    %c0_149 = arith.constant 0 : index
    %733 = vector.load %arg5[%c0_148, %c0_149] : memref<32x64xf32, #tpu.memory_space<vmem>>, vector<32x64xf32>
    %c0_150 = arith.constant 0 : index
    %c0_151 = arith.constant 0 : index
    %734 = vector.load %arg4[%c0_150, %c0_151] : memref<64x32xf32, #tpu.memory_space<vmem>>, vector<64x32xf32>
    %735 = vector.shape_cast %714 : vector<32x32xf32> to vector<1x32x32xf32>
    %736 = vector.shape_cast %720 : vector<32x32xf32> to vector<1x32x32xf32>
    %737 = vector.shape_cast %726 : vector<32x32xf32> to vector<1x32x32xf32>
    %738 = vector.shape_cast %732 : vector<32x32xf32> to vector<1x32x32xf32>
    %739 = tpu.concatenate %735, %736, %737, %738 in 0 : vector<1x32x32xf32>, vector<1x32x32xf32>, vector<1x32x32xf32>, vector<1x32x32xf32> -> vector<4x32x32xf32>
    %740 = vector.shape_cast %739 : vector<4x32x32xf32> to vector<128x32xf32>
    %cst_152 = arith.constant dense<0.000000e+00> : vector<128x64xf32>
    %741 = tpu.matmul %740, %733, %cst_152 {dimension_numbers = #tpu.dot_dimension_numbers<[1], [0], [0], [1], [0, 0, 1, 1], [], []>} : vector<128x32xf32>, vector<32x64xf32>, vector<128x64xf32> -> vector<128x64xf32>
    %742 = vector.shape_cast %741 : vector<128x64xf32> to vector<4x32x64xf32>
    %743 = vector.extract_strided_slice %742 {offsets = [0, 0, 0], sizes = [1, 32, 64], strides = [1, 1, 1]} : vector<4x32x64xf32> to vector<1x32x64xf32>
    %744 = vector.shape_cast %743 : vector<1x32x64xf32> to vector<32x64xf32>
    %cst_153 = arith.constant dense<0.000000e+00> : vector<64x64xf32>
    %745 = tpu.matmul %734, %744, %cst_153 {dimension_numbers = #tpu.dot_dimension_numbers<[1], [0], [0], [1], [0, 0, 1, 1], [], []>} : vector<64x32xf32>, vector<32x64xf32>, vector<64x64xf32> -> vector<64x64xf32>
    %746 = vector.extract_strided_slice %742 {offsets = [1, 0, 0], sizes = [1, 32, 64], strides = [1, 1, 1]} : vector<4x32x64xf32> to vector<1x32x64xf32>
    %747 = vector.shape_cast %746 : vector<1x32x64xf32> to vector<32x64xf32>
    %cst_154 = arith.constant dense<0.000000e+00> : vector<64x64xf32>
    %748 = tpu.matmul %734, %747, %cst_154 {dimension_numbers = #tpu.dot_dimension_numbers<[1], [0], [0], [1], [0, 0, 1, 1], [], []>} : vector<64x32xf32>, vector<32x64xf32>, vector<64x64xf32> -> vector<64x64xf32>
    %749 = vector.extract_strided_slice %742 {offsets = [2, 0, 0], sizes = [1, 32, 64], strides = [1, 1, 1]} : vector<4x32x64xf32> to vector<1x32x64xf32>
    %750 = vector.shape_cast %749 : vector<1x32x64xf32> to vector<32x64xf32>
    %cst_155 = arith.constant dense<0.000000e+00> : vector<64x64xf32>
    %751 = tpu.matmul %734, %750, %cst_155 {dimension_numbers = #tpu.dot_dimension_numbers<[1], [0], [0], [1], [0, 0, 1, 1], [], []>} : vector<64x32xf32>, vector<32x64xf32>, vector<64x64xf32> -> vector<64x64xf32>
    %752 = vector.extract_strided_slice %742 {offsets = [3, 0, 0], sizes = [1, 32, 64], strides = [1, 1, 1]} : vector<4x32x64xf32> to vector<1x32x64xf32>
    %753 = vector.shape_cast %752 : vector<1x32x64xf32> to vector<32x64xf32>
    %cst_156 = arith.constant dense<0.000000e+00> : vector<64x64xf32>
    %754 = tpu.matmul %734, %753, %cst_156 {dimension_numbers = #tpu.dot_dimension_numbers<[1], [0], [0], [1], [0, 0, 1, 1], [], []>} : vector<64x32xf32>, vector<32x64xf32>, vector<64x64xf32> -> vector<64x64xf32>
    %755 = vector.shape_cast %745 : vector<64x64xf32> to vector<1x64x64xf32>
    %756 = vector.shape_cast %748 : vector<64x64xf32> to vector<1x64x64xf32>
    %757 = vector.shape_cast %751 : vector<64x64xf32> to vector<1x64x64xf32>
    %758 = vector.shape_cast %754 : vector<64x64xf32> to vector<1x64x64xf32>
    %759 = tpu.concatenate %755, %756, %757, %758 in 0 : vector<1x64x64xf32>, vector<1x64x64xf32>, vector<1x64x64xf32>, vector<1x64x64xf32> -> vector<4x64x64xf32>
    %760 = vector.shape_cast %759 : vector<4x64x64xf32> to vector<4x4096xf32>
    %c0_157 = arith.constant 0 : index
    %c0_158 = arith.constant 0 : index
    %c0_159 = arith.constant 0 : index
    %761 = vector.load %arg7[%c0_157, %c0_158, %c0_159] : memref<1x4x4096xf32, #tpu.memory_space<vmem>>, vector<1x4x4096xf32>
    %762 = vector.shape_cast %761 : vector<1x4x4096xf32> to vector<4x4096xf32>
    %763 = vector.shape_cast %760 : vector<4x4096xf32> to vector<1x4x4096xf32>
    tpu.vector_store %arg7[%c0_157, %c0_158, %c0_159], %763 {strides = array<i32>} : memref<1x4x4096xf32, #tpu.memory_space<vmem>>, vector<1x4x4096xf32>,
    return
  }
  func.func @transform_0(%arg0: i32) -> (i32, i32, i32, i32) {
    %c0_i32 = arith.constant 0 : i32
    %c0_i32_0 = arith.constant 0 : i32
    %c0_i32_1 = arith.constant 0 : i32
    %c0_i32_2 = arith.constant 0 : i32
    return %arg0, %c0_i32, %c0_i32_0, %c0_i32_1 : i32, i32, i32, i32
  }
  func.func @transform_1(%arg0: i32) -> (i32, i32) {
    %c0_i32 = arith.constant 0 : i32
    %c0_i32_0 = arith.constant 0 : i32
    %c0_i32_1 = arith.constant 0 : i32
    return %c0_i32, %c0_i32_0 : i32, i32
  }
  func.func @transform_2(%arg0: i32) -> (i32, i32) {
    %c0_i32 = arith.constant 0 : i32
    %c0_i32_0 = arith.constant 0 : i32
    %c0_i32_1 = arith.constant 0 : i32
    return %c0_i32, %c0_i32_0 : i32, i32
  }
  func.func @transform_3(%arg0: i32) -> (i32, i32) {
    %c0_i32 = arith.constant 0 : i32
    %c0_i32_0 = arith.constant 0 : i32
    %c0_i32_1 = arith.constant 0 : i32
    return %c0_i32, %c0_i32_0 : i32, i32
  }
  func.func @transform_4(%arg0: i32) -> (i32, i32) {
    %c0_i32 = arith.constant 0 : i32
    %c0_i32_0 = arith.constant 0 : i32
    %c0_i32_1 = arith.constant 0 : i32
    return %c0_i32, %c0_i32_0 : i32, i32
  }
  func.func @transform_5(%arg0: i32) -> i32 {
    %c0_i32 = arith.constant 0 : i32
    %c0_i32_0 = arith.constant 0 : i32
    return %c0_i32 : i32
  }
  func.func @transform_6(%arg0: i32) -> (i32, i32, i32) {
    %c0_i32 = arith.constant 0 : i32
    %c0_i32_0 = arith.constant 0 : i32
    %c0_i32_1 = arith.constant 0 : i32
    return %arg0, %c0_i32, %c0_i32_0 : i32, i32, i32
  }
}

</mosaic_0001>

<bundles_post_ra>
// kernel: interp2d_upsample_forward.1
= control target key start
LH: loop header
LB: loop body
LE: loop exit
PB: predicated region body
PF: predicated region fallthrough
CT: control target
= control target key end

     0   :  { %11 = vsyncpa [#allocation4], 0  ;;  %s10357_s0 = inlined_call_operand.vmem [shape: f32[2,4,16,16], index: 0, kind: input, shape index: {}]   ;;  %s10358_s1 = inlined_call_operand.hbm [shape: f32[32,16], index: 1, kind: input, shape index: {}]   ;;  %s10359_s2 = inlined_call_operand.hbm [shape: f32[16,32], index: 2, kind: input, shape index: {}]   ;;  %s10360_s3 = inlined_call_operand.hbm [shape: f32[64,32], index: 3, kind: input, shape index: {}]   ;;  %s10361_s4 = inlined_call_operand.vmem [shape: f32[32,64], index: 4, kind: input, shape index: {}]   ;;  %s10362_s5 = inlined_call_operand.vmem [shape: f32[144], index: 5, kind: input, shape index: {}]   ;;  %s10363_s6 = inlined_call_operand.vmem [shape: f32[2,4,4096], index: 6, kind: output, shape index: {}]  }
   0x1   :  { %12 = vsyncpa [#allocation7], 0 }
   0x2   :  { %13 = vsyncpa [#allocation5], 0  ;;  %s6633_s21 = smov 0  }
   0x3 LB: > { %s6639_s22 = sadd.s32 4294967295, %s6583_s21   ;;  %p5695_p0 = scmp.ge.s32.totalorder %s6583_s21, 1  ;;  %s6583_s21 = sphi %s6633_s21, %s19_s21  }
   0x4   : > { %p181_p1 = scmp.lt.s32.totalorder %s6583_s21, 3  ;;  %p6260_p2 = scmp.eq.s32.totalorder %s6639_s22, 0 }
   0x5   : > { %s6585_s24 = smov [#allocation6]   ;;  %s6586_s26 = smov [#allocation3]  }
   0x6   : > { %p6644_p3 = pnand %p5695_p0, %p181_p1  ;;  %s206_s25 = sshll.u32 %s6585_s24, 4  ;;  %s207_s25 = int_to_ptr.vmem [resolvable:$true] %s206_s25 }
   0x7   : > { %s193_s27 = sshll.u32 %s6586_s26, 4  ;;  %s6587_s29 = smov [#allocation8]   ;;  %s6650_s27 = int_to_ptr.vmem [resolvable:$true] %s193_s27 }
   0x8   : > { %p6247_p4 = pneg %p6644_p3  ;;  %s219_s30 = sshll.u32 %s6587_s29, 4  ;;  %s6658_s30 = int_to_ptr.vmem [resolvable:$true] %s219_s30 }
   0x9   : > { %s236_s9 = sshll.u32 %s10362_s5, 4  ;;  %s6483_s10 = scalar_lea.vmem %s207_s25, 256  ;;  %s6663_s9 = int_to_ptr.vmem [resolvable:$true] %s236_s9 }
   0xa   : > { %p6654_p5 = pnand %p6260_p2, %p6247_p4  ;;  %p6484_p7 = scmp.ne.s32.totalorder %s207_s25, %s6483_s10 }
   0xb   : > { %p6491_p10 = scmp.lt.s32.totalorder %s207_s25, %s207_s25  ;;  %p6492_p11 = scmp.lt.s32.totalorder %s6483_s10, %s6483_s10 }
   0xc   : > { %p6474_p6 = pneg %p6654_p5 }
   0xd   : > { %p6493_p12 = por %p6492_p11, %p6491_p10 }
   0xe   : > { %p6486_p8 = pnand %p6484_p7, %p6474_p6 }
  0x10   : > { %p6487_p9 = pneg %p6486_p8 }
  0x12   : > { %p6494_p13 = pnand %p6493_p12, %p6487_p9 }
  0x14   : > { %6497 = shalt.err (!%p6494_p13)
}
  0x15   : > { %s6588_s11 = smov 128   ;;  %s6589_s12 = smov 8  }
  0x16   : > { %6253 = dma.hbm_to_vmem [thread:$0]  (!%p6654_p5), %s10359_s2, 256, %s207_s25, [#allocation7], %s6588_s11, %s6588_s11, %s6589_s12  }
  0x17   : > { %s6509_s15 = scalar_lea.vmem %s6650_s27, 512  ;;  %p6517_p7 = scmp.lt.s32.totalorder %s6650_s27, %s6650_s27 }
  0x18   : > { %p6510_p0 = scmp.ne.s32.totalorder %s6650_s27, %s6509_s15  ;;  %p6518_p8 = scmp.lt.s32.totalorder %s6509_s15, %s6509_s15 }
  0x1a   : > { %p6512_p1 = pnand %p6510_p0, %p6474_p6  ;;  %p6519_p9 = por %p6518_p8, %p6517_p7 }
  0x1c   : > { %p6513_p4 = pneg %p6512_p1 }
  0x1e   : > { %p6520_p10 = pnand %p6519_p9, %p6513_p4 }
  0x20   : > { %6523 = shalt.err (!%p6520_p10)
}
  0x21   : > { %6250 = dma.hbm_to_vmem [thread:$0]  (!%p6654_p5), %s10358_s1, 512, %s6650_s27, [#allocation4], %s6588_s11, %s6588_s11, %s6589_s12  }
  0x22   : > { %s6535_s18 = scalar_lea.vmem %s6658_s30, 1024  ;;  %p6543_p0 = scmp.lt.s32.totalorder %s6658_s30, %s6658_s30 }
  0x23   : > { %p6536_p11 = scmp.ne.s32.totalorder %s6658_s30, %s6535_s18  ;;  %p6544_p1 = scmp.lt.s32.totalorder %s6535_s18, %s6535_s18 }
  0x25   : > { %p6538_p12 = pnand %p6536_p11, %p6474_p6  ;;  %p6545_p4 = por %p6544_p1, %p6543_p0 }
  0x27   : > { %p6539_p13 = pneg %p6538_p12 }
  0x29   : > { %p6546_p7 = pnand %p6545_p4, %p6539_p13 }
  0x2b   : > { %6549 = shalt.err (!%p6546_p7)
}
  0x2c   : > { %6256 = dma.hbm_to_vmem [thread:$0]  (!%p6654_p5), %s10360_s3, 1024, %s6658_s30, [#allocation7], %s6588_s11, %s6588_s11, %s6589_s12  }
  0x2d   : > { %s6550_s24 = scalar_lea.vmem %s6663_s9, 32  ;;  %p6558_p11 = scmp.lt.s32.totalorder %s6663_s9, %s6663_s9 }
  0x2e   : > { %p6551_p8 = scmp.ne.s32.totalorder %s6663_s9, %s6550_s24  ;;  %p6559_p12 = scmp.lt.s32.totalorder %s6550_s24, %s6550_s24 }
  0x30   : > { %p6553_p9 = pnand %p6551_p8, %p6474_p6  ;;  %p6560_p13 = por %p6559_p12, %p6558_p11 }
  0x32   : > { %p6554_p10 = pneg %p6553_p9 }
  0x34   : > { %p6561_p0 = pnand %p6560_p13, %p6554_p10 }
  0x36   : > { %6564 = shalt.err (!%p6561_p0)
}
  0x37   : > { %s6590_s25 = smov [#allocation9]   ;;  %257 = sbr.rel (%p6644_p3) target bundleno = 2127 (0x84f), region = 44 }
  0x38   : > { %6259 = dma.vmem_to_smem (!%p6654_p5), %s6663_s9, 32, %s6590_s25, [#allocation5]  }
  0x3c   : > { %6570 = dma.done.wait (%p6260_p2), [#allocation4], 512  }
  0x3d   : > { %6572 = vsyncadd (%p6260_p2), [#allocation4], 4294966784 }
  0x3e   : > { %6574 = dma.done.wait (%p6260_p2), [#allocation7], 1280  }
  0x3f   : > { %6576 = vsyncadd (%p6260_p2), [#allocation7], 4294966016 }
  0x40   : > { %6578 = dma.done.wait (%p6260_p2), [#allocation5], 32  }
  0x41   : > { %6580 = vsyncadd (%p6260_p2), [#allocation5], 4294967264 }
  0x42   : > { %275 = sfence }
  0x43   : > { %v319_v0 = vld [vmem:[#allocation6 + $0x8] sm:$0xff]  ;;  %v318_v1 = vld [vmem:[#allocation6] sm:$0xff]  ;;  %p300_p3 = scmp.lt.s32.totalorder %s6639_s22, 1  ;;  %vm324_vm0 = vcmask 130048   ;;  %v322_v14 = vld [vmem:[#allocation3 + $0x10] sm:$0xff]  ;;  %vm806_vm1 = vcmask 277504  }
  0x44   : > { %6063 = vmatprep.subr.mxu0 %v319_v0  ;;  %v320_v10 = vld [vmem:[#allocation3] sm:$0xff]  ;;  %v321_v13 = vld [vmem:[#allocation3 + $0x8] sm:$0xff]  ;;  %v323_v16 = vld [vmem:[#allocation3 + $0x18] sm:$0xff]  ;;  %v10364_v22 = vmov 0.0   ;;  %vm811_vm2 = vcmask 271360   ;;  %s6592_s29 = smov 1  }
  0x45   : > { %6064 = vmatpush3.msra.mxu0 %v319_v0  ;;  %s10924_s22 = smov (!%p300_p3, %s6639_s22), 1  ;;  %6083 = vmatprep.mubr.msk.f32.mxu1 %vm324_vm0, %v320_v10  ;;  %808 = vst.msk [vmem:[#allocation2 + $0x8] sm:$0xff] %vm806_vm1, %v10364_v22  ;;  %809 = vst.msk [vmem:[#allocation2 + $0x10] sm:$0xff] %vm806_vm1, %v10364_v22  ;;  %vm844_vm3 = vcmask 269320   ;;  %s5749_s30 = sld [smem:[#allocation9 + $0x4]]  ;;  %vm4172_vm4 = vcmask 261120  }
  0x46   : > { %6065 = vmatprep.subr.mxu0 %v318_v1  ;;  %s5959_s23 = sshll.u32 %s10924_s22, 6  ;;  %807 = vst.msk [vmem:[#allocation2] sm:$0xff] %vm806_vm1, %v10364_v22  ;;  %810 = vst.msk [vmem:[#allocation2 + $0x18] sm:$0xff] %vm806_vm1, %v10364_v22  ;;  %s5750_s7 = sld [smem:[#allocation9 + $0x28]]  ;;  %vm5482_vm5 = vcmask 523264  }
  0x47   : > { %6066 = vmatpush3.msra.mxu0 %v318_v1  ;;  %s304_s28 = scalar_lea.vmem %s10357_s0, %s5959_s23  ;;  %813 = vst.msk [vmem:[#allocation2 + $0x28] sm:$0xff] %vm806_vm1, %v10364_v22  ;;  %814 = vst.msk [vmem:[#allocation2 + $0x30] sm:$0xff] %vm806_vm1, %v10364_v22  ;;  %s5737_s8 = sld [smem:[#allocation9 + $0x1]] }
  0x48   : > { %v310_v2 = vld [vmem:[%s304_s28] sm:$0xff]  ;;  %v311_v3 = vld [vmem:[%s304_s28 + $0x8] sm:$0xff]  ;;  %v312_v4 = vld [vmem:[%s304_s28 + $0x10] sm:$0xff]  ;;  %815 = vst.msk [vmem:[#allocation2 + $0x38] sm:$0xff] %vm806_vm1, %v10364_v22  ;;  %s5751_s9 = sld [smem:[#allocation9 + $0x4c]]  ;;  %s6593_s13 = smov 127  }
  0x49   : > { %6067 = vmatprep.mubr.msk.f32.mxu0 %vm324_vm0, %v310_v2  ;;  %v313_v5 = vld [vmem:[%s304_s28 + $0x18] sm:$0xff]  ;;  %v314_v6 = vld [vmem:[%s304_s28 + $0x20] sm:$0xff]  ;;  %v315_v7 = vld [vmem:[%s304_s28 + $0x28] sm:$0xff]  ;;  %816 = vst.msk [vmem:[#allocation2 + $0x40] sm:$0xff] %vm806_vm1, %v10364_v22  ;;  %s5738_s10 = sld [smem:[#allocation9 + $0x25]]  ;;  %s6594_s25 = smov 126  }
  0x4a   : > { %6068 = vmatmul.mubr.msk.f32.vlgmr.msra.gmra.mxu0 %vm324_vm0, %v311_v3  ;;  %v316_v8 = vld [vmem:[%s304_s28 + $0x30] sm:$0xff]  ;;  %v317_v9 = vld [vmem:[%s304_s28 + $0x38] sm:$0xff]  ;;  %818 = vst.msk [vmem:[#allocation2 + $0x50] sm:$0xff] %vm806_vm1, %v10364_v22  ;;  %819 = vst.msk [vmem:[#allocation2 + $0x58] sm:$0xff] %vm806_vm1, %v10364_v22  ;;  %s5752_s11 = sld [smem:[#allocation9 + $0x70]] }
  0x4b   : > { %6070 = vmatprep.mubr.msk.f32.mxu0 %vm324_vm0, %v312_v4  ;;  %820 = vst.msk [vmem:[#allocation2 + $0x60] sm:$0xff] %vm806_vm1, %v10364_v22  ;;  %821 = vst.msk [vmem:[#allocation2 + $0x68] sm:$0xff] %vm806_vm1, %v10364_v22  ;;  %v6812_v42 = vstv %s5749_s30  ;;  %s5739_s12 = sld [smem:[#allocation9 + $0x49]] }
  0x4c   : > { %823 = vst.msk [vmem:[#allocation2 + $0x78] sm:$0xff] %vm806_vm1, %v10364_v22  ;;  %824 = vst.msk [vmem:[#allocation2 + $0x80] sm:$0xff] %vm806_vm1, %v10364_v22  ;;  %v6819_v46 = vstv %s5750_s7  ;;  %s5753_s14 = sld [smem:[#allocation9 + $0x5]] }
  0x4d   : > { %825 = vst.msk [vmem:[#allocation2 + $0x88] sm:$0xff] %vm806_vm1, %v10364_v22  ;;  %826 = vst.msk [vmem:[#allocation2 + $0x90] sm:$0xff] %vm806_vm1, %v10364_v22  ;;  %v6821_v47 = vstv %s5737_s8  ;;  %s5740_s15 = sld [smem:[#allocation9 + $0x6d]] }
  0x4e   : > { %6071 = vmatmul.mubr.msk.f32.gmra.mxu0 %vm324_vm0, %v313_v5  ;;  %812 = vst.msk [vmem:[#allocation2 + $0x20] sm:$0x3] %vm811_vm2, %v10364_v22  ;;  %817 = vst.msk [vmem:[#allocation2 + $0x48] sm:$0x3] %vm811_vm2, %v10364_v22  ;;  %v6832_v53 = vstv %s5751_s9  ;;  %s5754_s16 = sld [smem:[#allocation9 + $0x29]] }
  0x4f   : > { %6073 = vmatprep.mubr.msk.f32.mxu0 %vm324_vm0, %v314_v6  ;;  %822 = vst.msk [vmem:[#allocation2 + $0x70] sm:$0x3] %vm811_vm2, %v10364_v22  ;;  %827 = vst.msk [vmem:[#allocation2 + $0x98] sm:$0x3] %vm811_vm2, %v10364_v22  ;;  %v6834_v54 = vstv %s5738_s10  ;;  %s5741_s17 = sld [smem:[#allocation9 + $0x2]] }
  0x50   : > { %v6844_v59 = vstv %s5752_s11  ;;  %s5755_s18 = sld [smem:[#allocation9 + $0x4d]] }
  0x51   : > { %v6846_v60 = vstv %s5739_s12  ;;  %s5742_s19 = sld [smem:[#allocation9 + $0x26]] }
  0x52   : > { %6074 = vmatmul.mubr.msk.f32.gmra.mxu0 %vm324_vm0, %v315_v7  ;;  %v6856_v1 = vstv %s5753_s14  ;;  %s5756_s20 = sld [smem:[#allocation9 + $0x71]] }
  0x53   : > { %6076 = vmatprep.mubr.msk.f32.mxu0 %vm324_vm0, %v316_v8  ;;  %v6858_v2 = vstv %s5740_s15  ;;  %s5743_s24 = sld [smem:[#allocation9 + $0x4a]] }
  0x54   : > { %v6868_v7 = vstv %s5754_s16  ;;  %s5744_s23 = sld [smem:[#allocation9 + $0x6e]] }
  0x55   : > { %v6870_v8 = vstv %s5741_s17  ;;  %s5764_s26 = sld [smem:[#allocation9 + $0x73]] }
  0x56   : > { %6077 = vmatmul.mubr.msk.f32.gmra.mxu0 %vm324_vm0, %v317_v9  ;;  %s5791_s27 = sld [smem:[#allocation9 + $0x56]] }
  0x57   : > { %6103 = vmatprep.mubr.msk.f32.mxu0 %vm324_vm0, %v320_v10  ;;  %s5792_s28 = sld [smem:[#allocation9 + $0x7a]] }
  0x58   : > { %s5761_s30 = sld [smem:[#allocation9 + $0x7]] }
  0x59   : > { %s5762_s7 = sld [smem:[#allocation9 + $0x2b]] }
  0x5a   : > { %s5766_s8 = sld [smem:[#allocation9 + $0x2c]] }
  0x5b   : > { %s5763_s9 = sld [smem:[#allocation9 + $0x4f]] }
  0x5c   : > { %s5767_s10 = sld [smem:[#allocation9 + $0x50]] }
  0x5d   : > { %s5787_s11 = sld [smem:[#allocation9 + $0x55]] }
  0x5e   : > { %s7010_s12 = sld [smem:[#allocation9 + $0x79]] }
  0x5f   : > { %s5803_s14 = sld [smem:[#allocation9 + $0x59]] }
  0x60   : > { %s5799_s15 = sld [smem:[#allocation9 + $0x58]] }
  0x61   : > { %s5780_s16 = sld [smem:[#allocation9 + $0x77]] }
  0x62   : > { %s5776_s17 = sld [smem:[#allocation9 + $0x76]] }
 0x10a   : > { %v6069_v11 = vpop.f32.mrf.mxu0 }
 0x10b   : > { %6079 = vmatprep.subr.mxu1 %v6069_v11 }
 0x10c   : > { %v415_v12 = vpop.f32.mrf.mxu0  ;;  %6080 = vmatpush3.msra.mxu1 %v6069_v11 }
 0x10d   : > { %6081 = vmatprep.subr.mxu1 %v415_v12 }
 0x10e   : > { %6082 = vmatpush3.msra.mxu1 %v415_v12  ;;  %v6072_v15 = vpop.f32.mrf.mxu0 }
 0x10f   : > { %6084 = vmatmul.mubr.msk.f32.vlgmr.msra.gmra.mxu1 %vm324_vm0, %v321_v13  ;;  %6089 = vmatprep.subr.mxu1 %v6072_v15 }
 0x110   : > { %6086 = vmatprep.mubr.msk.f32.mxu1 %vm324_vm0, %v322_v14  ;;  %v425_v17 = vpop.f32.mrf.mxu0  ;;  %6090 = vmatpush3.msra.mxu1 %v6072_v15 }
 0x111   : > { %6091 = vmatprep.subr.mxu1 %v425_v17 }
 0x112   : > { %v6075_v18 = vpop.f32.mrf.mxu0  ;;  %6092 = vmatpush3.msra.mxu1 %v425_v17 }
 0x113   : > { %6087 = vmatmul.mubr.msk.f32.gmra.mxu1 %vm324_vm0, %v323_v16  ;;  %6099 = vmatprep.subr.mxu0 %v6075_v18 }
 0x114   : > { %6093 = vmatprep.mubr.msk.f32.mxu1 %vm324_vm0, %v320_v10  ;;  %v435_v19 = vpop.f32.mrf.mxu0  ;;  %6100 = vmatpush3.msra.mxu0 %v6075_v18 }
 0x115   : > { %6101 = vmatprep.subr.mxu0 %v435_v19 }
 0x116   : > { %6102 = vmatpush3.msra.mxu0 %v435_v19  ;;  %v6078_v20 = vpop.f32.mrf.mxu0  ;;  %v6892_v19 = vstv %s5756_s20  ;;  %s5768_s20 = sld [smem:[#allocation9 + $0x74]] }
 0x117   : > { %6094 = vmatmul.mubr.msk.f32.vlgmr.msra.gmra.mxu1 %vm324_vm0, %v321_v13  ;;  %6104 = vmatmul.mubr.msk.f32.vlgmr.msra.gmra.mxu0 %vm324_vm0, %v321_v13 }
 0x118   : > { %6096 = vmatprep.mubr.msk.f32.mxu1 %vm324_vm0, %v322_v14  ;;  %6106 = vmatprep.mubr.msk.f32.mxu0 %vm324_vm0, %v322_v14  ;;  %v445_v21 = vpop.f32.mrf.mxu0 }
 0x119   : > { %6109 = vmatprep.subr.mxu1 %v6078_v20 }
 0x11a   : > { %6110 = vmatpush3.msra.mxu1 %v6078_v20  ;;  %v6894_v20 = vstv %s5743_s24  ;;  %s916_s24 = sld [smem:[#allocation9]] }
 0x11b   : > { %6097 = vmatmul.mubr.msk.f32.gmra.mxu1 %vm324_vm0, %v323_v16  ;;  %6107 = vmatmul.mubr.msk.f32.gmra.mxu0 %vm324_vm0, %v323_v16 }
 0x11c   : > { %6111 = vmatprep.subr.mxu1 %v445_v21  ;;  %6113 = vmatprep.mubr.msk.f32.mxu1 %vm324_vm0, %v320_v10 }
 0x11d   : > { %6112 = vmatpush3.msra.mxu1 %v445_v21 }
 0x11f   : > { %6114 = vmatmul.mubr.msk.f32.vlgmr.msra.gmra.mxu1 %vm324_vm0, %v321_v13  ;;  %v6880_v13 = vstv %s5755_s18  ;;  %s5804_s18 = sld [smem:[#allocation9 + $0x7d]] }
 0x120   : > { %6116 = vmatprep.mubr.msk.f32.mxu1 %vm324_vm0, %v322_v14  ;;  %v6882_v14 = vstv %s5742_s19  ;;  %s5800_s19 = sld [smem:[#allocation9 + $0x7c]] }
 0x123   : > { %6117 = vmatmul.mubr.msk.f32.gmra.mxu1 %vm324_vm0, %v323_v16 }
 0x1cf   : > { %v6085_v23 = vpop.f32.mrf.mxu1 }
 0x1d0   : > { %834 = vrot.lane.b32.xlu0 %v6085_v23, %s6592_s29 }
 0x1d1   : > { %v532_v24 = vpop.f32.mrf.mxu1 }
 0x1d3   : > { %v6088_v25 = vpop.f32.mrf.mxu1 }
 0x1d4   : > { %832 = vrot.lane.b32.xlu0 %v532_v24, %s6592_s29  ;;  %838 = vrot.lane.b32.xlu1 %v6088_v25, %s6592_s29  ;;  %v6904_v25 = vstv %s5744_s23  ;;  %s5734_s23 = sld [smem:[#allocation9 + $0x24]] }
 0x1d5   : > { %v542_v26 = vpop.f32.mrf.mxu1 }
 0x1d7   : > { %v6095_v27 = vpop.f32.mrf.mxu1  ;;  %v6105_v28 = vpop.f32.mrf.mxu0 }
 0x1d8   : > { %836 = vrot.lane.b32.xlu1 %v542_v26, %s6592_s29 }
 0x1d9   : > { %v617_v29 = vpop.f32.mrf.mxu1  ;;  %v702_v30 = vpop.f32.mrf.mxu0 }
 0x1da   : > { %853 = vrot.lane.b32.xlu0 %v617_v29, %s6592_s29 }
 0x1db   : > { %v6098_v31 = vpop.f32.mrf.mxu1  ;;  %v6108_v33 = vpop.f32.mrf.mxu0 }
 0x1dc   : > { %855 = vrot.lane.b32.xlu1 %v6095_v27, %s6592_s29 }
 0x1dd   : > { %v627_v32 = vpop.f32.mrf.mxu1  ;;  %v712_v35 = vpop.f32.mrf.mxu0 }
 0x1de   : > { %874 = vrot.lane.b32.xlu0 %v702_v30, %s6592_s29  ;;  %v6916_v30 = vstv %s5764_s26  ;;  %s5745_s26 = sld [smem:[#allocation9 + $0x3]] }
 0x1df   : > { %v6115_v34 = vpop.f32.mrf.mxu1 }
 0x1e0   : > { %876 = vrot.lane.b32.xlu1 %v6105_v28, %s6592_s29 }
 0x1e1   : > { %v787_v36 = vpop.f32.mrf.mxu1 }
 0x1e2   : > { %857 = vrot.lane.b32.xlu0 %v627_v32, %s6592_s29 }
 0x1e3   : > { %v6118_v37 = vpop.f32.mrf.mxu1 }
 0x1e4   : > { %859 = vrot.lane.b32.xlu1 %v6098_v31, %s6592_s29 }
 0x1e5   : > { %v797_v38 = vpop.f32.mrf.mxu1 }
 0x1e6   : > { %878 = vrot.lane.b32.xlu0 %v712_v35, %s6592_s29 }
 0x1e8   : > { %880 = vrot.lane.b32.xlu1 %v6108_v33, %s6592_s29 }
 0x1ea   : > { %895 = vrot.lane.b32.xlu0 %v787_v36, %s6592_s29 }
 0x1ec   : > { %897 = vrot.lane.b32.xlu1 %v6115_v34, %s6592_s29 }
 0x1ee   : > { %899 = vrot.lane.b32.xlu0 %v797_v38, %s6592_s29 }
 0x1f0   : > { %901 = vrot.lane.b32.xlu1 %v6118_v37, %s6592_s29  ;;  %s5765_s29 = sld [smem:[#allocation9 + $0x8]] }
 0x242   : > { %v835_v39 = vpop.permute.xlu0 %834 }
 0x243   : > { %846 = vst.msk [vmem:[#allocation2 + $0x9] sm:$0xff] %vm844_vm3, %v835_v39  ;;  %v6944_v39 = vstv %s5791_s27  ;;  %s5735_s27 = sld [smem:[#allocation9 + $0x48]] }
 0x244   : > { %10472 = vst [vmem:[#allocation13_spill] sm:$0xff] %v6944_v39 }
 0x246   : > { %v833_v40 = vpop.permute.xlu0 %832  ;;  %v839_v41 = vpop.permute.xlu1 %838 }
 0x247   : > { %845 = vst.msk [vmem:[#allocation2 + $0x1] sm:$0xff] %vm844_vm3, %v833_v40  ;;  %848 = vst.msk [vmem:[#allocation2 + $0x19] sm:$0xff] %vm844_vm3, %v839_v41 }
 0x24a   : > { %v6814_v43 = vld [vmem:[#allocation2 + $0x9] sm:$0xff]  ;;  %v837_v44 = vpop.permute.xlu1 %836 }
 0x24b   : > { %847 = vst.msk [vmem:[#allocation2 + $0x11] sm:$0xff] %vm844_vm3, %v837_v44  ;;  %v1211_v45 = vmul.f32 %v6812_v42, %v6814_v43  ;;  %v1237_v51 = vmul.f32 %v6819_v46, %v6814_v43  ;;  %v1263_v57 = vmul.f32 %v6832_v53, %v6814_v43  ;;  %v1289_v63 = vmul.f32 %v6844_v59, %v6814_v43 }
 0x24c   : > { %v854_v48 = vpop.permute.xlu0 %853  ;;  %v1315_v5 = vmul.f32 %v6856_v1, %v6814_v43  ;;  %v1341_v11 = vmul.f32 %v6868_v7, %v6814_v43  ;;  %v1367_v17 = vmul.f32 %v6880_v13, %v6814_v43  ;;  %v1393_v21 = vmul.f32 %v6892_v19, %v6814_v43 }
 0x24d   : > { %1220 = vrot.lane.b32.xlu1 %v1211_v45, %s6593_s13  ;;  %866 = vst.msk [vmem:[#allocation2 + $0x29] sm:$0xff] %vm844_vm3, %v854_v48 }
 0x24e   : > { %v6825_v49 = vld [vmem:[#allocation2] sm:$0xff]  ;;  %v856_v50 = vpop.permute.xlu1 %855  ;;  %v6902_v24 = vld [vmem:[#allocation2 + $0x8] sm:$0xff] }
 0x24f   : > { %v958_v52 = vmul.f32 %v6821_v47, %v6825_v49  ;;  %867 = vst.msk [vmem:[#allocation2 + $0x31] sm:$0xff] %vm844_vm3, %v856_v50  ;;  %v984_v58 = vmul.f32 %v6834_v54, %v6825_v49  ;;  %v1010_v0 = vmul.f32 %v6846_v60, %v6825_v49  ;;  %v1036_v6 = vmul.f32 %v6858_v2, %v6825_v49  ;;  %v6914_v29 = vld [vmem:[#allocation2 + $0x1] sm:$0xff] }
 0x250   : > { %v875_v55 = vpop.permute.xlu0 %874  ;;  %v1062_v12 = vmul.f32 %v6870_v8, %v6825_v49  ;;  %v1088_v18 = vmul.f32 %v6882_v14, %v6825_v49  ;;  %v1114_v23 = vmul.f32 %v6894_v20, %v6825_v49  ;;  %v959_v27 = vmul.f32 %v6821_v47, %v6902_v24 }
 0x251   : > { %1246 = vrot.lane.b32.xlu1 %v1237_v51, %s6593_s13  ;;  %966 = vrot.lane.b32.xlu0 %v958_v52, %s6593_s13  ;;  %887 = vst.msk [vmem:[#allocation2 + $0x51] sm:$0xff] %vm844_vm3, %v875_v55  ;;  %v1140_v28 = vmul.f32 %v6904_v25, %v6825_v49  ;;  %v985_v32 = vmul.f32 %v6834_v54, %v6902_v24  ;;  %v6960_v50 = vstv %s5792_s28  ;;  %s5746_s28 = sld [smem:[#allocation9 + $0x27]] }
 0x252   : > { %v877_v56 = vpop.permute.xlu1 %876  ;;  %v6908_v26 = vld [vmem:[#allocation2 + $0xa] sm:$0xff]  ;;  %v1210_v33 = vmul.f32 %v6812_v42, %v6914_v29  ;;  %v1011_v34 = vmul.f32 %v6846_v60, %v6902_v24  ;;  %v1236_v35 = vmul.f32 %v6819_v46, %v6914_v29  ;;  %v1037_v36 = vmul.f32 %v6858_v2, %v6902_v24  ;;  %10474 = vst [vmem:[#allocation15_spill] sm:$0xff] %v6960_v50 }
 0x253   : > { %888 = vst.msk [vmem:[#allocation2 + $0x59] sm:$0xff] %vm844_vm3, %v877_v56  ;;  %v6922_v31 = vmul.f32 %v6916_v30, %v6908_v26  ;;  %v1262_v37 = vmul.f32 %v6832_v53, %v6914_v29  ;;  %v1063_v40 = vmul.f32 %v6870_v8, %v6902_v24  ;;  %v1288_v41 = vmul.f32 %v6844_v59, %v6914_v29 }
 0x254   : > { %v858_v61 = vpop.permute.xlu0 %857  ;;  %v6942_v38 = vld [vmem:[#allocation2 + $0x29] sm:$0xff]  ;;  %v1089_v45 = vmul.f32 %v6882_v14, %v6902_v24  ;;  %v1314_v48 = vmul.f32 %v6856_v1, %v6914_v29  ;;  %v1115_v51 = vmul.f32 %v6894_v20, %v6902_v24  ;;  %v1340_v52 = vmul.f32 %v6868_v7, %v6914_v29 }
 0x255   : > { %1272 = vrot.lane.b32.xlu1 %v1263_v57, %s6593_s13  ;;  %992 = vrot.lane.b32.xlu0 %v984_v58, %s6593_s13  ;;  %868 = vst.msk [vmem:[#allocation2 + $0x39] sm:$0xff] %vm844_vm3, %v858_v61  ;;  %v6954_v44 = vmul.f32 %v6944_v39, %v6942_v38  ;;  %v6970_v55 = vmul.f32 %v6960_v50, %v6942_v38  ;;  %v6978_v58 = vld [vmem:[#allocation2 + $0x2] sm:$0xff]  ;;  %v6980_v61 = vstv %s5765_s29  ;;  %s5736_s29 = sld [smem:[#allocation9 + $0x6c]] }
 0x256   : > { %v860_v62 = vpop.permute.xlu1 %859  ;;  %v1141_v56 = vmul.f32 %v6904_v25, %v6902_v24  ;;  %v1366_v57 = vmul.f32 %v6880_v13, %v6914_v29 }
 0x257   : > { %869 = vst.msk [vmem:[#allocation2 + $0x41] sm:$0xff] %vm844_vm3, %v860_v62  ;;  %10473 = vst [vmem:[#allocation14_spill] sm:$0xff] %v6954_v44  ;;  %v6984_v62 = vld [vmem:[#allocation2 + $0x19] sm:$0xff] }
 0x258   : > { %v879_v3 = vpop.permute.xlu0 %878  ;;  %10475 = vst [vmem:[#allocation16_spill] sm:$0xff] %v6970_v55  ;;  %10476 = vst [vmem:[#allocation17_spill] sm:$0xff] %v6984_v62  ;;  %v1369_v22 = vmul.f32 %v6880_v13, %v6984_v62 }
 0x259   : > { %1298 = vrot.lane.b32.xlu1 %v1289_v63, %s6593_s13  ;;  %1018 = vrot.lane.b32.xlu0 %v1010_v0, %s6593_s13  ;;  %889 = vst.msk [vmem:[#allocation2 + $0x61] sm:$0xff] %vm844_vm3, %v879_v3  ;;  %v1566_v63 = vmul.f32 %v6980_v61, %v6978_v58  ;;  %v1392_v0 = vmul.f32 %v6892_v19, %v6914_v29  ;;  %v6990_v3 = vstv %s5761_s30  ;;  %s5747_s30 = sld [smem:[#allocation9 + $0x4b]] }
 0x25a   : > { %v881_v4 = vpop.permute.xlu1 %880 }
 0x25b   : > { %890 = vst.msk [vmem:[#allocation2 + $0x69] sm:$0xff] %vm844_vm3, %v881_v4  ;;  %v1213_v4 = vmul.f32 %v6812_v42, %v6984_v62 }
 0x25c   : > { %v896_v9 = vpop.permute.xlu0 %895 }
 0x25d   : > { %1324 = vrot.lane.b32.xlu1 %v1315_v5, %s6594_s25  ;;  %1044 = vrot.lane.b32.xlu0 %v1036_v6, %s6593_s13  ;;  %908 = vst.msk [vmem:[#allocation2 + $0x79] sm:$0xff] %vm844_vm3, %v896_v9  ;;  %v1462_v5 = vmul.f32 %v6990_v3, %v6978_v58  ;;  %v6998_v6 = vstv %s5762_s7  ;;  %v1239_v9 = vmul.f32 %v6819_v46, %v6984_v62  ;;  %s5748_s7 = sld [smem:[#allocation9 + $0x6f]] }
 0x25e   : > { %v898_v10 = vpop.permute.xlu1 %897 }
 0x25f   : > { %909 = vst.msk [vmem:[#allocation2 + $0x81] sm:$0xff] %vm844_vm3, %v898_v10  ;;  %v1488_v10 = vmul.f32 %v6998_v6, %v6978_v58 }
 0x260   : > { %v900_v15 = vpop.permute.xlu0 %899 }
 0x261   : > { %1350 = vrot.lane.b32.xlu1 %v1341_v11, %s6594_s25  ;;  %1070 = vrot.lane.b32.xlu0 %v1062_v12, %s6594_s25  ;;  %910 = vst.msk [vmem:[#allocation2 + $0x89] sm:$0xff] %vm844_vm3, %v900_v15  ;;  %v7006_v11 = vstv %s5766_s8  ;;  %v1265_v12 = vmul.f32 %v6832_v53, %v6984_v62  ;;  %s5785_s8 = sld [smem:[#allocation9 + $0xd]] }
 0x262   : > { %v902_v16 = vpop.permute.xlu1 %901  ;;  %v1592_v15 = vmul.f32 %v7006_v11, %v6978_v58 }
 0x263   : > { %911 = vst.msk [vmem:[#allocation2 + $0x91] sm:$0xff] %vm844_vm3, %v902_v16  ;;  %v7016_v16 = vstv %s5763_s9  ;;  %s5757_s9 = sld [smem:[#allocation9 + $0x6]] }
 0x265   : > { %1376 = vrot.lane.b32.xlu1 %v1367_v17, %s6594_s25  ;;  %1096 = vrot.lane.b32.xlu0 %v1088_v18, %s6594_s25  ;;  %v1291_v17 = vmul.f32 %v6844_v59, %v6984_v62  ;;  %v1514_v18 = vmul.f32 %v7016_v16, %v6978_v58 }
 0x269   : > { %1402 = vrot.lane.b32.xlu1 %v1393_v21, %s6594_s25  ;;  %1122 = vrot.lane.b32.xlu0 %v1114_v23, %s6594_s25  ;;  %v7024_v21 = vstv %s5767_s10  ;;  %v1922_v23 = vld [vmem:[#allocation2 + $0x39] sm:$0xff]  ;;  %s5758_s10 = sld [smem:[#allocation9 + $0x2a]] }
 0x26d   : > { %968 = vrot.lane.b32.xlu1 %v959_v27, %s6593_s13  ;;  %1148 = vrot.lane.b32.xlu0 %v1140_v28, %s6594_s25  ;;  %v1317_v27 = vmul.f32 %v6856_v1, %v6984_v62  ;;  %v2173_v28 = vld [vmem:[#allocation2 + $0x32] sm:$0xff] }
 0x271   : > { %994 = vrot.lane.b32.xlu1 %v985_v32, %s6593_s13  ;;  %1218 = vrot.lane.b32.xlu0 %v1210_v33, %s6593_s13  ;;  %v7030_v32 = vld [vmem:[#allocation2 + $0x40] sm:$0xff]  ;;  %v7032_v33 = vstv %s5787_s11  ;;  %s5789_s11 = sld [smem:[#allocation9 + $0xe]] }
 0x272   : > { %10477 = vst [vmem:[#allocation18_spill] sm:$0xff] %v7030_v32  ;;  %10478 = vst [vmem:[#allocation19_spill] sm:$0xff] %v7032_v33 }
 0x275   : > { %1020 = vrot.lane.b32.xlu1 %v1011_v34, %s6593_s13  ;;  %1244 = vrot.lane.b32.xlu0 %v1236_v35, %s6593_s13  ;;  %v7034_v34 = vstv %s5803_s14  ;;  %v1618_v35 = vmul.f32 %v7024_v21, %v6978_v58  ;;  %s5790_s14 = sld [smem:[#allocation9 + $0x32]] }
 0x276   : > { %10479 = vst [vmem:[#allocation20_spill] sm:$0xff] %v7034_v34 }
 0x279   : > { %1046 = vrot.lane.b32.xlu1 %v1037_v36, %s6593_s13  ;;  %1270 = vrot.lane.b32.xlu0 %v1262_v37, %s6593_s13  ;;  %v7038_v36 = vstv %s5799_s15  ;;  %v7041_v37 = vmul.f32 %v7032_v33, %v1922_v23  ;;  %s7285_s15 = sld [smem:[#allocation9 + $0x16]] }
 0x27a   : > { %10480 = vst [vmem:[#allocation21_spill] sm:$0xff] %v7038_v36 }
 0x27b   : > { %10481 = vst [vmem:[#allocation22_spill] sm:$0xff] %v7041_v37  ;;  %v7199_v37 = vstv %s5745_s26  ;;  %s5777_s26 = sld [smem:[#allocation9 + $0xb]] }
 0x27c   : > { %10504 = vst [vmem:[#allocation45_spill] sm:$0xff] %v7199_v37 }
 0x27d   : > { %1072 = vrot.lane.b32.xlu1 %v1063_v40, %s6594_s25  ;;  %1296 = vrot.lane.b32.xlu0 %v1288_v41, %s6593_s13  ;;  %v7044_v40 = vmul.f32 %v6944_v39, %v1922_v23  ;;  %v1670_v41 = vld [vmem:[#allocation2 + $0x38] sm:$0xff] }
 0x27f   : > { %10482 = vst [vmem:[#allocation23_spill] sm:$0xff] %v7044_v40 }
 0x281   : > { %1098 = vrot.lane.b32.xlu1 %v1089_v45, %s6594_s25  ;;  %1322 = vrot.lane.b32.xlu0 %v1314_v48, %s6594_s25  ;;  %v2174_v45 = vld [vmem:[#allocation2 + $0x3a] sm:$0xff]  ;;  %v7046_v48 = vstv %s5780_s16  ;;  %s7318_s16 = sld [smem:[#allocation9 + $0x17]] }
 0x282   : > { %10483 = vst [vmem:[#allocation24_spill] sm:$0xff] %v7046_v48 }
 0x285   : > { %1124 = vrot.lane.b32.xlu1 %v1115_v51, %s6594_s25  ;;  %1348 = vrot.lane.b32.xlu0 %v1340_v52, %s6594_s25  ;;  %v1343_v51 = vmul.f32 %v6868_v7, %v6984_v62  ;;  %v7052_v52 = vstv %s5776_s17  ;;  %s7330_s17 = sld [smem:[#allocation9 + $0x72]] }
 0x286   : > { %10484 = vst [vmem:[#allocation25_spill] sm:$0xff] %v7052_v52 }
 0x289   : > { %1150 = vrot.lane.b32.xlu1 %v1141_v56, %s6594_s25  ;;  %1374 = vrot.lane.b32.xlu0 %v1366_v57, %s6594_s25  ;;  %v7056_v56 = vmul.f32 %v7046_v48, %v7030_v32  ;;  %v7059_v57 = vmul.f32 %v7034_v34, %v2173_v28 }
 0x28b   : > { %10485 = vst [vmem:[#allocation26_spill] sm:$0xff] %v7056_v56  ;;  %10486 = vst [vmem:[#allocation27_spill] sm:$0xff] %v7059_v57  ;;  %v7189_v57 = vstv %s5734_s23  ;;  %s5771_s23 = sld [smem:[#allocation9 + $0x51]] }
 0x28d   : > { %1574 = vrot.lane.b32.xlu1 %v1566_v63, %s6594_s25  ;;  %1400 = vrot.lane.b32.xlu0 %v1392_v0, %s6594_s25  ;;  %v1540_v63 = vmul.f32 %v6916_v30, %v6978_v58  ;;  %v7063_v0 = vstv %s5804_s18  ;;  %s7371_s18 = sld [smem:[#allocation9 + $0x9]] }
 0x28e   : > { %10487 = vst [vmem:[#allocation28_spill] sm:$0xff] %v7063_v0 }
 0x291   : > { %1224 = vrot.lane.b32.xlu1 %v1213_v4, %s6593_s13  ;;  %1470 = vrot.lane.b32.xlu0 %v1462_v5, %s6593_s13  ;;  %v7067_v4 = vmul.f32 %v7052_v52, %v7030_v32  ;;  %v7070_v5 = vmul.f32 %v7038_v36, %v2173_v28  ;;  %v7293_v32 = vstv %s5757_s9  ;;  %s5813_s9 = sld [smem:[#allocation9 + $0x14]] }
 0x293   : > { %10488 = vst [vmem:[#allocation29_spill] sm:$0xff] %v7067_v4  ;;  %10489 = vst [vmem:[#allocation30_spill] sm:$0xff] %v7070_v5  ;;  %v7177_v5 = vstv %s916_s24  ;;  %s5773_s24 = sld [smem:[#allocation9 + $0xa]] }
 0x294   : > { %10503 = vst [vmem:[#allocation44_spill] sm:$0xff] %v7177_v5  ;;  %v918_v4 = vmul.f32 %v7177_v5, %v6825_v49 }
 0x295   : > { %1250 = vrot.lane.b32.xlu1 %v1239_v9, %s6593_s13  ;;  %1496 = vrot.lane.b32.xlu0 %v1488_v10, %s6593_s13  ;;  %v7073_v9 = vstv %s7010_s12  ;;  %v7075_v10 = vstv %s5800_s19  ;;  %s5759_s12 = sld [smem:[#allocation9 + $0x4e]] }
 0x296   : > { %10490 = vst [vmem:[#allocation31_spill] sm:$0xff] %v7073_v9  ;;  %10491 = vst [vmem:[#allocation32_spill] sm:$0xff] %v7075_v10  ;;  %s5826_s19 = sld [smem:[#allocation9 + $0x3b]] }
 0x299   : > { %1276 = vrot.lane.b32.xlu1 %v1265_v12, %s6593_s13  ;;  %1600 = vrot.lane.b32.xlu0 %v1592_v15, %s6594_s25  ;;  %v7078_v12 = vmul.f32 %v7046_v48, %v1670_v41  ;;  %v7081_v15 = vmul.f32 %v7034_v34, %v2174_v45  ;;  %v7097_v41 = vmul.f32 %v7075_v10, %v2173_v28 }
 0x29b   : > { %10492 = vst [vmem:[#allocation33_spill] sm:$0xff] %v7078_v12  ;;  %10493 = vst [vmem:[#allocation34_spill] sm:$0xff] %v7081_v15 }
 0x29c   : > { %10497 = vst [vmem:[#allocation38_spill] sm:$0xff] %v7097_v41 }
 0x29d   : > { %1302 = vrot.lane.b32.xlu1 %v1291_v17, %s6593_s13  ;;  %1522 = vrot.lane.b32.xlu0 %v1514_v18, %s6593_s13  ;;  %v7083_v17 = vstv %s5768_s20  ;;  %v7086_v18 = vmul.f32 %v7073_v9, %v1922_v23  ;;  %s5770_s20 = sld [smem:[#allocation9 + $0x2d]] }
 0x29e   : > { %v1644_v15 = vmul.f32 %v7083_v17, %v6978_v58 }
 0x29f   : > { %10494 = vst [vmem:[#allocation35_spill] sm:$0xff] %v7086_v18  ;;  %v7103_v18 = vld [vmem:[#allocation2 + $0x1a] sm:$0xff] }
 0x2a0   : > { %10498 = vst [vmem:[#allocation39_spill] sm:$0xff] %v7103_v18 }
 0x2a1   : > { %1328 = vrot.lane.b32.xlu1 %v1317_v27, %s6594_s25  ;;  %1626 = vrot.lane.b32.xlu0 %v1618_v35, %s6594_s25  ;;  %v7091_v27 = vmul.f32 %v7063_v0, %v2173_v28  ;;  %v7094_v35 = vmul.f32 %v6960_v50, %v1922_v23  ;;  %v1395_v23 = vmul.f32 %v6892_v19, %v6984_v62  ;;  %v7299_v62 = vstv %s5789_s11  ;;  %s5775_s11 = sld [smem:[#allocation9 + $0x52]] }
 0x2a2   : > { %v1569_v28 = vmul.f32 %v6980_v61, %v7103_v18  ;;  %10509 = vst [vmem:[#allocation50_spill] sm:$0xff] %v7299_v62 }
 0x2a3   : > { %10495 = vst [vmem:[#allocation36_spill] sm:$0xff] %v7091_v27  ;;  %10496 = vst [vmem:[#allocation37_spill] sm:$0xff] %v7094_v35 }
 0x2a5   : > { %1354 = vrot.lane.b32.xlu1 %v1343_v51, %s6594_s25  ;;  %1548 = vrot.lane.b32.xlu0 %v1540_v63, %s6593_s13  ;;  %v7108_v51 = vmul.f32 %v7075_v10, %v2174_v45  ;;  %v1465_v63 = vmul.f32 %v6990_v3, %v7103_v18  ;;  %v7219_v10 = vld [vmem:[#allocation2 + $0x11] sm:$0xff] }
 0x2a7   : > { %10499 = vst [vmem:[#allocation40_spill] sm:$0xff] %v7108_v51  ;;  %v1517_v51 = vmul.f32 %v7016_v16, %v7103_v18 }
 0x2a9   : > { %1380 = vrot.lane.b32.xlu1 %v1369_v22, %s6594_s25  ;;  %1652 = vrot.lane.b32.xlu0 %v1644_v15, %s6594_s25  ;;  %v1491_v22 = vmul.f32 %v6998_v6, %v7103_v18  ;;  %v1595_v15 = vmul.f32 %v7006_v11, %v7103_v18 }
 0x2ad   : > { %1406 = vrot.lane.b32.xlu1 %v1395_v23, %s6594_s25  ;;  %1580 = vrot.lane.b32.xlu0 %v1569_v28, %s6594_s25  ;;  %v7127_v23 = vmul.f32 %v7063_v0, %v2174_v45  ;;  %v1621_v28 = vmul.f32 %v7024_v21, %v7103_v18  ;;  %v1647_v45 = vmul.f32 %v7083_v17, %v7103_v18 }
 0x2ae   : > { %v928_v0 = vmul.f32 %v7189_v57, %v6825_v49 }
 0x2af   : > { %10500 = vst [vmem:[#allocation41_spill] sm:$0xff] %v7127_v23  ;;  %v7143_v23 = vld [vmem:[#allocation2 + $0x18] sm:$0xff] }
 0x2b0   : > { %10502 = vst [vmem:[#allocation43_spill] sm:$0xff] %v7143_v23  ;;  %v961_v41 = vmul.f32 %v6821_v47, %v7143_v23  ;;  %v1117_v36 = vmul.f32 %v6894_v20, %v7143_v23  ;;  %v1143_v48 = vmul.f32 %v6904_v25, %v7143_v23 }
 0x2b1   : > { %1476 = vrot.lane.b32.xlu1 %v1465_v63, %s6593_s13  ;;  %1502 = vrot.lane.b32.xlu0 %v1491_v22, %s6593_s13  ;;  %v1543_v63 = vmul.f32 %v6916_v30, %v7103_v18  ;;  %v7135_v22 = vld [vmem:[#allocation2 + $0x10] sm:$0xff]  ;;  %v929_v18 = vmul.f32 %v7189_v57, %v6902_v24 }
 0x2b2   : > { %10501 = vst [vmem:[#allocation42_spill] sm:$0xff] %v7135_v22  ;;  %v1116_v40 = vmul.f32 %v6894_v20, %v7135_v22 }
 0x2b5   : > { %1606 = vrot.lane.b32.xlu1 %v1595_v15, %s6594_s25  ;;  %1528 = vrot.lane.b32.xlu0 %v1517_v51, %s6593_s13  ;;  %v960_v15 = vmul.f32 %v6821_v47, %v7135_v22 }
 0x2b9   : > { %1632 = vrot.lane.b32.xlu1 %v1621_v28, %s6594_s25  ;;  %1554 = vrot.lane.b32.xlu0 %v1543_v63, %s6593_s13  ;;  %v986_v28 = vmul.f32 %v6834_v54, %v7135_v22 }
 0x2bd   : > { %1658 = vrot.lane.b32.xlu1 %v1647_v45, %s6594_s25  ;;  %970 = vrot.lane.b32.xlu0 %v960_v15, %s6593_s13  ;;  %v987_v45 = vmul.f32 %v6834_v54, %v7143_v23  ;;  %v1012_v15 = vmul.f32 %v6846_v60, %v7135_v22 }
 0x2bf   : > { %v7147_v51 = vpop.permute.xlu1 %1220 }
 0x2c1   : > { %972 = vrot.lane.b32.xlu1 %v961_v41, %s6593_s13  ;;  %996 = vrot.lane.b32.xlu0 %v986_v28, %s6593_s13  ;;  %v1013_v41 = vmul.f32 %v6846_v60, %v7143_v23  ;;  %v1038_v28 = vmul.f32 %v6858_v2, %v7135_v22 }
 0x2c3   : > { %v7155_v63 = vpop.permute.xlu1 %1246  ;;  %v967_v35 = vpop.permute.xlu0 %966 }
 0x2c5   : > { %998 = vrot.lane.b32.xlu1 %v987_v45, %s6593_s13  ;;  %1022 = vrot.lane.b32.xlu0 %v1012_v15, %s6593_s13  ;;  %v1039_v45 = vmul.f32 %v6858_v2, %v7143_v23  ;;  %v1064_v15 = vmul.f32 %v6870_v8, %v7135_v22  ;;  %v1090_v2 = vmul.f32 %v6882_v14, %v7135_v22 }
 0x2c7   : > { %v7163_v47 = vpop.permute.xlu1 %1272  ;;  %v993_v27 = vpop.permute.xlu0 %992 }
 0x2c9   : > { %1024 = vrot.lane.b32.xlu1 %v1013_v41, %s6593_s13  ;;  %1048 = vrot.lane.b32.xlu0 %v1038_v28, %s6593_s13  ;;  %v1065_v28 = vmul.f32 %v6870_v8, %v7143_v23  ;;  %v1091_v8 = vmul.f32 %v6882_v14, %v7143_v23  ;;  %v1004_v14 = vadd.f32 %v993_v27, %v928_v0  ;;  %v7225_v27 = vstv %s5736_s29  ;;  %s5774_s29 = sld [smem:[#allocation9 + $0x2e]] }
 0x2ca   : > { %v948_v52 = vmul.f32 %v7225_v27, %v6825_v49 }
 0x2cb   : > { %v7171_v54 = vpop.permute.xlu1 %1298  ;;  %v1019_v12 = vpop.permute.xlu0 %1018 }
 0x2cd   : > { %1050 = vrot.lane.b32.xlu1 %v1039_v45, %s6593_s13  ;;  %1074 = vrot.lane.b32.xlu0 %v1064_v15, %s6594_s25  ;;  %v978_v45 = vadd.f32 %v967_v35, %v918_v4  ;;  %v7205_v4 = vstv %s5735_s27  ;;  %s5772_s27 = sld [smem:[#allocation9 + $0x75]] }
 0x2ce   : > { %10505 = vst [vmem:[#allocation46_spill] sm:$0xff] %v7205_v4 }
 0x2cf   : > { %v7181_v60 = vpop.permute.xlu1 %1324  ;;  %v1045_v41 = vpop.permute.xlu0 %1044 }
 0x2d1   : > { %1076 = vrot.lane.b32.xlu1 %v1065_v28, %s6594_s25  ;;  %1100 = vrot.lane.b32.xlu0 %v1090_v2, %s6594_s25  ;;  %v1170_v28 = vmul.f32 %v7199_v37, %v6914_v29 }
 0x2d3   : > { %v7193_v15 = vpop.permute.xlu1 %1350  ;;  %v1071_v56 = vpop.permute.xlu0 %1070 }
 0x2d4   : > { %v1082_v55 = vadd.f32 %v1071_v56, %v978_v45  ;;  %v1142_v56 = vmul.f32 %v6904_v25, %v7135_v22  ;;  %v7217_v45 = vstv %s5746_s28  ;;  %v7308_v22 = vstv %s5790_s14  ;;  %s5801_s28 = sld [smem:[#allocation9 + $0x11]] }
 0x2d5   : > { %1102 = vrot.lane.b32.xlu1 %v1091_v8, %s6594_s25  ;;  %1126 = vrot.lane.b32.xlu0 %v1116_v40, %s6594_s25  ;;  %10506 = vst [vmem:[#allocation47_spill] sm:$0xff] %v7217_v45  ;;  %v938_v40 = vmul.f32 %v7205_v4, %v6825_v49  ;;  %v7251_v49 = vstv %s5748_s7  ;;  %s5809_s7 = sld [smem:[#allocation9 + $0x13]] }
 0x2d6   : > { %v7209_v35 = vadd.f32 %v1170_v28, %v1082_v55  ;;  %v1180_v55 = vmul.f32 %v7217_v45, %v6914_v29  ;;  %s5797_s14 = sld [smem:[#allocation9 + $0x10]] }
 0x2d7   : > { %v7211_v2 = vpop.permute.xlu1 %1376  ;;  %v1097_v34 = vpop.permute.xlu0 %1096  ;;  %v1030_v20 = vadd.f32 %v1019_v12, %v938_v40 }
 0x2d8   : > { %v1108_v0 = vadd.f32 %v1097_v34, %v1004_v14  ;;  %v1212_v34 = vmul.f32 %v6812_v42, %v7219_v10  ;;  %v7237_v14 = vstv %s5747_s30  ;;  %v1463_v42 = vmul.f32 %v6990_v3, %v6908_v26  ;;  %s5778_s30 = sld [smem:[#allocation9 + $0x2f]] }
 0x2d9   : > { %1128 = vrot.lane.b32.xlu1 %v1117_v36, %s6594_s25  ;;  %1152 = vrot.lane.b32.xlu0 %v1142_v56, %s6594_s25  ;;  %v1190_v12 = vmul.f32 %v7237_v14, %v6914_v29  ;;  %v1056_v56 = vadd.f32 %v1045_v41, %v948_v52 }
 0x2da   : > { %v7229_v8 = vadd.f32 %v1180_v55, %v1108_v0  ;;  %v1238_v55 = vmul.f32 %v6819_v46, %v7219_v10  ;;  %v1264_v46 = vmul.f32 %v6832_v53, %v7219_v10 }
 0x2db   : > { %v7231_v28 = vpop.permute.xlu1 %1402  ;;  %v1123_v44 = vpop.permute.xlu0 %1122 }
 0x2dc   : > { %v1134_v36 = vadd.f32 %v1123_v44, %v1030_v20  ;;  %v1200_v20 = vmul.f32 %v7251_v49, %v6914_v29 }
 0x2dd   : > { %1154 = vrot.lane.b32.xlu1 %v1143_v48, %s6594_s25  ;;  %1222 = vrot.lane.b32.xlu0 %v1212_v34, %s6593_s13  ;;  %v1593_v34 = vmul.f32 %v7006_v11, %v6908_v26 }
 0x2de   : > { %v7245_v40 = vadd.f32 %v1190_v12, %v1134_v36  ;;  %v1619_v12 = vmul.f32 %v7024_v21, %v6908_v26 }
 0x2df   : > { %v969_v25 = vpop.permute.xlu1 %968  ;;  %v1149_v0 = vpop.permute.xlu0 %1148 }
 0x2e0   : > { %v1160_v44 = vadd.f32 %v1149_v0, %v1056_v56  ;;  %v1290_v56 = vmul.f32 %v6844_v59, %v7219_v10  ;;  %v919_v59 = vmul.f32 %v7177_v5, %v6902_v24 }
 0x2e1   : > { %1472 = vrot.lane.b32.xlu1 %v1463_v42, %s6593_s13  ;;  %1248 = vrot.lane.b32.xlu0 %v1238_v55, %s6593_s13  ;;  %v1645_v42 = vmul.f32 %v7083_v17, %v6908_v26  ;;  %v1316_v55 = vmul.f32 %v6856_v1, %v7219_v10 }
 0x2e2   : > { %v7257_v48 = vadd.f32 %v1200_v20, %v1160_v44  ;;  %v7277_v44 = vld [vmem:[#allocation2 + $0x31] sm:$0xff]  ;;  %v7281_v20 = vstv %s5785_s8  ;;  %s5786_s8 = sld [smem:[#allocation9 + $0x31]] }
 0x2e3   : > { %v995_v52 = vpop.permute.xlu1 %994  ;;  %v1219_v41 = vpop.permute.xlu0 %1218  ;;  %10507 = vst [vmem:[#allocation48_spill] sm:$0xff] %v7277_v44  ;;  %10508 = vst [vmem:[#allocation49_spill] sm:$0xff] %v7281_v20  ;;  %v1967_v1 = vmul.f32 %v7281_v20, %v7277_v44 }
 0x2e4   : > { %v1230_v23 = vadd.f32 %v1219_v41, %v7209_v35 }
 0x2e5   : > { %1602 = vrot.lane.b32.xlu1 %v1593_v34, %s6594_s25  ;;  %1274 = vrot.lane.b32.xlu0 %v1264_v46, %s6593_s13  ;;  %v979_v34 = vadd.f32 %v969_v25, %v919_v59  ;;  %v7303_v25 = vstv %s5758_s10  ;;  %v7305_v59 = vstv %s5759_s12  ;;  %s5822_s10 = sld [smem:[#allocation9 + $0x3a]] }
 0x2e6   : > { %s5779_s12 = sld [smem:[#allocation9 + $0x53]] }
 0x2e7   : > { %v1021_v29 = vpop.permute.xlu1 %1020  ;;  %v1245_v36 = vpop.permute.xlu0 %1244 }
 0x2e9   : > { %1628 = vrot.lane.b32.xlu1 %v1619_v12, %s6594_s25  ;;  %1300 = vrot.lane.b32.xlu0 %v1290_v56, %s6593_s13  ;;  %v1342_v56 = vmul.f32 %v6868_v7, %v7219_v10  ;;  %v1005_v7 = vadd.f32 %v995_v52, %v929_v18  ;;  %v1368_v18 = vmul.f32 %v6880_v13, %v7219_v10 }
 0x2ea   : > { %v1423_v13 = vmul.f32 %v7293_v32, %v6908_v26 }
 0x2eb   : > { %v1047_v53 = vpop.permute.xlu1 %1046  ;;  %v7271_v0 = vpop.permute.xlu0 %1270 }
 0x2ed   : > { %1654 = vrot.lane.b32.xlu1 %v1645_v42, %s6594_s25  ;;  %1326 = vrot.lane.b32.xlu0 %v1316_v55, %s6594_s25  ;;  %v1171_v42 = vmul.f32 %v7199_v37, %v6814_v43 }
 0x2ef   : > { %v1073_v46 = vpop.permute.xlu1 %1072  ;;  %v7287_v12 = vpop.permute.xlu0 %1296 }
 0x2f0   : > { %v1083_v55 = vadd.f32 %v1073_v46, %v979_v34  ;;  %v939_v34 = vmul.f32 %v7205_v4, %v6902_v24  ;;  %v1181_v46 = vmul.f32 %v7217_v45, %v6814_v43  ;;  %v1191_v45 = vmul.f32 %v7237_v14, %v6814_v43 }
 0x2f1   : > { %1976 = vrot.lane.b32.xlu1 %v1967_v1, %s6593_s13  ;;  %1352 = vrot.lane.b32.xlu0 %v1342_v56, %s6594_s25  ;;  %v2071_v56 = vmul.f32 %v7299_v62, %v7277_v44  ;;  %v7328_v4 = vstv %s7285_s15  ;;  %s7596_s15 = sld [smem:[#allocation9 + $0x34]] }
 0x2f2   : > { %v1175_v5 = vadd.f32 %v1171_v42, %v1083_v55  ;;  %v1422_v42 = vmul.f32 %v7293_v32, %v6978_v58  ;;  %v1031_v55 = vadd.f32 %v1021_v29, %v939_v34  ;;  %v949_v29 = vmul.f32 %v7225_v27, %v6902_v24 }
 0x2f3   : > { %v1099_v1 = vpop.permute.xlu1 %1098  ;;  %v1323_v37 = vpop.permute.xlu0 %1322 }
 0x2f4   : > { %v1231_v35 = vadd.f32 %v7147_v51, %v1175_v5  ;;  %v1109_v52 = vadd.f32 %v1099_v1, %v1005_v7  ;;  %v1334_v41 = vadd.f32 %v1323_v37, %v1230_v23  ;;  %v1256_v37 = vadd.f32 %v1245_v36, %v7229_v8  ;;  %v7346_v8 = vld [vmem:[#allocation2 + $0x12] sm:$0xff] }
 0x2f5   : > { %2080 = vrot.lane.b32.xlu1 %v2071_v56, %s6594_s25  ;;  %1378 = vrot.lane.b32.xlu0 %v1368_v18, %s6594_s25  ;;  %v2097_v1 = vmul.f32 %v7308_v22, %v7277_v44  ;;  %v1394_v56 = vmul.f32 %v6892_v19, %v7219_v10  ;;  %v1432_v18 = vmul.f32 %v7303_v25, %v6978_v58  ;;  %v7348_v36 = vld [vmem:[#allocation2 + $0x59] sm:$0xff] }
 0x2f6   : > { %v1185_v5 = vadd.f32 %v1181_v46, %v1109_v52  ;;  %v7335_v23 = vadd.f32 %v1422_v42, %v1334_v41  ;;  %v1335_v51 = vadd.f32 %v7181_v60, %v1231_v35  ;;  %10510 = vst [vmem:[#allocation51_spill] sm:$0xff] %v7346_v8  ;;  %v1057_v52 = vadd.f32 %v1047_v53, %v949_v29 }
 0x2f7   : > { %v1125_v7 = vpop.permute.xlu1 %1124  ;;  %v1349_v34 = vpop.permute.xlu0 %1348  ;;  %v1201_v19 = vmul.f32 %v7251_v49, %v6814_v43  ;;  %v1433_v41 = vmul.f32 %v7303_v25, %v6908_v26  ;;  %v1282_v42 = vadd.f32 %v7271_v0, %v7245_v40  ;;  %v7367_v43 = vstv %s7318_s16  ;;  %s7618_s16 = sld [smem:[#allocation9 + $0x35]] }
 0x2f8   : > { %v1257_v60 = vadd.f32 %v7155_v63, %v1185_v5  ;;  %v1135_v46 = vadd.f32 %v1125_v7, %v1031_v55  ;;  %v1360_v24 = vadd.f32 %v1349_v34, %v1256_v37  ;;  %v7351_v35 = vadd.f32 %v1423_v13, %v1335_v51  ;;  %10512 = vst [vmem:[#allocation53_spill] sm:$0xff] %v7367_v43 }
 0x2f9   : > { %2106 = vrot.lane.b32.xlu1 %v2097_v1, %s6594_s25  ;;  %1404 = vrot.lane.b32.xlu0 %v1394_v56, %s6594_s25  ;;  %v2723_v5 = vmul.f32 %v7328_v4, %v7348_v36  ;;  %v1464_v51 = vmul.f32 %v6990_v3, %v7346_v8  ;;  %v1442_v29 = vmul.f32 %v7305_v59, %v6978_v58  ;;  %v7379_v7 = vstv %s7330_s17  ;;  %s7643_s17 = sld [smem:[#allocation9 + $0x19]] }
 0x2fa   : > { %10511 = vst [vmem:[#allocation52_spill] sm:$0xff] %v7351_v35  ;;  %v1195_v63 = vadd.f32 %v1191_v45, %v1135_v46  ;;  %v1436_v55 = vadd.f32 %v1432_v18, %v1360_v24  ;;  %v1361_v13 = vadd.f32 %v7193_v15, %v1257_v60  ;;  %v1443_v3 = vmul.f32 %v7305_v59, %v6908_v26 }
 0x2fb   : > { %v1151_v37 = vpop.permute.xlu1 %1150  ;;  %v1375_v53 = vpop.permute.xlu0 %1374  ;;  %v1308_v34 = vadd.f32 %v7287_v12, %v7257_v48  ;;  %v2827_v46 = vmul.f32 %v7367_v43, %v7348_v36  ;;  %v1567_v24 = vmul.f32 %v6980_v61, %v6908_v26  ;;  %v1452_v48 = vmul.f32 %v7379_v7, %v6978_v58 }
 0x2fc   : > { %v1283_v45 = vadd.f32 %v7163_v47, %v1195_v63  ;;  %v1161_v40 = vadd.f32 %v1151_v37, %v1057_v52  ;;  %v1386_v0 = vadd.f32 %v1375_v53, %v1282_v42  ;;  %v7374_v15 = vadd.f32 %v1433_v41, %v1361_v13  ;;  %v7402_v42 = vld [vmem:[#allocation2 + $0x28] sm:$0xff] }
 0x2fd   : > { %2732 = vrot.lane.b32.xlu1 %v2723_v5, %s6593_s13  ;;  %1474 = vrot.lane.b32.xlu0 %v1464_v51, %s6593_s13  ;;  %v2123_v58 = vmul.f32 %v6944_v39, %v7277_v44  ;;  %v1568_v37 = vmul.f32 %v6980_v61, %v7346_v8  ;;  %v7411_v53 = vstv %s7371_s18  ;;  %v2149_v61 = vmul.f32 %v6960_v50, %v7277_v44  ;;  %s5810_s18 = sld [smem:[#allocation9 + $0x37]] }
 0x2fe   : > { %10513 = vst [vmem:[#allocation54_spill] sm:$0xff] %v7374_v15  ;;  %v1205_v1 = vadd.f32 %v1201_v19, %v1161_v40  ;;  %v1446_v56 = vadd.f32 %v1442_v29, %v1386_v0  ;;  %v1387_v47 = vadd.f32 %v7211_v2, %v1283_v45  ;;  %v1674_v29 = vmul.f32 %v7411_v53, %v7402_v42  ;;  %v10533_v15 = vld [vmem:[#allocation44_spill] sm:$0xff] }
 0x2ff   : > { %v1575_v18 = vpop.permute.xlu1 %1574  ;;  %v1401_v60 = vpop.permute.xlu0 %1400  ;;  %v7426_v0 = vstv %s5826_s19  ;;  %v2045_v39 = vmul.f32 %v7073_v9, %v7277_v44  ;;  %v7584_v35 = vstv %s5779_s12  ;;  %s5814_s19 = sld [smem:[#allocation9 + $0x38]] }
 0x300   : > { %v1309_v52 = vadd.f32 %v7171_v54, %v1205_v1  ;;  %v1412_v41 = vadd.f32 %v1401_v60, %v1308_v34  ;;  %v7393_v12 = vadd.f32 %v1443_v3, %v1387_v47  ;;  %v1453_v54 = vmul.f32 %v7379_v7, %v6908_v26  ;;  %10516 = vst [vmem:[#allocation57_spill] sm:$0xff] %v7426_v0  ;;  %s5796_s12 = sld [smem:[#allocation9 + $0x7b]] }
 0x301   : > { %2836 = vrot.lane.b32.xlu1 %v2827_v46, %s6594_s25  ;;  %1576 = vrot.lane.b32.xlu0 %v1567_v24, %s6594_s25  ;;  %v7432_v34 = vstv %s5770_s20  ;;  %v2853_v60 = vmul.f32 %v7426_v0, %v7348_v36  ;;  %v1490_v46 = vmul.f32 %v6998_v6, %v7346_v8  ;;  %s5837_s20 = sld [smem:[#allocation9 + $0x1a]] }
 0x302   : > { %10514 = vst [vmem:[#allocation55_spill] sm:$0xff] %v7393_v12  ;;  %v7397_v2 = vadd.f32 %v1452_v48, %v1412_v41  ;;  %v1413_v19 = vadd.f32 %v7231_v28, %v1309_v52  ;;  %v7440_v52 = vstv %s5773_s24  ;;  %v1684_v41 = vmul.f32 %v7432_v34, %v7402_v42  ;;  %s5815_s24 = sld [smem:[#allocation9 + $0x5c]] }
 0x303   : > { %v7404_v63 = vpop.permute.xlu1 %1224  ;;  %v1471_v13 = vpop.permute.xlu0 %1470  ;;  %10518 = vst [vmem:[#allocation59_spill] sm:$0xff] %v7440_v52 }
 0x304   : > { %v1482_v5 = vadd.f32 %v1471_v13, %v7335_v23  ;;  %v7414_v28 = vadd.f32 %v1453_v54, %v1413_v19  ;;  %v1489_v23 = vmul.f32 %v6998_v6, %v6908_v26  ;;  %v1714_v54 = vmul.f32 %v7440_v52, %v7402_v42  ;;  %v7454_v13 = vld [vmem:[#allocation2 + $0x30] sm:$0xff] }
 0x305   : > { %2132 = vrot.lane.b32.xlu1 %v2123_v58, %s6594_s25  ;;  %1578 = vrot.lane.b32.xlu0 %v1568_v37, %s6594_s25  ;;  %v1594_v6 = vmul.f32 %v7006_v11, %v7346_v8  ;;  %v7458_v58 = vstv %s5771_s23  ;;  %s5834_s23 = sld [smem:[#allocation9 + $0x3d]] }
 0x306   : > { %10515 = vst [vmem:[#allocation56_spill] sm:$0xff] %v7414_v28  ;;  %v1586_v51 = vadd.f32 %v1575_v18, %v1482_v5  ;;  %v7574_v28 = vstv %s5775_s11  ;;  %s5784_s11 = sld [smem:[#allocation9 + $0x78]] }
 0x307   : > { %v7420_v45 = vpop.permute.xlu1 %1250  ;;  %v1497_v40 = vpop.permute.xlu0 %1496  ;;  %10531 = vst [vmem:[#allocation72_spill] sm:$0xff] %v7574_v28 }
 0x308   : > { %v7428_v3 = vadd.f32 %v1674_v29, %v1586_v51  ;;  %v1508_v1 = vadd.f32 %v1497_v40, %v1436_v55  ;;  %v1715_v29 = vmul.f32 %v7440_v52, %v7454_v13  ;;  %v1515_v40 = vmul.f32 %v7016_v16, %v6908_v26 }
 0x309   : > { %2158 = vrot.lane.b32.xlu1 %v2149_v61, %s6594_s25  ;;  %1498 = vrot.lane.b32.xlu0 %v1489_v23, %s6593_s13  ;;  %v7466_v61 = vstv %s5777_s26  ;;  %v1694_v23 = vmul.f32 %v7458_v58, %v7402_v42  ;;  %v1516_v26 = vmul.f32 %v7016_v16, %v7346_v8  ;;  %v2019_v52 = vmul.f32 %v7032_v33, %v7277_v44  ;;  %s5838_s26 = sld [smem:[#allocation9 + $0x3e]] }
 0x30a   : > { %10517 = vst [vmem:[#allocation58_spill] sm:$0xff] %v7428_v3  ;;  %10520 = vst [vmem:[#allocation61_spill] sm:$0xff] %v7466_v61  ;;  %v7556_v3 = vld [vmem:[#allocation2 + $0x58] sm:$0xff] }
 0x30b   : > { %v7434_v47 = vpop.permute.xlu1 %1276  ;;  %v1601_v18 = vpop.permute.xlu0 %1600  ;;  %10529 = vst [vmem:[#allocation70_spill] sm:$0xff] %v7556_v3 }
 0x30c   : > { %v1612_v24 = vadd.f32 %v1601_v18, %v1508_v1 }
 0x30d   : > { %2862 = vrot.lane.b32.xlu1 %v2853_v60, %s6594_s25  ;;  %1500 = vrot.lane.b32.xlu0 %v1490_v46, %s6593_s13  ;;  %v1819_v60 = vmul.f32 %v7466_v61, %v7454_v13  ;;  %v7482_v46 = vstv %s5772_s27  ;;  %s5811_s27 = sld [smem:[#allocation9 + $0x5b]] }
 0x30e   : > { %v7446_v55 = vadd.f32 %v1684_v41, %v1612_v24  ;;  %10522 = vst [vmem:[#allocation63_spill] sm:$0xff] %v7482_v46 }
 0x30f   : > { %v7448_v48 = vpop.permute.xlu1 %1302  ;;  %v1523_v19 = vpop.permute.xlu0 %1522 }
 0x310   : > { %10519 = vst [vmem:[#allocation60_spill] sm:$0xff] %v7446_v55  ;;  %v1534_v37 = vadd.f32 %v1523_v19, %v1446_v56 }
 0x311   : > { %1722 = vrot.lane.b32.xlu1 %v1714_v54, %s6593_s13  ;;  %1604 = vrot.lane.b32.xlu0 %v1594_v6, %s6594_s25  ;;  %v1966_v54 = vmul.f32 %v7281_v20, %v6942_v38  ;;  %v1620_v6 = vmul.f32 %v7024_v21, %v7346_v8  ;;  %v10532_v20 = vld [vmem:[#allocation42_spill] sm:$0xff] }
 0x312   : > { %v920_v0 = vmul.f32 %v10533_v15, %v10532_v20 }
 0x313   : > { %v7460_v5 = vpop.permute.xlu1 %1328  ;;  %v1627_v51 = vpop.permute.xlu0 %1626 }
 0x314   : > { %v1638_v11 = vadd.f32 %v1627_v51, %v1534_v37  ;;  %v7491_v37 = vld [vmem:[#allocation2 + $0x2a] sm:$0xff]  ;;  %v7493_v51 = vstv %s5801_s28  ;;  %s5781_s28 = sld [smem:[#allocation9 + $0xc]] }
 0x315   : > { %1724 = vrot.lane.b32.xlu1 %v1715_v29, %s6593_s13  ;;  %1524 = vrot.lane.b32.xlu0 %v1515_v40, %s6593_s13  ;;  %10523 = vst [vmem:[#allocation64_spill] sm:$0xff] %v7493_v51  ;;  %v1704_v29 = vmul.f32 %v7482_v46, %v7402_v42  ;;  %v2322_v21 = vmul.f32 %v7493_v51, %v7491_v37  ;;  %v7564_v51 = vstv %s5813_s9  ;;  %s5794_s9 = sld [smem:[#allocation9 + $0x33]] }
 0x316   : > { %v7472_v56 = vadd.f32 %v1694_v23, %v1638_v11  ;;  %v7507_v23 = vstv %s5774_s29  ;;  %s5793_s29 = sld [smem:[#allocation9 + $0xf]] }
 0x317   : > { %v7474_v1 = vpop.permute.xlu1 %1354  ;;  %v1549_v18 = vpop.permute.xlu0 %1548 }
 0x318   : > { %10521 = vst [vmem:[#allocation62_spill] sm:$0xff] %v7472_v56  ;;  %v1560_v24 = vadd.f32 %v1549_v18, %v7397_v2 }
 0x319   : > { %1828 = vrot.lane.b32.xlu1 %v1819_v60, %s6594_s25  ;;  %1526 = vrot.lane.b32.xlu0 %v1516_v26, %s6593_s13  ;;  %v1740_v26 = vmul.f32 %v7507_v23, %v7402_v42 }
 0x31b   : > { %v7485_v41 = vpop.permute.xlu1 %1380  ;;  %v1653_v19 = vpop.permute.xlu0 %1652 }
 0x31c   : > { %v1664_v16 = vadd.f32 %v1653_v19, %v1560_v24  ;;  %v1542_v24 = vmul.f32 %v6916_v30, %v7346_v8  ;;  %v7520_v19 = vstv %s5778_s30  ;;  %v7536_v30 = vstv %s5786_s8  ;;  %s5823_s30 = sld [smem:[#allocation9 + $0x5e]] }
 0x31d   : > { %1974 = vrot.lane.b32.xlu1 %v1966_v54, %s6593_s13  ;;  %1630 = vrot.lane.b32.xlu0 %v1620_v6, %s6594_s25  ;;  %10525 = vst [vmem:[#allocation66_spill] sm:$0xff] %v7520_v19  ;;  %s5783_s8 = sld [smem:[#allocation9 + $0x54]] }
 0x31e   : > { %v7499_v2 = vadd.f32 %v1704_v29, %v1664_v16  ;;  %v1646_v16 = vmul.f32 %v7083_v17, %v7346_v8  ;;  %v7532_v29 = vld [vmem:[#allocation2 + $0x50] sm:$0xff]  ;;  %v1993_v17 = vmul.f32 %v7536_v30, %v7277_v44 }
 0x31f   : > { %v7501_v40 = vpop.permute.xlu1 %1406  ;;  %v7503_v11 = vpop.permute.xlu0 %1580  ;;  %v7598_v8 = vld [vmem:[#allocation2 + $0x51] sm:$0xff] }
 0x320   : > { %10524 = vst [vmem:[#allocation65_spill] sm:$0xff] %v7499_v2 }
 0x321   : > { %2330 = vrot.lane.b32.xlu1 %v2322_v21, %s6594_s25  ;;  %1550 = vrot.lane.b32.xlu0 %v6922_v31, %s6593_s13  ;;  %v1844_v31 = vmul.f32 %v7520_v19, %v7402_v42  ;;  %v7534_v21 = vstv %s5809_s7  ;;  %s5782_s7 = sld [smem:[#allocation9 + $0x30]] }
 0x322   : > { %10526 = vst [vmem:[#allocation67_spill] sm:$0xff] %v7534_v21  ;;  %v2470_v2 = vmul.f32 %v7534_v21, %v7532_v29 }
 0x323   : > { %v7512_v18 = vpop.permute.xlu1 %1476  ;;  %v7514_v60 = vpop.permute.xlu0 %1502 }
 0x325   : > { %1748 = vrot.lane.b32.xlu1 %v1740_v26, %s6593_s13  ;;  %1552 = vrot.lane.b32.xlu0 %v1542_v24, %s6593_s13 }
 0x327   : > { %v7524_v54 = vpop.permute.xlu1 %1606  ;;  %v7526_v6 = vpop.permute.xlu0 %1528 }
 0x329   : > { %1852 = vrot.lane.b32.xlu1 %v1844_v31, %s6594_s25  ;;  %1656 = vrot.lane.b32.xlu0 %v1646_v16, %s6594_s25  ;;  %v1845_v16 = vmul.f32 %v7520_v19, %v7454_v13  ;;  %v7566_v19 = vstv %s5822_s10  ;;  %s5795_s10 = sld [smem:[#allocation9 + $0x57]] }
 0x32a   : > { %10530 = vst [vmem:[#allocation71_spill] sm:$0xff] %v7566_v19 }
 0x32b   : > { %v7540_v26 = vpop.permute.xlu1 %1632  ;;  %v7542_v24 = vpop.permute.xlu0 %1554 }
 0x32c   : > { %10527 = vst [vmem:[#allocation68_spill] sm:$0xff] %v7542_v24  ;;  %v2826_v24 = vmul.f32 %v7367_v43, %v7598_v8 }
 0x32d   : > { %2478 = vrot.lane.b32.xlu1 %v2470_v2, %s6593_s13  ;;  %2002 = vrot.lane.b32.xlu0 %v1993_v17, %s6593_s13  ;;  %v2471_v17 = vmul.f32 %v7534_v21, %v7556_v3  ;;  %v2749_v21 = vmul.f32 %v7566_v19, %v7348_v36 }
 0x32f   : > { %v7550_v56 = vpop.permute.xlu1 %1658  ;;  %v971_v31 = vpop.permute.xlu0 %970 }
 0x330   : > { %10528 = vst [vmem:[#allocation69_spill] sm:$0xff] %v7550_v56  ;;  %v980_v36 = vadd.f32 %v971_v31, %v920_v0  ;;  %v7602_v31 = vstv %s5797_s14  ;;  %v10537_v56 = vld [vmem:[#allocation46_spill] sm:$0xff]  ;;  %s5857_s14 = sld [smem:[#allocation9 + $0x1f]] }
 0x331   : > { %1854 = vrot.lane.b32.xlu1 %v1845_v16, %s6594_s25  ;;  %2028 = vrot.lane.b32.xlu0 %v2019_v52, %s6593_s13  ;;  %v2575_v52 = vmul.f32 %v7564_v51, %v7556_v3  ;;  %v1870_v3 = vmul.f32 %v7584_v35, %v7402_v42  ;;  %10535 = vst [vmem:[#allocation42_spill] sm:$0xff] %v7602_v31 }
 0x333   : > { %v973_v50 = vpop.permute.xlu1 %972  ;;  %v997_v2 = vpop.permute.xlu0 %996 }
 0x335   : > { %2480 = vrot.lane.b32.xlu1 %v2471_v17, %s6593_s13  ;;  %2054 = vrot.lane.b32.xlu0 %v2045_v39, %s6593_s13  ;;  %v1766_v39 = vmul.f32 %v7574_v28, %v7402_v42  ;;  %v1818_v17 = vmul.f32 %v7466_v61, %v7402_v42  ;;  %v2070_v61 = vmul.f32 %v7299_v62, %v6942_v38 }
 0x336   : > { %v940_v28 = vmul.f32 %v10537_v56, %v10532_v20 }
 0x337   : > { %v999_v16 = vpop.permute.xlu1 %998  ;;  %v1023_v55 = vpop.permute.xlu0 %1022 }
 0x339   : > { %2584 = vrot.lane.b32.xlu1 %v2575_v52, %s6594_s25  ;;  %2758 = vrot.lane.b32.xlu0 %v2749_v21, %s6593_s13  ;;  %v10534_v52 = vld [vmem:[#allocation43_spill] sm:$0xff] }
 0x33a   : > { %v921_v21 = vmul.f32 %v10533_v15, %v10534_v52  ;;  %v10536_v15 = vld [vmem:[#allocation45_spill] sm:$0xff]  ;;  %v931_v62 = vmul.f32 %v7189_v57, %v10534_v52  ;;  %v951_v43 = vmul.f32 %v7225_v27, %v10534_v52 }
 0x33b   : > { %v1025_v44 = vpop.permute.xlu1 %1024  ;;  %v1049_v12 = vpop.permute.xlu0 %1048 }
 0x33c   : > { %v981_v33 = vadd.f32 %v973_v50, %v921_v21  ;;  %v10538_v50 = vld [vmem:[#allocation17_spill] sm:$0xff] }
 0x33d   : > { %1774 = vrot.lane.b32.xlu1 %v1766_v39, %s6593_s13  ;;  %1826 = vrot.lane.b32.xlu0 %v1818_v17, %s6594_s25  ;;  %v930_v39 = vmul.f32 %v7189_v57, %v10532_v20  ;;  %v1172_v17 = vmul.f32 %v10536_v15, %v7219_v10  ;;  %v10539_v57 = vld [vmem:[#allocation47_spill] sm:$0xff] }
 0x33f   : > { %v7590_v19 = vpop.permute.xlu1 %1050  ;;  %v1075_v9 = vpop.permute.xlu0 %1074  ;;  %v1006_v46 = vadd.f32 %v997_v2, %v930_v39  ;;  %v1182_v39 = vmul.f32 %v10539_v57, %v7219_v10 }
 0x340   : > { %v1084_v0 = vadd.f32 %v1075_v9, %v980_v36 }
 0x341   : > { %1878 = vrot.lane.b32.xlu1 %v1870_v3, %s6594_s25  ;;  %2078 = vrot.lane.b32.xlu0 %v2070_v61, %s6594_s25  ;;  %v2218_v3 = vmul.f32 %v7602_v31, %v7491_v37  ;;  %v1173_v61 = vmul.f32 %v10536_v15, %v10538_v50  ;;  %v1007_v15 = vadd.f32 %v999_v16, %v931_v62 }
 0x342   : > { %v7608_v38 = vadd.f32 %v1172_v17, %v1084_v0  ;;  %v941_v0 = vmul.f32 %v10537_v56, %v10534_v52  ;;  %v950_v17 = vmul.f32 %v7225_v27, %v10532_v20  ;;  %v1871_v20 = vmul.f32 %v7584_v35, %v7454_v13 }
 0x343   : > { %v1077_v9 = vpop.permute.xlu1 %1076  ;;  %v1101_v36 = vpop.permute.xlu0 %1100  ;;  %v1741_v27 = vmul.f32 %v7507_v23, %v7454_v13  ;;  %v7641_v52 = vstv %s7596_s15  ;;  %s5861_s15 = sld [smem:[#allocation9 + $0x20]] }
 0x344   : > { %v1085_v2 = vadd.f32 %v1077_v9, %v981_v33  ;;  %v1110_v21 = vadd.f32 %v1101_v36, %v1006_v46  ;;  %v1032_v33 = vadd.f32 %v1023_v55, %v940_v28  ;;  %v1183_v36 = vmul.f32 %v10539_v57, %v10538_v50 }
 0x345   : > { %2834 = vrot.lane.b32.xlu1 %v2826_v24, %s6594_s25  ;;  %2226 = vrot.lane.b32.xlu0 %v2218_v3, %s6593_s13  ;;  %v1192_v24 = vmul.f32 %v7237_v14, %v7219_v10  ;;  %v1033_v16 = vadd.f32 %v1025_v44, %v941_v0  ;;  %v1193_v3 = vmul.f32 %v7237_v14, %v10538_v50 }
 0x346   : > { %v1177_v46 = vadd.f32 %v1173_v61, %v1085_v2  ;;  %v7632_v9 = vadd.f32 %v1182_v39, %v1110_v21  ;;  %v10540_v61 = vld [vmem:[#allocation39_spill] sm:$0xff]  ;;  %v1058_v21 = vadd.f32 %v1049_v12, %v950_v17  ;;  %v2244_v44 = vmul.f32 %v7641_v52, %v7491_v37 }
 0x347   : > { %v1103_v31 = vpop.permute.xlu1 %1102  ;;  %v1127_v56 = vpop.permute.xlu0 %1126  ;;  %v1425_v2 = vmul.f32 %v7293_v32, %v10540_v61  ;;  %v2574_v0 = vmul.f32 %v7564_v51, %v7532_v29  ;;  %v1202_v14 = vmul.f32 %v7251_v49, %v7219_v10 }
 0x348   : > { %v1233_v62 = vadd.f32 %v7404_v63, %v1177_v46  ;;  %v1111_v28 = vadd.f32 %v1103_v31, %v1007_v15  ;;  %v1136_v55 = vadd.f32 %v1127_v56, %v1032_v33  ;;  %v7662_v33 = vstv %s7618_s16  ;;  %s5845_s16 = sld [smem:[#allocation9 + $0x1c]] }
 0x349   : > { %1880 = vrot.lane.b32.xlu1 %v1871_v20, %s6594_s25  ;;  %1750 = vrot.lane.b32.xlu0 %v1741_v27, %s6593_s13  ;;  %v1059_v46 = vadd.f32 %v7590_v19, %v951_v43  ;;  %v7677_v43 = vld [vmem:[#allocation2 + $0x29] sm:$0xff] }
 0x34a   : > { %v1337_v63 = vadd.f32 %v7460_v5, %v1233_v62  ;;  %v1187_v31 = vadd.f32 %v1183_v36, %v1111_v28  ;;  %v7655_v57 = vadd.f32 %v1192_v24, %v1136_v55  ;;  %v6417_v36 = vld [vmem:[#allocation2 + $0x19] sm:$0xff]  ;;  %v2348_v55 = vmul.f32 %v7662_v33, %v7491_v37 }
 0x34b   : > { %v1129_v39 = vpop.permute.xlu1 %1128  ;;  %v1153_v15 = vpop.permute.xlu0 %1152  ;;  %v1203_v56 = vmul.f32 %v6417_v36, %v7251_v49  ;;  %v1992_v19 = vmul.f32 %v7677_v43, %v7536_v30  ;;  %v7682_v24 = vstv %s7643_s17  ;;  %v1435_v49 = vmul.f32 %v7303_v25, %v10540_v61  ;;  %s5849_s17 = sld [smem:[#allocation9 + $0x1d]] }
 0x34c   : > { %v1259_v12 = vadd.f32 %v7420_v45, %v1187_v31  ;;  %v1137_v50 = vadd.f32 %v1129_v39, %v1033_v16  ;;  %v1162_v5 = vadd.f32 %v1153_v15, %v1058_v21  ;;  %v1429_v17 = vadd.f32 %v1425_v2, %v1337_v63 }
 0x34d   : > { %2252 = vrot.lane.b32.xlu1 %v2244_v44, %s6593_s13  ;;  %2582 = vrot.lane.b32.xlu0 %v2574_v0, %s6594_s25 }
 0x34e   : > { %v1363_v20 = vadd.f32 %v7474_v1, %v1259_v12  ;;  %v1197_v27 = vadd.f32 %v1193_v3, %v1137_v50  ;;  %v7672_v62 = vadd.f32 %v1202_v14, %v1162_v5  ;;  %v1485_v10 = vadd.f32 %v7512_v18, %v1429_v17  ;;  %v7686_v1 = vld [vmem:[#allocation2 + $0x52] sm:$0xff]  ;;  %v7710_v17 = vld [vmem:[#allocation2 + $0x40] sm:$0xff] }
 0x34f   : > { %v1155_v45 = vpop.permute.xlu1 %1154  ;;  %v1223_v28 = vpop.permute.xlu0 %1222  ;;  %v10541_v3 = vld [vmem:[#allocation18_spill] sm:$0xff]  ;;  %v2974_v14 = vmul.f32 %v7682_v24, %v7686_v1 }
 0x350   : > { %v1285_v16 = vadd.f32 %v7434_v47, %v1197_v27  ;;  %v1163_v18 = vadd.f32 %v1155_v45, %v1059_v46  ;;  %v1677_v2 = vmul.f32 %v7411_v53, %v10541_v3  ;;  %v1589_v21 = vadd.f32 %v7503_v11, %v1485_v10  ;;  %v10543_v27 = vld [vmem:[#allocation25_spill] sm:$0xff] }
 0x351   : > { %2356 = vrot.lane.b32.xlu1 %v2348_v55, %s6594_s25  ;;  %2000 = vrot.lane.b32.xlu0 %v1992_v19, %s6593_s13  ;;  %v1439_v63 = vadd.f32 %v1435_v49, %v1363_v20  ;;  %v1445_v47 = vmul.f32 %v7305_v59, %v10540_v61  ;;  %v2096_v11 = vmul.f32 %v7677_v43, %v7308_v22  ;;  %v7726_v55 = vstv %s5810_s18  ;;  %v10546_v49 = vld [vmem:[#allocation68_spill] sm:$0xff]  ;;  %s5869_s18 = sld [smem:[#allocation9 + $0x22]] }
 0x352   : > { %v1389_v31 = vadd.f32 %v7485_v41, %v1285_v16  ;;  %v1207_v39 = vadd.f32 %v1203_v56, %v1163_v18  ;;  %v7695_v15 = vadd.f32 %v1677_v2, %v1589_v21  ;;  %v1687_v46 = vmul.f32 %v7710_v17, %v7432_v34 }
 0x353   : > { %v7699_v44 = vpop.permute.xlu1 %1472  ;;  %v1249_v0 = vpop.permute.xlu0 %1248  ;;  %v1511_v12 = vadd.f32 %v7514_v60, %v1439_v63  ;;  %v1455_v60 = vmul.f32 %v7379_v7, %v10540_v61  ;;  %v1792_v10 = vmul.f32 %v10543_v27, %v7402_v42  ;;  %v2496_v2 = vmul.f32 %v7726_v55, %v7532_v29  ;;  %v10548_v63 = vld [vmem:[#allocation69_spill] sm:$0xff] }
 0x354   : > { %10542 = vst [vmem:[#allocation44_spill] sm:$0xff] %v7695_v15  ;;  %v1311_v50 = vadd.f32 %v7448_v48, %v1207_v39  ;;  %v1449_v41 = vadd.f32 %v1445_v47, %v1389_v31  ;;  %v10549_v39 = vld [vmem:[#allocation63_spill] sm:$0xff] }
 0x355   : > { %2982 = vrot.lane.b32.xlu1 %v2974_v14, %s6593_s13  ;;  %2104 = vrot.lane.b32.xlu0 %v2096_v11, %s6594_s25  ;;  %v1615_v5 = vadd.f32 %v7524_v54, %v1511_v12  ;;  %v2722_v54 = vmul.f32 %v7328_v4, %v7598_v8  ;;  %v1707_v47 = vmul.f32 %v7710_v17, %v10549_v39 }
 0x356   : > { %v1415_v36 = vadd.f32 %v7501_v40, %v1311_v50  ;;  %v1537_v56 = vadd.f32 %v7526_v6, %v1449_v41  ;;  %v1697_v6 = vmul.f32 %v7710_v17, %v7458_v58  ;;  %v1232_v14 = vadd.f32 %v1223_v28, %v7608_v38  ;;  %v10551_v41 = vld [vmem:[#allocation24_spill] sm:$0xff] }
 0x357   : > { %v7718_v48 = vpop.permute.xlu1 %1602  ;;  %v1275_v20 = vpop.permute.xlu0 %1274  ;;  %v7724_v45 = vadd.f32 %v1687_v46, %v1615_v5  ;;  %v1897_v5 = vmul.f32 %v10551_v41, %v7454_v13  ;;  %v10552_v46 = vld [vmem:[#allocation19_spill] sm:$0xff]  ;;  %v1258_v38 = vadd.f32 %v1249_v0, %v7632_v9 }
 0x358   : > { %v1641_v40 = vadd.f32 %v7540_v26, %v1537_v56  ;;  %v1459_v61 = vadd.f32 %v1455_v60, %v1415_v36  ;;  %v10547_v26 = vld [vmem:[#allocation72_spill] sm:$0xff]  ;;  %v2018_v36 = vmul.f32 %v7677_v43, %v10552_v46  ;;  %v7756_v60 = vstv %s5814_s19  ;;  %s5812_s19 = sld [smem:[#allocation9 + $0x7f]] }
 0x359   : > { %10544 = vst [vmem:[#allocation43_spill] sm:$0xff] %v7724_v45  ;;  %1800 = vrot.lane.b32.xlu1 %v1792_v10, %s6593_s13  ;;  %2730 = vrot.lane.b32.xlu0 %v2722_v54, %s6593_s13  ;;  %v1767_v21 = vmul.f32 %v10547_v26, %v7454_v13  ;;  %v10553_v10 = vld [vmem:[#allocation51_spill] sm:$0xff]  ;;  %v1284_v9 = vadd.f32 %v1275_v20, %v7655_v57  ;;  %v10575_v45 = vld [vmem:[#allocation42_spill] sm:$0xff] }
 0x35a   : > { %v7733_v19 = vadd.f32 %v1697_v6, %v1641_v40  ;;  %v1563_v16 = vadd.f32 %v10546_v49, %v1459_v61  ;;  %v1424_v54 = vmul.f32 %v7293_v32, %v10553_v10  ;;  %v2600_v61 = vmul.f32 %v7756_v60, %v7532_v29  ;;  %v10554_v32 = vld [vmem:[#allocation14_spill] sm:$0xff] }
 0x35b   : > { %v7736_v18 = vpop.permute.xlu1 %1628  ;;  %v1301_v3 = vpop.permute.xlu0 %1300 }
 0x35c   : > { %10545 = vst [vmem:[#allocation45_spill] sm:$0xff] %v7733_v19  ;;  %v1667_v31 = vadd.f32 %v10548_v63, %v1563_v16  ;;  %v7767_v16 = vstv %s5837_s20  ;;  %v1310_v57 = vadd.f32 %v1301_v3, %v7672_v62  ;;  %s5827_s20 = sld [smem:[#allocation9 + $0x5f]] }
 0x35d   : > { %2504 = vrot.lane.b32.xlu1 %v2496_v2, %s6593_s13  ;;  %1776 = vrot.lane.b32.xlu0 %v1767_v21, %s6593_s13  ;;  %v1434_v2 = vmul.f32 %v7303_v25, %v10553_v10  ;;  %v1444_v25 = vmul.f32 %v7305_v59, %v10553_v10  ;;  %v1454_v59 = vmul.f32 %v7379_v7, %v10553_v10  ;;  %v10559_v7 = vld [vmem:[#allocation52_spill] sm:$0xff] }
 0x35e   : > { %v7748_v11 = vadd.f32 %v1707_v47, %v1667_v31  ;;  %v10555_v31 = vld [vmem:[#allocation70_spill] sm:$0xff]  ;;  %v1483_v10 = vadd.f32 %v7699_v44, %v10559_v7 }
 0x35f   : > { %v7750_v12 = vpop.permute.xlu1 %1654  ;;  %v1327_v50 = vpop.permute.xlu0 %1326  ;;  %v2601_v47 = vmul.f32 %v7756_v60, %v10555_v31  ;;  %v7830_v7 = vld [vmem:[#allocation2 + $0x38] sm:$0xff] }
 0x360   : > { %10550 = vst [vmem:[#allocation46_spill] sm:$0xff] %v7748_v11  ;;  %v1336_v56 = vadd.f32 %v1327_v50, %v1232_v14  ;;  %v3078_v14 = vmul.f32 %v7767_v16, %v7686_v1  ;;  %v7872_v11 = vld [vmem:[#allocation2 + $0x41] sm:$0xff] }
 0x361   : > { %1906 = vrot.lane.b32.xlu1 %v1897_v5, %s6594_s25  ;;  %2026 = vrot.lane.b32.xlu0 %v2018_v36, %s6593_s13 }
 0x362   : > { %v1428_v28 = vadd.f32 %v1424_v54, %v1336_v56  ;;  %v10556_v56 = vld [vmem:[#allocation31_spill] sm:$0xff] }
 0x363   : > { %v7763_v40 = vpop.permute.xlu1 %1976  ;;  %v1353_v6 = vpop.permute.xlu0 %1352  ;;  %v2044_v54 = vmul.f32 %v7677_v43, %v10556_v56 }
 0x364   : > { %v1362_v49 = vadd.f32 %v1353_v6, %v1258_v38  ;;  %v1793_v38 = vmul.f32 %v10543_v27, %v7454_v13 }
 0x365   : > { %2608 = vrot.lane.b32.xlu1 %v2600_v61, %s6594_s25  ;;  %2130 = vrot.lane.b32.xlu0 %v10554_v32, %s6594_s25  ;;  %v1896_v32 = vmul.f32 %v10551_v41, %v7402_v42  ;;  %v1675_v42 = vmul.f32 %v7411_v53, %v7454_v13 }
 0x366   : > { %v7775_v0 = vadd.f32 %v1434_v2, %v1362_v49  ;;  %v10558_v49 = vld [vmem:[#allocation71_spill] sm:$0xff] }
 0x367   : > { %v7777_v21 = vpop.permute.xlu1 %2080  ;;  %v1379_v63 = vpop.permute.xlu0 %1378  ;;  %v2748_v2 = vmul.f32 %v10558_v49, %v7598_v8 }
 0x368   : > { %v1388_v50 = vadd.f32 %v1379_v63, %v1284_v9 }
 0x369   : > { %2610 = vrot.lane.b32.xlu1 %v2601_v47, %s6594_s25  ;;  %3086 = vrot.lane.b32.xlu0 %v3078_v14, %s6594_s25  ;;  %v10561_v47 = vld [vmem:[#allocation57_spill] sm:$0xff] }
 0x36a   : > { %v7788_v20 = vadd.f32 %v1444_v25, %v1388_v50  ;;  %v2852_v14 = vmul.f32 %v10561_v47, %v7598_v8  ;;  %v2497_v50 = vmul.f32 %v7726_v55, %v10555_v31 }
 0x36b   : > { %v7790_v5 = vpop.permute.xlu1 %2106  ;;  %v1405_v36 = vpop.permute.xlu0 %1404 }
 0x36c   : > { %v1414_v6 = vadd.f32 %v1405_v36, %v1310_v57 }
 0x36d   : > { %2052 = vrot.lane.b32.xlu1 %v2044_v54, %s6593_s13  ;;  %1802 = vrot.lane.b32.xlu0 %v1793_v38, %s6593_s13  ;;  %v10562_v54 = vld [vmem:[#allocation32_spill] sm:$0xff] }
 0x36e   : > { %v7800_v62 = vadd.f32 %v1454_v59, %v1414_v6  ;;  %v2296_v38 = vmul.f32 %v10562_v54, %v7491_v37  ;;  %v10563_v6 = vld [vmem:[#allocation21_spill] sm:$0xff] }
 0x36f   : > { %v7802_v3 = vpop.permute.xlu1 %2732  ;;  %v1475_v61 = vpop.permute.xlu0 %1474  ;;  %v2270_v59 = vmul.f32 %v10563_v6, %v7491_v37 }
 0x370   : > { %10557 = vst [vmem:[#allocation17_spill] sm:$0xff] %v7802_v3  ;;  %v1484_v41 = vadd.f32 %v1475_v61, %v1428_v28  ;;  %v1676_v28 = vmul.f32 %v7830_v7, %v7411_v53 }
 0x371   : > { %2756 = vrot.lane.b32.xlu1 %v2748_v2, %s6593_s13  ;;  %1904 = vrot.lane.b32.xlu0 %v1896_v32, %s6594_s25  ;;  %v7828_v32 = vstv %s5815_s24  ;;  %s5873_s24 = sld [smem:[#allocation9 + $0x23]] }
 0x373   : > { %v7812_v9 = vpop.permute.xlu1 %2836  ;;  %v1577_v63 = vpop.permute.xlu0 %1576 }
 0x374   : > { %10560 = vst [vmem:[#allocation47_spill] sm:$0xff] %v7812_v9  ;;  %v1587_v25 = vadd.f32 %v1577_v63, %v1483_v10  ;;  %v7856_v9 = vstv %s5838_s26  ;;  %s5816_s26 = sld [smem:[#allocation9 + $0x80]] }
 0x375   : > { %2860 = vrot.lane.b32.xlu1 %v2852_v14, %s6594_s25  ;;  %2506 = vrot.lane.b32.xlu0 %v2497_v50, %s6593_s13  ;;  %v2627_v14 = vmul.f32 %v7828_v32, %v10555_v31  ;;  %v10565_v50 = vld [vmem:[#allocation20_spill] sm:$0xff]  ;;  %10569 = vst [vmem:[#allocation68_spill] sm:$0xff] %v7856_v9 }
 0x376   : > { %v1679_v44 = vadd.f32 %v1675_v42, %v1587_v25  ;;  %v2374_v25 = vmul.f32 %v10565_v50, %v7491_v37  ;;  %v10566_v42 = vld [vmem:[#allocation54_spill] sm:$0xff] }
 0x377   : > { %v7822_v57 = vpop.permute.xlu1 %2132  ;;  %v1579_v36 = vpop.permute.xlu0 %1578 }
 0x378   : > { %v1588_v2 = vadd.f32 %v1579_v36, %v1484_v41  ;;  %v7845_v36 = vstv %s5834_s23  ;;  %s5846_s23 = sld [smem:[#allocation9 + $0x40]] }
 0x379   : > { %2304 = vrot.lane.b32.xlu1 %v2296_v38, %s6593_s13  ;;  %2278 = vrot.lane.b32.xlu0 %v2270_v59, %s6593_s13  ;;  %10567 = vst [vmem:[#allocation18_spill] sm:$0xff] %v7845_v36  ;;  %v1685_v38 = vmul.f32 %v7432_v34, %v7454_v13 }
 0x37a   : > { %v7836_v61 = vadd.f32 %v1676_v28, %v1588_v2  ;;  %v3000_v28 = vmul.f32 %v7845_v36, %v7686_v1 }
 0x37b   : > { %v7838_v10 = vpop.permute.xlu1 %2158  ;;  %v1499_v63 = vpop.permute.xlu0 %1498 }
 0x37c   : > { %10564 = vst [vmem:[#allocation39_spill] sm:$0xff] %v7836_v61  ;;  %v1509_v41 = vadd.f32 %v1499_v63, %v10566_v42  ;;  %v7858_v63 = vstv %s5811_s27  ;;  %s5850_s27 = sld [smem:[#allocation9 + $0x41]] }
 0x37d   : > { %2636 = vrot.lane.b32.xlu1 %v2627_v14, %s6594_s25  ;;  %2382 = vrot.lane.b32.xlu0 %v2374_v25, %s6594_s25  ;;  %v10570_v14 = vld [vmem:[#allocation16_spill] sm:$0xff]  ;;  %v2522_v3 = vmul.f32 %v7858_v63, %v7532_v29  ;;  %v2523_v19 = vmul.f32 %v7858_v63, %v10555_v31 }
 0x37e   : > { %v1613_v53 = vadd.f32 %v7718_v48, %v1509_v41 }
 0x37f   : > { %v7852_v59 = vpop.permute.xlu1 %2862  ;;  %v1501_v2 = vpop.permute.xlu0 %1500 }
 0x380   : > { %10568 = vst [vmem:[#allocation25_spill] sm:$0xff] %v7852_v59  ;;  %v7860_v42 = vadd.f32 %v1685_v38, %v1613_v53  ;;  %v1510_v48 = vadd.f32 %v1501_v2, %v7775_v0  ;;  %v3104_v59 = vmul.f32 %v7856_v9, %v7686_v1  ;;  %v1686_v38 = vmul.f32 %v7830_v7, %v7432_v34  ;;  %v7884_v9 = vld [vmem:[#allocation2 + $0x42] sm:$0xff] }
 0x381   : > { %3008 = vrot.lane.b32.xlu1 %v3000_v28, %s6593_s13  ;;  %2156 = vrot.lane.b32.xlu0 %v10570_v14, %s6594_s25  ;;  %v10572_v14 = vld [vmem:[#allocation49_spill] sm:$0xff]  ;;  %v7889_v34 = vstv %s5781_s28  ;;  %v2221_v15 = vmul.f32 %v10575_v45, %v7884_v9  ;;  %s5835_s28 = sld [smem:[#allocation9 + $0x61]] }
 0x382   : > { %v1969_v1 = vmul.f32 %v10572_v14, %v7872_v11  ;;  %10574 = vst [vmem:[#allocation69_spill] sm:$0xff] %v7889_v34 }
 0x383   : > { %v7866_v25 = vpop.permute.xlu1 %1722  ;;  %v1605_v41 = vpop.permute.xlu0 %1604 }
 0x384   : > { %v1614_v53 = vadd.f32 %v1605_v41, %v1510_v48  ;;  %v10573_v48 = vld [vmem:[#allocation55_spill] sm:$0xff] }
 0x385   : > { %3112 = vrot.lane.b32.xlu1 %v3104_v59, %s6594_s25  ;;  %2530 = vrot.lane.b32.xlu0 %v2522_v3, %s6593_s13 }
 0x386   : > { %v7878_v0 = vadd.f32 %v1686_v38, %v1614_v53  ;;  %v1695_v53 = vmul.f32 %v7458_v58, %v7454_v13 }
 0x387   : > { %v1725_v2 = vpop.permute.xlu1 %1724  ;;  %v1525_v28 = vpop.permute.xlu0 %1524 }
 0x388   : > { %10571 = vst [vmem:[#allocation72_spill] sm:$0xff] %v7878_v0  ;;  %v1535_v41 = vadd.f32 %v1525_v28, %v10573_v48  ;;  %v1735_v3 = vadd.f32 %v1725_v2, %v1679_v44  ;;  %v2626_v28 = vmul.f32 %v7828_v32, %v7532_v29  ;;  %v10576_v48 = vld [vmem:[#allocation48_spill] sm:$0xff]  ;;  %v2099_v0 = vmul.f32 %v7308_v22, %v7872_v11 }
 0x389   : > { %1980 = vrot.lane.b32.xlu1 %v1969_v1, %s6593_s13  ;;  %2532 = vrot.lane.b32.xlu0 %v2523_v19, %s6593_s13  ;;  %v1927_v1 = vmul.f32 %v7889_v34, %v10576_v48  ;;  %v10577_v29 = vld [vmem:[#allocation28_spill] sm:$0xff]  ;;  %v7911_v48 = vstv %s5793_s29  ;;  %s5824_s29 = sld [smem:[#allocation9 + $0x82]] }
 0x38a   : > { %v1639_v59 = vadd.f32 %v7736_v18, %v1535_v41  ;;  %v2400_v36 = vmul.f32 %v10577_v29, %v7491_v37 }
 0x38b   : > { %v1829_v38 = vpop.permute.xlu1 %1828  ;;  %v1527_v31 = vpop.permute.xlu0 %1526 }
 0x38c   : > { %v1839_v19 = vadd.f32 %v1829_v38, %v1735_v3  ;;  %v7900_v61 = vadd.f32 %v1695_v53, %v1639_v59  ;;  %v1536_v44 = vadd.f32 %v1527_v31, %v7788_v20  ;;  %v7913_v3 = vld [vmem:[#allocation2 + $0x69] sm:$0xff]  ;;  %v7916_v53 = vstv %s5823_s30  ;;  %v7922_v38 = vld [vmem:[#allocation2 + $0x32] sm:$0xff]  ;;  %s5839_s30 = sld [smem:[#allocation9 + $0x62]] }
 0x38d   : > { %2232 = vrot.lane.b32.xlu1 %v2221_v15, %s6593_s13  ;;  %2634 = vrot.lane.b32.xlu0 %v2626_v28, %s6594_s25  ;;  %10578 = vst [vmem:[#allocation63_spill] sm:$0xff] %v7916_v53  ;;  %v1696_v20 = vmul.f32 %v7830_v7, %v7458_v58  ;;  %v2179_v31 = vmul.f32 %v7922_v38, %v7911_v48 }
 0x38e   : > { %v1931_v18 = vadd.f32 %v1927_v1, %v1839_v19  ;;  %v2725_v58 = vmul.f32 %v7328_v4, %v7913_v3 }
 0x38f   : > { %v7905_v2 = vpop.permute.xlu1 %1974  ;;  %v1631_v41 = vpop.permute.xlu0 %1630 }
 0x390   : > { %v1987_v15 = vadd.f32 %v7763_v40, %v1931_v18  ;;  %v1640_v59 = vadd.f32 %v1631_v41, %v1536_v44  ;;  %v1705_v41 = vmul.f32 %v10549_v39, %v7454_v13 }
 0x391   : > { %2110 = vrot.lane.b32.xlu1 %v2099_v0, %s6594_s25  ;;  %2408 = vrot.lane.b32.xlu0 %v2400_v36, %s6594_s25  ;;  %v2774_v0 = vmul.f32 %v7916_v53, %v7598_v8  ;;  %v10581_v36 = vld [vmem:[#allocation56_spill] sm:$0xff]  ;;  %v10583_v8 = vld [vmem:[#allocation50_spill] sm:$0xff] }
 0x392   : > { %v2091_v28 = vadd.f32 %v7777_v21, %v1987_v15  ;;  %v7927_v1 = vadd.f32 %v1696_v20, %v1640_v59  ;;  %v2351_v20 = vmul.f32 %v7662_v33, %v7884_v9 }
 0x393   : > { %v7929_v40 = vpop.permute.xlu1 %2330  ;;  %v1551_v19 = vpop.permute.xlu0 %1550 }
 0x394   : > { %10579 = vst [vmem:[#allocation24_spill] sm:$0xff] %v7927_v1  ;;  %10580 = vst [vmem:[#allocation19_spill] sm:$0xff] %v7929_v40  ;;  %v1561_v18 = vadd.f32 %v1551_v19, %v10581_v36  ;;  %v7936_v44 = vadd.f32 %v2179_v31, %v2091_v28  ;;  %v2073_v40 = vmul.f32 %v10583_v8, %v7872_v11  ;;  %v7947_v19 = vld [vmem:[#allocation2 + $0x6a] sm:$0xff] }
 0x395   : > { %2736 = vrot.lane.b32.xlu1 %v2725_v58, %s6593_s13  ;;  %2782 = vrot.lane.b32.xlu0 %v2774_v0, %s6593_s13  ;;  %10584 = vst [vmem:[#allocation14_spill] sm:$0xff] %v7947_v19  ;;  %v10585_v28 = vld [vmem:[#allocation60_spill] sm:$0xff] }
 0x396   : > { %10582 = vst [vmem:[#allocation51_spill] sm:$0xff] %v7936_v44  ;;  %v1665_v21 = vadd.f32 %v7750_v12, %v1561_v18  ;;  %v7953_v12 = vstv %s5782_s7  ;;  %v2977_v18 = vmul.f32 %v7682_v24, %v7947_v19  ;;  %v10586_v44 = vld [vmem:[#allocation64_spill] sm:$0xff]  ;;  %s5805_s7 = sld [smem:[#allocation9 + $0x12]] }
 0x397   : > { %v1749_v15 = vpop.permute.xlu1 %1748  ;;  %v1553_v59 = vpop.permute.xlu0 %1552  ;;  %v2325_v29 = vmul.f32 %v10586_v44, %v7884_v9 }
 0x398   : > { %v7949_v31 = vadd.f32 %v1705_v41, %v1665_v21  ;;  %v1760_v13 = vadd.f32 %v1749_v15, %v10585_v28  ;;  %v1562_v58 = vadd.f32 %v1553_v59, %v7800_v62 }
 0x399   : > { %2362 = vrot.lane.b32.xlu1 %v2351_v20, %s6594_s25  ;;  %2084 = vrot.lane.b32.xlu0 %v2073_v40, %s6594_s25  ;;  %v1936_v20 = vmul.f32 %v7677_v43, %v7953_v12  ;;  %v1706_v40 = vmul.f32 %v7830_v7, %v10549_v39 }
 0x39b   : > { %v1853_v0 = vpop.permute.xlu1 %1852  ;;  %v1657_v36 = vpop.permute.xlu0 %1656 }
 0x39c   : > { %v1864_v21 = vadd.f32 %v1853_v0, %v1760_v13  ;;  %v1666_v41 = vadd.f32 %v1657_v36, %v1562_v58  ;;  %v10589_v13 = vld [vmem:[#allocation13_spill] sm:$0xff]  ;;  %v1995_v0 = vmul.f32 %v7536_v30, %v7872_v11  ;;  %v2377_v36 = vmul.f32 %v10565_v50, %v7884_v9 }
 0x39d   : > { %2988 = vrot.lane.b32.xlu1 %v2977_v18, %s6593_s13  ;;  %2336 = vrot.lane.b32.xlu0 %v2325_v29, %s6594_s25  ;;  %v2125_v58 = vmul.f32 %v10589_v13, %v7872_v11  ;;  %v10590_v18 = vld [vmem:[#allocation53_spill] sm:$0xff] }
 0x39e   : > { %v7967_v62 = vadd.f32 %v1936_v20, %v1864_v21  ;;  %v7969_v15 = vadd.f32 %v1706_v40, %v1666_v41  ;;  %v2829_v21 = vmul.f32 %v10590_v18, %v7913_v3  ;;  %v10592_v40 = vld [vmem:[#allocation15_spill] sm:$0xff] }
 0x39f   : > { %v7971_v59 = vpop.permute.xlu1 %2478  ;;  %v7973_v28 = vpop.permute.xlu0 %2002  ;;  %v2151_v13 = vmul.f32 %v10592_v40, %v7872_v11  ;;  %v10595_v40 = vld [vmem:[#allocation58_spill] sm:$0xff] }
 0x3a0   : > { %10587 = vst [vmem:[#allocation70_spill] sm:$0xff] %v7969_v15  ;;  %10588 = vst [vmem:[#allocation31_spill] sm:$0xff] %v7971_v59  ;;  %v10596_v59 = vld [vmem:[#allocation59_spill] sm:$0xff]  ;;  %v1926_v15 = vmul.f32 %v7677_v43, %v7889_v34  ;;  %v2273_v34 = vmul.f32 %v10563_v6, %v7884_v9 }
 0x3a1   : > { %2136 = vrot.lane.b32.xlu1 %v2125_v58, %s6594_s25  ;;  %2006 = vrot.lane.b32.xlu0 %v1995_v0, %s6593_s13  ;;  %v2247_v58 = vmul.f32 %v7641_v52, %v7884_v9 }
 0x3a3   : > { %v1855_v39 = vpop.permute.xlu1 %1854  ;;  %v7981_v29 = vpop.permute.xlu0 %2028 }
 0x3a5   : > { %2388 = vrot.lane.b32.xlu1 %v2377_v36, %s6594_s25  ;;  %2840 = vrot.lane.b32.xlu0 %v2829_v21, %s6594_s25  ;;  %v2855_v36 = vmul.f32 %v10561_v47, %v7913_v3  ;;  %v2021_v21 = vmul.f32 %v10552_v46, %v7872_v11  ;;  %v8019_v46 = vstv %s5783_s8  ;;  %v8022_v47 = vld [vmem:[#allocation2 + $0x39] sm:$0xff]  ;;  %s5858_s8 = sld [smem:[#allocation9 + $0x43]] }
 0x3a7   : > { %v7989_v41 = vpop.permute.xlu1 %2480  ;;  %v7991_v20 = vpop.permute.xlu0 %2054 }
 0x3a8   : > { %10591 = vst [vmem:[#allocation71_spill] sm:$0xff] %v7989_v41 }
 0x3a9   : > { %2162 = vrot.lane.b32.xlu1 %v2151_v13, %s6594_s25  ;;  %2258 = vrot.lane.b32.xlu0 %v2247_v58, %s6593_s13  ;;  %v1734_v13 = vadd.f32 %v7866_v25, %v10595_v40 }
 0x3ab   : > { %v7999_v50 = vpop.permute.xlu1 %2584  ;;  %v8001_v0 = vpop.permute.xlu0 %2758 }
 0x3ac   : > { %10593 = vst [vmem:[#allocation52_spill] sm:$0xff] %v7999_v50  ;;  %10594 = vst [vmem:[#allocation32_spill] sm:$0xff] %v8001_v0  ;;  %v1717_v50 = vmul.f32 %v7710_v17, %v10596_v59  ;;  %v3081_v0 = vmul.f32 %v7767_v16, %v7947_v19  ;;  %v1968_v19 = vmul.f32 %v8022_v47, %v10572_v14 }
 0x3ad   : > { %2866 = vrot.lane.b32.xlu1 %v2855_v36, %s6594_s25  ;;  %2032 = vrot.lane.b32.xlu0 %v2021_v21, %s6593_s13  ;;  %v10597_v36 = vld [vmem:[#allocation62_spill] sm:$0xff] }
 0x3af   : > { %v1775_v41 = vpop.permute.xlu1 %1774  ;;  %v1827_v58 = vpop.permute.xlu0 %1826 }
 0x3b0   : > { %v1838_v53 = vadd.f32 %v1827_v58, %v1734_v13  ;;  %v1786_v25 = vadd.f32 %v1775_v41, %v10597_v36  ;;  %v2047_v36 = vmul.f32 %v10556_v56, %v7872_v11  ;;  %v8056_v56 = vld [vmem:[#allocation2 + $0x31] sm:$0xff] }
 0x3b1   : > { %1728 = vrot.lane.b32.xlu1 %v1717_v50, %s6593_s13  ;;  %3092 = vrot.lane.b32.xlu0 %v3081_v0, %s6594_s25  ;;  %v1946_v0 = vmul.f32 %v7677_v43, %v8019_v46 }
 0x3b2   : > { %v1930_v21 = vadd.f32 %v1926_v15, %v1838_v53  ;;  %v2178_v15 = vmul.f32 %v7911_v48, %v7491_v37 }
 0x3b3   : > { %v1879_v40 = vpop.permute.xlu1 %1878  ;;  %v2079_v1 = vpop.permute.xlu0 %2078 }
 0x3b4   : > { %v1890_v13 = vadd.f32 %v1879_v40, %v1786_v25  ;;  %v1986_v50 = vadd.f32 %v7905_v2, %v1930_v21  ;;  %v2072_v2 = vmul.f32 %v8022_v47, %v10583_v8  ;;  %v2751_v21 = vmul.f32 %v10558_v49, %v7913_v3 }
 0x3b5   : > { %1978 = vrot.lane.b32.xlu1 %v1968_v19, %s6593_s13  ;;  %2284 = vrot.lane.b32.xlu0 %v2273_v34, %s6593_s13  ;;  %v2219_v19 = vmul.f32 %v7922_v38, %v10575_v45  ;;  %v1937_v40 = vmul.f32 %v8056_v56, %v7953_v12 }
 0x3b6   : > { %v2090_v53 = vadd.f32 %v2079_v1, %v1986_v50  ;;  %v8035_v41 = vadd.f32 %v1946_v0, %v1890_v13 }
 0x3b7   : > { %v8037_v14 = vpop.permute.xlu1 %2834  ;;  %v8039_v58 = vpop.permute.xlu0 %2226 }
 0x3b8   : > { %v8045_v25 = vadd.f32 %v2178_v15, %v2090_v53  ;;  %v2323_v53 = vmul.f32 %v7922_v38, %v10586_v44 }
 0x3b9   : > { %2082 = vrot.lane.b32.xlu1 %v2072_v2, %s6594_s25  ;;  %2058 = vrot.lane.b32.xlu0 %v2047_v36, %s6593_s13  ;;  %v8070_v2 = vstv %s5794_s9  ;;  %s5828_s9 = sld [smem:[#allocation9 + $0x83]] }
 0x3ba   : > { %10599 = vst [vmem:[#allocation20_spill] sm:$0xff] %v8070_v2 }
 0x3bb   : > { %v1881_v34 = vpop.permute.xlu1 %1880  ;;  %v1751_v1 = vpop.permute.xlu0 %1750 }
 0x3bc   : > { %v1761_v8 = vadd.f32 %v1751_v1, %v7860_v42  ;;  %v2299_v42 = vmul.f32 %v10562_v54, %v7884_v9 }
 0x3bd   : > { %2228 = vrot.lane.b32.xlu1 %v2219_v19, %s6593_s13  ;;  %2762 = vrot.lane.b32.xlu0 %v2751_v21, %s6593_s13  ;;  %v1742_v19 = vmul.f32 %v7830_v7, %v7507_v23  ;;  %v1716_v21 = vmul.f32 %v7830_v7, %v10596_v59  ;;  %v10603_v59 = vld [vmem:[#allocation61_spill] sm:$0xff] }
 0x3be   : > { %v1865_v13 = vadd.f32 %v1855_v39, %v1761_v8  ;;  %v2189_v8 = vmul.f32 %v7922_v38, %v8070_v2 }
 0x3bf   : > { %v8060_v50 = vpop.permute.xlu1 %2252  ;;  %v8062_v0 = vpop.permute.xlu0 %2582 }
 0x3c0   : > { %10598 = vst [vmem:[#allocation21_spill] sm:$0xff] %v8060_v50  ;;  %v1941_v15 = vadd.f32 %v1937_v40, %v1865_v13 }
 0x3c1   : > { %2332 = vrot.lane.b32.xlu1 %v2323_v53, %s6594_s25  ;;  %2310 = vrot.lane.b32.xlu0 %v2299_v42, %s6593_s13  ;;  %v10602_v42 = vld [vmem:[#allocation66_spill] sm:$0xff] }
 0x3c2   : > { %v2013_v36 = vadd.f32 %v7973_v28, %v1941_v15  ;;  %v1846_v15 = vmul.f32 %v7830_v7, %v10602_v42 }
 0x3c3   : > { %v8073_v39 = vpop.permute.xlu1 %2356  ;;  %v2001_v1 = vpop.permute.xlu0 %2000 }
 0x3c4   : > { %10600 = vst [vmem:[#allocation54_spill] sm:$0xff] %v8073_v39  ;;  %v2117_v54 = vadd.f32 %v7790_v5, %v2013_v36  ;;  %v2012_v28 = vadd.f32 %v2001_v1, %v7967_v62  ;;  %v1820_v5 = vmul.f32 %v7830_v7, %v10603_v59  ;;  %v8093_v36 = vld [vmem:[#allocation2 + $0x60] sm:$0xff] }
 0x3c5   : > { %1752 = vrot.lane.b32.xlu1 %v1742_v19, %s6593_s13  ;;  %1726 = vrot.lane.b32.xlu0 %v1716_v21, %s6593_s13  ;;  %v2188_v19 = vmul.f32 %v8070_v2, %v7491_v37 }
 0x3c6   : > { %v8085_v40 = vadd.f32 %v2189_v8, %v2117_v54  ;;  %v10605_v54 = vld [vmem:[#allocation67_spill] sm:$0xff] }
 0x3c7   : > { %v8087_v13 = vpop.permute.xlu1 %2982  ;;  %v2105_v53 = vpop.permute.xlu0 %2104  ;;  %v2472_v8 = vmul.f32 %v10605_v54, %v8093_v36 }
 0x3c8   : > { %10601 = vst [vmem:[#allocation16_spill] sm:$0xff] %v8085_v40  ;;  %v2116_v39 = vadd.f32 %v2105_v53, %v2012_v28  ;;  %v1821_v40 = vmul.f32 %v7710_v17, %v10603_v59 }
 0x3c9   : > { %1856 = vrot.lane.b32.xlu1 %v1846_v15, %s6594_s25  ;;  %1830 = vrot.lane.b32.xlu0 %v1820_v5, %s6594_s25  ;;  %v8113_v15 = vld [vmem:[#allocation2 + $0x3a] sm:$0xff] }
 0x3ca   : > { %v8099_v62 = vadd.f32 %v2188_v19, %v2116_v39  ;;  %v1847_v39 = vmul.f32 %v7710_v17, %v10602_v42  ;;  %v2220_v5 = vmul.f32 %v8113_v15, %v10575_v45  ;;  %v8117_v19 = vld [vmem:[#allocation2 + $0x68] sm:$0xff]  ;;  %v2324_v45 = vmul.f32 %v8113_v15, %v10586_v44 }
 0x3cb   : > { %v1801_v1 = vpop.permute.xlu1 %1800  ;;  %v8101_v21 = vpop.permute.xlu0 %2730  ;;  %v2473_v42 = vmul.f32 %v10605_v54, %v8117_v19  ;;  %v2576_v54 = vmul.f32 %v7564_v51, %v8093_v36  ;;  %v1743_v44 = vmul.f32 %v7710_v17, %v7507_v23 }
 0x3cc   : > { %10604 = vst [vmem:[#allocation49_spill] sm:$0xff] %v8099_v62 }
 0x3cd   : > { %2482 = vrot.lane.b32.xlu1 %v2472_v8, %s6593_s13  ;;  %1832 = vrot.lane.b32.xlu0 %v1821_v40, %s6594_s25  ;;  %v1947_v40 = vmul.f32 %v8056_v56, %v8019_v46 }
 0x3cf   : > { %v8109_v28 = vpop.permute.xlu1 %2504  ;;  %v1777_v53 = vpop.permute.xlu0 %1776 }
 0x3d0   : > { %10606 = vst [vmem:[#allocation55_spill] sm:$0xff] %v8109_v28  ;;  %v1787_v59 = vadd.f32 %v1777_v53, %v7900_v61  ;;  %v8130_v61 = vstv %s5795_s10  ;;  %s5817_s10 = sld [smem:[#allocation9 + $0x15]] }
 0x3d1   : > { %1858 = vrot.lane.b32.xlu1 %v1847_v39, %s6594_s25  ;;  %2230 = vrot.lane.b32.xlu0 %v2220_v5, %s6593_s13  ;;  %10607 = vst [vmem:[#allocation42_spill] sm:$0xff] %v8130_v61 }
 0x3d2   : > { %v1891_v8 = vadd.f32 %v1881_v34, %v1787_v59 }
 0x3d3   : > { %v1907_v28 = vpop.permute.xlu1 %1906  ;;  %v2027_v50 = vpop.permute.xlu0 %2026 }
 0x3d4   : > { %v1951_v62 = vadd.f32 %v1947_v40, %v1891_v8  ;;  %v2038_v53 = vadd.f32 %v2027_v50, %v8035_v41  ;;  %v2198_v40 = vmul.f32 %v8130_v61, %v7491_v37  ;;  %v2199_v41 = vmul.f32 %v7922_v38, %v8130_v61 }
 0x3d5   : > { %2484 = vrot.lane.b32.xlu1 %v2473_v42, %s6593_s13  ;;  %2334 = vrot.lane.b32.xlu0 %v2324_v45, %s6594_s25  ;;  %v1768_v37 = vmul.f32 %v7830_v7, %v10547_v26  ;;  %v8161_v45 = vstv %s5784_s11  ;;  %s5829_s11 = sld [smem:[#allocation9 + $0x18]] }
 0x3d6   : > { %v2039_v39 = vadd.f32 %v7981_v29, %v1951_v62 }
 0x3d7   : > { %v8134_v34 = vpop.permute.xlu1 %2608  ;;  %v2131_v5 = vpop.permute.xlu0 %2130 }
 0x3d8   : > { %10608 = vst [vmem:[#allocation48_spill] sm:$0xff] %v8134_v34  ;;  %v2142_v59 = vadd.f32 %v2131_v5, %v2038_v53  ;;  %v2143_v8 = vadd.f32 %v7822_v57, %v2039_v39  ;;  %v2577_v57 = vmul.f32 %v7564_v51, %v8117_v19  ;;  %v1872_v39 = vmul.f32 %v7830_v7, %v7584_v35  ;;  %v10612_v51 = vld [vmem:[#allocation65_spill] sm:$0xff] }
 0x3d9   : > { %2586 = vrot.lane.b32.xlu1 %v2576_v54, %s6594_s25  ;;  %1754 = vrot.lane.b32.xlu0 %v1743_v44, %s6593_s13  ;;  %v1994_v5 = vmul.f32 %v8022_v47, %v7536_v30  ;;  %v1812_v44 = vadd.f32 %v1801_v1, %v10612_v51  ;;  %v2098_v30 = vmul.f32 %v8022_v47, %v7308_v22 }
 0x3da   : > { %v8147_v29 = vadd.f32 %v2198_v40, %v2142_v59  ;;  %v8149_v50 = vadd.f32 %v2199_v41, %v2143_v8  ;;  %v1957_v59 = vmul.f32 %v8056_v56, %v8161_v45  ;;  %v8185_v56 = vstv %s5796_s12  ;;  %s5862_s12 = sld [smem:[#allocation9 + $0x44]] }
 0x3db   : > { %v8151_v62 = vpop.permute.xlu1 %2610  ;;  %v8153_v23 = vpop.permute.xlu0 %3086  ;;  %v2349_v22 = vmul.f32 %v7922_v38, %v7662_v33 }
 0x3dc   : > { %10609 = vst [vmem:[#allocation56_spill] sm:$0xff] %v8147_v29  ;;  %10610 = vst [vmem:[#allocation50_spill] sm:$0xff] %v8149_v50  ;;  %v10663_v50 = vld [vmem:[#allocation69_spill] sm:$0xff] }
 0x3dd   : > { %10611 = vst [vmem:[#allocation60_spill] sm:$0xff] %v8151_v62  ;;  %1778 = vrot.lane.b32.xlu1 %v1768_v37, %s6593_s13  ;;  %2588 = vrot.lane.b32.xlu0 %v2577_v57, %s6594_s25  ;;  %v1873_v37 = vmul.f32 %v7710_v17, %v7584_v35 }
 0x3df   : > { %v2053_v42 = vpop.permute.xlu1 %2052  ;;  %v1803_v53 = vpop.permute.xlu0 %1802 }
 0x3e0   : > { %v1813_v54 = vadd.f32 %v1803_v53, %v7949_v31  ;;  %v8179_v31 = vld [vmem:[#allocation2 + $0x61] sm:$0xff]  ;;  %v1956_v53 = vmul.f32 %v7677_v43, %v8161_v45 }
 0x3e1   : > { %1882 = vrot.lane.b32.xlu1 %v1872_v39, %s6594_s25  ;;  %2004 = vrot.lane.b32.xlu0 %v1994_v5, %s6593_s13  ;;  %v2724_v43 = vmul.f32 %v7328_v4, %v8179_v31 }
 0x3e2   : > { %v1917_v40 = vadd.f32 %v1907_v28, %v1813_v54  ;;  %v8196_v54 = vld [vmem:[#allocation2 + $0x5a] sm:$0xff] }
 0x3e3   : > { %v8173_v8 = vpop.permute.xlu1 %2756  ;;  %v1905_v41 = vpop.permute.xlu0 %1904  ;;  %v2975_v4 = vmul.f32 %v7682_v24, %v8196_v54 }
 0x3e4   : > { %10613 = vst [vmem:[#allocation64_spill] sm:$0xff] %v8173_v8  ;;  %v1961_v57 = vadd.f32 %v1957_v59, %v1917_v40  ;;  %v1916_v1 = vadd.f32 %v1905_v41, %v1812_v44  ;;  %v2209_v44 = vmul.f32 %v7922_v38, %v8185_v56  ;;  %v1769_v41 = vmul.f32 %v7710_v17, %v10547_v26 }
 0x3e5   : > { %1884 = vrot.lane.b32.xlu1 %v1873_v37, %s6594_s25  ;;  %2108 = vrot.lane.b32.xlu0 %v2098_v30, %s6594_s25  ;;  %v2246_v30 = vmul.f32 %v8113_v15, %v7641_v52  ;;  %v8362_v8 = vstv %s5861_s15  ;;  %s5841_s15 = sld [smem:[#allocation9 + $0x1b]] }
 0x3e6   : > { %v1960_v28 = vadd.f32 %v1956_v53, %v1916_v1  ;;  %v2065_v39 = vadd.f32 %v7991_v20, %v1961_v57  ;;  %v2245_v57 = vmul.f32 %v7922_v38, %v7641_v52  ;;  %v3079_v1 = vmul.f32 %v7767_v16, %v8196_v54 }
 0x3e7   : > { %v8188_v35 = vpop.permute.xlu1 %2860  ;;  %v8190_v5 = vpop.permute.xlu0 %2506 }
 0x3e8   : > { %10614 = vst [vmem:[#allocation13_spill] sm:$0xff] %v8188_v35  ;;  %10615 = vst [vmem:[#allocation53_spill] sm:$0xff] %v8190_v5  ;;  %v2169_v51 = vadd.f32 %v7838_v10, %v2065_v39  ;;  %v2064_v53 = vadd.f32 %v2053_v42, %v1960_v28  ;;  %v2828_v39 = vmul.f32 %v10590_v18, %v8179_v31  ;;  %v10625_v18 = vld [vmem:[#allocation22_spill] sm:$0xff]  ;;  %v8352_v35 = vstv %s5857_s14  ;;  %s5847_s14 = sld [smem:[#allocation9 + $0x64]] }
 0x3e9   : > { %2358 = vrot.lane.b32.xlu1 %v2349_v22, %s6594_s25  ;;  %2734 = vrot.lane.b32.xlu0 %v2724_v43, %s6593_s13  ;;  %v6425_v22 = vld [vmem:[#allocation2 + $0x2a] sm:$0xff]  ;;  %v2350_v28 = vmul.f32 %v8113_v15, %v7662_v33 }
 0x3ea   : > { %v8203_v20 = vadd.f32 %v2209_v44, %v2169_v51  ;;  %v2208_v43 = vmul.f32 %v6425_v22, %v8185_v56  ;;  %v8242_v44 = vld [vmem:[#allocation2 + $0x62] sm:$0xff] }
 0x3eb   : > { %v8205_v59 = vpop.permute.xlu1 %2304  ;;  %v8207_v40 = vpop.permute.xlu0 %2278  ;;  %v3080_v22 = vmul.f32 %v7767_v16, %v8242_v44  ;;  %v2272_v16 = vmul.f32 %v8113_v15, %v10563_v6 }
 0x3ec   : > { %10616 = vst [vmem:[#allocation15_spill] sm:$0xff] %v8203_v20  ;;  %10617 = vst [vmem:[#allocation58_spill] sm:$0xff] %v8205_v59  ;;  %v8386_v59 = vld [vmem:[#allocation2 + $0x80] sm:$0xff] }
 0x3ed   : > { %10618 = vst [vmem:[#allocation59_spill] sm:$0xff] %v8207_v40  ;;  %2984 = vrot.lane.b32.xlu1 %v2975_v4, %s6593_s13  ;;  %1780 = vrot.lane.b32.xlu0 %v1769_v41, %s6593_s13 }
 0x3ef   : > { %v8215_v10 = vpop.permute.xlu1 %2636  ;;  %v8217_v37 = vpop.permute.xlu0 %2382 }
 0x3f0   : > { %10619 = vst [vmem:[#allocation62_spill] sm:$0xff] %v8215_v10  ;;  %10620 = vst [vmem:[#allocation66_spill] sm:$0xff] %v8217_v37 }
 0x3f1   : > { %2256 = vrot.lane.b32.xlu1 %v2246_v30, %s6593_s13  ;;  %2254 = vrot.lane.b32.xlu0 %v2245_v57, %s6593_s13  ;;  %v2976_v30 = vmul.f32 %v7682_v24, %v8242_v44  ;;  %v10627_v57 = vld [vmem:[#allocation23_spill] sm:$0xff] }
 0x3f3   : > { %v8225_v17 = vpop.permute.xlu1 %3008  ;;  %v2157_v26 = vpop.permute.xlu0 %2156 }
 0x3f4   : > { %10621 = vst [vmem:[#allocation61_spill] sm:$0xff] %v8225_v17  ;;  %v2168_v51 = vadd.f32 %v2157_v26, %v2064_v53  ;;  %v2498_v26 = vmul.f32 %v7726_v55, %v8093_v36 }
 0x3f5   : > { %3088 = vrot.lane.b32.xlu1 %v3079_v1, %s6594_s25  ;;  %2838 = vrot.lane.b32.xlu0 %v2828_v39, %s6594_s25  ;;  %v1794_v1 = vmul.f32 %v7830_v7, %v10543_v27  ;;  %v10634_v27 = vld [vmem:[#allocation27_spill] sm:$0xff]  ;;  %v10635_v7 = vld [vmem:[#allocation29_spill] sm:$0xff] }
 0x3f6   : > { %v8234_v52 = vadd.f32 %v2208_v43, %v2168_v51  ;;  %v10631_v43 = vld [vmem:[#allocation26_spill] sm:$0xff] }
 0x3f7   : > { %v8236_v38 = vpop.permute.xlu1 %3112  ;;  %v8238_v42 = vpop.permute.xlu0 %2530 }
 0x3f8   : > { %10622 = vst [vmem:[#allocation67_spill] sm:$0xff] %v8234_v52  ;;  %10623 = vst [vmem:[#allocation65_spill] sm:$0xff] %v8236_v38  ;;  %v3329_v52 = vstv %s5849_s17  ;;  %s5853_s17 = sld [smem:[#allocation9 + $0x1e]] }
 0x3f9   : > { %10624 = vst [vmem:[#allocation73_spill] sm:$0xff] %v8238_v42  ;;  %2030 = vrot.lane.b32.xlu1 %v10625_v18, %s6593_s13  ;;  %2360 = vrot.lane.b32.xlu0 %v2350_v28, %s6594_s25  ;;  %v3331_v42 = vmul.f32 %v3329_v52, %v8386_v59 }
 0x3fb   : > { %v8247_v4 = vpop.permute.xlu1 %1980  ;;  %v8249_v41 = vpop.permute.xlu0 %2532 }
 0x3fc   : > { %10626 = vst [vmem:[#allocation22_spill] sm:$0xff] %v8249_v41 }
 0x3fd   : > { %2134 = vrot.lane.b32.xlu1 %v10627_v57, %s6594_s25  ;;  %2986 = vrot.lane.b32.xlu0 %v2976_v30, %s6593_s13  ;;  %v10637_v57 = vld [vmem:[#allocation30_spill] sm:$0xff] }
 0x3ff   : > { %v8256_v33 = vpop.permute.xlu1 %2232  ;;  %v8258_v53 = vpop.permute.xlu0 %2634 }
 0x400   : > { %10628 = vst [vmem:[#allocation23_spill] sm:$0xff] %v8258_v53 }
 0x401   : > { %2508 = vrot.lane.b32.xlu1 %v2498_v26, %s6593_s13  ;;  %1804 = vrot.lane.b32.xlu0 %v1794_v1, %s6593_s13 }
 0x403   : > { %v8266_v24 = vpop.permute.xlu1 %2110  ;;  %v8268_v39 = vpop.permute.xlu0 %2408 }
 0x404   : > { %10629 = vst [vmem:[#allocation74_spill] sm:$0xff] %v8266_v24  ;;  %10630 = vst [vmem:[#allocation75_spill] sm:$0xff] %v8268_v39  ;;  %v10658_v39 = vld [vmem:[#allocation18_spill] sm:$0xff] }
 0x405   : > { %1910 = vrot.lane.b32.xlu1 %v10631_v43, %s6594_s25  ;;  %3090 = vrot.lane.b32.xlu0 %v3080_v22, %s6594_s25  ;;  %v2603_v22 = vmul.f32 %v7756_v60, %v8117_v19  ;;  %v10639_v43 = vld [vmem:[#allocation33_spill] sm:$0xff]  ;;  %v3001_v10 = vmul.f32 %v10658_v39, %v8196_v54 }
 0x407   : > { %v8275_v51 = vpop.permute.xlu1 %2736  ;;  %v8277_v28 = vpop.permute.xlu0 %2782 }
 0x408   : > { %10632 = vst [vmem:[#allocation26_spill] sm:$0xff] %v8275_v51  ;;  %10633 = vst [vmem:[#allocation76_spill] sm:$0xff] %v8277_v28  ;;  %v10660_v28 = vld [vmem:[#allocation40_spill] sm:$0xff] }
 0x409   : > { %2384 = vrot.lane.b32.xlu1 %v10634_v27, %s6594_s25  ;;  %1806 = vrot.lane.b32.xlu0 %v10635_v7, %s6593_s13  ;;  %v2499_v7 = vmul.f32 %v7726_v55, %v8117_v19  ;;  %v8471_v51 = vld [vmem:[#allocation2 + $0x82] sm:$0xff] }
 0x40b   : > { %v8283_v18 = vpop.permute.xlu1 %2362  ;;  %v8285_v30 = vpop.permute.xlu0 %2084 }
 0x40c   : > { %10636 = vst [vmem:[#allocation27_spill] sm:$0xff] %v8283_v18 }
 0x40d   : > { %2282 = vrot.lane.b32.xlu1 %v2272_v16, %s6593_s13  ;;  %2280 = vrot.lane.b32.xlu0 %v10637_v57, %s6593_s13  ;;  %v10642_v16 = vld [vmem:[#allocation34_spill] sm:$0xff] }
 0x40f   : > { %v8292_v26 = vpop.permute.xlu1 %2988  ;;  %v8294_v1 = vpop.permute.xlu0 %2336 }
 0x410   : > { %10638 = vst [vmem:[#allocation29_spill] sm:$0xff] %v8292_v26 }
 0x411   : > { %2614 = vrot.lane.b32.xlu1 %v2603_v22, %s6594_s25  ;;  %1908 = vrot.lane.b32.xlu0 %v10639_v43, %s6594_s25  ;;  %v2750_v22 = vmul.f32 %v10558_v49, %v8179_v31  ;;  %v2602_v43 = vmul.f32 %v7756_v60, %v8093_v36  ;;  %v10650_v60 = vld [vmem:[#allocation36_spill] sm:$0xff] }
 0x413   : > { %v8301_v27 = vpop.permute.xlu1 %2136  ;;  %v8303_v6 = vpop.permute.xlu0 %2006 }
 0x414   : > { %10640 = vst [vmem:[#allocation30_spill] sm:$0xff] %v8301_v27  ;;  %10641 = vst [vmem:[#allocation33_spill] sm:$0xff] %v8303_v6  ;;  %v8350_v6 = vld [vmem:[#allocation2 + $0x81] sm:$0xff] }
 0x415   : > { %2386 = vrot.lane.b32.xlu1 %v10642_v16, %s6594_s25  ;;  %2510 = vrot.lane.b32.xlu0 %v2499_v7, %s6593_s13  ;;  %v2524_v7 = vmul.f32 %v7858_v63, %v8093_v36  ;;  %v10647_v16 = vld [vmem:[#allocation35_spill] sm:$0xff]  ;;  %v3479_v5 = vmul.f32 %v8352_v35, %v8350_v6  ;;  %v8403_v27 = vld [vmem:[#allocation2 + $0x88] sm:$0xff] }
 0x417   : > { %v8310_v57 = vpop.permute.xlu1 %2388  ;;  %v8312_v18 = vpop.permute.xlu0 %2840 }
 0x418   : > { %10643 = vst [vmem:[#allocation34_spill] sm:$0xff] %v8310_v57  ;;  %10644 = vst [vmem:[#allocation77_spill] sm:$0xff] %v8312_v18  ;;  %v8374_v57 = vld [vmem:[#allocation2 + $0x78] sm:$0xff]  ;;  %v10671_v18 = vld [vmem:[#allocation68_spill] sm:$0xff] }
 0x419   : > { %2760 = vrot.lane.b32.xlu1 %v2750_v22, %s6593_s13  ;;  %2612 = vrot.lane.b32.xlu0 %v2602_v43, %s6594_s25  ;;  %v10651_v22 = vld [vmem:[#allocation37_spill] sm:$0xff] }
 0x41b   : > { %v8320_v55 = vpop.permute.xlu1 %2162  ;;  %v8322_v38 = vpop.permute.xlu0 %2258 }
 0x41c   : > { %10645 = vst [vmem:[#allocation78_spill] sm:$0xff] %v8320_v55  ;;  %10646 = vst [vmem:[#allocation79_spill] sm:$0xff] %v8322_v38 }
 0x41d   : > { %2534 = vrot.lane.b32.xlu1 %v2524_v7, %s6593_s13  ;;  %2056 = vrot.lane.b32.xlu0 %v10647_v16, %s6593_s13  ;;  %v2628_v7 = vmul.f32 %v7828_v32, %v8093_v36  ;;  %v10653_v16 = vld [vmem:[#allocation38_spill] sm:$0xff] }
 0x41f   : > { %v8329_v49 = vpop.permute.xlu1 %2866  ;;  %v8331_v17 = vpop.permute.xlu0 %2032 }
 0x420   : > { %10648 = vst [vmem:[#allocation35_spill] sm:$0xff] %v8329_v49  ;;  %10649 = vst [vmem:[#allocation80_spill] sm:$0xff] %v8331_v17  ;;  %v1928_v17 = vmul.f32 %v8022_v47, %v10663_v50 }
 0x421   : > { %2410 = vrot.lane.b32.xlu1 %v10650_v60, %s6594_s25  ;;  %2160 = vrot.lane.b32.xlu0 %v10651_v22, %s6594_s25  ;;  %v2629_v60 = vmul.f32 %v7828_v32, %v8117_v19  ;;  %v10655_v22 = vld [vmem:[#allocation57_spill] sm:$0xff]  ;;  %v2525_v32 = vmul.f32 %v7858_v63, %v8117_v19  ;;  %v8376_v63 = vstv %s5845_s16  ;;  %s5836_s16 = sld [smem:[#allocation9 + $0x85]] }
 0x422   : > { %v2854_v62 = vmul.f32 %v10655_v22, %v8179_v31 }
 0x423   : > { %v1729_v43 = vpop.permute.xlu1 %1728  ;;  %v8337_v38 = vpop.permute.xlu0 %3092 }
 0x424   : > { %10652 = vst [vmem:[#allocation36_spill] sm:$0xff] %v8337_v38  ;;  %v8422_v38 = vstv %s5869_s18  ;;  %s5851_s18 = sld [smem:[#allocation9 + $0x65]] }
 0x425   : > { %2638 = vrot.lane.b32.xlu1 %v2628_v7, %s6594_s25  ;;  %2306 = vrot.lane.b32.xlu0 %v10653_v16, %s6593_s13 }
 0x427   : > { %v1979_v49 = vpop.permute.xlu1 %1978  ;;  %v8344_v24 = vpop.permute.xlu0 %2284 }
 0x428   : > { %10654 = vst [vmem:[#allocation37_spill] sm:$0xff] %v8344_v24  ;;  %v8394_v24 = vld [vmem:[#allocation2 + $0x79] sm:$0xff] }
 0x429   : > { %2640 = vrot.lane.b32.xlu1 %v2629_v60, %s6594_s25  ;;  %2864 = vrot.lane.b32.xlu0 %v2854_v62, %s6594_s25  ;;  %v3583_v62 = vmul.f32 %v8362_v8, %v8350_v6 }
 0x42b   : > { %v2083_v7 = vpop.permute.xlu1 %2082  ;;  %v8356_v16 = vpop.permute.xlu0 %2058 }
 0x42c   : > { %10656 = vst [vmem:[#allocation38_spill] sm:$0xff] %v8356_v16  ;;  %v3582_v16 = vmul.f32 %v8362_v8, %v8394_v24 }
 0x42d   : > { %3488 = vrot.lane.b32.xlu1 %v3479_v5, %s6593_s13  ;;  %2536 = vrot.lane.b32.xlu0 %v2525_v32, %s6593_s13 }
 0x42f   : > { %v8366_v22 = vpop.permute.xlu1 %2228  ;;  %v8368_v60 = vpop.permute.xlu0 %2762 }
 0x430   : > { %10657 = vst [vmem:[#allocation57_spill] sm:$0xff] %v8368_v60  ;;  %v3226_v60 = vmul.f32 %v8376_v63, %v8374_v57 }
 0x431   : > { %3592 = vrot.lane.b32.xlu1 %v3583_v62, %s6594_s25  ;;  %3010 = vrot.lane.b32.xlu0 %v3001_v10, %s6593_s13  ;;  %v3227_v10 = vmul.f32 %v8376_v63, %v8386_v59  ;;  %v3330_v62 = vmul.f32 %v3329_v52, %v8374_v57 }
 0x433   : > { %v8380_v5 = vpop.permute.xlu1 %2332  ;;  %v8382_v32 = vpop.permute.xlu0 %2310 }
 0x434   : > { %10659 = vst [vmem:[#allocation18_spill] sm:$0xff] %v8382_v32  ;;  %v10661_v32 = vld [vmem:[#allocation72_spill] sm:$0xff] }
 0x435   : > { %3234 = vrot.lane.b32.xlu1 %v3226_v60, %s6593_s13  ;;  %2308 = vrot.lane.b32.xlu0 %v10660_v28, %s6593_s13  ;;  %v10662_v60 = vld [vmem:[#allocation39_spill] sm:$0xff] }
 0x437   : > { %v1753_v34 = vpop.permute.xlu1 %1752  ;;  %v1727_v41 = vpop.permute.xlu0 %1726 }
 0x438   : > { %v1762_v55 = vadd.f32 %v1753_v34, %v10661_v32  ;;  %v1736_v53 = vadd.f32 %v1727_v41, %v10662_v60  ;;  %v10664_v34 = vld [vmem:[#allocation44_spill] sm:$0xff] }
 0x439   : > { %3236 = vrot.lane.b32.xlu1 %v3227_v10, %s6593_s13  ;;  %3338 = vrot.lane.b32.xlu0 %v3330_v62, %s6594_s25  ;;  %v1938_v62 = vmul.f32 %v8022_v47, %v7953_v12  ;;  %v1737_v41 = vadd.f32 %v1729_v43, %v10664_v34  ;;  %v2180_v43 = vmul.f32 %v8113_v15, %v7911_v48  ;;  %v8437_v34 = vld [vmem:[#allocation2 + $0x91] sm:$0xff] }
 0x43b   : > { %v1857_v20 = vpop.permute.xlu1 %1856  ;;  %v1831_v28 = vpop.permute.xlu0 %1830 }
 0x43c   : > { %v1866_v37 = vadd.f32 %v1857_v20, %v1762_v55  ;;  %v1840_v10 = vadd.f32 %v1831_v28, %v1736_v53  ;;  %v3478_v20 = vmul.f32 %v8352_v35, %v8394_v24  ;;  %v3228_v53 = vmul.f32 %v8376_v63, %v8403_v27  ;;  %v8418_v55 = vld [vmem:[#allocation2 + $0x7a] sm:$0xff] }
 0x43d   : > { %3340 = vrot.lane.b32.xlu1 %v3331_v42, %s6594_s25  ;;  %3590 = vrot.lane.b32.xlu0 %v3582_v16, %s6594_s25  ;;  %v1929_v42 = vmul.f32 %v10663_v50, %v7872_v11  ;;  %v8435_v50 = vld [vmem:[#allocation2 + $0x90] sm:$0xff] }
 0x43e   : > { %v1932_v32 = vadd.f32 %v1928_v17, %v1840_v10  ;;  %v1942_v60 = vadd.f32 %v1938_v62, %v1866_v37 }
 0x43f   : > { %v8412_v40 = vpop.permute.xlu1 %2482  ;;  %v1833_v29 = vpop.permute.xlu0 %1832 }
 0x440   : > { %10665 = vst [vmem:[#allocation40_spill] sm:$0xff] %v8412_v40  ;;  %v1988_v28 = vadd.f32 %v1979_v49, %v1932_v32  ;;  %v1841_v16 = vadd.f32 %v1833_v29, %v1737_v41  ;;  %v3730_v49 = vmul.f32 %v8422_v38, %v8418_v55  ;;  %v3332_v29 = vmul.f32 %v3329_v52, %v8403_v27 }
 0x441   : > { %3486 = vrot.lane.b32.xlu1 %v3478_v20, %s6593_s13  ;;  %3238 = vrot.lane.b32.xlu0 %v3228_v53, %s6593_s13  ;;  %v3481_v20 = vmul.f32 %v8352_v35, %v8437_v34  ;;  %v3333_v53 = vmul.f32 %v3329_v52, %v8435_v50  ;;  %v1939_v52 = vmul.f32 %v7953_v12, %v7872_v11 }
 0x442   : > { %v8426_v37 = vadd.f32 %v1929_v42, %v1841_v16  ;;  %v2092_v17 = vadd.f32 %v2083_v7, %v1988_v28  ;;  %v8450_v28 = vld [vmem:[#allocation2 + $0x89] sm:$0xff] }
 0x443   : > { %v1859_v10 = vpop.permute.xlu1 %1858  ;;  %v8430_v62 = vpop.permute.xlu0 %2230 }
 0x444   : > { %v8439_v41 = vadd.f32 %v2180_v43, %v2092_v17  ;;  %v3229_v17 = vmul.f32 %v8376_v63, %v8435_v50  ;;  %v3480_v43 = vmul.f32 %v8352_v35, %v8450_v28  ;;  %v3105_v63 = vmul.f32 %v10671_v18, %v8196_v54 }
 0x445   : > { %3738 = vrot.lane.b32.xlu1 %v3730_v49, %s6593_s13  ;;  %3342 = vrot.lane.b32.xlu0 %v3332_v29, %s6594_s25  ;;  %v10669_v49 = vld [vmem:[#allocation43_spill] sm:$0xff]  ;;  %v3584_v35 = vmul.f32 %v8362_v8, %v8450_v28 }
 0x446   : > { %10672 = vst [vmem:[#allocation43_spill] sm:$0xff] %v8471_v51 }
 0x447   : > { %v8443_v7 = vpop.permute.xlu1 %2484  ;;  %v8445_v32 = vpop.permute.xlu0 %2334 }
 0x448   : > { %10666 = vst [vmem:[#allocation72_spill] sm:$0xff] %v8443_v7  ;;  %10667 = vst [vmem:[#allocation39_spill] sm:$0xff] %v8445_v32  ;;  %v8484_v32 = vstv %s5812_s19  ;;  %v2190_v7 = vmul.f32 %v8113_v15, %v8070_v2  ;;  %s8866_s19 = sld [smem:[#allocation9 + $0x21]] }
 0x449   : > { %3492 = vrot.lane.b32.xlu1 %v3481_v20, %s6593_s13  ;;  %3344 = vrot.lane.b32.xlu0 %v3333_v53, %s6594_s25 }
 0x44b   : > { %v8454_v42 = vpop.permute.xlu1 %2586  ;;  %v1755_v16 = vpop.permute.xlu0 %1754 }
 0x44c   : > { %10668 = vst [vmem:[#allocation69_spill] sm:$0xff] %v8454_v42  ;;  %v1763_v29 = vadd.f32 %v1755_v16, %v10669_v49  ;;  %v3731_v49 = vmul.f32 %v8422_v38, %v8471_v51  ;;  %v10675_v42 = vld [vmem:[#allocation63_spill] sm:$0xff] }
 0x44d   : > { %3240 = vrot.lane.b32.xlu1 %v3229_v17, %s6593_s13  ;;  %3490 = vrot.lane.b32.xlu0 %v3480_v43, %s6593_s13  ;;  %v10674_v17 = vld [vmem:[#allocation24_spill] sm:$0xff] }
 0x44e   : > { %v1867_v20 = vadd.f32 %v1859_v10, %v1763_v29  ;;  %v8480_v29 = vld [vmem:[#allocation2 + $0x59] sm:$0xff] }
 0x44f   : > { %v1779_v53 = vpop.permute.xlu1 %1778  ;;  %v8465_v26 = vpop.permute.xlu0 %2588  ;;  %v2775_v40 = vmul.f32 %v8480_v29, %v10675_v42 }
 0x450   : > { %10670 = vst [vmem:[#allocation44_spill] sm:$0xff] %v8465_v26  ;;  %v8473_v16 = vadd.f32 %v1939_v52, %v1867_v20  ;;  %v1788_v12 = vadd.f32 %v1779_v53, %v10674_v17  ;;  %v1948_v52 = vmul.f32 %v8022_v47, %v8019_v46  ;;  %v8490_v17 = vld [vmem:[#allocation2 + $0x50] sm:$0xff] }
 0x451   : > { %3114 = vrot.lane.b32.xlu1 %v3105_v63, %s6594_s25  ;;  %3594 = vrot.lane.b32.xlu0 %v3584_v35, %s6594_s25 }
 0x452   : > { %10673 = vst [vmem:[#allocation68_spill] sm:$0xff] %v8473_v16  ;;  %v2548_v16 = vmul.f32 %v8490_v17, %v8484_v32 }
 0x453   : > { %v1883_v10 = vpop.permute.xlu1 %1882  ;;  %v2005_v43 = vpop.permute.xlu0 %2004 }
 0x454   : > { %v1892_v26 = vadd.f32 %v1883_v10, %v1788_v12  ;;  %v2014_v20 = vadd.f32 %v2005_v43, %v1942_v60  ;;  %v3585_v12 = vmul.f32 %v8362_v8, %v8437_v34  ;;  %v3002_v43 = vmul.f32 %v10658_v39, %v8242_v44  ;;  %v10679_v8 = vld [vmem:[#allocation41_spill] sm:$0xff] }
 0x455   : > { %3740 = vrot.lane.b32.xlu1 %v3731_v49, %s6593_s13  ;;  %2784 = vrot.lane.b32.xlu0 %v2775_v40, %s6593_s13  ;;  %v8508_v49 = vstv %s5827_s20  ;;  %s9190_s20 = sld [smem:[#allocation9 + $0x6a]] }
 0x456   : > { %v1952_v53 = vadd.f32 %v1948_v52, %v1892_v26 }
 0x457   : > { %v1885_v63 = vpop.permute.xlu1 %1884  ;;  %v2109_v35 = vpop.permute.xlu0 %2108 }
 0x458   : > { %v2118_v10 = vadd.f32 %v2109_v35, %v2014_v20  ;;  %v8517_v35 = vld [vmem:[#allocation2 + $0x51] sm:$0xff] }
 0x459   : > { %2556 = vrot.lane.b32.xlu1 %v2548_v16, %s6593_s13  ;;  %3596 = vrot.lane.b32.xlu0 %v3585_v12, %s6594_s25  ;;  %v2878_v12 = vmul.f32 %v8517_v35, %v8508_v49 }
 0x45a   : > { %v8500_v40 = vadd.f32 %v2190_v7, %v2118_v10  ;;  %v10680_v7 = vld [vmem:[#allocation28_spill] sm:$0xff]  ;;  %v10681_v10 = vld [vmem:[#allocation45_spill] sm:$0xff] }
 0x45b   : > { %v8502_v26 = vpop.permute.xlu1 %2358  ;;  %v8504_v60 = vpop.permute.xlu0 %2734  ;;  %v2403_v20 = vmul.f32 %v10680_v7, %v7884_v9  ;;  %v2879_v7 = vmul.f32 %v8480_v29, %v8508_v49 }
 0x45c   : > { %10676 = vst [vmem:[#allocation24_spill] sm:$0xff] %v8500_v40  ;;  %10677 = vst [vmem:[#allocation63_spill] sm:$0xff] %v8502_v26  ;;  %v8522_v26 = vstv %s5873_s24  ;;  %s9194_s24 = sld [smem:[#allocation9 + $0x7e]] }
 0x45d   : > { %10678 = vst [vmem:[#allocation81_spill] sm:$0xff] %v8504_v60  ;;  %3012 = vrot.lane.b32.xlu1 %v3002_v43, %s6593_s13  ;;  %2412 = vrot.lane.b32.xlu0 %v10679_v8, %s6594_s25  ;;  %v1949_v43 = vmul.f32 %v8019_v46, %v7872_v11 }
 0x45f   : > { %v8513_v52 = vpop.permute.xlu1 %2984  ;;  %v1781_v16 = vpop.permute.xlu0 %1780 }
 0x460   : > { %v1789_v40 = vadd.f32 %v1781_v16, %v10681_v10  ;;  %v3834_v16 = vmul.f32 %v8522_v26, %v8418_v55 }
 0x461   : > { %2414 = vrot.lane.b32.xlu1 %v2403_v20, %s6594_s25  ;;  %2886 = vrot.lane.b32.xlu0 %v2878_v12, %s6594_s25 }
 0x462   : > { %v1893_v8 = vadd.f32 %v1885_v63, %v1789_v40  ;;  %v3835_v63 = vmul.f32 %v8522_v26, %v8471_v51  ;;  %v8546_v40 = vld [vmem:[#allocation2 + $0x58] sm:$0xff]  ;;  %v8582_v51 = vld [vmem:[#allocation2 + $0x8a] sm:$0xff] }
 0x463   : > { %v8528_v2 = vpop.permute.xlu1 %2256  ;;  %v8530_v9 = vpop.permute.xlu0 %2254  ;;  %v2549_v20 = vmul.f32 %v8546_v40, %v8484_v32 }
 0x464   : > { %10682 = vst [vmem:[#allocation41_spill] sm:$0xff] %v8528_v2  ;;  %10683 = vst [vmem:[#allocation28_spill] sm:$0xff] %v8530_v9  ;;  %v8536_v10 = vadd.f32 %v1949_v43, %v1893_v8  ;;  %v2776_v8 = vmul.f32 %v10675_v42, %v8179_v31  ;;  %v8558_v2 = vstv %s5846_s23  ;;  %v8560_v9 = vstv %s5816_s26  ;;  %s9208_s23 = sld [smem:[#allocation9 + $0x8b]] }
 0x465   : > { %2888 = vrot.lane.b32.xlu1 %v2879_v7, %s6594_s25  ;;  %3842 = vrot.lane.b32.xlu0 %v3834_v16, %s6594_s25  ;;  %v10687_v7 = vld [vmem:[#allocation14_spill] sm:$0xff]  ;;  %s9213_s26 = sld [smem:[#allocation9 + $0x3f]] }
 0x466   : > { %10684 = vst [vmem:[#allocation45_spill] sm:$0xff] %v8536_v10  ;;  %v3003_v16 = vmul.f32 %v10658_v39, %v10687_v7  ;;  %v2200_v39 = vmul.f32 %v8113_v15, %v8130_v61 }
 0x467   : > { %v8540_v11 = vpop.permute.xlu1 %3088  ;;  %v8542_v46 = vpop.permute.xlu0 %2838 }
 0x468   : > { %10685 = vst [vmem:[#allocation82_spill] sm:$0xff] %v8542_v46  ;;  %v2652_v46 = vmul.f32 %v8490_v17, %v8560_v9 }
 0x469   : > { %3844 = vrot.lane.b32.xlu1 %v3835_v63, %s6594_s25  ;;  %2558 = vrot.lane.b32.xlu0 %v2549_v20, %s6593_s13 }
 0x46b   : > { %v2031_v12 = vpop.permute.xlu1 %2030  ;;  %v8552_v43 = vpop.permute.xlu0 %2360 }
 0x46c   : > { %10686 = vst [vmem:[#allocation83_spill] sm:$0xff] %v8552_v43  ;;  %v2040_v63 = vadd.f32 %v2031_v12, %v1952_v53  ;;  %v3252_v43 = vmul.f32 %v8558_v2, %v8374_v57 }
 0x46d   : > { %2786 = vrot.lane.b32.xlu1 %v2776_v8, %s6593_s13  ;;  %3014 = vrot.lane.b32.xlu0 %v3003_v16, %s6593_s13  ;;  %v2653_v16 = vmul.f32 %v8546_v40, %v8560_v9 }
 0x46f   : > { %v2135_v10 = vpop.permute.xlu1 %2134  ;;  %v8564_v20 = vpop.permute.xlu0 %2986 }
 0x470   : > { %10688 = vst [vmem:[#allocation14_spill] sm:$0xff] %v8564_v20  ;;  %v2144_v60 = vadd.f32 %v2135_v10, %v2040_v63  ;;  %v3106_v20 = vmul.f32 %v10671_v18, %v8242_v44  ;;  %v8592_v63 = vld [vmem:[#allocation2 + $0x92] sm:$0xff] }
 0x471   : > { %3260 = vrot.lane.b32.xlu1 %v3252_v43, %s6593_s13  ;;  %2660 = vrot.lane.b32.xlu0 %v2652_v46, %s6594_s25  ;;  %v3732_v46 = vmul.f32 %v8422_v38, %v8582_v51 }
 0x472   : > { %v8574_v8 = vadd.f32 %v2200_v39, %v2144_v60  ;;  %v3107_v60 = vmul.f32 %v10671_v18, %v10687_v7  ;;  %v10692_v18 = vld [vmem:[#allocation46_spill] sm:$0xff] }
 0x473   : > { %v8576_v53 = vpop.permute.xlu1 %2508  ;;  %v1805_v12 = vpop.permute.xlu0 %1804 }
 0x474   : > { %10689 = vst [vmem:[#allocation84_spill] sm:$0xff] %v8574_v8  ;;  %10690 = vst [vmem:[#allocation85_spill] sm:$0xff] %v8576_v53  ;;  %v2777_v53 = vmul.f32 %v10675_v42, %v7913_v3  ;;  %v6430_v8 = vld [vmem:[#allocation2 + $0x41] sm:$0xff]  ;;  %v3253_v3 = vmul.f32 %v8558_v2, %v8386_v59 }
 0x475   : > { %2662 = vrot.lane.b32.xlu1 %v2653_v16, %s6594_s25  ;;  %3116 = vrot.lane.b32.xlu0 %v3106_v20, %s6594_s25  ;;  %v3733_v20 = vmul.f32 %v8422_v38, %v8592_v63  ;;  %v2880_v38 = vmul.f32 %v8508_v49, %v8179_v31 }
 0x477   : > { %v1911_v10 = vpop.permute.xlu1 %1910  ;;  %v8586_v43 = vpop.permute.xlu0 %3090 }
 0x479   : > { %3118 = vrot.lane.b32.xlu1 %v3107_v60, %s6594_s25  ;;  %3742 = vrot.lane.b32.xlu0 %v3732_v46, %s6593_s13  ;;  %v1959_v60 = vmul.f32 %v6430_v8, %v8161_v45  ;;  %v10696_v8 = vld [vmem:[#allocation70_spill] sm:$0xff] }
 0x47b   : > { %v8596_v39 = vpop.permute.xlu1 %2384  ;;  %v1807_v16 = vpop.permute.xlu0 %1806 }
 0x47c   : > { %10691 = vst [vmem:[#allocation86_spill] sm:$0xff] %v8596_v39  ;;  %v1815_v7 = vadd.f32 %v1807_v16, %v10692_v18  ;;  %v8616_v16 = vstv %s5850_s27  ;;  %s8909_s27 = sld [smem:[#allocation9 + $0x46]] }
 0x47d   : > { %3744 = vrot.lane.b32.xlu1 %v3733_v20, %s6593_s13  ;;  %2788 = vrot.lane.b32.xlu0 %v2777_v53, %s6593_s13  ;;  %v1814_v53 = vadd.f32 %v1805_v12, %v10696_v8  ;;  %v3356_v18 = vmul.f32 %v8616_v16, %v8374_v57  ;;  %v2551_v8 = vmul.f32 %v8484_v32, %v8117_v19 }
 0x47e   : > { %v1919_v46 = vadd.f32 %v1911_v10, %v1815_v7  ;;  %v2550_v7 = vmul.f32 %v8484_v32, %v8093_v36  ;;  %v3836_v32 = vmul.f32 %v8522_v26, %v8582_v51 }
 0x47f   : > { %v8606_v61 = vpop.permute.xlu1 %2282  ;;  %v8608_v39 = vpop.permute.xlu0 %2280 }
 0x480   : > { %10693 = vst [vmem:[#allocation46_spill] sm:$0xff] %v8606_v61  ;;  %10694 = vst [vmem:[#allocation87_spill] sm:$0xff] %v8608_v39  ;;  %v8614_v42 = vadd.f32 %v1959_v60, %v1919_v46  ;;  %v8627_v60 = vstv %s5835_s28  ;;  %v1958_v46 = vmul.f32 %v8022_v47, %v8161_v45  ;;  %s8913_s28 = sld [smem:[#allocation9 + $0x86]] }
 0x481   : > { %2890 = vrot.lane.b32.xlu1 %v2880_v38, %s6594_s25  ;;  %3262 = vrot.lane.b32.xlu0 %v3253_v3, %s6593_s13  ;;  %v3027_v45 = vmul.f32 %v8627_v60, %v8196_v54 }
 0x482   : > { %10695 = vst [vmem:[#allocation88_spill] sm:$0xff] %v8614_v42 }
 0x483   : > { %v8621_v10 = vpop.permute.xlu1 %2614  ;;  %v1909_v20 = vpop.permute.xlu0 %1908 }
 0x484   : > { %10697 = vst [vmem:[#allocation70_spill] sm:$0xff] %v8621_v10  ;;  %v1918_v61 = vadd.f32 %v1909_v20, %v1814_v53  ;;  %v8639_v10 = vld [vmem:[#allocation2 + $0x52] sm:$0xff] }
 0x485   : > { %3364 = vrot.lane.b32.xlu1 %v3356_v18, %s6594_s25  ;;  %2560 = vrot.lane.b32.xlu0 %v2550_v7, %s6593_s13  ;;  %v3026_v53 = vmul.f32 %v8639_v10, %v8627_v60  ;;  %v3837_v7 = vmul.f32 %v8522_v26, %v8592_v63 }
 0x486   : > { %v1962_v12 = vadd.f32 %v1958_v46, %v1918_v61  ;;  %v8659_v46 = vld [vmem:[#allocation2 + $0x69] sm:$0xff] }
 0x487   : > { %v8633_v38 = vpop.permute.xlu1 %2386  ;;  %v8635_v3 = vpop.permute.xlu0 %2510 }
 0x488   : > { %10698 = vst [vmem:[#allocation89_spill] sm:$0xff] %v8633_v38  ;;  %10699 = vst [vmem:[#allocation90_spill] sm:$0xff] %v8635_v3 }
 0x489   : > { %2562 = vrot.lane.b32.xlu1 %v2551_v8, %s6593_s13  ;;  %3034 = vrot.lane.b32.xlu0 %v3026_v53, %s6593_s13  ;;  %v2881_v8 = vmul.f32 %v8659_v46, %v8508_v49  ;;  %v8663_v53 = vstv %s5824_s29  ;;  %v2210_v49 = vmul.f32 %v8113_v15, %v8185_v56  ;;  %v8689_v15 = vstv %s5839_s30  ;;  %s9294_s29 = sld [smem:[#allocation9 + $0x6b]] }
 0x48a   : > { %v2800_v26 = vmul.f32 %v8517_v35, %v8663_v53  ;;  %v2802_v38 = vmul.f32 %v8663_v53, %v8179_v31  ;;  %s9342_s30 = sld [smem:[#allocation9 + $0x8c]] }
 0x48b   : > { %v8645_v47 = vpop.permute.xlu1 %2760  ;;  %v8647_v61 = vpop.permute.xlu0 %2612 }
 0x48c   : > { %10700 = vst [vmem:[#allocation91_spill] sm:$0xff] %v8645_v47  ;;  %10701 = vst [vmem:[#allocation92_spill] sm:$0xff] %v8647_v61  ;;  %v3357_v61 = vmul.f32 %v8616_v16, %v8386_v59 }
 0x48d   : > { %3036 = vrot.lane.b32.xlu1 %v3027_v45, %s6593_s13  ;;  %3846 = vrot.lane.b32.xlu0 %v3836_v32, %s6594_s25 }
 0x48f   : > { %v8655_v20 = vpop.permute.xlu1 %2534  ;;  %v2057_v18 = vpop.permute.xlu0 %2056 }
 0x490   : > { %10702 = vst [vmem:[#allocation93_spill] sm:$0xff] %v8655_v20  ;;  %v2066_v45 = vadd.f32 %v2057_v18, %v1962_v12  ;;  %v2654_v20 = vmul.f32 %v8560_v9, %v8093_v36  ;;  %v3130_v36 = vmul.f32 %v8639_v10, %v8689_v15 }
 0x491   : > { %3848 = vrot.lane.b32.xlu1 %v3837_v7, %s6594_s25  ;;  %2892 = vrot.lane.b32.xlu0 %v2881_v8, %s6594_s25  ;;  %v3254_v8 = vmul.f32 %v8558_v2, %v8403_v27 }
 0x493   : > { %v8667_v32 = vpop.permute.xlu1 %2410  ;;  %v2161_v47 = vpop.permute.xlu0 %2160 }
 0x494   : > { %10703 = vst [vmem:[#allocation94_spill] sm:$0xff] %v8667_v32  ;;  %v2170_v3 = vadd.f32 %v2161_v47, %v2066_v45  ;;  %v2238_v47 = vadd.f32 %v8039_v58, %v8045_v25  ;;  %v10709_v58 = vld [vmem:[#allocation19_spill] sm:$0xff] }
 0x495   : > { %2808 = vrot.lane.b32.xlu1 %v2800_v26, %s6593_s13  ;;  %3366 = vrot.lane.b32.xlu0 %v3357_v61, %s6594_s25  ;;  %v2801_v26 = vmul.f32 %v8480_v29, %v8663_v53 }
 0x496   : > { %v8677_v7 = vadd.f32 %v2210_v49, %v2170_v3  ;;  %v8693_v3 = vstv %s5805_s7  ;;  %v2342_v25 = vadd.f32 %v10709_v58, %v2238_v47  ;;  %v10710_v49 = vld [vmem:[#allocation51_spill] sm:$0xff]  ;;  %v2655_v47 = vmul.f32 %v8560_v9, %v8117_v19  ;;  %s9386_s7 = sld [smem:[#allocation9 + $0x63]] }
 0x497   : > { %v8679_v12 = vpop.permute.xlu1 %2638  ;;  %v8681_v18 = vpop.permute.xlu0 %2306  ;;  %v3131_v19 = vmul.f32 %v8689_v15, %v8196_v54  ;;  %v10713_v9 = vld [vmem:[#allocation31_spill] sm:$0xff] }
 0x498   : > { %10704 = vst [vmem:[#allocation95_spill] sm:$0xff] %v8677_v7  ;;  %10705 = vst [vmem:[#allocation96_spill] sm:$0xff] %v8679_v12 }
 0x499   : > { %10706 = vst [vmem:[#allocation97_spill] sm:$0xff] %v8681_v18  ;;  %3264 = vrot.lane.b32.xlu1 %v3254_v8, %s6593_s13  ;;  %2664 = vrot.lane.b32.xlu0 %v2654_v20, %s6594_s25  ;;  %v2430_v20 = vmul.f32 %v8490_v17, %v8693_v3  ;;  %v2239_v8 = vadd.f32 %v8366_v22, %v10710_v49  ;;  %v8738_v49 = vstv %s5817_s10  ;;  %s5859_s10 = sld [smem:[#allocation9 + $0x67]] }
 0x49a   : > { %v2431_v22 = vmul.f32 %v8546_v40, %v8693_v3 }
 0x49b   : > { %v8695_v61 = vpop.permute.xlu1 %2640  ;;  %v8697_v45 = vpop.permute.xlu0 %2864 }
 0x49c   : > { %10707 = vst [vmem:[#allocation98_spill] sm:$0xff] %v8695_v61  ;;  %10708 = vst [vmem:[#allocation99_spill] sm:$0xff] %v8697_v45  ;;  %v3255_v61 = vmul.f32 %v8558_v2, %v8435_v50  ;;  %v3028_v2 = vmul.f32 %v8627_v60, %v8242_v44 }
 0x49d   : > { %2810 = vrot.lane.b32.xlu1 %v2801_v26, %s6593_s13  ;;  %3138 = vrot.lane.b32.xlu0 %v3130_v36, %s6594_s25  ;;  %v2434_v26 = vadd.f32 %v2430_v20, %v2342_v25  ;;  %v2343_v36 = vadd.f32 %v8380_v5, %v2239_v8  ;;  %v8732_v20 = vstv %s5858_s8  ;;  %s9438_s8 = sld [smem:[#allocation9 + $0x8e]] }
 0x49f   : > { %v8710_v45 = vpop.permute.xlu1 %3488  ;;  %v8712_v7 = vpop.permute.xlu0 %2536  ;;  %v2490_v25 = vadd.f32 %v10713_v9, %v2434_v26  ;;  %v2435_v5 = vadd.f32 %v2431_v22, %v2343_v36  ;;  %v10715_v22 = vld [vmem:[#allocation71_spill] sm:$0xff] }
 0x4a0   : > { %10711 = vst [vmem:[#allocation19_spill] sm:$0xff] %v8712_v7  ;;  %v8758_v7 = vld [vmem:[#allocation2 + $0x6a] sm:$0xff] }
 0x4a1   : > { %3266 = vrot.lane.b32.xlu1 %v3255_v61, %s6593_s13  ;;  %2666 = vrot.lane.b32.xlu0 %v2655_v47, %s6594_s25  ;;  %v8734_v61 = vstv %s5828_s9  ;;  %v2594_v36 = vadd.f32 %v8062_v0, %v2490_v25  ;;  %v2491_v9 = vadd.f32 %v10715_v22, %v2435_v5  ;;  %v3029_v12 = vmul.f32 %v8758_v7, %v8627_v60  ;;  %v10716_v5 = vld [vmem:[#allocation52_spill] sm:$0xff]  ;;  %s5874_s9 = sld [smem:[#allocation9 + $0x47]] }
 0x4a2   : > { %v2904_v26 = vmul.f32 %v8517_v35, %v8734_v61  ;;  %v3358_v0 = vmul.f32 %v8616_v16, %v8403_v27  ;;  %v3505_v60 = vmul.f32 %v8732_v20, %v8350_v6 }
 0x4a3   : > { %v8723_v17 = vpop.permute.xlu1 %3592  ;;  %v8725_v58 = vpop.permute.xlu0 %3010 }
 0x4a4   : > { %10712 = vst [vmem:[#allocation51_spill] sm:$0xff] %v8725_v58  ;;  %v3504_v58 = vmul.f32 %v8732_v20, %v8394_v24 }
 0x4a5   : > { %3038 = vrot.lane.b32.xlu1 %v3028_v2, %s6593_s13  ;;  %3140 = vrot.lane.b32.xlu0 %v3131_v19, %s6594_s25  ;;  %v2682_v2 = vmul.f32 %v8517_v35, %v8738_v49 }
 0x4a7   : > { %v8740_v8 = vpop.permute.xlu1 %3234  ;;  %v8742_v47 = vpop.permute.xlu0 %2308  ;;  %v2686_v25 = vadd.f32 %v2682_v2, %v2594_v36  ;;  %v2905_v36 = vmul.f32 %v8480_v29, %v8734_v61 }
 0x4a8   : > { %10714 = vst [vmem:[#allocation31_spill] sm:$0xff] %v8742_v47 }
 0x4a9   : > { %3512 = vrot.lane.b32.xlu1 %v3504_v58, %s6593_s13  ;;  %2912 = vrot.lane.b32.xlu0 %v2904_v26, %s6594_s25  ;;  %v2595_v58 = vadd.f32 %v10716_v5, %v2491_v9  ;;  %v2742_v35 = vadd.f32 %v8101_v21, %v2686_v25  ;;  %v2683_v26 = vmul.f32 %v8480_v29, %v8738_v49 }
 0x4aa   : > { %v3132_v25 = vmul.f32 %v8689_v15, %v8242_v44  ;;  %v3359_v29 = vmul.f32 %v8616_v16, %v8435_v50 }
 0x4ab   : > { %v8754_v19 = vpop.permute.xlu1 %3236  ;;  %v8756_v47 = vpop.permute.xlu0 %3338  ;;  %v2687_v9 = vadd.f32 %v2683_v26, %v2595_v58  ;;  %v2846_v21 = vadd.f32 %v8037_v14, %v2742_v35  ;;  %v1989_v58 = vadd.f32 %v8247_v4, %v8426_v37  ;;  %v10717_v26 = vld [vmem:[#allocation17_spill] sm:$0xff]  ;;  %v8796_v14 = vstv %s5862_s12  ;;  %v10718_v37 = vld [vmem:[#allocation47_spill] sm:$0xff]  ;;  %s5863_s12 = sld [smem:[#allocation9 + $0x68]] }
 0x4ac   : > { %v3608_v16 = vmul.f32 %v8796_v14, %v8394_v24 }
 0x4ad   : > { %3040 = vrot.lane.b32.xlu1 %v3029_v12, %s6593_s13  ;;  %3368 = vrot.lane.b32.xlu0 %v3358_v0, %s6594_s25  ;;  %v8778_v12 = vstv %s5829_s11  ;;  %v2093_v4 = vadd.f32 %v8285_v30, %v1989_v58  ;;  %v8821_v30 = vstv %s5841_s15  ;;  %s5848_s11 = sld [smem:[#allocation9 + $0x88]] }
 0x4ae   : > { %v2934_v5 = vmul.f32 %v8639_v10, %v8778_v12  ;;  %v3186_v18 = vmul.f32 %v8821_v30, %v8374_v57  ;;  %s9162_s15 = sld [smem:[#allocation9 + $0x36]] }
 0x4af   : > { %v8770_v22 = vpop.permute.xlu1 %3340  ;;  %v8772_v32 = vpop.permute.xlu0 %3590 }
 0x4b0   : > { %v2938_v35 = vadd.f32 %v2934_v5, %v2846_v21  ;;  %v2935_v5 = vmul.f32 %v8778_v12, %v8196_v54 }
 0x4b1   : > { %3514 = vrot.lane.b32.xlu1 %v3505_v60, %s6593_s13  ;;  %2914 = vrot.lane.b32.xlu0 %v2905_v36, %s6594_s25  ;;  %v2743_v60 = vadd.f32 %v10717_v26, %v2687_v9  ;;  %v8810_v26 = vstv %s5847_s14  ;;  %s5852_s14 = sld [smem:[#allocation9 + $0x89]] }
 0x4b2   : > { %v2994_v21 = vadd.f32 %v8087_v13, %v2938_v35  ;;  %v3278_v13 = vmul.f32 %v8810_v26, %v8374_v57 }
 0x4b3   : > { %v8783_v2 = vpop.permute.xlu1 %3486  ;;  %v8785_v0 = vpop.permute.xlu0 %3238  ;;  %v2847_v9 = vadd.f32 %v10718_v37, %v2743_v60 }
 0x4b4   : > { %v3098_v35 = vadd.f32 %v8153_v23, %v2994_v21  ;;  %v2803_v23 = vmul.f32 %v8659_v46, %v8663_v53 }
 0x4b5   : > { %3142 = vrot.lane.b32.xlu1 %v3132_v25, %s6594_s25  ;;  %3370 = vrot.lane.b32.xlu0 %v3359_v29, %s6594_s25  ;;  %v8815_v25 = vld [vmem:[#allocation2 + $0x42] sm:$0xff] }
 0x4b6   : > { %v2181_v29 = vmul.f32 %v8815_v25, %v7911_v48  ;;  %v2939_v48 = vadd.f32 %v2935_v5, %v2847_v9  ;;  %v3190_v21 = vadd.f32 %v3186_v18, %v3098_v35  ;;  %v3187_v5 = vmul.f32 %v8821_v30, %v8386_v59 }
 0x4b7   : > { %v8800_v36 = vpop.permute.xlu1 %3738  ;;  %v8802_v44 = vpop.permute.xlu0 %3342 }
 0x4b8   : > { %v2995_v37 = vadd.f32 %v8513_v52, %v2939_v48  ;;  %v8847_v52 = vstv %s5836_s16  ;;  %s9172_s16 = sld [smem:[#allocation9 + $0x39]] }
 0x4b9   : > { %3616 = vrot.lane.b32.xlu1 %v3608_v16, %s6594_s25  ;;  %2812 = vrot.lane.b32.xlu0 %v2802_v38, %s6593_s13  ;;  %v3133_v38 = vmul.f32 %v8758_v7, %v8689_v15  ;;  %v2185_v16 = vadd.f32 %v2181_v29, %v2093_v4  ;;  %v3609_v15 = vmul.f32 %v8796_v14, %v8350_v6 }
 0x4ba   : > { %v3099_v9 = vadd.f32 %v8540_v11, %v2995_v37  ;;  %v3246_v29 = vadd.f32 %v8740_v8, %v3190_v21  ;;  %v3279_v11 = vmul.f32 %v8810_v26, %v8386_v59  ;;  %v2240_v21 = vadd.f32 %v8430_v62, %v8439_v41 }
 0x4bb   : > { %v8823_v58 = vpop.permute.xlu1 %3492  ;;  %v8825_v60 = vpop.permute.xlu0 %3344  ;;  %v2241_v4 = vadd.f32 %v8256_v33, %v2185_v16  ;;  %v3052_v33 = vmul.f32 %v8639_v10, %v8847_v52  ;;  %v8870_v16 = vld [vmem:[#allocation2 + $0x68] sm:$0xff] }
 0x4bc   : > { %v3191_v35 = vadd.f32 %v3187_v5, %v3099_v9  ;;  %v3350_v8 = vadd.f32 %v8756_v47, %v3246_v29  ;;  %v2433_v48 = vmul.f32 %v8870_v16, %v8693_v3  ;;  %v3506_v47 = vmul.f32 %v8732_v20, %v8450_v28 }
 0x4bd   : > { %3144 = vrot.lane.b32.xlu1 %v3133_v38, %s6594_s25  ;;  %3286 = vrot.lane.b32.xlu0 %v3278_v13, %s6593_s13  ;;  %v8854_v38 = vstv %s5853_s17  ;;  %v2345_v18 = vadd.f32 %v8294_v1, %v2241_v4  ;;  %v2906_v4 = vmul.f32 %v8734_v61, %v8179_v31  ;;  %v8885_v9 = vstv %s5851_s18  ;;  %s9174_s17 = sld [smem:[#allocation9 + $0x3c]] }
 0x4be   : > { %v3247_v37 = vadd.f32 %v8754_v19, %v3191_v35  ;;  %v4162_v31 = vld [vmem:[%s10361_s4 + $0x10] sm:$0xff]  ;;  %v3439_v62 = vmul.f32 %v8854_v38, %v8350_v6  ;;  %v3382_v35 = vmul.f32 %v8885_v9, %v8374_v57  ;;  %s9178_s18 = sld [smem:[#allocation9 + $0x5a]] }
 0x4bf   : > { %v8837_v42 = vpop.permute.xlu1 %3240  ;;  %v8839_v39 = vpop.permute.xlu0 %3490  ;;  %v2437_v29 = vadd.f32 %v2433_v48, %v2345_v18  ;;  %v3053_v18 = vmul.f32 %v8847_v52, %v8196_v54  ;;  %v8923_v54 = vld [vmem:[#allocation2 + $0x60] sm:$0xff] }
 0x4c0   : > { %v3351_v19 = vadd.f32 %v8770_v22, %v3247_v37  ;;  %v10722_v37 = vld [vmem:[#allocation39_spill] sm:$0xff]  ;;  %v2432_v57 = vmul.f32 %v8923_v54, %v8693_v3 }
 0x4c1   : > { %3618 = vrot.lane.b32.xlu1 %v3609_v15, %s6594_s25  ;;  %2814 = vrot.lane.b32.xlu0 %v2803_v23, %s6593_s13  ;;  %v3438_v15 = vmul.f32 %v8854_v38, %v8394_v24  ;;  %v2344_v6 = vadd.f32 %v10722_v37, %v2240_v21  ;;  %v10726_v37 = vld [vmem:[#allocation40_spill] sm:$0xff] }
 0x4c3   : > { %v8856_v53 = vpop.permute.xlu1 %3114  ;;  %v8858_v13 = vpop.permute.xlu0 %3594  ;;  %v3442_v5 = vadd.f32 %v3438_v15, %v3350_v8  ;;  %v10721_v8 = vld [vmem:[#allocation72_spill] sm:$0xff]  ;;  %v3443_v15 = vadd.f32 %v3439_v62, %v3351_v19  ;;  %v3507_v19 = vmul.f32 %v8732_v20, %v8437_v34  ;;  %v2436_v3 = vadd.f32 %v2432_v57, %v2344_v6 }
 0x4c4   : > { %10719 = vst [vmem:[#allocation71_spill] sm:$0xff] %v8856_v53  ;;  %v2493_v48 = vadd.f32 %v10721_v8, %v2437_v29  ;;  %v10725_v62 = vld [vmem:[#allocation44_spill] sm:$0xff]  ;;  %v2685_v20 = vmul.f32 %v8659_v46, %v8738_v49  ;;  %v3383_v8 = vmul.f32 %v8885_v9, %v8386_v59  ;;  %v8961_v57 = vstv %s8913_s28  ;;  %s9266_s28 = sld [smem:[#allocation9 + $0x81]] }
 0x4c5   : > { %3060 = vrot.lane.b32.xlu1 %v3052_v33, %s6593_s13  ;;  %3288 = vrot.lane.b32.xlu0 %v3279_v11, %s6593_s13  ;;  %v4163_v33 = vld [vmem:[%s10361_s4 + $0x18] sm:$0xff]  ;;  %v3498_v41 = vadd.f32 %v8783_v2, %v3442_v5  ;;  %v4161_v2 = vld [vmem:[%s10361_s4 + $0x8] sm:$0xff]  ;;  %v2907_v5 = vmul.f32 %v8659_v46, %v8734_v61  ;;  %v2492_v6 = vadd.f32 %v10726_v37, %v2436_v3  ;;  %v10728_v3 = vld [vmem:[#allocation69_spill] sm:$0xff] }
 0x4c6   : > { %6119 = vmatprep.subr.mxu0 %v4163_v33 }
 0x4c7   : > { %v8877_v1 = vpop.permute.xlu1 %3740  ;;  %v8879_v23 = vpop.permute.xlu0 %2784  ;;  %6120 = vmatpush3.msra.mxu0 %v4163_v33  ;;  %v4160_v33 = vld [vmem:[%s10361_s4] sm:$0xff] }
 0x4c8   : > { %6121 = vmatprep.subr.mxu0 %v4162_v31 }
 0x4c9   : > { %3516 = vrot.lane.b32.xlu1 %v3506_v47, %s6593_s13  ;;  %2916 = vrot.lane.b32.xlu0 %v2906_v4, %s6594_s25  ;;  %v8919_v47 = vstv %s8866_s19  ;;  %v3602_v4 = vadd.f32 %v8772_v32, %v3498_v41  ;;  %v2597_v32 = vadd.f32 %v10725_v62, %v2493_v48  ;;  %v8956_v48 = vstv %s8909_s27  ;;  %s9180_s19 = sld [smem:[#allocation9 + $0x5d]] }
 0x4ca   : > { %6122 = vmatpush3.msra.mxu0 %v4162_v31  ;;  %v3499_v31 = vadd.f32 %v8710_v45, %v3443_v15  ;;  %v3690_v41 = vmul.f32 %v8919_v47, %v8418_v55  ;;  %v3280_v45 = vmul.f32 %v8810_v26, %v8403_v27  ;;  %s9225_s27 = sld [smem:[#allocation9 + $0x60]] }
 0x4cb   : > { %v8901_v22 = vpop.permute.xlu1 %2556  ;;  %v8903_v11 = vpop.permute.xlu0 %3596  ;;  %6123 = vmatprep.subr.mxu0 %v4161_v2  ;;  %v2689_v15 = vadd.f32 %v2685_v20, %v2597_v32  ;;  %v2596_v32 = vadd.f32 %v10728_v3, %v2492_v6 }
 0x4cc   : > { %10720 = vst [vmem:[#allocation52_spill] sm:$0xff] %v8901_v22  ;;  %6124 = vmatpush3.msra.mxu0 %v4161_v2  ;;  %v3694_v61 = vadd.f32 %v3690_v41, %v3602_v4  ;;  %v3603_v2 = vadd.f32 %v8723_v17, %v3499_v31  ;;  %v3156_v17 = vmul.f32 %v8639_v10, %v8961_v57  ;;  %v10729_v31 = vld [vmem:[#allocation26_spill] sm:$0xff] }
 0x4cd   : > { %3062 = vrot.lane.b32.xlu1 %v3053_v18, %s6593_s13  ;;  %3390 = vrot.lane.b32.xlu0 %v3382_v35, %s6594_s25  ;;  %v2745_v41 = vadd.f32 %v10729_v31, %v2689_v15  ;;  %v3281_v15 = vmul.f32 %v8810_v26, %v8435_v50 }
 0x4ce   : > { %6125 = vmatprep.subr.mxu0 %v4160_v33  ;;  %v3750_v4 = vadd.f32 %v8800_v36, %v3694_v61  ;;  %v8980_v36 = vld [vmem:[#allocation2 + $0x61] sm:$0xff] }
 0x4cf   : > { %v8928_v21 = vpop.permute.xlu1 %3012  ;;  %v8930_v29 = vpop.permute.xlu0 %2412  ;;  %6126 = vmatpush3.msra.mxu0 %v4160_v33  ;;  %v3756_v33 = vmul.f32 %v8956_v48, %v8418_v55  ;;  %10730 = vst [vmem:[#allocation72_spill] sm:$0xff] %v8980_v36  ;;  %v2684_v61 = vmul.f32 %v8980_v36, %v8738_v49  ;;  %v10732_v49 = vld [vmem:[#allocation81_spill] sm:$0xff] }
 0x4d0   : > { %10723 = vst [vmem:[#allocation17_spill] sm:$0xff] %v8928_v21  ;;  %10724 = vst [vmem:[#allocation47_spill] sm:$0xff] %v8930_v29  ;;  %v2459_v29 = vstv %s9194_s24 }
 0x4d1   : > { %3518 = vrot.lane.b32.xlu1 %v3507_v19, %s6593_s13  ;;  %2918 = vrot.lane.b32.xlu0 %v2907_v5, %s6594_s25  ;;  %v10727_v19 = vld [vmem:[#allocation43_spill] sm:$0xff] }
 0x4d2   : > { %v3691_v5 = vmul.f32 %v8919_v47, %v10727_v19 }
 0x4d3   : > { %v8947_v18 = vpop.permute.xlu1 %2414  ;;  %v8949_v35 = vpop.permute.xlu0 %2886 }
 0x4d4   : > { %v3695_v20 = vadd.f32 %v3691_v5, %v3603_v2  ;;  %v3610_v2 = vmul.f32 %v8796_v14, %v8450_v28 }
 0x4d5   : > { %3290 = vrot.lane.b32.xlu1 %v3280_v45, %s6593_s13  ;;  %3392 = vrot.lane.b32.xlu0 %v3383_v8, %s6594_s25 }
 0x4d6   : > { %v3751_v8 = vadd.f32 %v8877_v1, %v3695_v20  ;;  %v10734_v20 = vld [vmem:[#allocation82_spill] sm:$0xff] }
 0x4d7   : > { %v8968_v59 = vpop.permute.xlu1 %2888  ;;  %v3843_v62 = vpop.permute.xlu0 %3842 }
 0x4d8   : > { %v8976_v45 = vadd.f32 %v3843_v62, %v3750_v4  ;;  %v10731_v4 = vld [vmem:[#allocation77_spill] sm:$0xff]  ;;  %v2688_v62 = vadd.f32 %v2684_v61, %v2596_v32  ;;  %v9007_v32 = vld [vmem:[#allocation2 + $0x5a] sm:$0xff] }
 0x4d9   : > { %3764 = vrot.lane.b32.xlu1 %v3756_v33, %s6593_s13  ;;  %3164 = vrot.lane.b32.xlu0 %v3156_v17, %s6594_s25  ;;  %v2849_v5 = vadd.f32 %v10731_v4, %v2745_v41  ;;  %v2937_v17 = vmul.f32 %v8758_v7, %v8778_v12  ;;  %v3157_v41 = vmul.f32 %v9007_v32, %v8961_v57 }
 0x4da   : > { %v5877_v37 = vmul.f32 -1.442695, %v8976_v45  ;;  %v2744_v1 = vadd.f32 %v10732_v49, %v2688_v62  ;;  %v3384_v62 = vmul.f32 %v8885_v9, %v8403_v27 }
 0x4db   : > { %v3845_v21 = vpop.permute.xlu1 %3844  ;;  %v8986_v6 = vpop.permute.xlu0 %2558 }
 0x4dc   : > { %6289 = vpow2.f32 %v5877_v37  ;;  %v8993_v33 = vadd.f32 %v3845_v21, %v3751_v8  ;;  %v3757_v21 = vmul.f32 %v8956_v48, %v10727_v19  ;;  %v2848_v61 = vadd.f32 %v10734_v20, %v2744_v1  ;;  %v9014_v37 = vld [vmem:[#allocation2 + $0x62] sm:$0xff]  ;;  %v10738_v1 = vld [vmem:[#allocation29_spill] sm:$0xff] }
 0x4dd   : > { %3292 = vrot.lane.b32.xlu1 %v3281_v15, %s6593_s13  ;;  %3620 = vrot.lane.b32.xlu0 %v3610_v2, %s6594_s25  ;;  %v2941_v8 = vadd.f32 %v2937_v17, %v2849_v5  ;;  %10735 = vst [vmem:[#allocation44_spill] sm:$0xff] %v9014_v37  ;;  %v2936_v15 = vmul.f32 %v9014_v37, %v8778_v12  ;;  %v10739_v12 = vld [vmem:[#allocation14_spill] sm:$0xff] }
 0x4de   : > { %v5878_v26 = vmul.f32 -1.442695, %v8993_v33  ;;  %v3611_v5 = vmul.f32 %v8796_v14, %v8437_v34  ;;  %v3054_v14 = vmul.f32 %v9014_v37, %v8847_v52 }
 0x4df   : > { %v9001_v3 = vpop.permute.xlu1 %2786  ;;  %v9003_v31 = vpop.permute.xlu0 %3014  ;;  %v2940_v49 = vadd.f32 %v2936_v15, %v2848_v61  ;;  %v2997_v17 = vadd.f32 %v10738_v1, %v2941_v8  ;;  %v10741_v8 = vld [vmem:[#allocation36_spill] sm:$0xff]  ;;  %v9042_v1 = vstv %s5859_s10  ;;  %s9532_s10 = sld [smem:[#allocation9 + $0x8f]] }
 0x4e0   : > { %10733 = vst [vmem:[#allocation39_spill] sm:$0xff] %v9003_v31  ;;  %6291 = vpow2.f32 %v5878_v26  ;;  %v9027_v26 = vstv %s5874_s9  ;;  %s9499_s9 = sld [smem:[#allocation9 + $0x84]] }
 0x4e1   : > { %3766 = vrot.lane.b32.xlu1 %v3757_v21, %s6593_s13  ;;  %3166 = vrot.lane.b32.xlu0 %v3157_v41, %s6594_s25  ;;  %v2996_v21 = vadd.f32 %v10739_v12, %v2940_v49  ;;  %v3860_v31 = vmul.f32 %v9027_v26, %v8418_v55  ;;  %v3101_v15 = vadd.f32 %v10741_v8, %v2997_v17 }
 0x4e2   : > { %v3189_v55 = vmul.f32 %v8821_v30, %v8435_v50  ;;  %v3385_v17 = vmul.f32 %v8885_v9, %v8435_v50  ;;  %v3055_v50 = vmul.f32 %v8758_v7, %v8847_v52  ;;  %v9082_v52 = vld [vmem:[#allocation2 + $0x78] sm:$0xff] }
 0x4e3   : > { %v9018_v2 = vpop.permute.xlu1 %3260  ;;  %v9020_v4 = vpop.permute.xlu0 %2660  ;;  %v3100_v61 = vadd.f32 %v8586_v43, %v2996_v21  ;;  %v3530_v21 = vmul.f32 %v9042_v1, %v8394_v24  ;;  %v3861_v24 = vmul.f32 %v9027_v26, %v10727_v19  ;;  %10746 = vst [vmem:[#allocation29_spill] sm:$0xff] %v9082_v52 }
 0x4e4   : > { %10736 = vst [vmem:[#allocation40_spill] sm:$0xff] %v9018_v2  ;;  %10737 = vst [vmem:[#allocation43_spill] sm:$0xff] %v9020_v4  ;;  %v3193_v8 = vadd.f32 %v3189_v55, %v3101_v15  ;;  %v6452_v4 = vld [vmem:[#allocation2 + $0x59] sm:$0xff] }
 0x4e5   : > { %3394 = vrot.lane.b32.xlu1 %v3384_v62, %s6594_s25  ;;  %3622 = vrot.lane.b32.xlu0 %v3611_v5, %s6594_s25  ;;  %v3188_v5 = vmul.f32 %v8821_v30, %v8403_v27 }
 0x4e6   : > { %v3249_v30 = vadd.f32 %v8837_v42, %v3193_v8 }
 0x4e7   : > { %v9032_v41 = vpop.permute.xlu1 %2662  ;;  %v9034_v20 = vpop.permute.xlu0 %3116 }
 0x4e8   : > { %10740 = vst [vmem:[#allocation69_spill] sm:$0xff] %v9034_v20  ;;  %v3353_v42 = vadd.f32 %v8825_v60, %v3249_v30  ;;  %v3441_v60 = vmul.f32 %v8854_v38, %v8437_v34  ;;  %v9104_v34 = vstv %s5863_s12  ;;  %s9679_s12 = sld [smem:[#allocation9 + $0x45]] }
 0x4e9   : > { %v6290_v62 = vpop.eup %6289  ;;  %3868 = vrot.lane.b32.xlu1 %v3860_v31, %s6594_s25  ;;  %3064 = vrot.lane.b32.xlu0 %v3054_v14, %s6593_s13  ;;  %v3192_v31 = vadd.f32 %v3188_v5, %v3100_v61  ;;  %v9071_v61 = vstv %s5848_s11  ;;  %v9086_v5 = vld [vmem:[#allocation2 + $0x81] sm:$0xff]  ;;  %s9631_s11 = sld [smem:[#allocation9 + $0x42]] }
 0x4ea   : > { %v3948_v49 = vadd.f32 1.0, %v6290_v62  ;;  %10747 = vst [vmem:[#allocation14_spill] sm:$0xff] %v9086_v5  ;;  %v3531_v55 = vmul.f32 %v9086_v5, %v9042_v1 }
 0x4eb   : > { %v9050_v12 = vpop.permute.xlu1 %3118  ;;  %v9052_v43 = vpop.permute.xlu0 %3742  ;;  %v3248_v27 = vadd.f32 %v8785_v0, %v3192_v31  ;;  %v3440_v0 = vmul.f32 %v8854_v38, %v8450_v28 }
 0x4ec   : > { %10742 = vst [vmem:[#allocation26_spill] sm:$0xff] %v9050_v12  ;;  %6293 = vrcp.f32 %v3948_v49 }
 0x4ed   : > { %v6292_v14 = vpop.eup %6291  ;;  %3396 = vrot.lane.b32.xlu1 %v3385_v17, %s6594_s25  ;;  %3538 = vrot.lane.b32.xlu0 %v3530_v21, %s6593_s13  ;;  %v3352_v9 = vadd.f32 %v8802_v44, %v3248_v27  ;;  %v3304_v44 = vmul.f32 %v9082_v52, %v9071_v61  ;;  %v3445_v21 = vadd.f32 %v3441_v60, %v3353_v42 }
 0x4ee   : > { %v3949_v62 = vadd.f32 1.0, %v6292_v14  ;;  %v3758_v14 = vmul.f32 %v8956_v48, %v8582_v51  ;;  %v3158_v27 = vmul.f32 %v9014_v37, %v8961_v57 }
 0x4ef   : > { %v9062_v12 = vpop.permute.xlu1 %3744  ;;  %v9064_v20 = vpop.permute.xlu0 %2788  ;;  %v3444_v49 = vadd.f32 %v3440_v0, %v3352_v9  ;;  %v9122_v0 = vld [vmem:[#allocation2 + $0x79] sm:$0xff] }
 0x4f0   : > { %10743 = vst [vmem:[#allocation77_spill] sm:$0xff] %v9064_v20  ;;  %6295 = vrcp.f32 %v3949_v62  ;;  %10751 = vst [vmem:[#allocation102_spill] sm:$0xff] %v9122_v0  ;;  %v9280_v20 = vld [vmem:[#allocation2 + $0x7a] sm:$0xff] }
 0x4f1   : > { %3870 = vrot.lane.b32.xlu1 %v3861_v24, %s6594_s25  ;;  %3066 = vrot.lane.b32.xlu0 %v3055_v50, %s6593_s13  ;;  %v3500_v17 = vadd.f32 %v8839_v39, %v3444_v49  ;;  %v3501_v39 = vadd.f32 %v8823_v58, %v3445_v21  ;;  %v3692_v24 = vmul.f32 %v8919_v47, %v8582_v51 }
 0x4f2   : > { %v3634_v58 = vmul.f32 %v9122_v0, %v9104_v34  ;;  %v3693_v21 = vmul.f32 %v8919_v47, %v8592_v63 }
 0x4f3   : > { %v9078_v15 = vpop.permute.xlu1 %2890  ;;  %v9080_v19 = vpop.permute.xlu0 %3262  ;;  %v3604_v30 = vadd.f32 %v8858_v13, %v3500_v17  ;;  %v9118_v13 = vld [vmem:[#allocation2 + $0x80] sm:$0xff] }
 0x4f4   : > { %10744 = vst [vmem:[#allocation81_spill] sm:$0xff] %v9078_v15  ;;  %10745 = vst [vmem:[#allocation82_spill] sm:$0xff] %v9080_v19  ;;  %v3305_v42 = vmul.f32 %v9118_v13, %v9071_v61  ;;  %v9245_v19 = vld [vmem:[#allocation2 + $0x51] sm:$0xff] }
 0x4f5   : > { %3312 = vrot.lane.b32.xlu1 %v3304_v44, %s6593_s13  ;;  %3540 = vrot.lane.b32.xlu0 %v3531_v55, %s6593_s13  ;;  %v3696_v55 = vadd.f32 %v3692_v24, %v3604_v30  ;;  %v3159_v30 = vmul.f32 %v8758_v7, %v8961_v57  ;;  %v3635_v57 = vmul.f32 %v9086_v5, %v9104_v34 }
 0x4f7   : > { %v9095_v31 = vpop.permute.xlu1 %3364  ;;  %v9097_v8 = vpop.permute.xlu0 %2560  ;;  %v3752_v17 = vadd.f32 %v9052_v43, %v3696_v55 }
 0x4f8   : > { %10748 = vst [vmem:[#allocation36_spill] sm:$0xff] %v9095_v31  ;;  %10749 = vst [vmem:[#allocation100_spill] sm:$0xff] %v9097_v8 }
 0x4f9   : > { %v6294_v38 = vpop.eup %6293  ;;  %3768 = vrot.lane.b32.xlu1 %v3758_v14, %s6593_s13  ;;  %3168 = vrot.lane.b32.xlu0 %v3158_v27, %s6594_s25  ;;  %v3759_v27 = vmul.f32 %v8956_v48, %v8592_v63  ;;  %v3532_v48 = vmul.f32 %v9042_v1, %v8450_v28 }
 0x4fa   : > { %v9110_v62 = vmul.f32 %v6294_v38, %v8976_v45  ;;  %v3605_v45 = vadd.f32 %v8903_v11, %v3501_v39 }
 0x4fb   : > { %v9114_v50 = vpop.permute.xlu1 %2562  ;;  %v9116_v9 = vpop.permute.xlu0 %3034 }
 0x4fc   : > { %10750 = vst [vmem:[#allocation101_spill] sm:$0xff] %v9114_v50  ;;  %v5893_v44 = vmul.f32 -1.442695, %v9110_v62  ;;  %v3697_v39 = vadd.f32 %v3693_v21, %v3605_v45  ;;  %v9157_v45 = vstv %s5852_s14  ;;  %s5867_s14 = sld [smem:[#allocation9 + $0x69]] }
 0x4fd   : > { %v6296_v49 = vpop.eup %6295  ;;  %3314 = vrot.lane.b32.xlu1 %v3305_v42, %s6593_s13  ;;  %3642 = vrot.lane.b32.xlu0 %v3634_v58, %s6594_s25  ;;  %v3409_v28 = vmul.f32 %v9118_v13, %v9157_v45 }
 0x4fe   : > { %6297 = vpow2.f32 %v5893_v44  ;;  %v9131_v60 = vmul.f32 %v6296_v49, %v8993_v33  ;;  %v3753_v47 = vadd.f32 %v9062_v12, %v3697_v39  ;;  %v3408_v49 = vmul.f32 %v9082_v52, %v9157_v45 }
 0x4ff   : > { %v9136_v14 = vpop.permute.xlu1 %3036  ;;  %v3847_v11 = vpop.permute.xlu0 %3846 }
 0x500   : > { %10752 = vst [vmem:[#allocation103_spill] sm:$0xff] %v9136_v14  ;;  %v5894_v38 = vmul.f32 -1.442695, %v9131_v60  ;;  %v9143_v24 = vadd.f32 %v3847_v11, %v3752_v17 }
 0x501   : > { %3770 = vrot.lane.b32.xlu1 %v3759_v27, %s6593_s13  ;;  %3170 = vrot.lane.b32.xlu0 %v3159_v30, %s6594_s25  ;;  %v3863_v27 = vmul.f32 %v9027_v26, %v8592_v63  ;;  %v3862_v30 = vmul.f32 %v9027_v26, %v8582_v51  ;;  %v9200_v51 = vld [vmem:[#allocation2 + $0x89] sm:$0xff] }
 0x502   : > { %6299 = vpow2.f32 %v5894_v38  ;;  %v5879_v33 = vmul.f32 -1.442695, %v9143_v24  ;;  %v3636_v26 = vmul.f32 %v9200_v51, %v9104_v34 }
 0x503   : > { %v3849_v43 = vpop.permute.xlu1 %3848  ;;  %v9149_v42 = vpop.permute.xlu0 %2892 }
 0x504   : > { %10753 = vst [vmem:[#allocation104_spill] sm:$0xff] %v9149_v42  ;;  %6301 = vpow2.f32 %v5879_v33  ;;  %v9155_v58 = vadd.f32 %v3849_v43, %v3753_v47  ;;  %v9204_v33 = vld [vmem:[#allocation2 + $0x91] sm:$0xff]  ;;  %v9276_v42 = vld [vmem:[#allocation2 + $0x82] sm:$0xff] }
 0x505   : > { %3542 = vrot.lane.b32.xlu1 %v3532_v48, %s6593_s13  ;;  %3644 = vrot.lane.b32.xlu0 %v3635_v57, %s6594_s25  ;;  %v3533_v43 = vmul.f32 %v9204_v33, %v9042_v1  ;;  %v2449_v1 = vstv %s9178_s18  ;;  %s5960_s18 = sshll.u32 %s10924_s22, 7 }
 0x506   : > { %v5880_v12 = vmul.f32 -1.442695, %v9155_v58  ;;  %v9269_v2 = vmul.f32 %v8546_v40, %v2449_v1  ;;  %v9289_v14 = vmul.f32 %v8923_v54, %v2449_v1  ;;  %s10274_s24 = scalar_lea.vmem %s10363_s6, %s5960_s18 }
 0x507   : > { %v9164_v44 = vpop.permute.xlu1 %2808  ;;  %v9166_v55 = vpop.permute.xlu0 %3366 }
 0x508   : > { %10754 = vst [vmem:[#allocation105_spill] sm:$0xff] %v9164_v44  ;;  %10755 = vst [vmem:[#allocation106_spill] sm:$0xff] %v9166_v55  ;;  %6303 = vpow2.f32 %v5880_v12  ;;  %v9211_v12 = vstv %s9162_s15  ;;  %v6448_v55 = vld [vmem:[#allocation2 + $0x50] sm:$0xff]  ;;  %s5856_s15 = sld [smem:[#allocation9 + $0x8a]] }
 0x509   : > { %3418 = vrot.lane.b32.xlu1 %v3409_v28, %s6594_s25  ;;  %3416 = vrot.lane.b32.xlu0 %v3408_v49, %s6594_s25  ;;  %10760 = vst [vmem:[#allocation111_spill] sm:$0xff] %v9211_v12  ;;  %v9218_v28 = vstv %s9172_s16  ;;  %v9221_v49 = vstv %s9174_s17  ;;  %v9264_v31 = vmul.f32 %v8546_v40, %v9211_v12  ;;  %s9872_s16 = sld [smem:[#allocation9 + $0x8d]]  ;;  %s6597_s17 = smov 64  }
 0x50a   : > { %10761 = vst [vmem:[#allocation112_spill] sm:$0xff] %v9218_v28  ;;  %10762 = vst [vmem:[#allocation113_spill] sm:$0xff] %v9221_v49  ;;  %v9253_v8 = vmul.f32 %v8639_v10, %v9221_v49 }
 0x50b   : > { %v6298_v17 = vpop.eup %6297  ;;  %v9182_v21 = vpop.permute.xlu1 %3264 }
 0x50c   : > { %10756 = vst [vmem:[#allocation107_spill] sm:$0xff] %v9182_v21  ;;  %v9184_v11 = vpop.permute.xlu0 %2664  ;;  %v4060_v38 = vadd.f32 1.0, %v6298_v17  ;;  %10767 = vst [vmem:[#allocation118_spill] sm:$0xff] %v9253_v8 }
 0x50d   : > { %10757 = vst [vmem:[#allocation108_spill] sm:$0xff] %v9184_v11  ;;  %3874 = vrot.lane.b32.xlu1 %v3863_v27, %s6594_s25  ;;  %3872 = vrot.lane.b32.xlu0 %v3862_v30, %s6594_s25  ;;  %v2701_v27 = vstv %s9180_s19  ;;  %v9249_v11 = vmul.f32 %v9245_v19, %v9218_v28 }
 0x50e   : > { %6305 = vrcp.f32 %v4060_v38  ;;  %v9315_v15 = vmul.f32 %v6452_v4, %v2701_v27 }
 0x50f   : > { %v6300_v39 = vpop.eup %6299  ;;  %v9196_v47 = vpop.permute.xlu1 %2810 }
 0x510   : > { %10758 = vst [vmem:[#allocation109_spill] sm:$0xff] %v9196_v47  ;;  %v9198_v63 = vpop.permute.xlu0 %3138  ;;  %v4061_v48 = vadd.f32 1.0, %v6300_v39  ;;  %v9231_v39 = vld [vmem:[#allocation2 + $0x90] sm:$0xff] }
 0x511   : > { %10759 = vst [vmem:[#allocation110_spill] sm:$0xff] %v9198_v63  ;;  %v6302_v57 = vpop.eup %6301  ;;  %3646 = vrot.lane.b32.xlu1 %v3636_v26, %s6594_s25  ;;  %3544 = vrot.lane.b32.xlu0 %v3533_v43, %s6593_s13  ;;  %10765 = vst [vmem:[#allocation116_spill] sm:$0xff] %v9231_v39  ;;  %v3307_v26 = vmul.f32 %v9231_v39, %v9071_v61  ;;  %v9235_v43 = vld [vmem:[#allocation2 + $0x88] sm:$0xff] }
 0x512   : > { %6307 = vrcp.f32 %v4061_v48  ;;  %v3950_v17 = vadd.f32 1.0, %v6302_v57  ;;  %10766 = vst [vmem:[#allocation117_spill] sm:$0xff] %v9235_v43  ;;  %v3306_v21 = vmul.f32 %v9235_v43, %v9071_v61  ;;  %v9240_v48 = vstv %s9190_s20 }
 0x513   : > { %v9227_v30 = vpop.permute.xlu1 %3266  ;;  %v9257_v61 = vmul.f32 %v6448_v55, %v2449_v1  ;;  %v3783_v44 = vmul.f32 %v9276_v42, %v9240_v48 }
 0x514   : > { %10763 = vst [vmem:[#allocation114_spill] sm:$0xff] %v9227_v30  ;;  %v9229_v38 = vpop.permute.xlu0 %2666  ;;  %6309 = vrcp.f32 %v3950_v17  ;;  %v9243_v30 = vmul.f32 %v6448_v55, %v9211_v12  ;;  %v9260_v17 = vmul.f32 %v9245_v19, %v2701_v27  ;;  %v10770_v12 = vld [vmem:[#allocation20_spill] sm:$0xff] }
 0x515   : > { %10764 = vst [vmem:[#allocation115_spill] sm:$0xff] %v9229_v38  ;;  %v6304_v57 = vpop.eup %6303  ;;  %3318 = vrot.lane.b32.xlu1 %v3307_v26, %s6593_s13  ;;  %3316 = vrot.lane.b32.xlu0 %v3306_v21, %s6593_s13  ;;  %v9286_v40 = vmul.f32 %v8815_v25, %v10770_v12  ;;  %v9301_v38 = vmul.f32 %v8870_v16, %v2449_v1 }
 0x516   : > { %v3951_v53 = vadd.f32 1.0, %v6304_v57  ;;  %v3782_v57 = vmul.f32 %v9280_v20, %v9240_v48  ;;  %v9304_v12 = vmul.f32 %v6452_v4, %v9218_v28  ;;  %v9321_v1 = vmul.f32 %v8815_v25, %v8185_v56 }
 0x517   : > { %v9272_v26 = vpop.permute.xlu1 %3038  ;;  %10771 = vst [vmem:[#allocation20_spill] sm:$0xff] %v9286_v40  ;;  %v9307_v40 = vstv %s9213_s26  ;;  %v9336_v56 = vmul.f32 %v8980_v36, %v2701_v27 }
 0x518   : > { %10768 = vst [vmem:[#allocation119_spill] sm:$0xff] %v9272_v26  ;;  %v9274_v21 = vpop.permute.xlu0 %3140  ;;  %6311 = vrcp.f32 %v3951_v53  ;;  %v10772_v26 = vld [vmem:[#allocation42_spill] sm:$0xff]  ;;  %10774 = vst [vmem:[#allocation121_spill] sm:$0xff] %v9307_v40  ;;  %v9313_v53 = vmul.f32 %v9007_v32, %v9221_v49 }
 0x519   : > { %10769 = vst [vmem:[#allocation120_spill] sm:$0xff] %v9274_v21  ;;  %v9292_v21 = vstv %s9208_s23  ;;  %v9298_v8 = vmul.f32 %v8815_v25, %v10772_v26  ;;  %10773 = vst [vmem:[#allocation42_spill] sm:$0xff] %v9304_v12  ;;  %3792 = vrot.lane.b32.xlu1 %v3783_v44, %s6593_s13  ;;  %3790 = vrot.lane.b32.xlu0 %v3782_v57, %s6593_s13  ;;  %v9317_v26 = vmul.f32 %v6448_v55, %v2459_v29  ;;  %v6453_v49 = vld [vmem:[#allocation2 + $0x58] sm:$0xff] }
 0x51a   : > { %10775 = vst [vmem:[#allocation122_spill] sm:$0xff] %v9313_v53  ;;  %v2953_v12 = vstv %s9225_s27  ;;  %v3556_v44 = vmul.f32 %v9122_v0, %v9292_v21  ;;  %v3637_v57 = vmul.f32 %v9204_v33, %v9104_v34  ;;  %v9333_v53 = vmul.f32 %v6453_v49, %v2459_v29  ;;  %v10784_v49 = vld [vmem:[#allocation59_spill] sm:$0xff] }
 0x51b   : > { %v6306_v28 = vpop.eup %6305  ;;  %v9324_v50 = vpop.permute.xlu1 %3512  ;;  %v9340_v25 = vmul.f32 %v9082_v52, %v9307_v40  ;;  %v9347_v34 = vmul.f32 %v8659_v46, %v2701_v27  ;;  %v9357_v40 = vmul.f32 %v8870_v16, %v2459_v29  ;;  %v3411_v16 = vmul.f32 %v9231_v39, %v9157_v45 }
 0x51c   : > { %10776 = vst [vmem:[#allocation123_spill] sm:$0xff] %v9324_v50  ;;  %v9326_v22 = vpop.permute.xlu0 %2912  ;;  %v4072_v55 = vmul.f32 %v6306_v28, %v9110_v62  ;;  %v10779_v50 = vld [vmem:[#allocation49_spill] sm:$0xff]  ;;  %v9350_v62 = vmul.f32 %v8923_v54, %v2459_v29  ;;  %v10783_v28 = vld [vmem:[#allocation56_spill] sm:$0xff]  ;;  %v10791_v29 = vld [vmem:[#allocation66_spill] sm:$0xff]  ;;  %v9381_v47 = vmul.f32 %v9007_v32, %v2953_v12 }
 0x51d   : > { %10777 = vst [vmem:[#allocation124_spill] sm:$0xff] %v9326_v22  ;;  %10778 = vst [vmem:[#allocation125_spill] sm:$0xff] %v9340_v25  ;;  %v10780_v22 = vld [vmem:[#allocation21_spill] sm:$0xff]  ;;  %3564 = vrot.lane.b32.xlu1 %v3556_v44, %s6593_s13  ;;  %3648 = vrot.lane.b32.xlu0 %v3637_v57, %s6594_s25  ;;  %v2290_v36 = vadd.f32 %v10784_v49, %v10783_v28  ;;  %v9360_v25 = vmul.f32 %v8639_v10, %v2953_v12  ;;  %v10787_v44 = vld [vmem:[#allocation50_spill] sm:$0xff] }
 0x51e   : > { %v2264_v63 = vadd.f32 %v10780_v22, %v10779_v50  ;;  %10781 = vst [vmem:[#allocation49_spill] sm:$0xff] %v9347_v34  ;;  %10782 = vst [vmem:[#allocation21_spill] sm:$0xff] %v9350_v62  ;;  %v9363_v22 = vstv %s9266_s28  ;;  %6127 = vmatprep.mubr.msk.f32.mxu0 %vm4172_vm4, %v4072_v55  ;;  %v10785_v54 = vld [vmem:[#allocation45_spill] sm:$0xff]  ;;  %v10786_v50 = vld [vmem:[#allocation80_spill] sm:$0xff]  ;;  %v3410_v10 = vmul.f32 %v9235_v43, %v9157_v45 }
 0x51f   : > { %v6308_v46 = vpop.eup %6307  ;;  %v2041_v27 = vadd.f32 %v10786_v50, %v10785_v54  ;;  %v10788_v57 = vld [vmem:[#allocation87_spill] sm:$0xff]  ;;  %v9370_v34 = vpop.permute.xlu1 %3040  ;;  %v2394_v49 = vadd.f32 %v10791_v29, %v2290_v36  ;;  %10792 = vst [vmem:[#allocation45_spill] sm:$0xff] %v9381_v47  ;;  %v9384_v54 = vstv %s9294_s29  ;;  %v9394_v45 = vmul.f32 %v6452_v4, %v9363_v22  ;;  %v10806_v43 = vld [vmem:[#allocation97_spill] sm:$0xff] }
 0x520   : > { %v2291_v62 = vadd.f32 %v10788_v57, %v10787_v44  ;;  %10789 = vst [vmem:[#allocation56_spill] sm:$0xff] %v9370_v34  ;;  %v9372_v28 = vpop.permute.xlu0 %3368  ;;  %v4073_v55 = vmul.f32 %v6308_v46, %v9131_v60  ;;  %v10793_v44 = vld [vmem:[#allocation54_spill] sm:$0xff]  ;;  %v9402_v60 = vmul.f32 %v9014_v37, %v2953_v12  ;;  %v3557_v37 = vmul.f32 %v9086_v5, %v9292_v21 }
 0x521   : > { %10790 = vst [vmem:[#allocation59_spill] sm:$0xff] %v9372_v28  ;;  %v6310_v50 = vpop.eup %6309  ;;  %v2368_v57 = vadd.f32 %v10793_v44, %v2264_v63  ;;  %v9391_v28 = vmul.f32 %v9245_v19, %v9363_v22  ;;  %3422 = vrot.lane.b32.xlu1 %v3411_v16, %s6594_s25  ;;  %3420 = vrot.lane.b32.xlu0 %v3410_v10, %s6594_s25  ;;  %v9408_v19 = vld [vmem:[#allocation2 + $0x8a] sm:$0xff]  ;;  %v10799_v46 = vld [vmem:[#allocation30_spill] sm:$0xff]  ;;  %v9461_v47 = vstv %s9386_s7 }
 0x522   : > { %v9399_v36 = vmul.f32 %v6310_v50, %v9143_v24  ;;  %10796 = vst [vmem:[#allocation87_spill] sm:$0xff] %v9402_v60  ;;  %v9405_v63 = vmul.f32 %v8758_v7, %v2953_v12  ;;  %6128 = vmatmul.mubr.msk.f32.vlgmr.msra.gmra.mxu0 %vm4172_vm4, %v4073_v55  ;;  %10798 = vst [vmem:[#allocation54_spill] sm:$0xff] %v9408_v19  ;;  %v3784_v4 = vmul.f32 %v9408_v19, %v9240_v48  ;;  %v10800_v10 = vld [vmem:[#allocation86_spill] sm:$0xff] }
 0x523   : > { %10794 = vst [vmem:[#allocation80_spill] sm:$0xff] %v9391_v28  ;;  %v2145_v16 = vadd.f32 %v10799_v46, %v2041_v27  ;;  %v2395_v29 = vadd.f32 %v10800_v10, %v2291_v62  ;;  %v9414_v44 = vpop.permute.xlu1 %3514  ;;  %v3887_v50 = vmul.f32 %v9276_v42, %v9384_v54  ;;  %v3886_v7 = vmul.f32 %v9280_v20, %v9384_v54  ;;  %v10802_v10 = vld [vmem:[#allocation88_spill] sm:$0xff]  ;;  %v9434_v34 = vld [vmem:[#allocation2 + $0x92] sm:$0xff] }
 0x524   : > { %10795 = vst [vmem:[#allocation50_spill] sm:$0xff] %v9399_v36  ;;  %10797 = vst [vmem:[#allocation66_spill] sm:$0xff] %v9405_v63  ;;  %v9416_v24 = vpop.permute.xlu0 %2914  ;;  %v2454_v12 = vadd.f32 %v9257_v61, %v2394_v49  ;;  %v5895_v55 = vmul.f32 -1.442695, %v9399_v36  ;;  %v9427_v27 = vstv %s9342_s30  ;;  %v2444_v46 = vadd.f32 %v9243_v30, %v2368_v57  ;;  %v10804_v49 = vld [vmem:[#allocation73_spill] sm:$0xff]  ;;  %v10805_v36 = vld [vmem:[#allocation15_spill] sm:$0xff] }
 0x525   : > { %10801 = vst [vmem:[#allocation30_spill] sm:$0xff] %v9414_v44  ;;  %v6312_v62 = vpop.eup %6311  ;;  %v10803_v44 = vld [vmem:[#allocation38_spill] sm:$0xff]  ;;  %3896 = vrot.lane.b32.xlu1 %v3887_v50, %s6594_s25  ;;  %3894 = vrot.lane.b32.xlu0 %v3886_v7, %s6594_s25  ;;  %v3785_v61 = vmul.f32 %v9434_v34, %v9240_v48  ;;  %v2317_v30 = vadd.f32 %v10806_v43, %v10805_v36  ;;  %v10809_v50 = vld [vmem:[#allocation28_spill] sm:$0xff] }
 0x526   : > { %v2067_v39 = vadd.f32 %v10803_v44, %v10802_v10  ;;  %v2542_v63 = vadd.f32 %v10804_v49, %v2454_v12  ;;  %6313 = vpow2.f32 %v5895_v55  ;;  %v9444_v57 = vmul.f32 %v6312_v62, %v9155_v58  ;;  %v10808_v44 = vld [vmem:[#allocation16_spill] sm:$0xff]  ;;  %v10811_v49 = vld [vmem:[#allocation23_spill] sm:$0xff]  ;;  %v10813_v55 = vld [vmem:[#allocation46_spill] sm:$0xff] }
 0x527   : > { %v2265_v7 = vadd.f32 %v10809_v50, %v10808_v44  ;;  %v2455_v10 = vadd.f32 %v9269_v2, %v2395_v29  ;;  %v2205_v28 = vadd.f32 %v9298_v8, %v2145_v16  ;;  %v9450_v60 = vpop.permute.xlu1 %3142  ;;  %v3660_v12 = vmul.f32 %v9122_v0, %v9427_v27  ;;  %v10812_v36 = vld [vmem:[#allocation84_spill] sm:$0xff]  ;;  %v10814_v44 = vld [vmem:[#allocation78_spill] sm:$0xff]  ;;  %v10816_v50 = vld [vmem:[#allocation89_spill] sm:$0xff] }
 0x528   : > { %10807 = vst [vmem:[#allocation86_spill] sm:$0xff] %v9444_v57  ;;  %v9452_v48 = vpop.permute.xlu0 %3370  ;;  %v2646_v43 = vadd.f32 %v10811_v49, %v2542_v63  ;;  %v2292_v58 = vadd.f32 %v10813_v55, %v10812_v36  ;;  %v5896_v62 = vmul.f32 -1.442695, %v9444_v57  ;;  %v2171_v2 = vadd.f32 %v10814_v44, %v2067_v39  ;;  %v10815_v63 = vld [vmem:[#allocation55_spill] sm:$0xff]  ;;  %v10817_v36 = vld [vmem:[#allocation94_spill] sm:$0xff]  ;;  %v10819_v39 = vld [vmem:[#allocation37_spill] sm:$0xff] }
 0x529   : > { %10810 = vst [vmem:[#allocation88_spill] sm:$0xff] %v9452_v48  ;;  %3794 = vrot.lane.b32.xlu1 %v3784_v4, %s6593_s13  ;;  %3566 = vrot.lane.b32.xlu0 %v3557_v37, %s6593_s13  ;;  %v3888_v8 = vmul.f32 %v9408_v19, %v9384_v54  ;;  %v3661_v16 = vmul.f32 %v9086_v5, %v9427_v27  ;;  %v10818_v48 = vld [vmem:[#allocation63_spill] sm:$0xff]  ;;  %v10820_v4 = vld [vmem:[#allocation22_spill] sm:$0xff] }
 0x52a   : > { %v2516_v29 = vadd.f32 %v10815_v63, %v2444_v46  ;;  %v2396_v49 = vadd.f32 %v10816_v50, %v2292_v58  ;;  %v2421_v55 = vadd.f32 %v10817_v36, %v2317_v30  ;;  %6315 = vpow2.f32 %v5896_v62  ;;  %v10822_v46 = vld [vmem:[#allocation48_spill] sm:$0xff] }
 0x52b   : > { %v2369_v0 = vadd.f32 %v10818_v48, %v2265_v7  ;;  %v2293_v44 = vadd.f32 %v10819_v39, %v2205_v28  ;;  %v2543_v37 = vadd.f32 %v10820_v4, %v2455_v10  ;;  %v9476_v57 = vpop.permute.xlu1 %3616  ;;  %v9482_v5 = vmul.f32 %v9082_v52, %v9461_v47  ;;  %v9486_v62 = vld [vmem:[#allocation2 + $0x69] sm:$0xff]  ;;  %v10827_v39 = vld [vmem:[#allocation34_spill] sm:$0xff] }
 0x52c   : > { %v9478_v19 = vpop.permute.xlu0 %2812  ;;  %v2620_v58 = vadd.f32 %v10822_v46, %v2516_v29  ;;  %v2706_v30 = vadd.f32 %v9260_v17, %v2646_v43  ;;  %10823 = vst [vmem:[#allocation73_spill] sm:$0xff] %v9486_v62  ;;  %v9490_v28 = vmul.f32 %v9486_v62, %v9363_v22  ;;  %v3889_v7 = vmul.f32 %v9434_v34, %v9384_v54  ;;  %v10824_v63 = vld [vmem:[#allocation76_spill] sm:$0xff]  ;;  %v10828_v46 = vld [vmem:[#allocation62_spill] sm:$0xff] }
 0x52d   : > { %10821 = vst [vmem:[#allocation38_spill] sm:$0xff] %v9478_v19  ;;  %v2215_v10 = vadd.f32 %v9321_v1, %v2171_v2  ;;  %3796 = vrot.lane.b32.xlu1 %v3785_v61, %s6593_s13  ;;  %3668 = vrot.lane.b32.xlu0 %v3660_v12, %s6594_s25  ;;  %v3558_v48 = vmul.f32 %v9200_v51, %v9292_v21  ;;  %v9506_v43 = vstv %s9438_s8  ;;  %v10825_v12 = vld [vmem:[#allocation67_spill] sm:$0xff]  ;;  %v10826_v2 = vld [vmem:[#allocation58_spill] sm:$0xff] }
 0x52e   : > { %v9503_v17 = vmul.f32 %v9118_v13, %v9461_v47  ;;  %v2794_v29 = vadd.f32 %v10824_v63, %v2706_v30  ;;  %v2456_v54 = vadd.f32 %v9289_v14, %v2396_v49  ;;  %v2465_v1 = vadd.f32 %v9333_v53, %v2421_v55  ;;  %v10829_v49 = vld [vmem:[#allocation93_spill] sm:$0xff]  ;;  %v10830_v30 = vld [vmem:[#allocation75_spill] sm:$0xff] }
 0x52f   : > { %v3559_v61 = vmul.f32 %v9204_v33, %v9292_v21  ;;  %v2316_v50 = vadd.f32 %v10826_v2, %v10825_v12  ;;  %v2445_v36 = vadd.f32 %v9264_v31, %v2369_v0  ;;  %v2397_v4 = vadd.f32 %v10827_v39, %v2293_v44  ;;  %v9518_v62 = vpop.permute.xlu1 %3144  ;;  %v10831_v12 = vld [vmem:[#allocation18_spill] sm:$0xff]  ;;  %v10835_v39 = vld [vmem:[#allocation13_spill] sm:$0xff] }
 0x530   : > { %v2647_v52 = vadd.f32 %v10828_v46, %v2543_v37  ;;  %v9520_v19 = vpop.permute.xlu0 %3286  ;;  %v2696_v14 = vadd.f32 %v9249_v11, %v2620_v58  ;;  %v2544_v53 = vadd.f32 %v10829_v49, %v2456_v54  ;;  %v2898_v55 = vadd.f32 %v8949_v35, %v2794_v29  ;;  %v10832_v11 = vld [vmem:[#allocation64_spill] sm:$0xff] }
 0x531   : > { %v2569_v21 = vadd.f32 %v8986_v6, %v2465_v1  ;;  %v2420_v63 = vadd.f32 %v10830_v30, %v2316_v50  ;;  %v2319_v31 = vadd.f32 %v10831_v12, %v2215_v10  ;;  %3898 = vrot.lane.b32.xlu1 %v3888_v8, %s6594_s25  ;;  %3670 = vrot.lane.b32.xlu0 %v3661_v16, %s6594_s25  ;;  %v10833_v37 = vld [vmem:[#allocation96_spill] sm:$0xff]  ;;  %v10834_v10 = vld [vmem:[#allocation53_spill] sm:$0xff] }
 0x532   : > { %v3808_v0 = vmul.f32 %v9280_v20, %v9506_v43  ;;  %v2768_v44 = vadd.f32 %v10832_v11, %v2696_v14  ;;  %v2648_v58 = vadd.f32 %v10833_v37, %v2544_v53  ;;  %v3809_v6 = vmul.f32 %v9276_v42, %v9506_v43  ;;  %v10836_v53 = vld [vmem:[#allocation19_spill] sm:$0xff]  ;;  %v10838_v30 = vld [vmem:[#allocation33_spill] sm:$0xff]  ;;  %v10839_v12 = vld [vmem:[#allocation60_spill] sm:$0xff] }
 0x533   : > { %v2673_v35 = vadd.f32 %v9032_v41, %v2569_v21  ;;  %v6314_v29 = vpop.eup %6313  ;;  %v2517_v8 = vadd.f32 %v10834_v10, %v2445_v36  ;;  %v2457_v16 = vadd.f32 %v9301_v38, %v2397_v4  ;;  %v2707_v54 = vadd.f32 %v9315_v15, %v2647_v52  ;;  %v9543_v2 = vpop.permute.xlu1 %3618  ;;  %v10837_v21 = vld [vmem:[#allocation68_spill] sm:$0xff]  ;;  %v10840_v11 = vld [vmem:[#allocation109_spill] sm:$0xff] }
 0x534   : > { %v2423_v1 = vadd.f32 %v8947_v18, %v2319_v31  ;;  %v9545_v50 = vpop.permute.xlu0 %2814  ;;  %v2872_v46 = vadd.f32 %v10835_v39, %v2768_v44  ;;  %v2958_v41 = vadd.f32 %v9360_v25, %v2898_v55  ;;  %v4062_v14 = vadd.f32 1.0, %v6314_v29  ;;  %v10841_v44 = vld [vmem:[#allocation110_spill] sm:$0xff]  ;;  %v10843_v29 = vld [vmem:[#allocation52_spill] sm:$0xff] }
 0x535   : > { %v3662_v49 = vmul.f32 %v9200_v51, %v9427_v27  ;;  %v2545_v36 = vadd.f32 %v10836_v53, %v2457_v16  ;;  %v2795_v38 = vadd.f32 %v8879_v23, %v2707_v54  ;;  %v2464_v15 = vadd.f32 %v9317_v26, %v2420_v63  ;;  %3900 = vrot.lane.b32.xlu1 %v3889_v7, %s6594_s25  ;;  %v10846_v39 = vld [vmem:[#allocation42_spill] sm:$0xff] }
 0x536   : > { %3568 = vrot.lane.b32.xlu0 %v3558_v48, %s6593_s13  ;;  %v9557_v18 = vstv %s9499_s9  ;;  %v2708_v52 = vadd.f32 %v9336_v56, %v2648_v58  ;;  %v3046_v25 = vadd.f32 %v9116_v9, %v2958_v41  ;;  %6317 = vrcp.f32 %v4062_v14  ;;  %v10842_v58 = vld [vmem:[#allocation98_spill] sm:$0xff]  ;;  %v10847_v14 = vld [vmem:[#allocation43_spill] sm:$0xff] }
 0x537   : > { %v2717_v4 = vadd.f32 %v9394_v45, %v2673_v35  ;;  %v6316_v55 = vpop.eup %6315  ;;  %v2015_v23 = vadd.f32 %v10838_v30, %v10837_v21  ;;  %v2621_v26 = vadd.f32 %v10839_v12, %v2517_v8  ;;  %v2899_v7 = vadd.f32 %v8968_v59, %v2795_v38  ;;  %v9567_v63 = vpop.permute.xlu1 %3060  ;;  %v10844_v8 = vld [vmem:[#allocation101_spill] sm:$0xff]  ;;  %v10851_v30 = vld [vmem:[#allocation74_spill] sm:$0xff] }
 0x538   : > { %v2467_v48 = vadd.f32 %v9357_v40, %v2423_v1  ;;  %v9569_v31 = vpop.permute.xlu0 %3288  ;;  %v2796_v9 = vadd.f32 %v9001_v3, %v2708_v52  ;;  %v4063_v56 = vadd.f32 1.0, %v6316_v55  ;;  %v3150_v37 = vadd.f32 %v10841_v44, %v3046_v25  ;;  %v10845_v40 = vld [vmem:[#allocation81_spill] sm:$0xff]  ;;  %v10850_v55 = vld [vmem:[#allocation118_spill] sm:$0xff] }
 0x539   : > { %v2821_v45 = vadd.f32 %v10840_v11, %v2717_v4  ;;  %v2649_v35 = vadd.f32 %v10842_v58, %v2545_v36  ;;  %v2568_v10 = vadd.f32 %v10843_v29, %v2464_v15  ;;  %3816 = vrot.lane.b32.xlu1 %v3808_v0, %s6593_s13  ;;  %v9580_v59 = vstv %s9532_s10  ;;  %v10848_v36 = vld [vmem:[#allocation115_spill] sm:$0xff]  ;;  %v10849_v52 = vld [vmem:[#allocation45_spill] sm:$0xff] }
 0x53a   : > { %v2571_v16 = vadd.f32 %v10844_v8, %v2467_v48  ;;  %3570 = vrot.lane.b32.xlu0 %v3559_v61, %s6593_s13  ;;  %v2900_v54 = vadd.f32 %v10845_v40, %v2796_v9  ;;  %6319 = vrcp.f32 %v4063_v56  ;;  %v2965_v1 = vmul.f32 %v9007_v32, %v9557_v18  ;;  %v10854_v9 = vld [vmem:[#allocation87_spill] sm:$0xff] }
 0x53b   : > { %v2925_v3 = vadd.f32 %v9416_v24, %v2821_v45  ;;  %v2697_v41 = vadd.f32 %v10846_v39, %v2621_v26  ;;  %v2672_v53 = vadd.f32 %v10847_v14, %v2568_v10  ;;  %v9589_v15 = vpop.permute.xlu1 %3516  ;;  %v3663_v61 = vmul.f32 %v9204_v33, %v9427_v27  ;;  %v10852_v26 = vld [vmem:[#allocation49_spill] sm:$0xff]  ;;  %v10853_v27 = vld [vmem:[#allocation103_spill] sm:$0xff]  ;;  %v10855_v45 = vld [vmem:[#allocation32_spill] sm:$0xff] }
 0x53c   : > { %v2675_v38 = vadd.f32 %v10848_v36, %v2571_v16  ;;  %v9591_v0 = vpop.permute.xlu0 %2916  ;;  %v2959_v25 = vadd.f32 %v10849_v52, %v2899_v7  ;;  %v3210_v24 = vadd.f32 %v9482_v5, %v3150_v37  ;;  %v3913_v32 = vmul.f32 %v9276_v42, %v9580_v59  ;;  %v10856_v37 = vld [vmem:[#allocation77_spill] sm:$0xff] }
 0x53d   : > { %v3811_v4 = vmul.f32 %v9434_v34, %v9506_v43  ;;  %v2948_v21 = vadd.f32 %v10850_v55, %v2872_v46  ;;  %v2119_v12 = vadd.f32 %v10851_v30, %v2015_v23  ;;  %v2709_v48 = vadd.f32 %v10852_v26, %v2649_v35  ;;  %3818 = vrot.lane.b32.xlu1 %v3809_v6, %s6593_s13  ;;  %v10857_v46 = vld [vmem:[#allocation80_spill] sm:$0xff]  ;;  %v10858_v6 = vld [vmem:[#allocation119_spill] sm:$0xff] }
 0x53e   : > { %3672 = vrot.lane.b32.xlu0 %v3662_v49, %s6594_s25  ;;  %v3047_v7 = vadd.f32 %v10853_v27, %v2959_v25  ;;  %v2960_v5 = vadd.f32 %v10854_v9, %v2900_v54  ;;  %v3298_v56 = vadd.f32 %v9520_v19, %v3210_v24  ;;  %v2969_v11 = vadd.f32 %v2965_v1, %v2925_v3  ;;  %v10859_v49 = vld [vmem:[#allocation120_spill] sm:$0xff]  ;;  %v10860_v19 = vld [vmem:[#allocation61_spill] sm:$0xff]  ;;  %v10868_v27 = vld [vmem:[#allocation95_spill] sm:$0xff] }
 0x53f   : > { %v2769_v44 = vadd.f32 %v10855_v45, %v2697_v41  ;;  %v2797_v58 = vadd.f32 %v10856_v37, %v2709_v48  ;;  %v2716_v29 = vadd.f32 %v10857_v46, %v2672_v53  ;;  %v2719_v23 = vadd.f32 %v9490_v28, %v2675_v38  ;;  %v3063_v35 = vpop.permute.xlu1 %3062  ;;  %v10861_v1 = vld [vmem:[#allocation20_spill] sm:$0xff]  ;;  %v10862_v41 = vld [vmem:[#allocation105_spill] sm:$0xff]  ;;  %v10870_v9 = vld [vmem:[#allocation50_spill] sm:$0xff] }
 0x540   : > { %v3391_v10 = vpop.permute.xlu0 %3390  ;;  %v3048_v8 = vadd.f32 %v10858_v6, %v2960_v5  ;;  %v3151_v16 = vadd.f32 %v10859_v49, %v3047_v7  ;;  %v9615_v40 = vadd.f32 %v3063_v35, %v2969_v11  ;;  %v3020_v3 = vadd.f32 %v10860_v19, %v2948_v21  ;;  %v10863_v28 = vld [vmem:[#allocation104_spill] sm:$0xff]  ;;  %v10864_v24 = vld [vmem:[#allocation65_spill] sm:$0xff]  ;;  %v10871_v45 = vld [vmem:[#allocation79_spill] sm:$0xff] }
 0x541   : > { %v9617_v54 = vadd.f32 %v3391_v10, %v3298_v56  ;;  %v2195_v39 = vadd.f32 %v10861_v1, %v2119_v12  ;;  %v2820_v14 = vadd.f32 %v10862_v41, %v2716_v29  ;;  %3922 = vrot.lane.b32.xlu1 %v3913_v32, %s6594_s25  ;;  %v2901_v53 = vadd.f32 %v10863_v28, %v2797_v58  ;;  %v10865_v21 = vld [vmem:[#allocation25_spill] sm:$0xff]  ;;  %v10866_v12 = vld [vmem:[#allocation124_spill] sm:$0xff]  ;;  %v10872_v29 = vld [vmem:[#allocation47_spill] sm:$0xff] }
 0x542   : > { %3674 = vrot.lane.b32.xlu0 %v3663_v61, %s6594_s25  ;;  %v3152_v36 = vadd.f32 %v9450_v60, %v3048_v8  ;;  %v2823_v38 = vadd.f32 %v9545_v50, %v2719_v23  ;;  %v3912_v52 = vmul.f32 %v9280_v20, %v9580_v59  ;;  %v3124_v55 = vadd.f32 %v10864_v24, %v3020_v3  ;;  %v10867_v48 = vld [vmem:[#allocation117_spill] sm:$0xff]  ;;  %v10869_v50 = vld [vmem:[#allocation31_spill] sm:$0xff]  ;;  %v10873_v35 = vld [vmem:[#allocation66_spill] sm:$0xff] }
 0x543   : > { %v6318_v25 = vpop.eup %6317  ;;  %v2873_v30 = vadd.f32 %v10865_v21, %v2769_v44  ;;  %v2924_v32 = vadd.f32 %v10866_v12, %v2820_v14  ;;  %v9634_v26 = vpop.permute.xlu1 %3518  ;;  %v3208_v60 = vmul.f32 %v10867_v48, %v9461_v47  ;;  %v2318_v7 = vadd.f32 %v10869_v50, %v10868_v27  ;;  %v6457_v37 = vld [vmem:[#allocation2 + $0x52] sm:$0xff]  ;;  %v6458_v21 = vld [vmem:[#allocation2 + $0x68] sm:$0xff]  ;;  %v10881_v12 = vld [vmem:[#allocation51_spill] sm:$0xff] }
 0x544   : > { %v2919_v61 = vpop.permute.xlu0 %2918  ;;  %v4074_v5 = vmul.f32 %v6318_v25, %v10870_v9  ;;  %v3211_v56 = vadd.f32 %v9503_v17, %v3151_v16  ;;  %v2267_v44 = vadd.f32 %v10871_v45, %v2195_v39  ;;  %v2964_v58 = vmul.f32 %v6457_v37, %v9557_v18  ;;  %v10874_v49 = vld [vmem:[#allocation122_spill] sm:$0xff]  ;;  %v10875_v19 = vld [vmem:[#allocation125_spill] sm:$0xff]  ;;  %v10884_v9 = vld [vmem:[#allocation24_spill] sm:$0xff] }
 0x545   : > { %v9642_v11 = vadd.f32 %v2919_v61, %v2823_v38  ;;  %3822 = vrot.lane.b32.xlu1 %v3811_v4, %s6593_s13  ;;  %v3915_v46 = vmul.f32 %v9434_v34, %v9580_v59  ;;  %v2422_v23 = vadd.f32 %v10872_v29, %v2318_v7  ;;  %v2961_v10 = vadd.f32 %v10873_v35, %v2901_v53  ;;  %v10876_v41 = vld [vmem:[#allocation54_spill] sm:$0xff] }
 0x546   : > { %3920 = vrot.lane.b32.xlu0 %v3912_v52, %s6594_s25  ;;  %v3299_v17 = vadd.f32 %v9569_v31, %v3211_v56  ;;  %6130 = vmatprep.mubr.msk.f32.mxu0 %vm4172_vm4, %v4074_v5  ;;  %v3212_v6 = vadd.f32 %v3208_v60, %v3152_v36  ;;  %v2949_v16 = vadd.f32 %v10874_v49, %v2873_v30  ;;  %v10877_v28 = vld [vmem:[#allocation86_spill] sm:$0xff]  ;;  %v10878_v52 = vld [vmem:[#allocation56_spill] sm:$0xff]  ;;  %v10879_v36 = vld [vmem:[#allocation27_spill] sm:$0xff]  ;;  %v9677_v45 = vstv %s9631_s11 }
 0x547   : > { %v6320_v8 = vpop.eup %6319  ;;  %v3200_v3 = vadd.f32 %v10875_v19, %v3124_v55  ;;  %v2968_v4 = vadd.f32 %v2964_v58, %v2924_v32  ;;  %v3291_v1 = vpop.permute.xlu1 %3290  ;;  %v3810_v14 = vmul.f32 %v10876_v41, %v9506_v43  ;;  %v3049_v53 = vadd.f32 %v10878_v52, %v2961_v10  ;;  %v10880_v30 = vld [vmem:[#allocation111_spill] sm:$0xff]  ;;  %v10882_v43 = vld [vmem:[#allocation40_spill] sm:$0xff]  ;;  %v10883_v60 = vld [vmem:[#allocation21_spill] sm:$0xff] }
 0x548   : > { %v3393_v39 = vpop.permute.xlu0 %3392  ;;  %v4075_v38 = vmul.f32 %v6320_v8, %v10877_v28  ;;  %v9660_v31 = vadd.f32 %v3291_v1, %v3212_v6  ;;  %v2371_v24 = vadd.f32 %v10879_v36, %v2267_v44  ;;  %v2443_v55 = vmul.f32 %v6458_v21, %v10880_v30  ;;  %v10885_v5 = vld [vmem:[#allocation41_spill] sm:$0xff]  ;;  %v10889_v10 = vld [vmem:[#allocation100_spill] sm:$0xff]  ;;  %v10890_v8 = vld [vmem:[#allocation83_spill] sm:$0xff] }
 0x549   : > { %v9662_v25 = vadd.f32 %v3393_v39, %v3299_v17  ;;  %v3021_v32 = vadd.f32 %v10881_v12, %v2949_v16  ;;  %3926 = vrot.lane.b32.xlu1 %v3915_v46, %s6594_s25  ;;  %v3272_v61 = vadd.f32 %v10882_v43, %v3200_v3  ;;  %v2466_v27 = vadd.f32 %v10883_v60, %v2422_v23  ;;  %v10886_v46 = vld [vmem:[#allocation116_spill] sm:$0xff]  ;;  %v10891_v19 = vld [vmem:[#allocation121_spill] sm:$0xff]  ;;  %v10896_v43 = vld [vmem:[#allocation82_spill] sm:$0xff] }
 0x54a   : > { %3820 = vrot.lane.b32.xlu0 %v3810_v14, %s6593_s13  ;;  %v3153_v50 = vadd.f32 %v9518_v62, %v3049_v53  ;;  %v3072_v7 = vadd.f32 %v9567_v63, %v2968_v4  ;;  %6131 = vmatmul.mubr.msk.f32.gmra.mxu0 %vm4172_vm4, %v4075_v38  ;;  %v2266_v56 = vadd.f32 %v10885_v5, %v10884_v9  ;;  %v10887_v62 = vld [vmem:[#allocation71_spill] sm:$0xff]  ;;  %v10888_v63 = vld [vmem:[#allocation36_spill] sm:$0xff]  ;;  %v10894_v38 = vld [vmem:[#allocation90_spill] sm:$0xff]  ;;  %s5844_s13 = sld [smem:[#allocation9 + $0x87]] }
 0x54b   : > { %v3765_v44 = vpop.permute.xlu1 %3764  ;;  %v3914_v58 = vmul.f32 %v10876_v41, %v9580_v59  ;;  %v3209_v29 = vmul.f32 %v10886_v46, %v9461_v47  ;;  %v3125_v23 = vadd.f32 %v10887_v62, %v3021_v32  ;;  %v3376_v35 = vadd.f32 %v10888_v63, %v3272_v61  ;;  %v10892_v59 = vld [vmem:[#allocation108_spill] sm:$0xff]  ;;  %v10893_v47 = vld [vmem:[#allocation102_spill] sm:$0xff]  ;;  %v6459_v14 = vld [vmem:[#allocation2 + $0x60] sm:$0xff] }
 0x54c   : > { %v3165_v37 = vpop.permute.xlu0 %3164  ;;  %v2570_v17 = vadd.f32 %v10889_v10, %v2466_v27  ;;  %v2370_v49 = vadd.f32 %v10890_v8, %v2266_v56  ;;  %v2447_v16 = vadd.f32 %v2443_v55, %v2371_v24  ;;  %v3197_v3 = vmul.f32 %v9118_v13, %v10891_v19  ;;  %v10895_v55 = vld [vmem:[#allocation72_spill] sm:$0xff]  ;;  %v10897_v60 = vld [vmem:[#allocation123_spill] sm:$0xff] }
 0x54d   : > { %v9688_v6 = vadd.f32 %v3165_v37, %v3072_v7  ;;  %v3448_v1 = vmul.f32 %v10893_v47, %v9677_v45  ;;  %v3213_v39 = vadd.f32 %v3209_v29, %v3153_v50  ;;  %v2442_v28 = vmul.f32 %v6459_v14, %v10880_v30  ;;  %v10898_v7 = vld [vmem:[#allocation85_spill] sm:$0xff]  ;;  %v10899_v30 = vld [vmem:[#allocation70_spill] sm:$0xff]  ;;  %v10902_v10 = vld [vmem:[#allocation112_spill] sm:$0xff] }
 0x54e   : > { %3924 = vrot.lane.b32.xlu0 %v3914_v58, %s6594_s25  ;;  %v2674_v4 = vadd.f32 %v10892_v59, %v2570_v17  ;;  %v2519_v52 = vadd.f32 %v10894_v38, %v2447_v16  ;;  %v3201_v24 = vadd.f32 %v3197_v3, %v3125_v23  ;;  %v2714_v13 = vmul.f32 %v10895_v55, %v9363_v22  ;;  %v10900_v29 = vld [vmem:[#allocation106_spill] sm:$0xff]  ;;  %v10903_v17 = vld [vmem:[#allocation73_spill] sm:$0xff]  ;;  %s5855_s25 = sld [smem:[#allocation9 + $0x66]] }
 0x54f   : > { %v3293_v53 = vpop.permute.xlu1 %3292  ;;  %v3452_v21 = vadd.f32 %v3448_v1, %v3376_v35  ;;  %v2446_v32 = vadd.f32 %v2442_v28, %v2370_v49  ;;  %v9708_v56 = vstv %s9679_s12  ;;  %v10901_v22 = vld [vmem:[#allocation38_spill] sm:$0xff]  ;;  %v2695_v8 = vmul.f32 %v10903_v17, %v10902_v10  ;;  %v10904_v49 = vld [vmem:[#allocation92_spill] sm:$0xff] }
 0x550   : > { %v9699_v36 = vpop.permute.xlu0 %3620  ;;  %v3301_v12 = vadd.f32 %v3293_v53, %v3213_v39  ;;  %v3273_v61 = vadd.f32 %v10896_v43, %v3201_v24  ;;  %v2718_v50 = vadd.f32 %v2714_v13, %v2674_v4  ;;  %v2623_v5 = vadd.f32 %v10899_v30, %v2519_v52  ;;  %v10905_v3 = vld [vmem:[#allocation14_spill] sm:$0xff]  ;;  %v10906_v52 = vld [vmem:[#allocation44_spill] sm:$0xff]  ;;  %v10908_v43 = vld [vmem:[#allocation57_spill] sm:$0xff] }
 0x551   : > { %v3524_v27 = vadd.f32 %v10897_v60, %v3452_v21  ;;  %v2518_v9 = vadd.f32 %v10898_v7, %v2446_v32  ;;  %v3449_v59 = vmul.f32 %v10905_v3, %v9677_v45  ;;  %v3700_v47 = vmul.f32 %v9280_v20, %v9708_v56  ;;  %v10907_v24 = vld [vmem:[#allocation30_spill] sm:$0xff] }
 0x552   : > { %v3377_v62 = vadd.f32 %v10900_v29, %v3273_v61  ;;  %v2822_v63 = vadd.f32 %v10901_v22, %v2718_v50  ;;  %v2699_v1 = vadd.f32 %v2695_v8, %v2623_v5  ;;  %v2966_v53 = vmul.f32 %v10906_v52, %v9557_v18 }
 0x553   : > { %v3767_v37 = vpop.permute.xlu1 %3766  ;;  %v3628_v23 = vadd.f32 %v9476_v57, %v3524_v27  ;;  %v2622_v16 = vadd.f32 %v10904_v49, %v2518_v9  ;;  %v2694_v57 = vmul.f32 %v10895_v55, %v10902_v10  ;;  %v10909_v9 = vld [vmem:[#allocation91_spill] sm:$0xff]  ;;  %v3701_v30 = vmul.f32 %v9276_v42, %v9708_v56 }
 0x554   : > { %v3167_v58 = vpop.permute.xlu0 %3166  ;;  %v2926_v4 = vadd.f32 %v9591_v0, %v2822_v63  ;;  %v3453_v14 = vadd.f32 %v3449_v59, %v3377_v62  ;;  %v2771_v61 = vadd.f32 %v10908_v43, %v2699_v1  ;;  %v9746_v63 = vstv %s5844_s13  ;;  %v6461_v49 = vld [vmem:[#allocation2 + $0x62] sm:$0xff]  ;;  %v10916_v43 = vld [vmem:[#allocation69_spill] sm:$0xff] }
 0x555   : > { %v9714_v35 = vadd.f32 %v3167_v58, %v9615_v40  ;;  %v3704_v28 = vadd.f32 %v3700_v47, %v3628_v23  ;;  %v2698_v0 = vadd.f32 %v2694_v57, %v2622_v16  ;;  %v10910_v58 = vld [vmem:[#allocation35_spill] sm:$0xff]  ;;  %v6460_v23 = vld [vmem:[#allocation2 + $0x6a] sm:$0xff] }
 0x556   : > { %v3525_v21 = vadd.f32 %v10907_v24, %v3453_v14  ;;  %v2970_v32 = vadd.f32 %v2966_v53, %v2926_v4  ;;  %v2875_v29 = vadd.f32 %v10910_v58, %v2771_v61  ;;  %v2967_v22 = vmul.f32 %v6460_v23, %v9557_v18  ;;  %v10912_v16 = vld [vmem:[#allocation113_spill] sm:$0xff]  ;;  %v10915_v24 = vld [vmem:[#allocation39_spill] sm:$0xff] }
 0x557   : > { %v3395_v39 = vpop.permute.xlu1 %3394  ;;  %v3776_v13 = vadd.f32 %v3765_v44, %v3704_v28  ;;  %v2946_v3 = vmul.f32 %v6461_v49, %v10912_v16  ;;  %v2947_v59 = vmul.f32 %v6460_v23, %v10912_v16  ;;  %v10913_v18 = vld [vmem:[#allocation29_spill] sm:$0xff]  ;;  %v10918_v23 = vld [vmem:[#allocation107_spill] sm:$0xff] }
 0x558   : > { %v9726_v40 = vpop.permute.xlu0 %3622  ;;  %v9729_v38 = vadd.f32 %v3395_v39, %v9660_v31  ;;  %v3629_v27 = vadd.f32 %v9543_v2, %v3525_v21  ;;  %v2770_v31 = vadd.f32 %v10909_v9, %v2698_v0  ;;  %v10911_v2 = vld [vmem:[#allocation99_spill] sm:$0xff]  ;;  %v2971_v47 = vadd.f32 %v2967_v22, %v9642_v11 }
 0x559   : > { %v3216_v39 = vmul.f32 %v10913_v18, %v9746_v63  ;;  %v2951_v28 = vadd.f32 %v2947_v59, %v2875_v29  ;;  %v3198_v9 = vmul.f32 %v10867_v48, %v10891_v19  ;;  %v10920_v48 = vld [vmem:[#allocation59_spill] sm:$0xff]  ;;  %v10921_v59 = vld [vmem:[#allocation88_spill] sm:$0xff] }
 0x55a   : > { %v2874_v10 = vadd.f32 %v10911_v2, %v2770_v31  ;;  %v3705_v17 = vadd.f32 %v3701_v30, %v3629_v27  ;;  %v3199_v31 = vmul.f32 %v10886_v46, %v10891_v19  ;;  %v10919_v2 = vld [vmem:[#allocation114_spill] sm:$0xff]  ;;  %v3450_v19 = vmul.f32 %v9200_v51, %v9677_v45 }
 0x55b   : > { %v3869_v55 = vpop.permute.xlu1 %3868  ;;  %v3023_v21 = vadd.f32 %v10915_v24, %v2951_v28 }
 0x55c   : > { %v3065_v60 = vpop.permute.xlu0 %3064  ;;  %v9736_v50 = vadd.f32 %v3869_v55, %v3776_v13  ;;  %v3777_v4 = vadd.f32 %v3767_v37, %v3705_v17  ;;  %v2950_v14 = vadd.f32 %v2946_v3, %v2874_v10  ;;  %v3220_v37 = vadd.f32 %v3216_v39, %v9688_v6  ;;  %v10917_v55 = vld [vmem:[#allocation26_spill] sm:$0xff] }
 0x55d   : > { %v3074_v7 = vadd.f32 %v3065_v60, %v2970_v32  ;;  %v3127_v60 = vadd.f32 %v10917_v55, %v3023_v21 }
 0x55e   : > { %v5881_v5 = vmul.f32 -1.442695, %v9736_v50 }
 0x55f   : > { %v3397_v44 = vpop.permute.xlu1 %3396  ;;  %v3203_v6 = vadd.f32 %v3199_v31, %v3127_v60 }
 0x560   : > { %v9743_v62 = vpop.permute.xlu0 %3538  ;;  %6321 = vpow2.f32 %v5881_v5  ;;  %v9749_v8 = vadd.f32 %v3397_v44, %v3301_v12  ;;  %v10914_v12 = vld [vmem:[#allocation17_spill] sm:$0xff] }
 0x561   : > { %v3022_v0 = vadd.f32 %v10914_v12, %v2950_v14  ;;  %v3275_v10 = vadd.f32 %v10919_v2, %v3203_v6 }
 0x563   : > { %v3871_v1 = vpop.permute.xlu1 %3870  ;;  %v3126_v61 = vadd.f32 %v10916_v43, %v3022_v0  ;;  %v3379_v46 = vadd.f32 %v10921_v59, %v3275_v10 }
 0x564   : > { %v3067_v57 = vpop.permute.xlu0 %3066  ;;  %v9756_v52 = vadd.f32 %v3871_v1, %v3777_v4 }
 0x565   : > { %v9758_v53 = vadd.f32 %v3067_v57, %v2971_v47  ;;  %v3202_v58 = vadd.f32 %v3198_v9, %v3126_v61 }
 0x566   : > { %v5882_v13 = vmul.f32 -1.442695, %v9756_v52 }
 0x567   : > { %v3313_v11 = vpop.permute.xlu1 %3312  ;;  %v3274_v22 = vadd.f32 %v10918_v23, %v3202_v58  ;;  %v3457_v23 = vstv %s5855_s25 }
 0x568   : > { %v9764_v32 = vpop.permute.xlu0 %3540  ;;  %6323 = vpow2.f32 %v5882_v13  ;;  %v9768_v27 = vadd.f32 %v3313_v11, %v3220_v37  ;;  %v3703_v13 = vmul.f32 %v9434_v34, %v9708_v56 }
 0x569   : > { %v3378_v3 = vadd.f32 %v10920_v48, %v3274_v22 }
 0x56b   : > { %v3769_v30 = vpop.permute.xlu1 %3768  ;;  %v3454_v1 = vadd.f32 %v3450_v19, %v3378_v3  ;;  %v9827_v3 = vld [vmem:[#allocation2 + $0x81] sm:$0xff] }
 0x56c   : > { %v3169_v5 = vpop.permute.xlu0 %3168  ;;  %v3459_v59 = vmul.f32 %v9827_v3, %v3457_v23 }
 0x56d   : > { %v9774_v29 = vadd.f32 %v3169_v5, %v3074_v7  ;;  %v6322_v44 = vpop.eup %6321  ;;  %v3451_v7 = vmul.f32 %v9204_v33, %v9677_v45  ;;  %v3526_v39 = vadd.f32 %v9589_v15, %v3454_v1  ;;  %v3702_v45 = vmul.f32 %v10876_v41, %v9708_v56 }
 0x56e   : > { %v3976_v17 = vadd.f32 1.0, %v6322_v44 }
 0x56f   : > { %v9778_v49 = vpop.permute.xlu1 %3314  ;;  %v3455_v57 = vadd.f32 %v3451_v7, %v3379_v46  ;;  %v3630_v24 = vadd.f32 %v9699_v36, %v3526_v39  ;;  %v3463_v7 = vadd.f32 %v3459_v59, %v9662_v25 }
 0x570   : > { %v9780_v16 = vpop.permute.xlu0 %3642  ;;  %6325 = vrcp.f32 %v3976_v17  ;;  %v9824_v17 = vld [vmem:[#allocation2 + $0x79] sm:$0xff] }
 0x571   : > { %v3527_v14 = vadd.f32 %v9634_v26, %v3455_v57  ;;  %v3706_v26 = vadd.f32 %v3702_v45, %v3630_v24  ;;  %v3458_v48 = vmul.f32 %v9824_v17, %v3457_v23  ;;  %v3551_v1 = vadd.f32 %v9764_v32, %v3463_v7 }
 0x573   : > { %v3771_v4 = vpop.permute.xlu1 %3770  ;;  %v3631_v21 = vadd.f32 %v9726_v40, %v3527_v14  ;;  %v3778_v36 = vadd.f32 %v3769_v30, %v3706_v26  ;;  %v3462_v19 = vadd.f32 %v3458_v48, %v9617_v54 }
 0x574   : > { %v9788_v47 = vpop.permute.xlu0 %3170 }
 0x575   : > { %v6324_v18 = vpop.eup %6323  ;;  %v3707_v11 = vadd.f32 %v3703_v13, %v3631_v21 }
 0x576   : > { %v3977_v28 = vadd.f32 1.0, %v6324_v18  ;;  %v3709_v18 = vstv %s5867_s14 }
 0x577   : > { %v9792_v12 = vpop.permute.xlu1 %3542  ;;  %v3779_v55 = vadd.f32 %v3771_v4, %v3707_v11  ;;  %v3550_v4 = vadd.f32 %v9743_v62, %v3462_v19  ;;  %v3711_v54 = vmul.f32 %v9276_v42, %v3709_v18  ;;  %v3710_v25 = vmul.f32 %v9280_v20, %v3709_v18 }
 0x578   : > { %v3645_v0 = vpop.permute.xlu0 %3644  ;;  %6327 = vrcp.f32 %v3977_v28 }
 0x579   : > { %v3654_v24 = vadd.f32 %v9780_v16, %v3550_v4  ;;  %v3655_v21 = vadd.f32 %v3645_v0, %v3551_v1  ;;  %v3460_v16 = vmul.f32 %v9200_v51, %v3457_v23 }
 0x57b   : > { %v9800_v37 = vpop.permute.xlu1 %3418  ;;  %v3464_v42 = vadd.f32 %v3460_v16, %v9729_v38  ;;  %v6464_v38 = vld [vmem:[#allocation2 + $0x80] sm:$0xff] }
 0x57c   : > { %v9802_v15 = vpop.permute.xlu0 %3416  ;;  %v3217_v7 = vmul.f32 %v6464_v38, %v9746_v63  ;;  %v3719_v38 = vstv %s9872_s16 }
 0x57d   : > { %v6326_v43 = vpop.eup %6325 }
 0x57e   : > { %v9805_v61 = vmul.f32 %v6326_v43, %v9736_v50  ;;  %v3715_v43 = vadd.f32 %v3711_v54, %v3655_v21 }
 0x57f   : > { %v3875_v40 = vpop.permute.xlu1 %3874 }
 0x580   : > { %v3873_v60 = vpop.permute.xlu0 %3872  ;;  %v5897_v9 = vmul.f32 -1.442695, %v9805_v61  ;;  %v9808_v31 = vadd.f32 %v3875_v40, %v3779_v55 }
 0x581   : > { %v9810_v56 = vadd.f32 %v3873_v60, %v3778_v36  ;;  %v3714_v36 = vadd.f32 %v3710_v25, %v3654_v24 }
 0x582   : > { %6329 = vpow2.f32 %v5897_v9  ;;  %v5884_v5 = vmul.f32 -1.442695, %v9808_v31 }
 0x583   : > { %v5883_v58 = vmul.f32 -1.442695, %v9810_v56  ;;  %v3647_v6 = vpop.permute.xlu1 %3646 }
 0x584   : > { %v9814_v44 = vpop.permute.xlu0 %3544  ;;  %6331 = vpow2.f32 %v5884_v5 }
 0x585   : > { %v6328_v50 = vpop.eup %6327  ;;  %6333 = vpow2.f32 %v5883_v58 }
 0x586   : > { %v9817_v30 = vmul.f32 %v6328_v50, %v9756_v52  ;;  %v3461_v50 = vmul.f32 %v9204_v33, %v3457_v23  ;;  %v3712_v23 = vmul.f32 %v10876_v41, %v3709_v18  ;;  %v3713_v41 = vmul.f32 %v9434_v34, %v3709_v18 }
 0x587   : > { %v9819_v22 = vpop.permute.xlu1 %3318 }
 0x588   : > { %v9821_v2 = vpop.permute.xlu0 %3316  ;;  %v5898_v10 = vmul.f32 -1.442695, %v9817_v30  ;;  %v3465_v19 = vadd.f32 %v3461_v50, %v9749_v8 }
 0x58a   : > { %6335 = vpow2.f32 %v5898_v10  ;;  %v3552_v10 = vadd.f32 %v9792_v12, %v3464_v42  ;;  %v3553_v33 = vadd.f32 %v9814_v44, %v3465_v19 }
 0x58b   : > { %v3793_v46 = vpop.permute.xlu1 %3792 }
 0x58c   : > { %v3791_v52 = vpop.permute.xlu0 %3790  ;;  %v3803_v0 = vadd.f32 %v3793_v46, %v3715_v43  ;;  %v6465_v43 = vld [vmem:[#allocation2 + $0x90] sm:$0xff] }
 0x58d   : > { %v3802_v55 = vadd.f32 %v3791_v52, %v3714_v36  ;;  %v3656_v52 = vadd.f32 %v3647_v6, %v3552_v10 }
 0x58f   : > { %v6330_v57 = vpop.eup %6329  ;;  %v9834_v39 = vpop.permute.xlu1 %3564  ;;  %v3716_v24 = vadd.f32 %v3712_v23, %v3656_v52 }
 0x590   : > { %v3649_v14 = vpop.permute.xlu0 %3648  ;;  %v4088_v28 = vadd.f32 1.0, %v6330_v57 }
 0x591   : > { %v6332_v45 = vpop.eup %6331  ;;  %v3657_v6 = vadd.f32 %v3649_v14, %v3553_v33 }
 0x592   : > { %v6334_v13 = vpop.eup %6333  ;;  %6337 = vrcp.f32 %v4088_v28  ;;  %v3979_v26 = vadd.f32 1.0, %v6332_v45  ;;  %v3221_v28 = vadd.f32 %v3217_v7, %v9714_v35  ;;  %v3467_v35 = vstv %s5856_s15 }
 0x593   : > { %v3978_v62 = vadd.f32 1.0, %v6334_v13  ;;  %v9839_v11 = vpop.permute.xlu1 %3422  ;;  %v3717_v25 = vadd.f32 %v3713_v41, %v3657_v6  ;;  %v3468_v10 = vmul.f32 %v9824_v17, %v3467_v35 }
 0x594   : > { %v9841_v32 = vpop.permute.xlu0 %3420  ;;  %6339 = vrcp.f32 %v3979_v26  ;;  %v3325_v45 = vadd.f32 %v9778_v49, %v3221_v28  ;;  %v3179_v26 = vadd.f32 %v9788_v47, %v9758_v53  ;;  %v3219_v53 = vmul.f32 %v6465_v43, %v9746_v63 }
 0x595   : > { %6341 = vrcp.f32 %v3978_v62  ;;  %v3469_v47 = vmul.f32 %v9827_v3, %v3467_v35  ;;  %v6466_v3 = vld [vmem:[#allocation2 + $0x88] sm:$0xff]  ;;  %v3723_v43 = vmul.f32 %v9434_v34, %v3719_v38 }
 0x596   : > { %v3429_v49 = vadd.f32 %v9800_v37, %v3325_v45  ;;  %v3428_v37 = vadd.f32 %v9802_v15, %v9768_v27  ;;  %v3218_v50 = vmul.f32 %v6466_v3, %v9746_v63  ;;  %v6471_v3 = vld [vmem:[#allocation2 + $0x8a] sm:$0xff] }
 0x597   : > { %v6336_v40 = vpop.eup %6335  ;;  %v3897_v60 = vpop.permute.xlu1 %3896  ;;  %v3722_v34 = vmul.f32 %v6471_v3, %v3719_v38 }
 0x598   : > { %v3895_v9 = vpop.permute.xlu0 %3894  ;;  %v4089_v5 = vadd.f32 1.0, %v6336_v40  ;;  %v9845_v20 = vadd.f32 %v3897_v60, %v3803_v0  ;;  %v3223_v0 = vadd.f32 %v3219_v53, %v3179_v26  ;;  %v3472_v52 = vadd.f32 %v3468_v10, %v3428_v37 }
 0x599   : > { %v9847_v58 = vadd.f32 %v3895_v9, %v3802_v55  ;;  %v3473_v9 = vadd.f32 %v3469_v47, %v3429_v49 }
 0x59a   : > { %6343 = vrcp.f32 %v4089_v5  ;;  %v5886_v48 = vmul.f32 -1.442695, %v9845_v20  ;;  %v3327_v27 = vadd.f32 %v9819_v22, %v3223_v0  ;;  %v3576_v22 = vadd.f32 %v9834_v39, %v3472_v52 }
 0x59b   : > { %v5885_v51 = vmul.f32 -1.442695, %v9847_v58  ;;  %v3795_v59 = vpop.permute.xlu1 %3794 }
 0x59c   : > { %v3567_v46 = vpop.permute.xlu0 %3566  ;;  %6345 = vpow2.f32 %v5886_v48  ;;  %v3804_v44 = vadd.f32 %v3795_v59, %v3716_v24  ;;  %v3431_v63 = vadd.f32 %v9839_v11, %v3327_v27 }
 0x59d   : > { %6347 = vpow2.f32 %v5885_v51  ;;  %v3577_v51 = vadd.f32 %v3567_v46, %v3473_v9  ;;  %v6467_v46 = vld [vmem:[#allocation2 + $0x91] sm:$0xff] }
 0x59f   : > { %v6338_v12 = vpop.eup %6337  ;;  %v3797_v4 = vpop.permute.xlu1 %3796 }
 0x5a0   : > { %v9857_v1 = vpop.permute.xlu0 %3668  ;;  %v4100_v57 = vmul.f32 %v6338_v12, %v9805_v61  ;;  %v3471_v12 = vmul.f32 %v6467_v46, %v3467_v35 }
 0x5a1   : > { %v6340_v8 = vpop.eup %6339  ;;  %v3680_v28 = vadd.f32 %v9857_v1, %v3576_v22 }
 0x5a2   : > { %v6342_v21 = vpop.eup %6341  ;;  %v9863_v13 = vmul.f32 %v6340_v8, %v9808_v31  ;;  %6133 = vmatprep.mubr.msk.f32.mxu0 %vm4172_vm4, %v4100_v57  ;;  %v3475_v8 = vadd.f32 %v3471_v12, %v3431_v63 }
 0x5a3   : > { %v9870_v61 = vmul.f32 %v6342_v21, %v9810_v56  ;;  %v3899_v14 = vpop.permute.xlu1 %3898  ;;  %v3805_v56 = vadd.f32 %v3797_v4, %v3717_v25  ;;  %v6468_v4 = vld [vmem:[#allocation2 + $0x82] sm:$0xff] }
 0x5a4   : > { %v3671_v54 = vpop.permute.xlu0 %3670  ;;  %v5900_v31 = vmul.f32 -1.442695, %v9863_v13  ;;  %v9876_v62 = vadd.f32 %v3899_v14, %v3804_v44  ;;  %v3721_v57 = vmul.f32 %v6468_v4, %v3719_v38  ;;  %v6469_v21 = vld [vmem:[#allocation2 + $0x89] sm:$0xff]  ;;  %v6470_v44 = vld [vmem:[#allocation2 + $0x7a] sm:$0xff] }
 0x5a5   : > { %v5899_v18 = vmul.f32 -1.442695, %v9870_v61  ;;  %v3681_v17 = vadd.f32 %v3671_v54, %v3577_v51  ;;  %v3470_v45 = vmul.f32 %v6469_v21, %v3467_v35 }
 0x5a6   : > { %6349 = vpow2.f32 %v5900_v31  ;;  %v5887_v36 = vmul.f32 -1.442695, %v9876_v62 }
 0x5a7   : > { %v6344_v16 = vpop.eup %6343  ;;  %6351 = vpow2.f32 %v5899_v18  ;;  %v3901_v55 = vpop.permute.xlu1 %3900  ;;  %v3725_v11 = vadd.f32 %v3721_v57, %v3681_v17 }
 0x5a8   : > { %v3569_v40 = vpop.permute.xlu0 %3568  ;;  %v4101_v60 = vmul.f32 %v6344_v16, %v9817_v30  ;;  %6353 = vpow2.f32 %v5887_v36  ;;  %v9885_v5 = vadd.f32 %v3901_v55, %v3805_v56  ;;  %v3222_v30 = vadd.f32 %v3218_v50, %v9774_v29 }
 0x5a9   : > { %v6346_v42 = vpop.eup %6345 }
 0x5aa   : > { %v6348_v48 = vpop.eup %6347  ;;  %v4005_v15 = vadd.f32 1.0, %v6346_v42  ;;  %v5888_v59 = vmul.f32 -1.442695, %v9885_v5  ;;  %6134 = vmatmul.mubr.msk.f32.gmra.mxu0 %vm4172_vm4, %v4101_v60  ;;  %v3326_v23 = vadd.f32 %v9821_v2, %v3222_v30  ;;  %v3720_v2 = vmul.f32 %v6470_v44, %v3719_v38 }
 0x5ab   : > { %v4004_v19 = vadd.f32 1.0, %v6348_v48  ;;  %v3817_v7 = vpop.permute.xlu1 %3816 }
 0x5ac   : > { %v3571_v33 = vpop.permute.xlu0 %3570  ;;  %6355 = vrcp.f32 %v4005_v15  ;;  %v3430_v29 = vadd.f32 %v9841_v32, %v3326_v23  ;;  %v3724_v54 = vadd.f32 %v3720_v2, %v3680_v28 }
 0x5ad   : > { %6357 = vrcp.f32 %v4004_v19  ;;  %v3579_v41 = vadd.f32 %v3571_v33, %v3475_v8 }
 0x5ae   : > { %6359 = vpow2.f32 %v5888_v59  ;;  %v3474_v14 = vadd.f32 %v3470_v45, %v3430_v29  ;;  %v3828_v35 = vadd.f32 %v3817_v7, %v3724_v54 }
 0x5af   : > { %v3819_v6 = vpop.permute.xlu1 %3818 }
 0x5b0   : > { %v3673_v24 = vpop.permute.xlu0 %3672  ;;  %v3829_v39 = vadd.f32 %v3819_v6, %v3725_v11  ;;  %v3578_v56 = vadd.f32 %v3569_v40, %v3474_v14 }
 0x5b2   : > { %v3682_v0 = vadd.f32 %v3673_v24, %v3578_v56 }
 0x5b3   : > { %v6350_v26 = vpop.eup %6349  ;;  %v3923_v49 = vpop.permute.xlu1 %3922 }
 0x5b4   : > { %v3675_v31 = vpop.permute.xlu0 %3674  ;;  %v6352_v25 = vpop.eup %6351  ;;  %v4091_v18 = vadd.f32 1.0, %v6350_v26  ;;  %v9899_v32 = vadd.f32 %v3923_v49, %v3829_v39  ;;  %v3726_v59 = vadd.f32 %v3722_v34, %v3682_v0 }
 0x5b5   : > { %v3683_v1 = vadd.f32 %v3675_v31, %v3579_v41  ;;  %v6354_v53 = vpop.eup %6353  ;;  %v4090_v47 = vadd.f32 1.0, %v6352_v25 }
 0x5b6   : > { %6361 = vrcp.f32 %v4091_v18  ;;  %v4006_v36 = vadd.f32 1.0, %v6354_v53  ;;  %v5890_v16 = vmul.f32 -1.442695, %v9899_v32 }
 0x5b7   : > { %v3727_v37 = vadd.f32 %v3723_v43, %v3683_v1  ;;  %6363 = vrcp.f32 %v4090_v47  ;;  %v3823_v55 = vpop.permute.xlu1 %3822 }
 0x5b8   : > { %v3921_v60 = vpop.permute.xlu0 %3920  ;;  %6365 = vrcp.f32 %v4006_v36 }
 0x5b9   : > { %v9903_v9 = vadd.f32 %v3921_v60, %v3828_v35  ;;  %v6356_v42 = vpop.eup %6355  ;;  %6367 = vpow2.f32 %v5890_v16  ;;  %v3831_v10 = vadd.f32 %v3823_v55, %v3727_v37 }
 0x5ba   : > { %v6358_v50 = vpop.eup %6357  ;;  %v9906_v40 = vmul.f32 %v6356_v42, %v9845_v20 }
 0x5bb   : > { %v5889_v48 = vmul.f32 -1.442695, %v9903_v9  ;;  %v6360_v27 = vpop.eup %6359  ;;  %v9910_v15 = vmul.f32 %v6358_v50, %v9847_v58  ;;  %v3927_v51 = vpop.permute.xlu1 %3926 }
 0x5bc   : > { %v3821_v30 = vpop.permute.xlu0 %3820  ;;  %v5902_v52 = vmul.f32 -1.442695, %v9906_v40  ;;  %v4007_v19 = vadd.f32 1.0, %v6360_v27  ;;  %v3935_v7 = vadd.f32 %v3927_v51, %v3831_v10 }
 0x5bd   : > { %6369 = vpow2.f32 %v5889_v48  ;;  %v5901_v38 = vmul.f32 -1.442695, %v9910_v15  ;;  %v3830_v33 = vadd.f32 %v3821_v30, %v3726_v59 }
 0x5be   : > { %6371 = vpow2.f32 %v5902_v52  ;;  %v5892_v20 = vmul.f32 -1.442695, %v3935_v7 }
 0x5bf   : > { %6373 = vpow2.f32 %v5901_v38 }
 0x5c0   : > { %v3925_v63 = vpop.permute.xlu0 %3924  ;;  %6375 = vrcp.f32 %v4007_v19 }
 0x5c1   : > { %v3934_v17 = vadd.f32 %v3925_v63, %v3830_v33  ;;  %6377 = vpow2.f32 %v5892_v20 }
 0x5c3   : > { %v5891_v58 = vmul.f32 -1.442695, %v3934_v17  ;;  %v6362_v23 = vpop.eup %6361 }
 0x5c4   : > { %v6364_v22 = vpop.eup %6363  ;;  %v4103_v46 = vmul.f32 %v6362_v23, %v9863_v13  ;;  %v4164_v23 = vld [vmem:[#allocation8] sm:$0xff] }
 0x5c5   : > { %6379 = vpow2.f32 %v5891_v58  ;;  %v6366_v12 = vpop.eup %6365  ;;  %v4102_v4 = vmul.f32 %v6364_v22, %v9870_v61  ;;  %6159 = vmatprep.mubr.msk.f32.mxu1 %vm4172_vm4, %v4164_v23 }
 0x5c6   : > { %v6368_v57 = vpop.eup %6367  ;;  %v4018_v29 = vmul.f32 %v6366_v12, %v9876_v62  ;;  %v9934_v12 = vld [vmem:[#allocation8 + $0x8] sm:$0xff] }
 0x5c7   : > { %v4033_v28 = vadd.f32 1.0, %v6368_v57  ;;  %6136 = vmatprep.mubr.msk.f32.mxu0 %vm4172_vm4, %v4102_v4  ;;  %v9938_v4 = vld [vmem:[#allocation8 + $0x10] sm:$0xff]  ;;  %v9942_v57 = vld [vmem:[#allocation8 + $0x18] sm:$0xff] }
 0x5c8   : > { %v5903_v6 = vmul.f32 -1.442695, %v4018_v29  ;;  %6137 = vmatmul.mubr.msk.f32.gmra.mxu0 %vm4172_vm4, %v4103_v46 }
 0x5c9   : > { %6381 = vrcp.f32 %v4033_v28  ;;  %v4169_v28 = vld [vmem:[#allocation8 + $0x28] sm:$0xff] }
 0x5ca   : > { %v6370_v24 = vpop.eup %6369  ;;  %6383 = vpow2.f32 %v5903_v6  ;;  %v4170_v6 = vld [vmem:[#allocation8 + $0x30] sm:$0xff] }
 0x5cb   : > { %v4032_v8 = vadd.f32 1.0, %v6370_v24  ;;  %v6372_v11 = vpop.eup %6371  ;;  %v4171_v24 = vld [vmem:[#allocation8 + $0x38] sm:$0xff] }
 0x5cc   : > { %v6374_v21 = vpop.eup %6373  ;;  %v4117_v13 = vadd.f32 1.0, %v6372_v11 }
 0x5cd   : > { %6385 = vrcp.f32 %v4032_v8  ;;  %v6376_v45 = vpop.eup %6375  ;;  %v4116_v44 = vadd.f32 1.0, %v6374_v21 }
 0x5ce   : > { %v6378_v61 = vpop.eup %6377  ;;  %6387 = vrcp.f32 %v4117_v13  ;;  %v4019_v62 = vmul.f32 %v6376_v45, %v9885_v5 }
 0x5cf   : > { %6389 = vrcp.f32 %v4116_v44  ;;  %v4035_v2 = vadd.f32 1.0, %v6378_v61 }
 0x5d0   : > { %v5904_v41 = vmul.f32 -1.442695, %v4019_v62 }
 0x5d1   : > { %6391 = vrcp.f32 %v4035_v2 }
 0x5d2   : > { %v6380_v39 = vpop.eup %6379  ;;  %6393 = vpow2.f32 %v5904_v41 }
 0x5d3   : > { %v4034_v26 = vadd.f32 1.0, %v6380_v39 }
 0x5d5   : > { %6395 = vrcp.f32 %v4034_v26 }
 0x5d6   : > { %v6382_v14 = vpop.eup %6381 }
 0x5d7   : > { %v6384_v54 = vpop.eup %6383  ;;  %v4045_v49 = vmul.f32 %v6382_v14, %v9899_v32 }
 0x5d8   : > { %v4118_v31 = vadd.f32 1.0, %v6384_v54 }
 0x5d9   : > { %v5906_v18 = vmul.f32 -1.442695, %v4045_v49 }
 0x5da   : > { %v6386_v25 = vpop.eup %6385  ;;  %6397 = vrcp.f32 %v4118_v31 }
 0x5db   : > { %v4044_v1 = vmul.f32 %v6386_v25, %v9903_v9  ;;  %v6388_v43 = vpop.eup %6387  ;;  %6399 = vpow2.f32 %v5906_v18 }
 0x5dc   : > { %v6390_v5 = vpop.eup %6389  ;;  %v4129_v53 = vmul.f32 %v6388_v43, %v9906_v40 }
 0x5dd   : > { %v5905_v47 = vmul.f32 -1.442695, %v4044_v1  ;;  %v4128_v56 = vmul.f32 %v6390_v5, %v9910_v15 }
 0x5de   : > { %v6392_v35 = vpop.eup %6391 }
 0x5df   : > { %6401 = vpow2.f32 %v5905_v47  ;;  %v6394_v36 = vpop.eup %6393  ;;  %v4047_v16 = vmul.f32 %v6392_v35, %v3935_v7  ;;  %6139 = vmatprep.mubr.msk.f32.mxu0 %vm4172_vm4, %v4128_v56 }
 0x5e0   : > { %v4119_v32 = vadd.f32 1.0, %v6394_v36  ;;  %6140 = vmatmul.mubr.msk.f32.gmra.mxu0 %vm4172_vm4, %v4129_v53 }
 0x5e1   : > { %v5908_v0 = vmul.f32 -1.442695, %v4047_v16 }
 0x5e2   : > { %v6396_v37 = vpop.eup %6395  ;;  %6403 = vrcp.f32 %v4119_v32  ;;  %v6129_v63 = vpop.f32.mrf.mxu0  ;;  %v6595_v32 = vmov 1983009808  }
 0x5e3   : > { %v4046_v55 = vmul.f32 %v6396_v37, %v3934_v17  ;;  %6405 = vpow2.f32 %v5908_v0  ;;  %v4813_v37 = vunpack.c.l.s4 %v6595_v32  ;;  %v4815_v0 = vlaneseq }
 0x5e4   : > { %v4287_v58 = vpop.f32.mrf.mxu0 }
 0x5e5   : > { %v5907_v60 = vmul.f32 -1.442695, %v4046_v55 }
 0x5e7   : > { %6407 = vpow2.f32 %v5907_v60  ;;  %v6398_v9 = vpop.eup %6397  ;;  %v4814_v60 = vunpack.c.0.s8 %v4813_v37 }
 0x5e8   : > { %v6400_v42 = vpop.eup %6399  ;;  %v4130_v3 = vmul.f32 %v6398_v9, %v4018_v29  ;;  %v9946_v29 = vld [vmem:[#allocation8 + $0x20] sm:$0xff]  ;;  %v4816_v9 = vshrl.u32 %v4815_v0, 7 }
 0x5e9   : > { %v4145_v34 = vadd.f32 1.0, %v6400_v42 }
 0x5ea   : > { %6142 = vmatprep.mubr.msk.f32.mxu0 %vm4172_vm4, %v4130_v3 }
 0x5eb   : > { %6409 = vrcp.f32 %v4145_v34  ;;  %v6596_v34 = vmov 1934713408  }
 0x5ec   : > { %v6402_v50 = vpop.eup %6401 }
 0x5ed   : > { %v4144_v40 = vadd.f32 1.0, %v6402_v50  ;;  %v4845_v50 = vunpack.c.l.s4 %v6596_v34 }
 0x5ef   : > { %6411 = vrcp.f32 %v4144_v40  ;;  %v6404_v10 = vpop.eup %6403 }
 0x5f0   : > { %v6406_v48 = vpop.eup %6405  ;;  %v4131_v27 = vmul.f32 %v6404_v10, %v4019_v62  ;;  %v10014_v10 = vsub.s32 %v4814_v60, %v4816_v9 }
 0x5f1   : > { %v4147_v15 = vadd.f32 1.0, %v6406_v48 }
 0x5f2   : > { %6143 = vmatmul.mubr.msk.f32.gmra.mxu0 %vm4172_vm4, %v4131_v27  ;;  %v4846_v27 = vunpack.c.0.s8 %v4845_v50 }
 0x5f3   : > { %6413 = vrcp.f32 %v4147_v15 }
 0x5f4   : > { %v6408_v51 = vpop.eup %6407 }
 0x5f5   : > { %v4146_v59 = vadd.f32 1.0, %v6408_v51 }
 0x5f7   : > { %6415 = vrcp.f32 %v4146_v59 }
 0x5f8   : > { %v6410_v30 = vpop.eup %6409 }
 0x5f9   : > { %v4157_v7 = vmul.f32 %v6410_v30, %v4045_v49 }
 0x5fc   : > { %v6412_v52 = vpop.eup %6411 }
 0x5fd   : > { %v4156_v19 = vmul.f32 %v6412_v52, %v4044_v1 }
 0x5ff   : > { %6145 = vmatprep.mubr.msk.f32.mxu0 %vm4172_vm4, %v4156_v19  ;;  %v10018_v19 = vsub.s32 %v4846_v27, %v4816_v9 }
 0x600   : > { %6146 = vmatmul.mubr.msk.f32.gmra.mxu0 %vm4172_vm4, %v4157_v7  ;;  %v6414_v38 = vpop.eup %6413 }
 0x601   : > { %v4159_v17 = vmul.f32 %v6414_v38, %v4047_v16 }
 0x604   : > { %v6416_v20 = vpop.eup %6415 }
 0x605   : > { %v4158_v33 = vmul.f32 %v6416_v20, %v4046_v55 }
 0x607   : > { %6148 = vmatprep.mubr.msk.f32.mxu0 %vm4172_vm4, %v4158_v33 }
 0x608   : > { %6149 = vmatmul.mubr.msk.f32.gmra.mxu0 %vm4172_vm4, %v4159_v17 }
 0x609   : > { %6199 = vmatprep.mubr.msk.f32.mxu0 %vm4172_vm4, %v4164_v23 }
 0x60a   : > { %v6132_v22 = vpop.f32.mrf.mxu0 }
 0x60b   : > { %6151 = vmatprep.subr.mxu1 %v6132_v22 }
 0x60c   : > { %v4297_v46 = vpop.f32.mrf.mxu0  ;;  %6152 = vmatpush3.msra.mxu1 %v6132_v22 }
 0x60d   : > { %6153 = vmatprep.subr.mxu1 %v4297_v46 }
 0x60e   : > { %6154 = vmatpush3.msra.mxu1 %v4297_v46 }
 0x60f   : > { %6155 = vmatprep.subr.mxu1 %v6129_v63 }
 0x610   : > { %6156 = vmatpush3.msra.mxu1 %v6129_v63 }
 0x611   : > { %6157 = vmatprep.subr.mxu1 %v4287_v58 }
 0x612   : > { %6158 = vmatpush3.msra.mxu1 %v4287_v58 }
 0x613   : > { %6160 = vmatmul.mubr.msk.f32.vlgmr.msra.gmra.mxu1 %vm4172_vm4, %v9934_v12 }
 0x614   : > { %6162 = vmatprep.mubr.msk.f32.mxu1 %vm4172_vm4, %v9938_v4 }
 0x617   : > { %6163 = vmatmul.mubr.msk.f32.gmra.mxu1 %vm4172_vm4, %v9942_v57 }
 0x618   : > { %6165 = vmatprep.mubr.msk.f32.mxu1 %vm4172_vm4, %v9946_v29 }
 0x61b   : > { %6166 = vmatmul.mubr.msk.f32.gmra.mxu1 %vm4172_vm4, %v4169_v28 }
 0x61c   : > { %6168 = vmatprep.mubr.msk.f32.mxu1 %vm4172_vm4, %v4170_v6 }
 0x61f   : > { %6169 = vmatmul.mubr.msk.f32.gmra.mxu1 %vm4172_vm4, %v4171_v24 }
 0x620   : > { %6179 = vmatprep.mubr.msk.f32.mxu1 %vm4172_vm4, %v4164_v23 }
 0x66a   : > { %v6135_v8 = vpop.f32.mrf.mxu0 }
 0x66c   : > { %v4307_v11 = vpop.f32.mrf.mxu0 }
 0x688   : > { %v6138_v21 = vpop.f32.mrf.mxu0 }
 0x689   : > { %6171 = vmatprep.subr.mxu1 %v6138_v21 }
 0x68a   : > { %v4317_v13 = vpop.f32.mrf.mxu0  ;;  %6172 = vmatpush3.msra.mxu1 %v6138_v21 }
 0x68b   : > { %6173 = vmatprep.subr.mxu1 %v4317_v13 }
 0x68c   : > { %6174 = vmatpush3.msra.mxu1 %v4317_v13 }
 0x68d   : > { %6175 = vmatprep.subr.mxu1 %v6135_v8 }
 0x68e   : > { %6176 = vmatpush3.msra.mxu1 %v6135_v8 }
 0x68f   : > { %6177 = vmatprep.subr.mxu1 %v4307_v11 }
 0x690   : > { %6178 = vmatpush3.msra.mxu1 %v4307_v11 }
 0x691   : > { %6180 = vmatmul.mubr.msk.f32.vlgmr.msra.gmra.mxu1 %vm4172_vm4, %v9934_v12 }
 0x692   : > { %6182 = vmatprep.mubr.msk.f32.mxu1 %vm4172_vm4, %v9938_v4 }
 0x695   : > { %6183 = vmatmul.mubr.msk.f32.gmra.mxu1 %vm4172_vm4, %v9942_v57 }
 0x696   : > { %6185 = vmatprep.mubr.msk.f32.mxu1 %vm4172_vm4, %v9946_v29 }
 0x699   : > { %6186 = vmatmul.mubr.msk.f32.gmra.mxu1 %vm4172_vm4, %v4169_v28 }
 0x69a   : > { %6188 = vmatprep.mubr.msk.f32.mxu1 %vm4172_vm4, %v4170_v6 }
 0x69d   : > { %6189 = vmatmul.mubr.msk.f32.gmra.mxu1 %vm4172_vm4, %v4171_v24 }
 0x69e   : > { %6219 = vmatprep.mubr.msk.f32.mxu1 %vm4172_vm4, %v4164_v23 }
 0x6a0   : > { %v6141_v45 = vpop.f32.mrf.mxu0 }
 0x6a2   : > { %v4327_v44 = vpop.f32.mrf.mxu0 }
 0x6b2   : > { %v6144_v61 = vpop.f32.mrf.mxu0 }
 0x6b3   : > { %6191 = vmatprep.subr.mxu0 %v6144_v61 }
 0x6b4   : > { %v4337_v62 = vpop.f32.mrf.mxu0  ;;  %6192 = vmatpush3.msra.mxu0 %v6144_v61 }
 0x6b5   : > { %6193 = vmatprep.subr.mxu0 %v4337_v62 }
 0x6b6   : > { %6194 = vmatpush3.msra.mxu0 %v4337_v62 }
 0x6b7   : > { %6195 = vmatprep.subr.mxu0 %v6141_v45 }
 0x6b8   : > { %6196 = vmatpush3.msra.mxu0 %v6141_v45 }
 0x6b9   : > { %6197 = vmatprep.subr.mxu0 %v4327_v44 }
 0x6ba   : > { %6198 = vmatpush3.msra.mxu0 %v4327_v44 }
 0x6bb   : > { %6200 = vmatmul.mubr.msk.f32.vlgmr.msra.gmra.mxu0 %vm4172_vm4, %v9934_v12 }
 0x6bc   : > { %6202 = vmatprep.mubr.msk.f32.mxu0 %vm4172_vm4, %v9938_v4 }
 0x6bf   : > { %6203 = vmatmul.mubr.msk.f32.gmra.mxu0 %vm4172_vm4, %v9942_v57 }
 0x6c0   : > { %6205 = vmatprep.mubr.msk.f32.mxu0 %vm4172_vm4, %v9946_v29  ;;  %v6147_v2 = vpop.f32.mrf.mxu0 }
 0x6c2   : > { %v4347_v41 = vpop.f32.mrf.mxu0 }
 0x6c3   : > { %6206 = vmatmul.mubr.msk.f32.gmra.mxu0 %vm4172_vm4, %v4169_v28 }
 0x6c4   : > { %6208 = vmatprep.mubr.msk.f32.mxu0 %vm4172_vm4, %v4170_v6 }
 0x6c7   : > { %6209 = vmatmul.mubr.msk.f32.gmra.mxu0 %vm4172_vm4, %v4171_v24 }
 0x6c8   : > { %v6150_v39 = vpop.f32.mrf.mxu0 }
 0x6c9   : > { %6211 = vmatprep.subr.mxu1 %v6150_v39 }
 0x6ca   : > { %v4357_v26 = vpop.f32.mrf.mxu0  ;;  %6212 = vmatpush3.msra.mxu1 %v6150_v39 }
 0x6cb   : > { %6213 = vmatprep.subr.mxu1 %v4357_v26 }
 0x6cc   : > { %6214 = vmatpush3.msra.mxu1 %v4357_v26 }
 0x6cd   : > { %6215 = vmatprep.subr.mxu1 %v6147_v2 }
 0x6ce   : > { %6216 = vmatpush3.msra.mxu1 %v6147_v2 }
 0x6cf   : > { %6217 = vmatprep.subr.mxu1 %v4347_v41 }
 0x6d0   : > { %6218 = vmatpush3.msra.mxu1 %v4347_v41 }
 0x6d1   : > { %6220 = vmatmul.mubr.msk.f32.vlgmr.msra.gmra.mxu1 %vm4172_vm4, %v9934_v12 }
 0x6d2   : > { %6222 = vmatprep.mubr.msk.f32.mxu1 %vm4172_vm4, %v9938_v4 }
 0x6d3   : > { %v6161_v14 = vpop.f32.mrf.mxu1 }
 0x6d5   : > { %6223 = vmatmul.mubr.msk.f32.gmra.mxu1 %vm4172_vm4, %v9942_v57  ;;  %v9988_v54 = vpop.f32.mrf.mxu1 }
 0x6d6   : > { %6225 = vmatprep.mubr.msk.f32.mxu1 %vm4172_vm4, %v9946_v29 }
 0x6d7   : > { %v9990_v49 = vpop.f32.mrf.mxu1 }
 0x6d9   : > { %6226 = vmatmul.mubr.msk.f32.gmra.mxu1 %vm4172_vm4, %v4169_v28  ;;  %v9992_v31 = vpop.f32.mrf.mxu1 }
 0x6da   : > { %6228 = vmatprep.mubr.msk.f32.mxu1 %vm4172_vm4, %v4170_v6 }
 0x6db   : > { %v9994_v25 = vpop.f32.mrf.mxu1 }
 0x6dd   : > { %6229 = vmatmul.mubr.msk.f32.gmra.mxu1 %vm4172_vm4, %v4171_v24  ;;  %v9996_v18 = vpop.f32.mrf.mxu1  ;;  %v10922_v24 = vmov 0.0  }
 0x6df   : > { %v9998_v1 = vpop.f32.mrf.mxu1 }
 0x6e1   : > { %v10000_v43 = vpop.f32.mrf.mxu1 }
 0x751   : > { %v6181_v5 = vpop.f32.mrf.mxu1 }
 0x753   : > { %v4561_v53 = vpop.f32.mrf.mxu1 }
 0x755   : > { %v10002_v47 = vpop.f32.mrf.mxu1 }
 0x757   : > { %v10004_v56 = vpop.f32.mrf.mxu1 }
 0x759   : > { %v10006_v35 = vpop.f32.mrf.mxu1 }
 0x75b   : > { %v10008_v36 = vpop.f32.mrf.mxu1 }
 0x75d   : > { %v10010_v16 = vpop.f32.mrf.mxu1 }
 0x75f   : > { %v10012_v55 = vpop.f32.mrf.mxu1 }
 0x77b   : > { %v6201_v3 = vpop.f32.mrf.mxu0 }
 0x77c   : > { %v4878_v48 = vcombine.low %v6161_v14, %v6201_v3  ;;  %v4879_v52 = vcombine.high %v6161_v14, %v6201_v3 }
 0x77d   : > { %v4666_v20 = vpop.f32.mrf.mxu0 }
 0x77e   : > { %v4886_v51 = vrot.slane %v4878_v48, %v10014_v10  ;;  %v4893_v17 = vrot.slane %v4879_v52, %v10014_v10  ;;  %v4810_v58 = vcombine.low %v9988_v54, %v4666_v20  ;;  %v4811_v28 = vcombine.high %v9988_v54, %v4666_v20 }
 0x77f   : > { %v6204_v21 = vpop.f32.mrf.mxu0 }
 0x780   : > { %v4818_v6 = vrot.slane %v4810_v58, %v10014_v10  ;;  %v4825_v41 = vrot.slane %v4811_v28, %v10014_v10  ;;  %v5014_v39 = vcombine.low %v9990_v49, %v6204_v21  ;;  %v5015_v9 = vcombine.high %v9990_v49, %v6204_v21 }
 0x791   : > { %v6221_v42 = vpop.f32.mrf.mxu1 }
 0x792   : > { %v4894_v40 = vcombine.low %v6181_v5, %v6221_v42  ;;  %v4895_v59 = vcombine.high %v6181_v5, %v6221_v42  ;;  %v4676_v42 = vpop.f32.mrf.mxu0 }
 0x793   : > { %v4771_v30 = vpop.f32.mrf.mxu1 }
 0x794   : > { %v4902_v15 = vrot.slane %v4894_v40, %v10014_v10  ;;  %v4909_v33 = vrot.slane %v4895_v59, %v10014_v10  ;;  %v4826_v63 = vcombine.low %v4561_v53, %v4771_v30  ;;  %v4827_v12 = vcombine.high %v4561_v53, %v4771_v30 }
 0x795   : > { %v6224_v29 = vpop.f32.mrf.mxu1  ;;  %v4946_v59 = vcombine.low %v9992_v31, %v4676_v42 }
 0x796   : > { %v4910_v7 = vcombine.low %v4886_v51, %v4902_v15  ;;  %v4911_v38 = vcombine.high %v4886_v51, %v4902_v15  ;;  %v4927_v46 = vcombine.high %v4893_v17, %v4909_v33  ;;  %v4834_v4 = vrot.slane %v4826_v63, %v10014_v10 }
 0x797   : > { %v4926_v57 = vcombine.low %v4893_v17, %v4909_v33  ;;  %v4841_v45 = vrot.slane %v4827_v12, %v10014_v10  ;;  %v5030_v61 = vcombine.low %v10002_v47, %v6224_v29  ;;  %v5031_v26 = vcombine.high %v10002_v47, %v6224_v29  ;;  %v4781_v0 = vpop.f32.mrf.mxu1  ;;  %v6207_v12 = vpop.f32.mrf.mxu0 }
 0x798   : > { %v10024_v23 = vrot.slane %v4910_v7, %v10018_v19  ;;  %v10027_v22 = vrot.slane %v4911_v38, %v10018_v19  ;;  %v10037_v13 = vrot.slane %v4927_v46, %v10018_v19  ;;  %v4843_v44 = vcombine.high %v4818_v6, %v4834_v4 }
 0x799   : > { %v10043_v62 = vrot.slane %v4926_v57, %v10018_v19  ;;  %v4842_v2 = vcombine.low %v4818_v6, %v4834_v4  ;;  %v4859_v54 = vcombine.high %v4825_v41, %v4841_v45  ;;  %v5038_v5 = vrot.slane %v5030_v61, %v10014_v10  ;;  %v6227_v17 = vpop.f32.mrf.mxu1 }
 0x79a   : > { %v4943_v8 = vcombine.high %v10027_v22, %v10922_v24  ;;  %v4942_v11 = vcombine.high %v10024_v23, %v10922_v24  ;;  %v10050_v14 = vrot.slane %v4843_v44, %v10018_v19  ;;  %v4945_v53 = vcombine.high %v10037_v13, %v10922_v24 }
 0x79b   : > { %v10056_v32 = vrot.slane %v4842_v2, %v10018_v19  ;;  %v4858_v37 = vcombine.low %v4825_v41, %v4841_v45  ;;  %v4944_v60 = vcombine.high %v10043_v62, %v10922_v24  ;;  %v5022_v47 = vrot.slane %v5014_v39, %v10014_v10 }
 0x79c   : > { %5375 = vrot.lane.b32.xlu1 %v4943_v8, %s6597_s17  ;;  %5371 = vrot.lane.b32.xlu0 %v4942_v11, %s6597_s17  ;;  %v5045_v3 = vrot.slane %v5031_v26, %v10014_v10  ;;  %v10066_v34 = vrot.slane %v4859_v54, %v10018_v19  ;;  %v4962_v40 = vcombine.low %v10004_v56, %v4781_v0 }
 0x79d   : > { %v5047_v50 = vcombine.high %v5022_v47, %v5038_v5  ;;  %v4875_v48 = vcombine.high %v10050_v14, %v10922_v24  ;;  %v10072_v49 = vrot.slane %v4858_v37, %v10018_v19  ;;  %v5046_v27 = vcombine.low %v5022_v47, %v5038_v5  ;;  %v4791_v5 = vpop.f32.mrf.mxu1 }
 0x79e   : > { %v4874_v15 = vcombine.high %v10056_v32, %v10922_v24  ;;  %v5029_v51 = vrot.slane %v5015_v9, %v10014_v10  ;;  %v4963_v30 = vcombine.high %v10004_v56, %v4781_v0  ;;  %v4970_v38 = vrot.slane %v4962_v40, %v10014_v10  ;;  %v4686_v0 = vpop.f32.mrf.mxu0 }
 0x79f   : > { %v10082_v52 = vrot.slane %v5047_v50, %v10018_v19  ;;  %v4877_v20 = vcombine.high %v10066_v34, %v10922_v24  ;;  %v10088_v33 = vrot.slane %v5046_v27, %v10018_v19  ;;  %v4876_v58 = vcombine.high %v10072_v49, %v10922_v24 }
 0x7a0   : > { %5383 = vrot.lane.b32.xlu1 %v4945_v53, %s6597_s17  ;;  %5379 = vrot.lane.b32.xlu0 %v4944_v60, %s6597_s17  ;;  %v5063_v7 = vcombine.high %v5029_v51, %v5045_v3  ;;  %v5062_v63 = vcombine.low %v5029_v51, %v5045_v3  ;;  %v4947_v56 = vcombine.high %v9992_v31, %v4676_v42 }
 0x7a1   : > { %v4954_v46 = vrot.slane %v4946_v59, %v10014_v10  ;;  %v4977_v4 = vrot.slane %v4963_v30, %v10014_v10  ;;  %v5166_v28 = vcombine.low %v10006_v35, %v6227_v17  ;;  %v5079_v6 = vcombine.high %v10082_v52, %v10922_v24 }
 0x7a2   : > { %v10098_v57 = vrot.slane %v5063_v7, %v10018_v19  ;;  %v10104_v31 = vrot.slane %v5062_v63, %v10018_v19  ;;  %v5078_v11 = vcombine.high %v10088_v33, %v10922_v24  ;;  %v4961_v21 = vrot.slane %v4947_v56, %v10014_v10  ;;  %v6210_v56 = vpop.f32.mrf.mxu0 }
 0x7a3   : > { %v4979_v29 = vcombine.high %v4954_v46, %v4970_v38  ;;  %v4978_v8 = vcombine.low %v4954_v46, %v4970_v38  ;;  %v5150_v45 = vcombine.low %v9994_v25, %v6207_v12  ;;  %v5167_v44 = vcombine.high %v10006_v35, %v6227_v17  ;;  %v6230_v17 = vpop.f32.mrf.mxu1 }
 0x7a4   : > { %5359 = vrot.lane.b32.xlu1 %v4875_v48, %s6597_s17  ;;  %5355 = vrot.lane.b32.xlu0 %v4874_v15, %s6597_s17  ;;  %v4995_v2 = vcombine.high %v4961_v21, %v4977_v4  ;;  %v5174_v41 = vrot.slane %v5166_v28, %v10014_v10  ;;  %v5081_v39 = vcombine.high %v10098_v57, %v10922_v24 }
 0x7a5   : > { %v10114_v61 = vrot.slane %v4979_v29, %v10018_v19  ;;  %v10120_v26 = vrot.slane %v4978_v8, %v10018_v19  ;;  %v4994_v54 = vcombine.low %v4961_v21, %v4977_v4  ;;  %v5080_v53 = vcombine.high %v10104_v31, %v10922_v24 }
 0x7a6   : > { %v5151_v35 = vcombine.high %v9994_v25, %v6207_v12  ;;  %v5158_v37 = vrot.slane %v5150_v45, %v10014_v10  ;;  %v5181_v60 = vrot.slane %v5167_v44, %v10014_v10  ;;  %v10130_v9 = vrot.slane %v4995_v2, %v10018_v19  ;;  %v4696_v44 = vpop.f32.mrf.mxu0 }
 0x7a7   : > { %v5098_v42 = vcombine.low %v10008_v36, %v4791_v5  ;;  %v5011_v3 = vcombine.high %v10114_v61, %v10922_v24  ;;  %v10136_v25 = vrot.slane %v4994_v54, %v10018_v19  ;;  %v5010_v40 = vcombine.high %v10120_v26, %v10922_v24 }
 0x7a8   : > { %5367 = vrot.lane.b32.xlu1 %v4877_v20, %s6597_s17  ;;  %5363 = vrot.lane.b32.xlu0 %v4876_v58, %s6597_s17  ;;  %v5183_v47 = vcombine.high %v5158_v37, %v5174_v41  ;;  %v5182_v50 = vcombine.low %v5158_v37, %v5174_v41  ;;  %v5165_v48 = vrot.slane %v5151_v35, %v10014_v10 }
 0x7a9   : > { %v5082_v27 = vcombine.low %v9996_v18, %v4686_v0  ;;  %v5099_v15 = vcombine.high %v10008_v36, %v4791_v5  ;;  %v5106_v30 = vrot.slane %v5098_v42, %v10014_v10  ;;  %v5013_v7 = vcombine.high %v10130_v9, %v10922_v24 }
 0x7aa   : > { %v10146_v51 = vrot.slane %v5183_v47, %v10018_v19  ;;  %v5199_v59 = vcombine.high %v5165_v48, %v5181_v60  ;;  %v5083_v38 = vcombine.high %v9996_v18, %v4686_v0  ;;  %v10153_v20 = vrot.slane %v5182_v50, %v10018_v19 }
 0x7ab   : > { %v5198_v63 = vcombine.low %v5165_v48, %v5181_v60  ;;  %v5012_v36 = vcombine.high %v10136_v25, %v10922_v24  ;;  %v5090_v58 = vrot.slane %v5082_v27, %v10014_v10  ;;  %v5113_v46 = vrot.slane %v5099_v15, %v10014_v10 }
 0x7ac   : > { %5407 = vrot.lane.b32.xlu1 %v5079_v6, %s6597_s17  ;;  %5403 = vrot.lane.b32.xlu0 %v5078_v11, %s6597_s17  ;;  %v10162_v12 = vrot.slane %v5199_v59, %v10018_v19  ;;  %v5302_v4 = vcombine.low %v10010_v16, %v6230_v17  ;;  %v5215_v29 = vcombine.high %v10146_v51, %v10922_v24  ;;  %v4801_v11 = vpop.f32.mrf.mxu1 }
 0x7ad   : > { %v5115_v18 = vcombine.high %v5090_v58, %v5106_v30  ;;  %v5097_v28 = vrot.slane %v5083_v38, %v10014_v10  ;;  %v10169_v6 = vrot.slane %v5198_v63, %v10018_v19  ;;  %v5114_v8 = vcombine.low %v5090_v58, %v5106_v30 }
 0x7ae   : > { %v5214_v21 = vcombine.high %v10153_v20, %v10922_v24  ;;  %v5286_v45 = vcombine.low %v9998_v1, %v6210_v56  ;;  %v5234_v54 = vcombine.low %v10012_v55, %v4801_v11  ;;  %v5217_v5 = vcombine.high %v10162_v12, %v10922_v24 }
 0x7af   : > { %v5131_v2 = vcombine.high %v5097_v28, %v5113_v46  ;;  %v10177_v41 = vrot.slane %v5115_v18, %v10018_v19  ;;  %v5130_v35 = vcombine.low %v5097_v28, %v5113_v46  ;;  %v5216_v37 = vcombine.high %v10169_v6, %v10922_v24 }
 0x7b0   : > { %5415 = vrot.lane.b32.xlu1 %v5081_v39, %s6597_s17  ;;  %5411 = vrot.lane.b32.xlu0 %v5080_v53, %s6597_s17  ;;  %v5310_v39 = vrot.slane %v5302_v4, %v10014_v10  ;;  %v10184_v53 = vrot.slane %v5114_v8, %v10018_v19  ;;  %v5294_v0 = vrot.slane %v5286_v45, %v10014_v10 }
 0x7b1   : > { %v5218_v60 = vcombine.low %v10000_v43, %v4696_v44  ;;  %v5235_v47 = vcombine.high %v10012_v55, %v4801_v11  ;;  %v10194_v42 = vrot.slane %v5131_v2, %v10018_v19  ;;  %v5242_v50 = vrot.slane %v5234_v54, %v10014_v10 }
 0x7b2   : > { %v10200_v48 = vrot.slane %v5130_v35, %v10018_v19  ;;  %v5318_v27 = vcombine.low %v5294_v0, %v5310_v39  ;;  %v5146_v15 = vcombine.high %v10184_v53, %v10922_v24  ;;  %v5219_v55 = vcombine.high %v10000_v43, %v4696_v44 }
 0x7b3   : > { %v5226_v59 = vrot.slane %v5218_v60, %v10014_v10  ;;  %v5303_v30 = vcombine.high %v10010_v16, %v6230_v17  ;;  %v5249_v38 = vrot.slane %v5235_v47, %v10014_v10  ;;  %v5287_v16 = vcombine.high %v9998_v1, %v6210_v56 }
 0x7b4   : > { %5391 = vrot.lane.b32.xlu1 %v5011_v3, %s6597_s17  ;;  %5387 = vrot.lane.b32.xlu0 %v5010_v40, %s6597_s17  ;;  %v5319_v3 = vcombine.high %v5294_v0, %v5310_v39  ;;  %v5147_v40 = vcombine.high %v10177_v41, %v10922_v24  ;;  %v10216_v58 = vrot.slane %v5318_v27, %v10018_v19 }
 0x7b5   : > { %v5251_v63 = vcombine.high %v5226_v59, %v5242_v50  ;;  %v5250_v43 = vcombine.low %v5226_v59, %v5242_v50  ;;  %v5148_v46 = vcombine.high %v10200_v48, %v10922_v24  ;;  %v5233_v17 = vrot.slane %v5219_v55, %v10014_v10 }
 0x7b6   : > { %v5317_v18 = vrot.slane %v5303_v30, %v10014_v10  ;;  %v5350_v1 = vcombine.high %v10216_v58, %v10922_v24  ;;  %v5301_v56 = vrot.slane %v5287_v16, %v10014_v10 }
 0x7b7   : > { %v10226_v4 = vrot.slane %v5251_v63, %v10018_v19  ;;  %v10231_v8 = vrot.slane %v5250_v43, %v10018_v19  ;;  %v5266_v11 = vcombine.low %v5233_v17, %v5249_v38 }
 0x7b8   : > { %5399 = vrot.lane.b32.xlu1 %v5013_v7, %s6597_s17  ;;  %5395 = vrot.lane.b32.xlu0 %v5012_v36, %s6597_s17  ;;  %v10210_v7 = vrot.slane %v5319_v3, %v10018_v19  ;;  %v5149_v36 = vcombine.high %v10194_v42, %v10922_v24  ;;  %v5334_v2 = vcombine.low %v5301_v56, %v5317_v18 }
 0x7b9   : > { %v5283_v44 = vcombine.high %v10226_v4, %v10922_v24  ;;  %v10244_v39 = vrot.slane %v5266_v11, %v10018_v19  ;;  %v5282_v54 = vcombine.high %v10231_v8, %v10922_v24 }
 0x7ba   : > { %v5351_v28 = vcombine.high %v10210_v7, %v10922_v24  ;;  %v10256_v35 = vrot.slane %v5334_v2, %v10018_v19 }
 0x7bc   : > { %5439 = vrot.lane.b32.xlu1 %v5215_v29, %s6597_s17  ;;  %5435 = vrot.lane.b32.xlu0 %v5214_v21, %s6597_s17  ;;  %v5267_v29 = vcombine.high %v5233_v17, %v5249_v38  ;;  %v5335_v21 = vcombine.high %v5301_v56, %v5317_v18  ;;  %v5352_v60 = vcombine.high %v10256_v35, %v10922_v24 }
 0x7be   : > { %v10239_v45 = vrot.slane %v5267_v29, %v10018_v19  ;;  %v10251_v10 = vrot.slane %v5335_v21, %v10018_v19 }
 0x7c0   : > { %5447 = vrot.lane.b32.xlu1 %v5217_v5, %s6597_s17  ;;  %5443 = vrot.lane.b32.xlu0 %v5216_v37, %s6597_s17  ;;  %v5285_v5 = vcombine.high %v10239_v45, %v10922_v24  ;;  %v5284_v37 = vcombine.high %v10244_v39, %v10922_v24  ;;  %v5353_v0 = vcombine.high %v10251_v10, %v10922_v24 }
 0x7c4   : > { %5423 = vrot.lane.b32.xlu1 %v5147_v40, %s6597_s17  ;;  %5419 = vrot.lane.b32.xlu0 %v5146_v15, %s6597_s17 }
 0x7c8   : > { %5431 = vrot.lane.b32.xlu1 %v5149_v36, %s6597_s17  ;;  %5427 = vrot.lane.b32.xlu0 %v5148_v46, %s6597_s17 }
 0x7cc   : > { %5471 = vrot.lane.b32.xlu1 %v5351_v28, %s6597_s17  ;;  %5467 = vrot.lane.b32.xlu0 %v5350_v1, %s6597_s17 }
 0x7d0   : > { %5455 = vrot.lane.b32.xlu1 %v5283_v44, %s6597_s17  ;;  %5451 = vrot.lane.b32.xlu0 %v5282_v54, %s6597_s17 }
 0x7d4   : > { %5463 = vrot.lane.b32.xlu1 %v5285_v5, %s6597_s17  ;;  %5459 = vrot.lane.b32.xlu0 %v5284_v37, %s6597_s17 }
 0x7d8   : > { %5479 = vrot.lane.b32.xlu1 %v5353_v0, %s6597_s17  ;;  %5475 = vrot.lane.b32.xlu0 %v5352_v60, %s6597_s17 }
 0x80e   : > { %v5376_v19 = vpop.permute.xlu1 %5375  ;;  %v5372_v3 = vpop.permute.xlu0 %5371 }
 0x80f   : > { %v5488_v47 = vsel %vm5482_vm5, %v10027_v22, %v5376_v19  ;;  %v5487_v24 = vsel %vm5482_vm5, %v10024_v23, %v5372_v3 }
 0x810   : > { %v5549_v50 = vcombine.low %v5487_v24, %v5488_v47 }
 0x812   : > { %5581 = vst [vmem:[%s10274_s24 + $0x10] sm:$0xff] %v5549_v50  ;;  %v5384_v40 = vpop.permute.xlu1 %5383  ;;  %v5380_v15 = vpop.permute.xlu0 %5379 }
 0x813   : > { %v5490_v27 = vsel %vm5482_vm5, %v10037_v13, %v5384_v40  ;;  %v5489_v22 = vsel %vm5482_vm5, %v10043_v62, %v5380_v15 }
 0x814   : > { %v5550_v55 = vcombine.low %v5489_v22, %v5490_v27 }
 0x816   : > { %v5360_v59 = vpop.permute.xlu1 %5359  ;;  %5582 = vst [vmem:[%s10274_s24 + $0x18] sm:$0xff] %v5550_v55  ;;  %v5356_v38 = vpop.permute.xlu0 %5355 }
 0x817   : > { %v5484_v30 = vsel %vm5482_vm5, %v10050_v14, %v5360_v59  ;;  %v5483_v23 = vsel %vm5482_vm5, %v10056_v32, %v5356_v38 }
 0x818   : > { %v5547_v63 = vcombine.low %v5483_v23, %v5484_v30 }
 0x81a   : > { %v5368_v36 = vpop.permute.xlu1 %5367  ;;  %5579 = vst [vmem:[%s10274_s24] sm:$0xff] %v5547_v63  ;;  %v5364_v43 = vpop.permute.xlu0 %5363 }
 0x81b   : > { %v5486_v13 = vsel %vm5482_vm5, %v10066_v34, %v5368_v36  ;;  %v5485_v62 = vsel %vm5482_vm5, %v10072_v49, %v5364_v43 }
 0x81c   : > { %v5548_v46 = vcombine.low %v5485_v62, %v5486_v13 }
 0x81e   : > { %v5408_v16 = vpop.permute.xlu1 %5407  ;;  %5580 = vst [vmem:[%s10274_s24 + $0x8] sm:$0xff] %v5548_v46  ;;  %v5404_v17 = vpop.permute.xlu0 %5403 }
 0x81f   : > { %v5496_v14 = vsel %vm5482_vm5, %v10082_v52, %v5408_v16  ;;  %v5495_v32 = vsel %vm5482_vm5, %v10088_v33, %v5404_v17 }
 0x820   : > { %v5553_v18 = vcombine.low %v5495_v32, %v5496_v14 }
 0x822   : > { %v5416_v29 = vpop.permute.xlu1 %5415  ;;  %5585 = vst [vmem:[%s10274_s24 + $0x30] sm:$0xff] %v5553_v18  ;;  %v5412_v28 = vpop.permute.xlu0 %5411 }
 0x823   : > { %v5498_v34 = vsel %vm5482_vm5, %v10098_v57, %v5416_v29  ;;  %v5497_v49 = vsel %vm5482_vm5, %v10104_v31, %v5412_v28 }
 0x824   : > { %v5554_v11 = vcombine.low %v5497_v49, %v5498_v34 }
 0x826   : > { %v5392_v1 = vpop.permute.xlu1 %5391  ;;  %5586 = vst [vmem:[%s10274_s24 + $0x38] sm:$0xff] %v5554_v11  ;;  %v5388_v56 = vpop.permute.xlu0 %5387 }
 0x827   : > { %v5492_v52 = vsel %vm5482_vm5, %v10114_v61, %v5392_v1  ;;  %v5491_v33 = vsel %vm5482_vm5, %v10120_v26, %v5388_v56 }
 0x828   : > { %v5551_v21 = vcombine.low %v5491_v33, %v5492_v52 }
 0x82a   : > { %v5400_v44 = vpop.permute.xlu1 %5399  ;;  %5583 = vst [vmem:[%s10274_s24 + $0x20] sm:$0xff] %v5551_v21  ;;  %v5396_v2 = vpop.permute.xlu0 %5395 }
 0x82b   : > { %v5494_v57 = vsel %vm5482_vm5, %v10130_v9, %v5400_v44  ;;  %v5493_v31 = vsel %vm5482_vm5, %v10136_v25, %v5396_v2 }
 0x82c   : > { %v5552_v54 = vcombine.low %v5493_v31, %v5494_v57 }
 0x82e   : > { %v5440_v5 = vpop.permute.xlu1 %5439  ;;  %5584 = vst [vmem:[%s10274_s24 + $0x28] sm:$0xff] %v5552_v54  ;;  %v5436_v37 = vpop.permute.xlu0 %5435 }
 0x82f   : > { %v5504_v61 = vsel %vm5482_vm5, %v10146_v51, %v5440_v5  ;;  %v5503_v26 = vsel %vm5482_vm5, %v10153_v20, %v5436_v37 }
 0x830   : > { %v5557_v0 = vcombine.low %v5503_v26, %v5504_v61 }
 0x832   : > { %v5448_v60 = vpop.permute.xlu1 %5447  ;;  %5589 = vst [vmem:[%s10274_s24 + $0x50] sm:$0xff] %v5557_v0  ;;  %v5444_v19 = vpop.permute.xlu0 %5443 }
 0x833   : > { %v5506_v9 = vsel %vm5482_vm5, %v10162_v12, %v5448_v60  ;;  %v5505_v25 = vsel %vm5482_vm5, %v10169_v6, %v5444_v19 }
 0x834   : > { %v5558_v47 = vcombine.low %v5505_v25, %v5506_v9 }
 0x836   : > { %v5424_v3 = vpop.permute.xlu1 %5423  ;;  %5590 = vst [vmem:[%s10274_s24 + $0x58] sm:$0xff] %v5558_v47  ;;  %v5420_v24 = vpop.permute.xlu0 %5419 }
 0x837   : > { %v5500_v51 = vsel %vm5482_vm5, %v10177_v41, %v5424_v3  ;;  %v5499_v20 = vsel %vm5482_vm5, %v10184_v53, %v5420_v24 }
 0x838   : > { %v5555_v50 = vcombine.low %v5499_v20, %v5500_v51 }
 0x83a   : > { %v5432_v40 = vpop.permute.xlu1 %5431  ;;  %5587 = vst [vmem:[%s10274_s24 + $0x40] sm:$0xff] %v5555_v50  ;;  %v5428_v27 = vpop.permute.xlu0 %5427 }
 0x83b   : > { %v5502_v12 = vsel %vm5482_vm5, %v10194_v42, %v5432_v40  ;;  %v5501_v6 = vsel %vm5482_vm5, %v10200_v48, %v5428_v27 }
 0x83c   : > { %v5556_v15 = vcombine.low %v5501_v6, %v5502_v12 }
 0x83e   : > { %v5472_v22 = vpop.permute.xlu1 %5471  ;;  %5588 = vst [vmem:[%s10274_s24 + $0x48] sm:$0xff] %v5556_v15  ;;  %v5468_v55 = vpop.permute.xlu0 %5467 }
 0x83f   : > { %v5512_v41 = vsel %vm5482_vm5, %v10210_v7, %v5472_v22  ;;  %v5511_v53 = vsel %vm5482_vm5, %v10216_v58, %v5468_v55 }
 0x840   : > { %v5561_v59 = vcombine.low %v5511_v53, %v5512_v41 }
 0x842   : > { %v5456_v30 = vpop.permute.xlu1 %5455  ;;  %5593 = vst [vmem:[%s10274_s24 + $0x70] sm:$0xff] %v5561_v59  ;;  %v5452_v38 = vpop.permute.xlu0 %5451 }
 0x843   : > { %v5508_v42 = vsel %vm5482_vm5, %v10226_v4, %v5456_v30  ;;  %v5507_v48 = vsel %vm5482_vm5, %v10231_v8, %v5452_v38 }
 0x844   : > { %v5559_v23 = vcombine.low %v5507_v48, %v5508_v42 }
 0x846   : > { %v5464_v63 = vpop.permute.xlu1 %5463  ;;  %5591 = vst [vmem:[%s10274_s24 + $0x60] sm:$0xff] %v5559_v23  ;;  %v5460_v36 = vpop.permute.xlu0 %5459 }
 0x847   : > { %v5510_v7 = vsel %vm5482_vm5, %v10239_v45, %v5464_v63  ;;  %v5509_v58 = vsel %vm5482_vm5, %v10244_v39, %v5460_v36 }
 0x848   : > { %v5560_v13 = vcombine.low %v5509_v58, %v5510_v7 }
 0x84a   : > { %v5480_v43 = vpop.permute.xlu1 %5479  ;;  %5592 = vst [vmem:[%s10274_s24 + $0x68] sm:$0xff] %v5560_v13  ;;  %v5476_v62 = vpop.permute.xlu0 %5475 }
 0x84b   : > { %v5514_v4 = vsel %vm5482_vm5, %v10251_v10, %v5480_v43  ;;  %v5513_v8 = vsel %vm5482_vm5, %v10256_v35, %v5476_v62 }
 0x84c   : > { %v5562_v46 = vcombine.low %v5513_v8, %v5514_v4 }
 0x84e   : > { %5594 = vst [vmem:[%s10274_s24 + $0x78] sm:$0xff] %v5562_v46 }
 0x84f PF: > { %s19_s21 = sadd.s32 1, %s6583_s21  }
 0x850   : > { %p16_p2 = scmp.ge.s32.totalorder %s19_s21, 4  }
 0x852   :  { %18 = sbr.rel (!%p16_p2) target bundleno = 3 (0x3), region = 95 }
 0x857   :  { %5616 = vsyncpa [#allocation4], 1 }
 0x858   :  { %5618 = vsyncpa [#allocation4 + $0x1], 1 }
 0x859   :  { %5619 = vsyncpa [#allocation7], 1 }
 0x85a   :  { %5620 = vsyncpa [#allocation5], 1 }
 0x85b   :  { %5622 = vsyncpa [#allocation5 + $0x1], 1 }

</bundles_post_ra>
